<compile_context>
chip_gen: v7x
topology: tpu7x:2x2x1
jax: 0.10.0
libtpu: 0.0.40
codegen_flags: <defaults>
</compile_context>

<pallas_src>
import numpy as np

import jax
import jax.numpy as jnp
from jax import lax
from jax.experimental import pallas as pl
from jax.experimental.pallas import tpu as pltpu

LEAKY_SLOPE = 0.2
BN_EPS = 1e-5           # PyTorch BatchNorm2d default
K = 4                   # conv kernel size (all layers)
NTAPS = K * K


# ---------------------------------------------------------------------------
# Small helpers
# ---------------------------------------------------------------------------
def _conv_out(n, k, s, p):
    return (n + 2 * p - k) // s + 1


def _round_up(n, m):
    return ((n + m - 1) // m) * m


def _leaky(y):
    return jnp.maximum(y, LEAKY_SLOPE * y)


def _batchnorm(y, gamma, beta, n_real):
    """Training-mode BatchNorm2d (biased variance over all real (N,H,W) rows).

    When the row dimension carries padding rows (n_real < rows), the pad rows
    are excluded from the statistics via an iota mask; their outputs are
    garbage-but-finite and are never read downstream.
    """
    rows = y.shape[0]
    inv_n = 1.0 / float(n_real)
    if n_real == rows:
        mean = jnp.sum(y, axis=0, keepdims=True) * inv_n
        cen = y - mean
        var = jnp.sum(cen * cen, axis=0, keepdims=True) * inv_n
    else:
        ridx = lax.broadcasted_iota(jnp.int32, (rows, 1), 0)
        mask = (ridx < n_real).astype(y.dtype)
        mean = jnp.sum(y * mask, axis=0, keepdims=True) * inv_n
        cen = y - mean
        var = jnp.sum(cen * cen * mask, axis=0, keepdims=True) * inv_n
    return cen * lax.rsqrt(var + BN_EPS) * gamma + beta


def _build_stacked_selector(batch, h, w, oh, ow, stride, pad, rows_in, rows_out_pad):
    """Stacked 0/1 gather matrix, shape (NTAPS*rows_out_pad, rows_in).

    Row t*rows_out_pad + (b*oh + r)*ow + c is one-hot on input row
    (b*h + (stride*r+i-pad))*w + (stride*c+j-pad) for tap t=i*K+j, or all-zero
    when the tap falls in the conv zero-padding / in the row-count padding.
    Stored as bf16 (0/1 exact) to halve the constant DMA; up-cast in-kernel.
    """
    sel = np.zeros((NTAPS * rows_out_pad, rows_in), np.float32)
    for i in range(K):
        for j in range(K):
            t = i * K + j
            for b in range(batch):
                for r in range(oh):
                    hh = stride * r + i - pad
                    if not 0 <= hh < h:
                        continue
                    for c in range(ow):
                        ww = stride * c + j - pad
                        if not 0 <= ww < w:
                            continue
                        out_row = t * rows_out_pad + (b * oh + r) * ow + c
                        in_row = (b * h + hh) * w + ww
                        sel[out_row, in_row] = 1.0
    return jnp.asarray(sel, dtype=jnp.bfloat16)


# ---------------------------------------------------------------------------
# Fused network builder
# ---------------------------------------------------------------------------
def make_discriminator(params, batch, height=28, width=28):
    (wt1, b1, _, _), (wt2, b2, g2, be2), (wt3, b3, g3, be3), (wt4, b4, _, _) = params
    cin, c1 = wt1.shape[2], wt1.shape[3]
    c2, c3 = wt2.shape[3], wt3.shape[3]

    h1, w1 = _conv_out(height, K, 2, 1), _conv_out(width, K, 2, 1)   # 14, 14
    h2, w2 = _conv_out(h1, K, 2, 1), _conv_out(w1, K, 2, 1)          # 7, 7
    h3, w3 = _conv_out(h2, K, 1, 0), _conv_out(w2, K, 1, 0)          # 4, 4
    h4, w4 = _conv_out(h3, K, 1, 0), _conv_out(w3, K, 1, 0)          # 1, 1
    assert (h4, w4) == (1, 1), "last conv must reduce spatial dims to 1x1"

    m1 = batch * h1 * w1                 # 392   rows of a1
    m2 = batch * h2 * w2                 # 98    real rows of a2
    m2p = _round_up(m2, 8)               # 104   padded (tile-aligned) rows of a2
    m3 = batch * h3 * w3                 # 32    real rows of a3
    m3p = _round_up(m3, 8)               # 32
    hw3 = h3 * w3                        # 16 rows per batch element in a3

    # Stacked gather selectors (built once at init, bf16).
    s2 = _build_stacked_selector(batch, h1, w1, h2, w2, 2, 1, m1, m2p)
    s3 = _build_stacked_selector(batch, h2, w2, h3, w3, 1, 0, m2p, m3p)

    # Last-conv weight replicated per batch element (zero rows if m3 padded).
    w4flat = jnp.asarray(wt4[..., 0].reshape(hw3, c3), jnp.float32)
    w4t = jnp.tile(w4flat, (batch, 1))
    if m3p > m3:
        w4t = jnp.pad(w4t, ((0, m3p - m3), (0, 0)))

    const_args = (
        s2, s3,
        jnp.asarray(wt1.reshape(NTAPS * cin, c1), jnp.float32),
        jnp.asarray(b1.reshape(1, c1), jnp.float32),
        jnp.asarray(wt2.reshape(NTAPS * wt2.shape[2], c2), jnp.float32),
        jnp.asarray(b2.reshape(1, c2), jnp.float32),
        jnp.asarray(g2.reshape(1, c2), jnp.float32),
        jnp.asarray(be2.reshape(1, c2), jnp.float32),
        jnp.asarray(wt3.reshape(NTAPS * wt3.shape[2], c3), jnp.float32),
        jnp.asarray(b3.reshape(1, c3), jnp.float32),
        jnp.asarray(g3.reshape(1, c3), jnp.float32),
        jnp.asarray(be3.reshape(1, c3), jnp.float32),
        w4t,
        jnp.asarray(b4.reshape(1, 1), jnp.float32),     # -> SMEM
    )

    def kernel(p1_ref, s2_ref, s3_ref,
               w1_ref, b1_ref,
               w2_ref, b2_ref, gam2_ref, bet2_ref,
               w3_ref, b3_ref, gam3_ref, bet3_ref,
               w4_ref, b4_ref,
               out_ref):
        f32 = jnp.float32

        # ---- Layer 1: conv (im2col patches precomputed outside) + LeakyReLU.
        a1 = _leaky(jnp.dot(p1_ref[...], w1_ref[...],
                            preferred_element_type=f32) + b1_ref[...])      # (392, 32)

        # ---- Layer 2: one gather GEMM + regroup (aligned slices + lane concat)
        #      + one weight GEMM + BatchNorm (pad rows masked) + LeakyReLU.
        gat2 = jnp.dot(s2_ref[...].astype(f32), a1,
                       preferred_element_type=f32)                          # (16*104, 32)
        patch2 = jnp.concatenate(
            [gat2[t * m2p:(t + 1) * m2p, :] for t in range(NTAPS)], axis=1)  # (104, 512)
        y2 = jnp.dot(patch2, w2_ref[...],
                     preferred_element_type=f32) + b2_ref[...]               # (104, 64)
        a2 = _leaky(_batchnorm(y2, gam2_ref[...], bet2_ref[...], n_real=m2))

        # ---- Layer 3: same structure (no spatial padding, all rows real).
        gat3 = jnp.dot(s3_ref[...].astype(f32), a2,
                       preferred_element_type=f32)                          # (16*32, 64)
        patch3 = jnp.concatenate(
            [gat3[t * m3p:(t + 1) * m3p, :] for t in range(NTAPS)], axis=1)  # (32, 1024)
        y3 = jnp.dot(patch3, w3_ref[...],
                     preferred_element_type=f32) + b3_ref[...]               # (32, 128)
        a3 = _leaky(_batchnorm(y3, gam3_ref[...], bet3_ref[...], n_real=m3))

        # ---- Layer 4: 4x4x128 -> scalar per batch: VPU multiply + reductions
        #      over tile-aligned per-batch row blocks (no MXU, no rsel constant).
        prod = a3 * w4_ref[...]                                              # (32, 128)
        parts = [jnp.sum(prod[b * hw3:(b + 1) * hw3, :], keepdims=True)
                 for b in range(batch)]                                      # B x (1, 1)
        logit = jnp.concatenate(parts, axis=0) + b4_ref[0, 0]                # (B, 1)
        out_ref[...] = jax.nn.sigmoid(logit)

    n_inputs = 1 + len(const_args)          # p1 + constants
    n_vmem_in = n_inputs - 1                # everything except the SMEM scalar b4

    fused = pl.pallas_call(
        kernel,
        out_shape=jax.ShapeDtypeStruct((batch, 1), jnp.float32),
        in_specs=[pl.BlockSpec(memory_space=pltpu.MemorySpace.VMEM)] * n_vmem_in
                 + [pl.BlockSpec(memory_space=pltpu.MemorySpace.SMEM)],
        out_specs=pl.BlockSpec(memory_space=pltpu.MemorySpace.VMEM),
        compiler_params=pltpu.CompilerParams(vmem_limit_bytes=32 * 1024 * 1024),
        cost_estimate=pl.CostEstimate(flops=65_000_000, transcendentals=256,
                                      bytes_accessed=4_000_000),
    )

    @jax.jit
    def forward(x_nchw):
        # NCHW -> NHWC, pad by 1, layer-1 im2col (fuses into one XLA op).
        x = jnp.transpose(x_nchw.astype(jnp.float32), (0, 2, 3, 1))
        xp = jnp.pad(x, ((0, 0), (1, 1), (1, 1), (0, 0)))
        cols = []
        for i in range(K):
            for j in range(K):
                cols.append(xp[:, i:i + 2 * h1:2, j:j + 2 * w1:2, :])
        p1 = jnp.stack(cols, axis=3).reshape(m1, NTAPS * cin)
        out = fused(p1, *const_args)
        return out.reshape(batch, 1, 1, 1)

    return forward


# ---------------------------------------------------------------------------
# Parameters (deterministic synthetic init, PyTorch-style uniform bounds)
# ---------------------------------------------------------------------------
def init_params(key, image_channels=1, features=32):
    specs = [
        (K, K, image_channels, features),
        (K, K, features, features * 2),
        (K, K, features * 2, features * 4),
        (K, K, features * 4, 1),
    ]
    params = []
    for s in specs:
        key, kw_key, kb_key = jax.random.split(key, 3)
        fan_in = s[0] * s[1] * s[2]
        bound = 1.0 / float(fan_in) ** 0.5
        w = jax.random.uniform(kw_key, s, jnp.float32, -bound, bound)
        b = jax.random.uniform(kb_key, (s[3],), jnp.float32, -bound, bound)
        gamma = jnp.ones((s[3],), jnp.float32)   # BatchNorm default init
        beta = jnp.zeros((s[3],), jnp.float32)
        params.append((w, b, gamma, beta))
    return params


# ---------------------------------------------------------------------------
# Pure-JAX reference (for correctness check)
# ---------------------------------------------------------------------------
LAYER_CFG = [
    (2, 1, False, "leaky"),
    (2, 1, True, "leaky"),
    (1, 0, True, "leaky"),
    (1, 0, False, "sigmoid"),
]


def reference_forward(x_nchw, params):
    x = jnp.transpose(x_nchw, (0, 2, 3, 1)).astype(jnp.float32)
    for (w, b, gamma, beta), (stride, pad, use_bn, act) in zip(params, LAYER_CFG):
        y = lax.conv_general_dilated(
            x, w, (stride, stride), [(pad, pad), (pad, pad)],
            dimension_numbers=("NHWC", "HWIO", "NHWC"),
        )
        y = y + b
        if use_bn:
            mean = jnp.mean(y, axis=(0, 1, 2), keepdims=True)
            var = jnp.mean((y - mean) ** 2, axis=(0, 1, 2), keepdims=True)
            y = (y - mean) / jnp.sqrt(var + BN_EPS) * gamma + beta
        y = jnp.where(y > 0, y, LEAKY_SLOPE * y) if act == "leaky" else jax.nn.sigmoid(y)
        x = y
    return jnp.transpose(x, (0, 3, 1, 2))


if __name__ == "__main__":
    key = jax.random.PRNGKey(0)
    key, xkey = jax.random.split(key)

    # MNIST-like input: 28x28 -> 14 -> 7 -> 4 -> 1 (final output (B, 1, 1, 1))
    B, C, H, W = 2, 1, 28, 28
    x = jax.random.normal(xkey, (B, C, H, W), jnp.float32)

    params = init_params(key, image_channels=C, features=32)

    forward = make_discriminator(params, batch=B, height=H, width=W)
    out = jax.block_until_ready(forward(x))

    ref = jax.block_until_ready(reference_forward(x, params))

    assert out.shape == (B, 1, 1, 1), out.shape
    max_err = float(jnp.max(jnp.abs(out - ref)))
    assert jnp.allclose(out, ref, atol=1e-4, rtol=1e-3), f"mismatch: max abs err {max_err}"
    print("KERNEL_OK")
</pallas_src>

<mosaic_0001>
module attributes {stable_mosaic.version = 11 : i64} {
  func.func @kernel(%arg0: memref<392x16xf32, #tpu.memory_space<vmem>>, %arg1: memref<1664x392xbf16, #tpu.memory_space<vmem>>, %arg2: memref<512x104xbf16, #tpu.memory_space<vmem>>, %arg3: memref<16x32xf32, #tpu.memory_space<vmem>>, %arg4: memref<1x32xf32, #tpu.memory_space<vmem>>, %arg5: memref<512x64xf32, #tpu.memory_space<vmem>>, %arg6: memref<1x64xf32, #tpu.memory_space<vmem>>, %arg7: memref<1x64xf32, #tpu.memory_space<vmem>>, %arg8: memref<1x64xf32, #tpu.memory_space<vmem>>, %arg9: memref<1024x128xf32, #tpu.memory_space<vmem>>, %arg10: memref<1x128xf32, #tpu.memory_space<vmem>>, %arg11: memref<1x128xf32, #tpu.memory_space<vmem>>, %arg12: memref<1x128xf32, #tpu.memory_space<vmem>>, %arg13: memref<32x128xf32, #tpu.memory_space<vmem>>, %arg14: memref<1x1xf32, #tpu.memory_space<smem>>, %arg15: memref<2x1xf32, #tpu.memory_space<vmem>>) attributes {dimension_semantics = [], scalar_prefetch = 0 : i64, scratch_operands = 0 : i64, tpu.core_type = #tpu.core_type<tc>} {
    %c0 = arith.constant 0 : index
    %c0_0 = arith.constant 0 : index
    %0 = vector.load %arg0[%c0, %c0_0] : memref<392x16xf32, #tpu.memory_space<vmem>>, vector<392x16xf32>
    %c0_1 = arith.constant 0 : index
    %c0_2 = arith.constant 0 : index
    %1 = vector.load %arg3[%c0_1, %c0_2] : memref<16x32xf32, #tpu.memory_space<vmem>>, vector<16x32xf32>
    %cst = arith.constant dense<0.000000e+00> : vector<392x32xf32>
    %2 = tpu.matmul %0, %1, %cst {dimension_numbers = #tpu.dot_dimension_numbers<[1], [0], [0], [1], [0, 0, 1, 1], [], []>} : vector<392x16xf32>, vector<16x32xf32>, vector<392x32xf32> -> vector<392x32xf32>
    %c0_3 = arith.constant 0 : index
    %c0_4 = arith.constant 0 : index
    %3 = vector.load %arg4[%c0_3, %c0_4] : memref<1x32xf32, #tpu.memory_space<vmem>>, vector<1x32xf32>
    %4 = vector.broadcast %3 : vector<1x32xf32> to vector<392x32xf32>
    %5 = arith.addf %2, %4 : vector<392x32xf32>
    %cst_5 = arith.constant 2.000000e-01 : f32
    %6 = vector.broadcast %cst_5 : f32 to vector<392x32xf32>
    %7 = arith.mulf %6, %5 : vector<392x32xf32>
    %8 = arith.maximumf %5, %7 : vector<392x32xf32>
    %c0_6 = arith.constant 0 : index
    %c0_7 = arith.constant 0 : index
    %9 = vector.load %arg1[%c0_6, %c0_7] : memref<1664x392xbf16, #tpu.memory_space<vmem>>, vector<1664x392xbf16>
    %10 = arith.extf %9 : vector<1664x392xbf16> to vector<1664x392xf32>
    %cst_8 = arith.constant dense<0.000000e+00> : vector<1664x32xf32>
    %11 = tpu.matmul %10, %8, %cst_8 {dimension_numbers = #tpu.dot_dimension_numbers<[1], [0], [0], [1], [0, 0, 1, 1], [], []>} : vector<1664x392xf32>, vector<392x32xf32>, vector<1664x32xf32> -> vector<1664x32xf32>
    %12 = vector.extract_strided_slice %11 {offsets = [0, 0], sizes = [104, 32], strides = [1, 1]} : vector<1664x32xf32> to vector<104x32xf32>
    %13 = vector.extract_strided_slice %11 {offsets = [104, 0], sizes = [104, 32], strides = [1, 1]} : vector<1664x32xf32> to vector<104x32xf32>
    %14 = vector.extract_strided_slice %11 {offsets = [208, 0], sizes = [104, 32], strides = [1, 1]} : vector<1664x32xf32> to vector<104x32xf32>
    %15 = vector.extract_strided_slice %11 {offsets = [312, 0], sizes = [104, 32], strides = [1, 1]} : vector<1664x32xf32> to vector<104x32xf32>
    %16 = vector.extract_strided_slice %11 {offsets = [416, 0], sizes = [104, 32], strides = [1, 1]} : vector<1664x32xf32> to vector<104x32xf32>
    %17 = vector.extract_strided_slice %11 {offsets = [520, 0], sizes = [104, 32], strides = [1, 1]} : vector<1664x32xf32> to vector<104x32xf32>
    %18 = vector.extract_strided_slice %11 {offsets = [624, 0], sizes = [104, 32], strides = [1, 1]} : vector<1664x32xf32> to vector<104x32xf32>
    %19 = vector.extract_strided_slice %11 {offsets = [728, 0], sizes = [104, 32], strides = [1, 1]} : vector<1664x32xf32> to vector<104x32xf32>
    %20 = vector.extract_strided_slice %11 {offsets = [832, 0], sizes = [104, 32], strides = [1, 1]} : vector<1664x32xf32> to vector<104x32xf32>
    %21 = vector.extract_strided_slice %11 {offsets = [936, 0], sizes = [104, 32], strides = [1, 1]} : vector<1664x32xf32> to vector<104x32xf32>
    %22 = vector.extract_strided_slice %11 {offsets = [1040, 0], sizes = [104, 32], strides = [1, 1]} : vector<1664x32xf32> to vector<104x32xf32>
    %23 = vector.extract_strided_slice %11 {offsets = [1144, 0], sizes = [104, 32], strides = [1, 1]} : vector<1664x32xf32> to vector<104x32xf32>
    %24 = vector.extract_strided_slice %11 {offsets = [1248, 0], sizes = [104, 32], strides = [1, 1]} : vector<1664x32xf32> to vector<104x32xf32>
    %25 = vector.extract_strided_slice %11 {offsets = [1352, 0], sizes = [104, 32], strides = [1, 1]} : vector<1664x32xf32> to vector<104x32xf32>
    %26 = vector.extract_strided_slice %11 {offsets = [1456, 0], sizes = [104, 32], strides = [1, 1]} : vector<1664x32xf32> to vector<104x32xf32>
    %27 = vector.extract_strided_slice %11 {offsets = [1560, 0], sizes = [104, 32], strides = [1, 1]} : vector<1664x32xf32> to vector<104x32xf32>
    %28 = tpu.concatenate %12, %13, %14, %15, %16, %17, %18, %19, %20, %21, %22, %23, %24, %25, %26, %27 in 1 : vector<104x32xf32>, vector<104x32xf32>, vector<104x32xf32>, vector<104x32xf32>, vector<104x32xf32>, vector<104x32xf32>, vector<104x32xf32>, vector<104x32xf32>, vector<104x32xf32>, vector<104x32xf32>, vector<104x32xf32>, vector<104x32xf32>, vector<104x32xf32>, vector<104x32xf32>, vector<104x32xf32>, vector<104x32xf32> -> vector<104x512xf32>
    %c0_9 = arith.constant 0 : index
    %c0_10 = arith.constant 0 : index
    %29 = vector.load %arg5[%c0_9, %c0_10] : memref<512x64xf32, #tpu.memory_space<vmem>>, vector<512x64xf32>
    %cst_11 = arith.constant dense<0.000000e+00> : vector<104x64xf32>
    %30 = tpu.matmul %28, %29, %cst_11 {dimension_numbers = #tpu.dot_dimension_numbers<[1], [0], [0], [1], [0, 0, 1, 1], [], []>} : vector<104x512xf32>, vector<512x64xf32>, vector<104x64xf32> -> vector<104x64xf32>
    %c0_12 = arith.constant 0 : index
    %c0_13 = arith.constant 0 : index
    %31 = vector.load %arg6[%c0_12, %c0_13] : memref<1x64xf32, #tpu.memory_space<vmem>>, vector<1x64xf32>
    %32 = vector.broadcast %31 : vector<1x64xf32> to vector<104x64xf32>
    %33 = arith.addf %30, %32 : vector<104x64xf32>
    %c0_14 = arith.constant 0 : index
    %c0_15 = arith.constant 0 : index
    %34 = vector.load %arg7[%c0_14, %c0_15] : memref<1x64xf32, #tpu.memory_space<vmem>>, vector<1x64xf32>
    %c0_16 = arith.constant 0 : index
    %c0_17 = arith.constant 0 : index
    %35 = vector.load %arg8[%c0_16, %c0_17] : memref<1x64xf32, #tpu.memory_space<vmem>>, vector<1x64xf32>
    %36 = tpu.iota {dimensions = array<i32: 0>} : vector<104x1xi32>
    %c98_i32 = arith.constant 98 : i32
    %37 = vector.broadcast %c98_i32 : i32 to vector<104x1xi32>
    %38 = arith.cmpi slt, %36, %37 : vector<104x1xi32>
    %39 = arith.extui %38 : vector<104x1xi1> to vector<104x1xi32>
    %40 = arith.sitofp %39 : vector<104x1xi32> to vector<104x1xf32>
    %41 = vector.broadcast %40 : vector<104x1xf32> to vector<104x64xf32>
    %42 = arith.mulf %33, %41 : vector<104x64xf32>
    %cst_18 = arith.constant dense<0.000000e+00> : vector<64xf32>
    %43 = vector.multi_reduction <add>, %42, %cst_18 [0] : vector<104x64xf32> to vector<64xf32>
    %44 = vector.shape_cast %43 : vector<64xf32> to vector<1x64xf32>
    %cst_19 = arith.constant 0.0102040814 : f32
    %45 = vector.broadcast %cst_19 : f32 to vector<1x64xf32>
    %46 = arith.mulf %44, %45 : vector<1x64xf32>
    %47 = vector.broadcast %46 : vector<1x64xf32> to vector<104x64xf32>
    %48 = arith.subf %33, %47 : vector<104x64xf32>
    %49 = arith.mulf %48, %48 : vector<104x64xf32>
    %50 = vector.broadcast %40 : vector<104x1xf32> to vector<104x64xf32>
    %51 = arith.mulf %49, %50 : vector<104x64xf32>
    %cst_20 = arith.constant dense<0.000000e+00> : vector<64xf32>
    %52 = vector.multi_reduction <add>, %51, %cst_20 [0] : vector<104x64xf32> to vector<64xf32>
    %53 = vector.shape_cast %52 : vector<64xf32> to vector<1x64xf32>
    %cst_21 = arith.constant 0.0102040814 : f32
    %54 = vector.broadcast %cst_21 : f32 to vector<1x64xf32>
    %55 = arith.mulf %53, %54 : vector<1x64xf32>
    %cst_22 = arith.constant 9.99999974E-6 : f32
    %56 = vector.broadcast %cst_22 : f32 to vector<1x64xf32>
    %57 = arith.addf %55, %56 : vector<1x64xf32>
    %58 = math.rsqrt %57 : vector<1x64xf32>
    %59 = vector.broadcast %58 : vector<1x64xf32> to vector<104x64xf32>
    %60 = arith.mulf %48, %59 : vector<104x64xf32>
    %61 = vector.broadcast %34 : vector<1x64xf32> to vector<104x64xf32>
    %62 = arith.mulf %60, %61 : vector<104x64xf32>
    %63 = vector.broadcast %35 : vector<1x64xf32> to vector<104x64xf32>
    %64 = arith.addf %62, %63 : vector<104x64xf32>
    %cst_23 = arith.constant 2.000000e-01 : f32
    %65 = vector.broadcast %cst_23 : f32 to vector<104x64xf32>
    %66 = arith.mulf %65, %64 : vector<104x64xf32>
    %67 = arith.maximumf %64, %66 : vector<104x64xf32>
    %c0_24 = arith.constant 0 : index
    %c0_25 = arith.constant 0 : index
    %68 = vector.load %arg2[%c0_24, %c0_25] : memref<512x104xbf16, #tpu.memory_space<vmem>>, vector<512x104xbf16>
    %69 = arith.extf %68 : vector<512x104xbf16> to vector<512x104xf32>
    %cst_26 = arith.constant dense<0.000000e+00> : vector<512x64xf32>
    %70 = tpu.matmul %69, %67, %cst_26 {dimension_numbers = #tpu.dot_dimension_numbers<[1], [0], [0], [1], [0, 0, 1, 1], [], []>} : vector<512x104xf32>, vector<104x64xf32>, vector<512x64xf32> -> vector<512x64xf32>
    %71 = vector.extract_strided_slice %70 {offsets = [0, 0], sizes = [32, 64], strides = [1, 1]} : vector<512x64xf32> to vector<32x64xf32>
    %72 = vector.extract_strided_slice %70 {offsets = [32, 0], sizes = [32, 64], strides = [1, 1]} : vector<512x64xf32> to vector<32x64xf32>
    %73 = vector.extract_strided_slice %70 {offsets = [64, 0], sizes = [32, 64], strides = [1, 1]} : vector<512x64xf32> to vector<32x64xf32>
    %74 = vector.extract_strided_slice %70 {offsets = [96, 0], sizes = [32, 64], strides = [1, 1]} : vector<512x64xf32> to vector<32x64xf32>
    %75 = vector.extract_strided_slice %70 {offsets = [128, 0], sizes = [32, 64], strides = [1, 1]} : vector<512x64xf32> to vector<32x64xf32>
    %76 = vector.extract_strided_slice %70 {offsets = [160, 0], sizes = [32, 64], strides = [1, 1]} : vector<512x64xf32> to vector<32x64xf32>
    %77 = vector.extract_strided_slice %70 {offsets = [192, 0], sizes = [32, 64], strides = [1, 1]} : vector<512x64xf32> to vector<32x64xf32>
    %78 = vector.extract_strided_slice %70 {offsets = [224, 0], sizes = [32, 64], strides = [1, 1]} : vector<512x64xf32> to vector<32x64xf32>
    %79 = vector.extract_strided_slice %70 {offsets = [256, 0], sizes = [32, 64], strides = [1, 1]} : vector<512x64xf32> to vector<32x64xf32>
    %80 = vector.extract_strided_slice %70 {offsets = [288, 0], sizes = [32, 64], strides = [1, 1]} : vector<512x64xf32> to vector<32x64xf32>
    %81 = vector.extract_strided_slice %70 {offsets = [320, 0], sizes = [32, 64], strides = [1, 1]} : vector<512x64xf32> to vector<32x64xf32>
    %82 = vector.extract_strided_slice %70 {offsets = [352, 0], sizes = [32, 64], strides = [1, 1]} : vector<512x64xf32> to vector<32x64xf32>
    %83 = vector.extract_strided_slice %70 {offsets = [384, 0], sizes = [32, 64], strides = [1, 1]} : vector<512x64xf32> to vector<32x64xf32>
    %84 = vector.extract_strided_slice %70 {offsets = [416, 0], sizes = [32, 64], strides = [1, 1]} : vector<512x64xf32> to vector<32x64xf32>
    %85 = vector.extract_strided_slice %70 {offsets = [448, 0], sizes = [32, 64], strides = [1, 1]} : vector<512x64xf32> to vector<32x64xf32>
    %86 = vector.extract_strided_slice %70 {offsets = [480, 0], sizes = [32, 64], strides = [1, 1]} : vector<512x64xf32> to vector<32x64xf32>
    %87 = tpu.concatenate %71, %72, %73, %74, %75, %76, %77, %78, %79, %80, %81, %82, %83, %84, %85, %86 in 1 : vector<32x64xf32>, vector<32x64xf32>, vector<32x64xf32>, vector<32x64xf32>, vector<32x64xf32>, vector<32x64xf32>, vector<32x64xf32>, vector<32x64xf32>, vector<32x64xf32>, vector<32x64xf32>, vector<32x64xf32>, vector<32x64xf32>, vector<32x64xf32>, vector<32x64xf32>, vector<32x64xf32>, vector<32x64xf32> -> vector<32x1024xf32>
    %c0_27 = arith.constant 0 : index
    %c0_28 = arith.constant 0 : index
    %88 = vector.load %arg9[%c0_27, %c0_28] : memref<1024x128xf32, #tpu.memory_space<vmem>>, vector<1024x128xf32>
    %cst_29 = arith.constant dense<0.000000e+00> : vector<32x128xf32>
    %89 = tpu.matmul %87, %88, %cst_29 {dimension_numbers = #tpu.dot_dimension_numbers<[1], [0], [0], [1], [0, 0, 1, 1], [], []>} : vector<32x1024xf32>, vector<1024x128xf32>, vector<32x128xf32> -> vector<32x128xf32>
    %c0_30 = arith.constant 0 : index
    %c0_31 = arith.constant 0 : index
    %90 = vector.load %arg10[%c0_30, %c0_31] : memref<1x128xf32, #tpu.memory_space<vmem>>, vector<1x128xf32>
    %91 = vector.broadcast %90 : vector<1x128xf32> to vector<32x128xf32>
    %92 = arith.addf %89, %91 : vector<32x128xf32>
    %c0_32 = arith.constant 0 : index
    %c0_33 = arith.constant 0 : index
    %93 = vector.load %arg11[%c0_32, %c0_33] : memref<1x128xf32, #tpu.memory_space<vmem>>, vector<1x128xf32>
    %c0_34 = arith.constant 0 : index
    %c0_35 = arith.constant 0 : index
    %94 = vector.load %arg12[%c0_34, %c0_35] : memref<1x128xf32, #tpu.memory_space<vmem>>, vector<1x128xf32>
    %cst_36 = arith.constant dense<0.000000e+00> : vector<128xf32>
    %95 = vector.multi_reduction <add>, %92, %cst_36 [0] : vector<32x128xf32> to vector<128xf32>
    %96 = vector.shape_cast %95 : vector<128xf32> to vector<1x128xf32>
    %cst_37 = arith.constant 3.125000e-02 : f32
    %97 = vector.broadcast %cst_37 : f32 to vector<1x128xf32>
    %98 = arith.mulf %96, %97 : vector<1x128xf32>
    %99 = vector.broadcast %98 : vector<1x128xf32> to vector<32x128xf32>
    %100 = arith.subf %92, %99 : vector<32x128xf32>
    %101 = arith.mulf %100, %100 : vector<32x128xf32>
    %cst_38 = arith.constant dense<0.000000e+00> : vector<128xf32>
    %102 = vector.multi_reduction <add>, %101, %cst_38 [0] : vector<32x128xf32> to vector<128xf32>
    %103 = vector.shape_cast %102 : vector<128xf32> to vector<1x128xf32>
    %cst_39 = arith.constant 3.125000e-02 : f32
    %104 = vector.broadcast %cst_39 : f32 to vector<1x128xf32>
    %105 = arith.mulf %103, %104 : vector<1x128xf32>
    %cst_40 = arith.constant 9.99999974E-6 : f32
    %106 = vector.broadcast %cst_40 : f32 to vector<1x128xf32>
    %107 = arith.addf %105, %106 : vector<1x128xf32>
    %108 = math.rsqrt %107 : vector<1x128xf32>
    %109 = vector.broadcast %108 : vector<1x128xf32> to vector<32x128xf32>
    %110 = arith.mulf %100, %109 : vector<32x128xf32>
    %111 = vector.broadcast %93 : vector<1x128xf32> to vector<32x128xf32>
    %112 = arith.mulf %110, %111 : vector<32x128xf32>
    %113 = vector.broadcast %94 : vector<1x128xf32> to vector<32x128xf32>
    %114 = arith.addf %112, %113 : vector<32x128xf32>
    %cst_41 = arith.constant 2.000000e-01 : f32
    %115 = vector.broadcast %cst_41 : f32 to vector<32x128xf32>
    %116 = arith.mulf %115, %114 : vector<32x128xf32>
    %117 = arith.maximumf %114, %116 : vector<32x128xf32>
    %c0_42 = arith.constant 0 : index
    %c0_43 = arith.constant 0 : index
    %118 = vector.load %arg13[%c0_42, %c0_43] : memref<32x128xf32, #tpu.memory_space<vmem>>, vector<32x128xf32>
    %119 = arith.mulf %117, %118 : vector<32x128xf32>
    %120 = vector.extract_strided_slice %119 {offsets = [0, 0], sizes = [16, 128], strides = [1, 1]} : vector<32x128xf32> to vector<16x128xf32>
    %121 = vector.shape_cast %120 : vector<16x128xf32> to vector<1x16x128xf32>
    %cst_44 = arith.constant dense<0.000000e+00> : vector<1xf32>
    %122 = vector.multi_reduction <add>, %121, %cst_44 [1, 2] : vector<1x16x128xf32> to vector<1xf32>
    %123 = vector.shape_cast %122 : vector<1xf32> to vector<1x1x1xf32>
    %124 = vector.extract %123[0, 0, 0] : f32 from vector<1x1x1xf32>
    %125 = vector.broadcast %124 : f32 to vector<1x1xf32>
    %126 = vector.extract_strided_slice %119 {offsets = [16, 0], sizes = [16, 128], strides = [1, 1]} : vector<32x128xf32> to vector<16x128xf32>
    %127 = vector.shape_cast %126 : vector<16x128xf32> to vector<1x16x128xf32>
    %cst_45 = arith.constant dense<0.000000e+00> : vector<1xf32>
    %128 = vector.multi_reduction <add>, %127, %cst_45 [1, 2] : vector<1x16x128xf32> to vector<1xf32>
    %129 = vector.shape_cast %128 : vector<1xf32> to vector<1x1x1xf32>
    %130 = vector.extract %129[0, 0, 0] : f32 from vector<1x1x1xf32>
    %131 = vector.broadcast %130 : f32 to vector<1x1xf32>
    %132 = tpu.concatenate %125, %131 in 0 : vector<1x1xf32>, vector<1x1xf32> -> vector<2x1xf32>
    %c0_46 = arith.constant 0 : index
    %c0_47 = arith.constant 0 : index
    %133 = memref.load %arg14[%c0_46, %c0_47] : memref<1x1xf32, #tpu.memory_space<smem>>
    %134 = vector.broadcast %133 : f32 to vector<2x1xf32>
    %135 = arith.addf %132, %134 : vector<2x1xf32>
    %136 = arith.negf %135 : vector<2x1xf32>
    %137 = math.exp %136 : vector<2x1xf32>
    %cst_48 = arith.constant 1.000000e+00 : f32
    %138 = vector.broadcast %cst_48 : f32 to vector<2x1xf32>
    %139 = arith.addf %138, %137 : vector<2x1xf32>
    %140 = arith.divf %138, %139 : vector<2x1xf32>
    %c0_49 = arith.constant 0 : index
    %c0_50 = arith.constant 0 : index
    %141 = vector.load %arg15[%c0_49, %c0_50] : memref<2x1xf32, #tpu.memory_space<vmem>>, vector<2x1xf32>
    tpu.vector_store %arg15[%c0_49, %c0_50], %140 {strides = array<i32>} : memref<2x1xf32, #tpu.memory_space<vmem>>, vector<2x1xf32>,
    return
  }
}

</mosaic_0001>

<bundles_post_ra>
// kernel: forward.1
= control target key start
LH: loop header
LB: loop body
LE: loop exit
PB: predicated region body
PF: predicated region fallthrough
CT: control target
= control target key end

     0   :  { %v9851_v0 = vmov 0.0|0.0   ;;  %vm9852_vm0 = vmmov 0   ;;  %v14209_v3 = vmov 0.0   ;;  %vm109_vm1 = vcmask 130048   ;;  %s9854_s18 = smov 32   ;;  %s9855_s19 = smov 64   ;;  %s14193_s3 = inlined_call_operand.vmem [shape: f32[16,32], index: 3, kind: input, shape index: {}]   ;;  %s14194_s0 = inlined_call_operand.vmem [shape: f32[392,16], index: 0, kind: input, shape index: {}]   ;;  %s14195_s4 = inlined_call_operand.vmem [shape: f32[1,32], index: 4, kind: input, shape index: {}]   ;;  %s14196_s1 = inlined_call_operand.vmem [shape: bf16[1664,392], index: 1, kind: input, shape index: {}]   ;;  %s14197_s5 = inlined_call_operand.vmem [shape: f32[512,64], index: 5, kind: input, shape index: {}]   ;;  %s14198_s6 = inlined_call_operand.vmem [shape: f32[1,64], index: 6, kind: input, shape index: {}]   ;;  %s14199_s2 = inlined_call_operand.vmem [shape: bf16[512,104], index: 2, kind: input, shape index: {}]   ;;  %s14200_s7 = inlined_call_operand.vmem [shape: f32[1,64], index: 7, kind: input, shape index: {}]   ;;  %s14201_s8 = inlined_call_operand.vmem [shape: f32[1,64], index: 8, kind: input, shape index: {}]   ;;  %s14202_s9 = inlined_call_operand.vmem [shape: f32[1024,128], index: 9, kind: input, shape index: {}]   ;;  %s14203_s10 = inlined_call_operand.vmem [shape: f32[1,128], index: 10, kind: input, shape index: {}]   ;;  %s14204_s11 = inlined_call_operand.vmem [shape: f32[1,128], index: 11, kind: input, shape index: {}]   ;;  %s14205_s12 = inlined_call_operand.vmem [shape: f32[1,128], index: 12, kind: input, shape index: {}]   ;;  %s14206_s13 = inlined_call_operand.vmem [shape: f32[32,128], index: 13, kind: input, shape index: {}]   ;;  %s14207_s14 = inlined_call_operand.<no memory space> [shape: f32[1,1], index: 14, kind: input, shape index: {}]   ;;  %s14208_s15 = inlined_call_operand.vmem [shape: f32[2,1], index: 15, kind: output, shape index: {}]  }
   0x1   :  { %8772 = vmatprep.subr.bf16.mxu0 %v9851_v0  ;;  %v100_v1 = vld [vmem:[%s14193_s3] sm:$0xff]  ;;  %v101_v2 = vld [vmem:[%s14193_s3 + $0x8] sm:$0xff]  ;;  %8503 = vmatprep.mubr.msk.f32.mxu0 %vm9852_vm0, %v14209_v3  ;;  %v53_v7 = vld [vmem:[%s14194_s0 + $0x10] sm:$0xff]  ;;  %vm1913_vm2 = vcmask 64512   ;;  %s9856_s22 = smov 96   ;;  %vm5372_vm3 = vcmask 261120  }
   0x2   :  { %v8773_v4 = vpack.c.bf16 %v101_v2, %v100_v1  ;;  %9063 = vmatprep.subr.bf16.mxu1 %v9851_v0  ;;  %v51_v5 = vld [vmem:[%s14194_s0] sm:$0xff]  ;;  %v52_v6 = vld [vmem:[%s14194_s0 + $0x8] sm:$0xff]  ;;  %v54_v8 = vld [vmem:[%s14194_s0 + $0x18] sm:$0xff]  ;;  %vm5386_vm4 = vcmask 523264   ;;  %vm5400_vm5 = vcmask 785408   ;;  %vm6240_vm6 = vcmask 850944  }
   0x3   :  { %v55_v9 = vld [vmem:[%s14194_s0 + $0x20] sm:$0xff]  ;;  %v56_v10 = vld [vmem:[%s14194_s0 + $0x28] sm:$0xff]  ;;  %v57_v11 = vld [vmem:[%s14194_s0 + $0x30] sm:$0xff]  ;;  %vm7547_vm8 = vcmask 1040384   ;;  %vm7558_vm9 = vcmask 1024  }
   0x4   :  { %8774 = vmatpush3.bf16.msra.mxu0 %v8773_v4  ;;  %v58_v12 = vld [vmem:[%s14194_s0 + $0x38] sm:$0xff]  ;;  %v59_v13 = vld [vmem:[%s14194_s0 + $0x40] sm:$0xff]  ;;  %v60_v14 = vld [vmem:[%s14194_s0 + $0x48] sm:$0xff] }
   0x5   :  { %8775 = vmatprep.subr.bf16.mxu0 %v9851_v0  ;;  %v61_v15 = vld [vmem:[%s14194_s0 + $0x50] sm:$0xff]  ;;  %v62_v16 = vld [vmem:[%s14194_s0 + $0x58] sm:$0xff]  ;;  %v63_v17 = vld [vmem:[%s14194_s0 + $0x60] sm:$0xff] }
   0x6   :  { %v64_v18 = vld [vmem:[%s14194_s0 + $0x68] sm:$0xff]  ;;  %v65_v19 = vld [vmem:[%s14194_s0 + $0x70] sm:$0xff]  ;;  %v66_v20 = vld [vmem:[%s14194_s0 + $0x78] sm:$0xff] }
   0x7   :  { %8504 = vmatmul.mubr.msk.f32.vlgmr.msra.gmra.mrb[0].mxu0 %vm109_vm1, %v51_v5  ;;  %v67_v21 = vld [vmem:[%s14194_s0 + $0x80] sm:$0xff]  ;;  %v68_v22 = vld [vmem:[%s14194_s0 + $0x88] sm:$0xff]  ;;  %v69_v23 = vld [vmem:[%s14194_s0 + $0x90] sm:$0xff] }
   0x8   :  { %8506 = vmatprep.mubr.msk.f32.mxu0 %vm9852_vm0, %v14209_v3  ;;  %v70_v24 = vld [vmem:[%s14194_s0 + $0x98] sm:$0xff]  ;;  %v71_v25 = vld [vmem:[%s14194_s0 + $0xa0] sm:$0xff]  ;;  %v72_v26 = vld [vmem:[%s14194_s0 + $0xa8] sm:$0xff] }
   0x9   :  { %v73_v27 = vld [vmem:[%s14194_s0 + $0xb0] sm:$0xff]  ;;  %v74_v28 = vld [vmem:[%s14194_s0 + $0xb8] sm:$0xff]  ;;  %v75_v29 = vld [vmem:[%s14194_s0 + $0xc0] sm:$0xff] }
   0xa   :  { %v76_v30 = vld [vmem:[%s14194_s0 + $0xc8] sm:$0xff]  ;;  %v77_v31 = vld [vmem:[%s14194_s0 + $0xd0] sm:$0xff]  ;;  %v78_v32 = vld [vmem:[%s14194_s0 + $0xd8] sm:$0xff] }
   0xb   :  { %8507 = vmatmul.mubr.msk.f32.gmra.mrb[2].mxu0 %vm109_vm1, %v52_v6  ;;  %v79_v33 = vld [vmem:[%s14194_s0 + $0xe0] sm:$0xff]  ;;  %v80_v34 = vld [vmem:[%s14194_s0 + $0xe8] sm:$0xff]  ;;  %v81_v35 = vld [vmem:[%s14194_s0 + $0xf0] sm:$0xff] }
   0xc   :  { %8509 = vmatprep.mubr.msk.f32.mxu0 %vm9852_vm0, %v14209_v3  ;;  %v82_v36 = vld [vmem:[%s14194_s0 + $0xf8] sm:$0xff]  ;;  %v83_v37 = vld [vmem:[%s14194_s0 + $0x100] sm:$0xff]  ;;  %v84_v38 = vld [vmem:[%s14194_s0 + $0x108] sm:$0xff] }
   0xd   :  { %v85_v39 = vld [vmem:[%s14194_s0 + $0x110] sm:$0xff]  ;;  %v86_v40 = vld [vmem:[%s14194_s0 + $0x118] sm:$0xff]  ;;  %v87_v41 = vld [vmem:[%s14194_s0 + $0x120] sm:$0xff] }
   0xe   :  { %v88_v42 = vld [vmem:[%s14194_s0 + $0x128] sm:$0xff]  ;;  %v89_v43 = vld [vmem:[%s14194_s0 + $0x130] sm:$0xff]  ;;  %v90_v44 = vld [vmem:[%s14194_s0 + $0x138] sm:$0xff] }
   0xf   :  { %8510 = vmatmul.mubr.msk.f32.gmra.mrb[4].mxu0 %vm109_vm1, %v53_v7  ;;  %v91_v45 = vld [vmem:[%s14194_s0 + $0x140] sm:$0xff]  ;;  %v92_v46 = vld [vmem:[%s14194_s0 + $0x148] sm:$0xff]  ;;  %v93_v47 = vld [vmem:[%s14194_s0 + $0x150] sm:$0xff] }
  0x10   :  { %8512 = vmatprep.mubr.msk.f32.mxu0 %vm9852_vm0, %v14209_v3  ;;  %v94_v48 = vld [vmem:[%s14194_s0 + $0x158] sm:$0xff]  ;;  %v95_v49 = vld [vmem:[%s14194_s0 + $0x160] sm:$0xff]  ;;  %v96_v50 = vld [vmem:[%s14194_s0 + $0x168] sm:$0xff] }
  0x11   :  { %v97_v51 = vld [vmem:[%s14194_s0 + $0x170] sm:$0xff]  ;;  %v10230_v52 = vld [vmem:[%s14195_s4] ss:$0 sm:$0xff]  ;;  %v98_v56 = vld [vmem:[%s14194_s0 + $0x178] sm:$0xff] }
  0x12   :  { %v10245_v58 = vld [vmem:[%s14196_s1 + $0x940] sm:$0xff] }
  0x13   :  { %8513 = vmatmul.mubr.msk.f32.gmra.mrb[6].mxu0 %vm109_vm1, %v54_v8  ;;  %v1674_v62 = vunpack.c.h.bf16 %v10245_v58 }
  0x14   :  { %8515 = vmatprep.mubr.msk.f32.mxu0 %vm9852_vm0, %v14209_v3 }
  0x15   :  { %3342 = vmatprep.mubr.f32.mxu1 %v1674_v62 }
  0x17   :  { %8516 = vmatmul.mubr.msk.f32.gmra.mrb[8].mxu0 %vm109_vm1, %v55_v9 }
  0x18   :  { %8518 = vmatprep.mubr.msk.f32.mxu0 %vm9852_vm0, %v14209_v3 }
  0x1b   :  { %8519 = vmatmul.mubr.msk.f32.gmra.mrb[10].mxu0 %vm109_vm1, %v56_v10 }
  0x1c   :  { %8521 = vmatprep.mubr.msk.f32.mxu0 %vm9852_vm0, %v14209_v3 }
  0x1f   :  { %8522 = vmatmul.mubr.msk.f32.gmra.mrb[12].mxu0 %vm109_vm1, %v57_v11 }
  0x20   :  { %8524 = vmatprep.mubr.msk.f32.mxu0 %vm9852_vm0, %v14209_v3 }
  0x23   :  { %8525 = vmatmul.mubr.msk.f32.gmra.mrb[14].mxu0 %vm109_vm1, %v58_v12 }
  0x24   :  { %8527 = vmatprep.mubr.msk.f32.mxu0 %vm9852_vm0, %v14209_v3 }
  0x27   :  { %8528 = vmatmul.mubr.msk.f32.gmra.mrb[16].mxu0 %vm109_vm1, %v59_v13 }
  0x28   :  { %8530 = vmatprep.mubr.msk.f32.mxu0 %vm9852_vm0, %v14209_v3 }
  0x2b   :  { %8531 = vmatmul.mubr.msk.f32.gmra.mrb[18].mxu0 %vm109_vm1, %v60_v14 }
  0x2c   :  { %8533 = vmatprep.mubr.msk.f32.mxu0 %vm9852_vm0, %v14209_v3 }
  0x2f   :  { %8534 = vmatmul.mubr.msk.f32.gmra.mrb[20].mxu0 %vm109_vm1, %v61_v15 }
  0x30   :  { %8536 = vmatprep.mubr.msk.f32.mxu0 %vm9852_vm0, %v14209_v3 }
  0x33   :  { %8537 = vmatmul.mubr.msk.f32.gmra.mrb[22].mxu0 %vm109_vm1, %v62_v16 }
  0x34   :  { %8539 = vmatprep.mubr.msk.f32.mxu0 %vm9852_vm0, %v14209_v3 }
  0x37   :  { %8540 = vmatmul.mubr.msk.f32.gmra.mrb[24].mxu0 %vm109_vm1, %v63_v17 }
  0x38   :  { %8542 = vmatprep.mubr.msk.f32.mxu0 %vm9852_vm0, %v14209_v3 }
  0x3b   :  { %8543 = vmatmul.mubr.msk.f32.gmra.mrb[26].mxu0 %vm109_vm1, %v64_v18 }
  0x3c   :  { %8545 = vmatprep.mubr.msk.f32.mxu0 %vm9852_vm0, %v14209_v3 }
  0x3f   :  { %8546 = vmatmul.mubr.msk.f32.gmra.mrb[28].mxu0 %vm109_vm1, %v65_v19 }
  0x40   :  { %8548 = vmatprep.mubr.msk.f32.mxu0 %vm9852_vm0, %v14209_v3 }
  0x43   :  { %8549 = vmatmul.mubr.msk.f32.gmra.mrb[30].mxu0 %vm109_vm1, %v66_v20 }
  0x44   :  { %8551 = vmatprep.mubr.msk.f32.mxu0 %vm9852_vm0, %v14209_v3 }
  0x47   :  { %8552 = vmatmul.mubr.msk.f32.gmra.mrb[32].mxu0 %vm109_vm1, %v67_v21 }
  0x48   :  { %8554 = vmatprep.mubr.msk.f32.mxu0 %vm9852_vm0, %v14209_v3 }
  0x4b   :  { %8555 = vmatmul.mubr.msk.f32.gmra.mrb[34].mxu0 %vm109_vm1, %v68_v22 }
  0x4c   :  { %8557 = vmatprep.mubr.msk.f32.mxu0 %vm9852_vm0, %v14209_v3 }
  0x4f   :  { %8558 = vmatmul.mubr.msk.f32.gmra.mrb[36].mxu0 %vm109_vm1, %v69_v23 }
  0x50   :  { %8560 = vmatprep.mubr.msk.f32.mxu0 %vm9852_vm0, %v14209_v3 }
  0x53   :  { %8561 = vmatmul.mubr.msk.f32.gmra.mrb[38].mxu0 %vm109_vm1, %v70_v24 }
  0x54   :  { %8563 = vmatprep.mubr.msk.f32.mxu0 %vm9852_vm0, %v14209_v3 }
  0x57   :  { %8564 = vmatmul.mubr.msk.f32.gmra.mrb[40].mxu0 %vm109_vm1, %v71_v25  ;;  %v99_v25 = vld [vmem:[%s14194_s0 + $0x180] sm:$0xff] }
  0x58   :  { %8566 = vmatprep.mubr.msk.f32.mxu0 %vm9852_vm0, %v14209_v3 }
  0x5b   :  { %8567 = vmatmul.mubr.msk.f32.gmra.mrb[42].mxu0 %vm109_vm1, %v72_v26 }
  0x5c   :  { %8569 = vmatprep.mubr.msk.f32.mxu0 %vm9852_vm0, %v14209_v3 }
  0x5f   :  { %8570 = vmatmul.mubr.msk.f32.gmra.mrb[44].mxu0 %vm109_vm1, %v73_v27 }
  0x60   :  { %8572 = vmatprep.mubr.msk.f32.mxu0 %vm9852_vm0, %v14209_v3 }
  0x63   :  { %8573 = vmatmul.mubr.msk.f32.gmra.mrb[46].mxu0 %vm109_vm1, %v74_v28 }
  0x64   :  { %8575 = vmatprep.mubr.msk.f32.mxu0 %vm9852_vm0, %v14209_v3 }
  0x67   :  { %8576 = vmatmul.mubr.msk.f32.gmra.mrb[48].mxu0 %vm109_vm1, %v75_v29 }
  0x68   :  { %8578 = vmatprep.mubr.msk.f32.mxu0 %vm9852_vm0, %v14209_v3 }
  0x6b   :  { %8579 = vmatmul.mubr.msk.f32.gmra.mrb[50].mxu0 %vm109_vm1, %v76_v30 }
  0x6c   :  { %8581 = vmatprep.mubr.msk.f32.mxu0 %vm9852_vm0, %v14209_v3 }
  0x6f   :  { %8582 = vmatmul.mubr.msk.f32.gmra.mrb[52].mxu0 %vm109_vm1, %v77_v31 }
  0x70   :  { %8584 = vmatprep.mubr.msk.f32.mxu0 %vm9852_vm0, %v14209_v3 }
  0x73   :  { %8585 = vmatmul.mubr.msk.f32.gmra.mrb[54].mxu0 %vm109_vm1, %v78_v32 }
  0x74   :  { %8587 = vmatprep.mubr.msk.f32.mxu0 %vm9852_vm0, %v14209_v3 }
  0x77   :  { %8588 = vmatmul.mubr.msk.f32.gmra.mrb[56].mxu0 %vm109_vm1, %v79_v33 }
  0x78   :  { %8590 = vmatprep.mubr.msk.f32.mxu0 %vm9852_vm0, %v14209_v3 }
  0x7b   :  { %8591 = vmatmul.mubr.msk.f32.gmra.mrb[58].mxu0 %vm109_vm1, %v80_v34 }
  0x7c   :  { %8593 = vmatprep.mubr.msk.f32.mxu0 %vm9852_vm0, %v14209_v3 }
  0x7f   :  { %8594 = vmatmul.mubr.msk.f32.gmra.mrb[60].mxu0 %vm109_vm1, %v81_v35 }
  0x80   :  { %8596 = vmatprep.mubr.msk.f32.mxu0 %vm9852_vm0, %v14209_v3 }
  0x83   :  { %8597 = vmatmul.mubr.msk.f32.gmra.mrb[62].mxu0 %vm109_vm1, %v82_v36 }
  0x84   :  { %8599 = vmatprep.mubr.msk.f32.mxu0 %vm9852_vm0, %v14209_v3 }
  0x87   :  { %8600 = vmatmul.mubr.msk.f32.gmra.mrb[64].mxu0 %vm109_vm1, %v83_v37 }
  0x88   :  { %8602 = vmatprep.mubr.msk.f32.mxu0 %vm9852_vm0, %v14209_v3 }
  0x8b   :  { %8603 = vmatmul.mubr.msk.f32.gmra.mrb[66].mxu0 %vm109_vm1, %v84_v38 }
  0x8c   :  { %8605 = vmatprep.mubr.msk.f32.mxu0 %vm9852_vm0, %v14209_v3 }
  0x8f   :  { %8606 = vmatmul.mubr.msk.f32.gmra.mrb[68].mxu0 %vm109_vm1, %v85_v39 }
  0x90   :  { %8608 = vmatprep.mubr.msk.f32.mxu0 %vm9852_vm0, %v14209_v3 }
  0x93   :  { %8609 = vmatmul.mubr.msk.f32.gmra.mrb[70].mxu0 %vm109_vm1, %v86_v40 }
  0x94   :  { %8611 = vmatprep.mubr.msk.f32.mxu0 %vm9852_vm0, %v14209_v3 }
  0x97   :  { %8612 = vmatmul.mubr.msk.f32.gmra.mrb[72].mxu0 %vm109_vm1, %v87_v41 }
  0x98   :  { %8614 = vmatprep.mubr.msk.f32.mxu0 %vm9852_vm0, %v14209_v3 }
  0x9b   :  { %8615 = vmatmul.mubr.msk.f32.gmra.mrb[74].mxu0 %vm109_vm1, %v88_v42 }
  0x9c   :  { %8617 = vmatprep.mubr.msk.f32.mxu0 %vm9852_vm0, %v14209_v3 }
  0x9f   :  { %8618 = vmatmul.mubr.msk.f32.gmra.mrb[76].mxu0 %vm109_vm1, %v89_v43 }
  0xa0   :  { %8620 = vmatprep.mubr.msk.f32.mxu0 %vm9852_vm0, %v14209_v3 }
  0xa3   :  { %8621 = vmatmul.mubr.msk.f32.gmra.mrb[78].mxu0 %vm109_vm1, %v90_v44 }
  0xa4   :  { %8623 = vmatprep.mubr.msk.f32.mxu0 %vm9852_vm0, %v14209_v3 }
  0xa7   :  { %8624 = vmatmul.mubr.msk.f32.gmra.mrb[80].mxu0 %vm109_vm1, %v91_v45 }
  0xa8   :  { %8626 = vmatprep.mubr.msk.f32.mxu0 %vm9852_vm0, %v14209_v3 }
  0xab   :  { %8627 = vmatmul.mubr.msk.f32.gmra.mrb[82].mxu0 %vm109_vm1, %v92_v46 }
  0xac   :  { %8629 = vmatprep.mubr.msk.f32.mxu0 %vm9852_vm0, %v14209_v3 }
  0xaf   :  { %8630 = vmatmul.mubr.msk.f32.gmra.mrb[84].mxu0 %vm109_vm1, %v93_v47 }
  0xb0   :  { %8632 = vmatprep.mubr.msk.f32.mxu0 %vm9852_vm0, %v14209_v3 }
  0xb3   :  { %8633 = vmatmul.mubr.msk.f32.gmra.mrb[86].mxu0 %vm109_vm1, %v94_v48 }
  0xb4   :  { %8635 = vmatprep.mubr.msk.f32.mxu0 %vm9852_vm0, %v14209_v3 }
  0xb7   :  { %8636 = vmatmul.mubr.msk.f32.gmra.mrb[88].mxu0 %vm109_vm1, %v95_v49 }
  0xb8   :  { %8638 = vmatprep.mubr.msk.f32.mxu0 %vm9852_vm0, %v14209_v3 }
  0xbb   :  { %8639 = vmatmul.mubr.msk.f32.gmra.mrb[90].mxu0 %vm109_vm1, %v96_v50 }
  0xbc   :  { %8641 = vmatprep.mubr.msk.f32.mxu0 %vm9852_vm0, %v14209_v3 }
  0xbf   :  { %8642 = vmatmul.mubr.msk.f32.gmra.mrb[92].mxu0 %vm109_vm1, %v97_v51 }
  0xc0   :  { %8644 = vmatprep.mubr.msk.f32.mxu0 %vm9852_vm0, %v14209_v3 }
  0xc3   :  { %8645 = vmatmul.mubr.msk.f32.gmra.mrb[94].mxu0 %vm109_vm1, %v98_v56 }
  0xc4   :  { %8647 = vmatprep.mubr.msk.f32.mxu0 %vm9852_vm0, %v14209_v3 }
  0xc7   :  { %8648 = vmatmul.mubr.msk.f32.gmra.mrb[96].mxu0 %vm109_vm1, %v99_v25 }
  0xda   :  { %v323_v53 = vpop.f32.mrb[0].mxu0 }
  0xdb   :  { %v324_v54 = vadd.f32 %v10230_v52, %v323_v53  ;;  %v8505_v55 = vpop.f32.mrb[1].mxu0 }
  0xdd   :  { %v567_v59 = vmul.f32 0.2, %v324_v54 }
  0xde   :  { %v328_v57 = vpop.f32.mrb[2].mxu0 }
  0xdf   :  { %v329_v60 = vadd.f32 %v10230_v52, %v328_v57  ;;  %v8508_v61 = vpop.f32.mrb[3].mxu0  ;;  %v616_v2 = vmax.f32 %v324_v54, %v567_v59 }
  0xe1   :  { %v568_v63 = vmul.f32 0.2, %v329_v60 }
  0xe2   :  { %v333_v1 = vpop.f32.mrb[4].mxu0 }
  0xe3   :  { %v617_v4 = vmax.f32 %v329_v60, %v568_v63  ;;  %v334_v5 = vadd.f32 %v10230_v52, %v333_v1  ;;  %v8511_v6 = vpop.f32.mrb[5].mxu0 }
  0xe5   :  { %v8776_v7 = vpack.c.bf16 %v617_v4, %v616_v2  ;;  %v569_v9 = vmul.f32 0.2, %v334_v5 }
  0xe6   :  { %v338_v8 = vpop.f32.mrb[6].mxu0 }
  0xe7   :  { %v339_v10 = vadd.f32 %v10230_v52, %v338_v8  ;;  %v8514_v11 = vpop.f32.mrb[7].mxu0  ;;  %8777 = vmatpush1.bf16.msra.mxu0 %v8776_v7  ;;  %9079 = vmatpush1.bf16.msra.mxu1 %v8776_v7  ;;  %v618_v14 = vmax.f32 %v334_v5, %v569_v9 }
  0xe8   :  { %8778 = vmatprep.subr.bf16.mxu0 %v9851_v0  ;;  %9064 = vmatprep.subr.bf16.mxu1 %v9851_v0 }
  0xe9   :  { %v570_v12 = vmul.f32 0.2, %v339_v10 }
  0xea   :  { %v343_v13 = vpop.f32.mrb[8].mxu0 }
  0xeb   :  { %v619_v15 = vmax.f32 %v339_v10, %v570_v12  ;;  %v344_v16 = vadd.f32 %v10230_v52, %v343_v13  ;;  %v8517_v17 = vpop.f32.mrb[9].mxu0 }
  0xed   :  { %v8779_v18 = vpack.c.bf16 %v619_v15, %v618_v14  ;;  %v571_v20 = vmul.f32 0.2, %v344_v16 }
  0xee   :  { %v348_v19 = vpop.f32.mrb[10].mxu0 }
  0xef   :  { %v349_v21 = vadd.f32 %v10230_v52, %v348_v19  ;;  %v8520_v22 = vpop.f32.mrb[11].mxu0  ;;  %8780 = vmatpush1.bf16.msra.mxu0 %v8779_v18  ;;  %9080 = vmatpush1.bf16.msra.mxu1 %v8779_v18  ;;  %v620_v26 = vmax.f32 %v344_v16, %v571_v20 }
  0xf0   :  { %8781 = vmatprep.subr.bf16.mxu0 %v9851_v0  ;;  %9065 = vmatprep.subr.bf16.mxu1 %v9851_v0 }
  0xf1   :  { %v572_v23 = vmul.f32 0.2, %v349_v21 }
  0xf2   :  { %v353_v24 = vpop.f32.mrb[12].mxu0 }
  0xf3   :  { %v621_v27 = vmax.f32 %v349_v21, %v572_v23  ;;  %v354_v28 = vadd.f32 %v10230_v52, %v353_v24  ;;  %v8523_v29 = vpop.f32.mrb[13].mxu0 }
  0xf5   :  { %v8782_v30 = vpack.c.bf16 %v621_v27, %v620_v26  ;;  %v573_v32 = vmul.f32 0.2, %v354_v28 }
  0xf6   :  { %v358_v31 = vpop.f32.mrb[14].mxu0 }
  0xf7   :  { %v359_v33 = vadd.f32 %v10230_v52, %v358_v31  ;;  %v8526_v34 = vpop.f32.mrb[15].mxu0  ;;  %8783 = vmatpush1.bf16.msra.mxu0 %v8782_v30  ;;  %9081 = vmatpush1.bf16.msra.mxu1 %v8782_v30  ;;  %v622_v37 = vmax.f32 %v354_v28, %v573_v32 }
  0xf8   :  { %8784 = vmatprep.subr.bf16.mxu0 %v9851_v0  ;;  %9066 = vmatprep.subr.bf16.mxu1 %v9851_v0 }
  0xf9   :  { %v574_v35 = vmul.f32 0.2, %v359_v33 }
  0xfa   :  { %v363_v36 = vpop.f32.mrb[16].mxu0 }
  0xfb   :  { %v623_v38 = vmax.f32 %v359_v33, %v574_v35  ;;  %v364_v39 = vadd.f32 %v10230_v52, %v363_v36  ;;  %v8529_v40 = vpop.f32.mrb[17].mxu0 }
  0xfd   :  { %v8785_v41 = vpack.c.bf16 %v623_v38, %v622_v37  ;;  %v575_v43 = vmul.f32 0.2, %v364_v39 }
  0xfe   :  { %v368_v42 = vpop.f32.mrb[18].mxu0 }
  0xff   :  { %v369_v44 = vadd.f32 %v10230_v52, %v368_v42  ;;  %v8532_v45 = vpop.f32.mrb[19].mxu0  ;;  %8786 = vmatpush1.bf16.msra.mxu0 %v8785_v41  ;;  %9082 = vmatpush1.bf16.msra.mxu1 %v8785_v41  ;;  %v624_v48 = vmax.f32 %v364_v39, %v575_v43 }
 0x100   :  { %8787 = vmatprep.subr.bf16.mxu0 %v9851_v0  ;;  %9067 = vmatprep.subr.bf16.mxu1 %v9851_v0 }
 0x101   :  { %v576_v46 = vmul.f32 0.2, %v369_v44 }
 0x102   :  { %v373_v47 = vpop.f32.mrb[20].mxu0 }
 0x103   :  { %v625_v49 = vmax.f32 %v369_v44, %v576_v46  ;;  %v374_v50 = vadd.f32 %v10230_v52, %v373_v47  ;;  %v8535_v51 = vpop.f32.mrb[21].mxu0 }
 0x105   :  { %v8788_v53 = vpack.c.bf16 %v625_v49, %v624_v48  ;;  %v577_v55 = vmul.f32 0.2, %v374_v50 }
 0x106   :  { %v378_v54 = vpop.f32.mrb[22].mxu0 }
 0x107   :  { %v379_v56 = vadd.f32 %v10230_v52, %v378_v54  ;;  %v8538_v57 = vpop.f32.mrb[23].mxu0  ;;  %8789 = vmatpush1.bf16.msra.mxu0 %v8788_v53  ;;  %9083 = vmatpush1.bf16.msra.mxu1 %v8788_v53  ;;  %v626_v61 = vmax.f32 %v374_v50, %v577_v55 }
 0x108   :  { %8790 = vmatprep.subr.bf16.mxu0 %v9851_v0  ;;  %9068 = vmatprep.subr.bf16.mxu1 %v9851_v0 }
 0x109   :  { %v578_v59 = vmul.f32 0.2, %v379_v56 }
 0x10a   :  { %v383_v60 = vpop.f32.mrb[24].mxu0 }
 0x10b   :  { %v627_v62 = vmax.f32 %v379_v56, %v578_v59  ;;  %v384_v63 = vadd.f32 %v10230_v52, %v383_v60  ;;  %v8541_v1 = vpop.f32.mrb[25].mxu0 }
 0x10d   :  { %v8791_v2 = vpack.c.bf16 %v627_v62, %v626_v61  ;;  %v579_v5 = vmul.f32 0.2, %v384_v63 }
 0x10e   :  { %v388_v4 = vpop.f32.mrb[26].mxu0 }
 0x10f   :  { %v389_v6 = vadd.f32 %v10230_v52, %v388_v4  ;;  %v8544_v7 = vpop.f32.mrb[27].mxu0  ;;  %8792 = vmatpush1.bf16.msra.mxu0 %v8791_v2  ;;  %9084 = vmatpush1.bf16.msra.mxu1 %v8791_v2  ;;  %v628_v10 = vmax.f32 %v384_v63, %v579_v5 }
 0x110   :  { %8793 = vmatprep.subr.bf16.mxu0 %v9851_v0  ;;  %9069 = vmatprep.subr.bf16.mxu1 %v9851_v0 }
 0x111   :  { %v580_v8 = vmul.f32 0.2, %v389_v6 }
 0x112   :  { %v393_v9 = vpop.f32.mrb[28].mxu0 }
 0x113   :  { %v629_v11 = vmax.f32 %v389_v6, %v580_v8  ;;  %v394_v12 = vadd.f32 %v10230_v52, %v393_v9  ;;  %v8547_v13 = vpop.f32.mrb[29].mxu0 }
 0x115   :  { %v8794_v14 = vpack.c.bf16 %v629_v11, %v628_v10  ;;  %v581_v16 = vmul.f32 0.2, %v394_v12 }
 0x116   :  { %v398_v15 = vpop.f32.mrb[30].mxu0 }
 0x117   :  { %v399_v17 = vadd.f32 %v10230_v52, %v398_v15  ;;  %v8550_v18 = vpop.f32.mrb[31].mxu0  ;;  %8795 = vmatpush1.bf16.msra.mxu0 %v8794_v14  ;;  %9085 = vmatpush1.bf16.msra.mxu1 %v8794_v14  ;;  %v630_v21 = vmax.f32 %v394_v12, %v581_v16 }
 0x118   :  { %8796 = vmatprep.subr.bf16.mxu0 %v9851_v0  ;;  %9070 = vmatprep.subr.bf16.mxu1 %v9851_v0 }
 0x119   :  { %v582_v19 = vmul.f32 0.2, %v399_v17 }
 0x11a   :  { %v403_v20 = vpop.f32.mrb[32].mxu0 }
 0x11b   :  { %v631_v22 = vmax.f32 %v399_v17, %v582_v19  ;;  %v404_v23 = vadd.f32 %v10230_v52, %v403_v20  ;;  %v8553_v24 = vpop.f32.mrb[33].mxu0 }
 0x11d   :  { %v8797_v25 = vpack.c.bf16 %v631_v22, %v630_v21  ;;  %v583_v27 = vmul.f32 0.2, %v404_v23 }
 0x11e   :  { %v408_v26 = vpop.f32.mrb[34].mxu0 }
 0x11f   :  { %v409_v28 = vadd.f32 %v10230_v52, %v408_v26  ;;  %v8556_v29 = vpop.f32.mrb[35].mxu0  ;;  %8798 = vmatpush1.bf16.msra.mxu0 %v8797_v25  ;;  %9086 = vmatpush1.bf16.msra.mxu1 %v8797_v25  ;;  %v632_v32 = vmax.f32 %v404_v23, %v583_v27 }
 0x120   :  { %8799 = vmatprep.subr.bf16.mxu0 %v9851_v0  ;;  %9071 = vmatprep.subr.bf16.mxu1 %v9851_v0 }
 0x121   :  { %v584_v30 = vmul.f32 0.2, %v409_v28 }
 0x122   :  { %v413_v31 = vpop.f32.mrb[36].mxu0 }
 0x123   :  { %v633_v33 = vmax.f32 %v409_v28, %v584_v30  ;;  %v414_v34 = vadd.f32 %v10230_v52, %v413_v31  ;;  %v8559_v35 = vpop.f32.mrb[37].mxu0 }
 0x125   :  { %v8800_v36 = vpack.c.bf16 %v633_v33, %v632_v32  ;;  %v585_v38 = vmul.f32 0.2, %v414_v34 }
 0x126   :  { %v418_v37 = vpop.f32.mrb[38].mxu0 }
 0x127   :  { %v419_v39 = vadd.f32 %v10230_v52, %v418_v37  ;;  %v8562_v40 = vpop.f32.mrb[39].mxu0  ;;  %8801 = vmatpush1.bf16.msra.mxu0 %v8800_v36  ;;  %9087 = vmatpush1.bf16.msra.mxu1 %v8800_v36  ;;  %v634_v43 = vmax.f32 %v414_v34, %v585_v38 }
 0x128   :  { %8802 = vmatprep.subr.bf16.mxu0 %v9851_v0  ;;  %9072 = vmatprep.subr.bf16.mxu1 %v9851_v0 }
 0x129   :  { %v586_v41 = vmul.f32 0.2, %v419_v39 }
 0x12a   :  { %v423_v42 = vpop.f32.mrb[40].mxu0 }
 0x12b   :  { %v635_v44 = vmax.f32 %v419_v39, %v586_v41  ;;  %v424_v45 = vadd.f32 %v10230_v52, %v423_v42  ;;  %v8565_v46 = vpop.f32.mrb[41].mxu0 }
 0x12d   :  { %v8803_v47 = vpack.c.bf16 %v635_v44, %v634_v43  ;;  %v587_v49 = vmul.f32 0.2, %v424_v45 }
 0x12e   :  { %v428_v48 = vpop.f32.mrb[42].mxu0 }
 0x12f   :  { %v429_v50 = vadd.f32 %v10230_v52, %v428_v48  ;;  %v8568_v51 = vpop.f32.mrb[43].mxu0  ;;  %8804 = vmatpush1.bf16.msra.mxu0 %v8803_v47  ;;  %9088 = vmatpush1.bf16.msra.mxu1 %v8803_v47  ;;  %v636_v55 = vmax.f32 %v424_v45, %v587_v49 }
 0x130   :  { %8805 = vmatprep.subr.bf16.mxu0 %v9851_v0  ;;  %9073 = vmatprep.subr.bf16.mxu1 %v9851_v0 }
 0x131   :  { %v588_v53 = vmul.f32 0.2, %v429_v50 }
 0x132   :  { %v433_v54 = vpop.f32.mrb[44].mxu0 }
 0x133   :  { %v637_v56 = vmax.f32 %v429_v50, %v588_v53  ;;  %v434_v57 = vadd.f32 %v10230_v52, %v433_v54  ;;  %v8571_v59 = vpop.f32.mrb[45].mxu0  ;;  %v963_v54 = vld [vmem:[%s14196_s1 + $0x950] sm:$0xff] }
 0x135   :  { %v8806_v60 = vpack.c.bf16 %v637_v56, %v636_v55  ;;  %v589_v62 = vmul.f32 0.2, %v434_v57 }
 0x136   :  { %v438_v61 = vpop.f32.mrb[46].mxu0 }
 0x137   :  { %v439_v63 = vadd.f32 %v10230_v52, %v438_v61  ;;  %v8574_v1 = vpop.f32.mrb[47].mxu0  ;;  %8807 = vmatpush1.bf16.msra.mxu0 %v8806_v60  ;;  %9089 = vmatpush1.bf16.msra.mxu1 %v8806_v60  ;;  %v638_v5 = vmax.f32 %v434_v57, %v589_v62  ;;  %v1673_v57 = vunpack.c.l.bf16 %v10245_v58  ;;  %v1678_v60 = vunpack.c.h.bf16 %v963_v54 }
 0x138   :  { %8808 = vmatprep.subr.bf16.mxu0 %v9851_v0  ;;  %9074 = vmatprep.subr.bf16.mxu1 %v9851_v0 }
 0x139   :  { %v590_v2 = vmul.f32 0.2, %v439_v63 }
 0x13a   :  { %v443_v4 = vpop.f32.mrb[48].mxu0 }
 0x13b   :  { %v639_v6 = vmax.f32 %v439_v63, %v590_v2  ;;  %v444_v7 = vadd.f32 %v10230_v52, %v443_v4  ;;  %v8577_v8 = vpop.f32.mrb[49].mxu0  ;;  %v965_v63 = vld [vmem:[%s14196_s1 + $0x960] sm:$0xff]  ;;  %v1677_v4 = vunpack.c.l.bf16 %v963_v54 }
 0x13c   :  { %v1682_v58 = vunpack.c.h.bf16 %v965_v63 }
 0x13d   :  { %v8809_v9 = vpack.c.bf16 %v639_v6, %v638_v5  ;;  %v591_v11 = vmul.f32 0.2, %v444_v7 }
 0x13e   :  { %v448_v10 = vpop.f32.mrb[50].mxu0 }
 0x13f   :  { %v449_v12 = vadd.f32 %v10230_v52, %v448_v10  ;;  %v8580_v13 = vpop.f32.mrb[51].mxu0  ;;  %8810 = vmatpush1.bf16.msra.mxu0 %v8809_v9  ;;  %9090 = vmatpush1.bf16.msra.mxu1 %v8809_v9  ;;  %v640_v16 = vmax.f32 %v444_v7, %v591_v11  ;;  %v967_v9 = vld [vmem:[%s14196_s1 + $0x970] sm:$0xff] }
 0x140   :  { %8811 = vmatprep.subr.bf16.mxu0 %v9851_v0  ;;  %9075 = vmatprep.subr.bf16.mxu1 %v9851_v0 }
 0x141   :  { %v592_v14 = vmul.f32 0.2, %v449_v12 }
 0x142   :  { %v453_v15 = vpop.f32.mrb[52].mxu0 }
 0x143   :  { %v641_v17 = vmax.f32 %v449_v12, %v592_v14  ;;  %v454_v18 = vadd.f32 %v10230_v52, %v453_v15  ;;  %v8583_v19 = vpop.f32.mrb[53].mxu0  ;;  %v1681_v12 = vunpack.c.l.bf16 %v965_v63  ;;  %v1686_v14 = vunpack.c.h.bf16 %v967_v9 }
 0x145   :  { %v8812_v20 = vpack.c.bf16 %v641_v17, %v640_v16  ;;  %v593_v22 = vmul.f32 0.2, %v454_v18  ;;  %v969_v17 = vld [vmem:[%s14196_s1 + $0x980] sm:$0xff] }
 0x146   :  { %v458_v21 = vpop.f32.mrb[54].mxu0 }
 0x147   :  { %v459_v23 = vadd.f32 %v10230_v52, %v458_v21  ;;  %v8586_v24 = vpop.f32.mrb[55].mxu0  ;;  %8813 = vmatpush1.bf16.msra.mxu0 %v8812_v20  ;;  %9091 = vmatpush1.bf16.msra.mxu1 %v8812_v20  ;;  %v642_v27 = vmax.f32 %v454_v18, %v593_v22  ;;  %v1685_v20 = vunpack.c.l.bf16 %v967_v9  ;;  %v1690_v22 = vunpack.c.h.bf16 %v969_v17 }
 0x148   :  { %8814 = vmatprep.subr.bf16.mxu0 %v9851_v0  ;;  %9076 = vmatprep.subr.bf16.mxu1 %v9851_v0 }
 0x149   :  { %v594_v25 = vmul.f32 0.2, %v459_v23 }
 0x14a   :  { %v463_v26 = vpop.f32.mrb[56].mxu0 }
 0x14b   :  { %v643_v28 = vmax.f32 %v459_v23, %v594_v25  ;;  %v464_v29 = vadd.f32 %v10230_v52, %v463_v26  ;;  %v8589_v30 = vpop.f32.mrb[57].mxu0  ;;  %v971_v26 = vld [vmem:[%s14196_s1 + $0x990] sm:$0xff] }
 0x14d   :  { %v8815_v31 = vpack.c.bf16 %v643_v28, %v642_v27  ;;  %v595_v33 = vmul.f32 0.2, %v464_v29 }
 0x14e   :  { %v468_v32 = vpop.f32.mrb[58].mxu0 }
 0x14f   :  { %v469_v34 = vadd.f32 %v10230_v52, %v468_v32  ;;  %v8592_v35 = vpop.f32.mrb[59].mxu0  ;;  %8816 = vmatpush1.bf16.msra.mxu0 %v8815_v31  ;;  %9092 = vmatpush1.bf16.msra.mxu1 %v8815_v31  ;;  %v644_v38 = vmax.f32 %v464_v29, %v595_v33  ;;  %v1689_v29 = vunpack.c.l.bf16 %v969_v17  ;;  %v1694_v31 = vunpack.c.h.bf16 %v971_v26 }
 0x150   :  { %8817 = vmatprep.subr.bf16.mxu0 %v9851_v0  ;;  %9077 = vmatprep.subr.bf16.mxu1 %v9851_v0 }
 0x151   :  { %v596_v36 = vmul.f32 0.2, %v469_v34 }
 0x152   :  { %v473_v37 = vpop.f32.mrb[60].mxu0 }
 0x153   :  { %v645_v39 = vmax.f32 %v469_v34, %v596_v36  ;;  %v474_v40 = vadd.f32 %v10230_v52, %v473_v37  ;;  %v8595_v41 = vpop.f32.mrb[61].mxu0  ;;  %v973_v34 = vld [vmem:[%s14196_s1 + $0x9a0] sm:$0xff]  ;;  %v1693_v37 = vunpack.c.l.bf16 %v971_v26 }
 0x155   :  { %v8818_v42 = vpack.c.bf16 %v645_v39, %v644_v38  ;;  %v597_v44 = vmul.f32 0.2, %v474_v40  ;;  %v1698_v39 = vunpack.c.h.bf16 %v973_v34 }
 0x156   :  { %v478_v43 = vpop.f32.mrb[62].mxu0 }
 0x157   :  { %v479_v45 = vadd.f32 %v10230_v52, %v478_v43  ;;  %v8598_v46 = vpop.f32.mrb[63].mxu0  ;;  %8819 = vmatpush1.bf16.msra.mxu0 %v8818_v42  ;;  %9093 = vmatpush1.bf16.msra.mxu1 %v8818_v42  ;;  %v646_v49 = vmax.f32 %v474_v40, %v597_v44  ;;  %v975_v43 = vld [vmem:[%s14196_s1 + $0x9b0] sm:$0xff] }
 0x158   :  { %8820 = vmatprep.subr.bf16.mxu0 %v9851_v0  ;;  %9078 = vmatprep.subr.bf16.mxu1 %v9851_v0  ;;  %v1697_v46 = vunpack.c.l.bf16 %v973_v34 }
 0x159   :  { %v598_v47 = vmul.f32 0.2, %v479_v45 }
 0x15a   :  { %v483_v48 = vpop.f32.mrb[64].mxu0 }
 0x15b   :  { %v647_v50 = vmax.f32 %v479_v45, %v598_v47  ;;  %v484_v51 = vadd.f32 %v10230_v52, %v483_v48  ;;  %v8601_v53 = vpop.f32.mrb[65].mxu0  ;;  %v1702_v48 = vunpack.c.h.bf16 %v975_v43 }
 0x15d   :  { %v8821_v55 = vpack.c.bf16 %v647_v50, %v646_v49  ;;  %v599_v56 = vmul.f32 0.2, %v484_v51 }
 0x15e   :  { %v488_v59 = vpop.f32.mrb[66].mxu0 }
 0x15f   :  { %8822 = vmatpush1.bf16.msra.mxu0 %v8821_v55  ;;  %9094 = vmatpush1.bf16.msra.mxu1 %v8821_v55  ;;  %v489_v61 = vadd.f32 %v10230_v52, %v488_v59  ;;  %v8604_v62 = vpop.f32.mrb[67].mxu0  ;;  %v648_v1 = vmax.f32 %v484_v51, %v599_v56  ;;  %v977_v51 = vld [vmem:[%s14196_s1 + $0x9c0] sm:$0xff]  ;;  %v1701_v55 = vunpack.c.l.bf16 %v975_v43 }
 0x160   :  { %8823 = vmatprep.subr.bf16.mxu1 %v9851_v0  ;;  %v979_v62 = vld [vmem:[%s14196_s1 + $0x9d0] sm:$0xff] }
 0x161   :  { %v600_v2 = vmul.f32 0.2, %v489_v61 }
 0x162   :  { %3343 = vmatmul.mubr.f32.vlgmr.msra.gmra.mrb[0].mxu1 %v1673_v57  ;;  %v493_v5 = vpop.f32.mrb[68].mxu0  ;;  %v1706_v57 = vunpack.c.h.bf16 %v977_v51 }
 0x163   :  { %3347 = vmatprep.mubr.f32.mxu1 %v1678_v60  ;;  %v649_v6 = vmax.f32 %v489_v61, %v600_v2  ;;  %v494_v7 = vadd.f32 %v10230_v52, %v493_v5  ;;  %v8607_v8 = vpop.f32.mrb[69].mxu0  ;;  %v1705_v2 = vunpack.c.l.bf16 %v977_v51  ;;  %v1710_v5 = vunpack.c.h.bf16 %v979_v62 }
 0x165   :  { %v8824_v10 = vpack.c.bf16 %v649_v6, %v648_v1  ;;  %v601_v11 = vmul.f32 0.2, %v494_v7 }
 0x166   :  { %3348 = vmatmul.mubr.f32.gmra.mrb[2].mxu1 %v1677_v4  ;;  %v498_v13 = vpop.f32.mrb[70].mxu0 }
 0x167   :  { %3352 = vmatprep.mubr.f32.mxu1 %v1682_v58  ;;  %8825 = vmatpush1.bf16.msra.mxu1 %v8824_v10  ;;  %v499_v15 = vadd.f32 %v10230_v52, %v498_v13  ;;  %v8610_v16 = vpop.f32.mrb[71].mxu0  ;;  %v650_v18 = vmax.f32 %v494_v7, %v601_v11  ;;  %v981_v7 = vld [vmem:[%s14196_s1 + $0x9e0] sm:$0xff]  ;;  %v1709_v10 = vunpack.c.l.bf16 %v979_v62  ;;  %v999_v62 = vld [vmem:[%s14196_s1 + $0xa70] sm:$0xff] }
 0x168   :  { %8826 = vmatprep.subr.bf16.mxu1 %v9851_v0  ;;  %v983_v16 = vld [vmem:[%s14196_s1 + $0x9f0] sm:$0xff] }
 0x169   :  { %v602_v19 = vmul.f32 0.2, %v499_v15 }
 0x16a   :  { %3353 = vmatmul.mubr.f32.gmra.mrb[4].mxu1 %v1681_v12  ;;  %v503_v21 = vpop.f32.mrb[72].mxu0  ;;  %v1714_v12 = vunpack.c.h.bf16 %v981_v7 }
 0x16b   :  { %3357 = vmatprep.mubr.f32.mxu1 %v1686_v14  ;;  %v651_v23 = vmax.f32 %v499_v15, %v602_v19  ;;  %v504_v24 = vadd.f32 %v10230_v52, %v503_v21  ;;  %v8613_v25 = vpop.f32.mrb[73].mxu0  ;;  %v1713_v19 = vunpack.c.l.bf16 %v981_v7  ;;  %v1718_v21 = vunpack.c.h.bf16 %v983_v16 }
 0x16d   :  { %v8827_v27 = vpack.c.bf16 %v651_v23, %v650_v18  ;;  %v603_v28 = vmul.f32 0.2, %v504_v24 }
 0x16e   :  { %3358 = vmatmul.mubr.f32.gmra.mrb[6].mxu1 %v1685_v20  ;;  %v508_v30 = vpop.f32.mrb[74].mxu0 }
 0x16f   :  { %3362 = vmatprep.mubr.f32.mxu1 %v1690_v22  ;;  %8828 = vmatpush1.bf16.msra.mxu1 %v8827_v27  ;;  %v509_v32 = vadd.f32 %v10230_v52, %v508_v30  ;;  %v8616_v33 = vpop.f32.mrb[75].mxu0  ;;  %v652_v35 = vmax.f32 %v504_v24, %v603_v28  ;;  %v985_v24 = vld [vmem:[%s14196_s1 + $0xa00] sm:$0xff]  ;;  %v1717_v27 = vunpack.c.l.bf16 %v983_v16  ;;  %v987_v30 = vld [vmem:[%s14196_s1 + $0xa10] sm:$0xff] }
 0x170   :  { %8829 = vmatprep.subr.bf16.mxu1 %v9851_v0  ;;  %v1722_v28 = vunpack.c.h.bf16 %v985_v24  ;;  %v1726_v33 = vunpack.c.h.bf16 %v987_v30 }
 0x171   :  { %v604_v36 = vmul.f32 0.2, %v509_v32 }
 0x172   :  { %3363 = vmatmul.mubr.f32.gmra.mrb[8].mxu1 %v1689_v29  ;;  %v513_v38 = vpop.f32.mrb[76].mxu0 }
 0x173   :  { %3367 = vmatprep.mubr.f32.mxu1 %v1694_v31  ;;  %v653_v40 = vmax.f32 %v509_v32, %v604_v36  ;;  %v514_v41 = vadd.f32 %v10230_v52, %v513_v38  ;;  %v8619_v42 = vpop.f32.mrb[77].mxu0  ;;  %v1721_v32 = vunpack.c.l.bf16 %v985_v24  ;;  %v1725_v38 = vunpack.c.l.bf16 %v987_v30  ;;  %v1009_v24 = vld [vmem:[%s14196_s1 + $0xac0] sm:$0xff] }
 0x174   :  { %v991_v42 = vld [vmem:[%s14196_s1 + $0xa30] sm:$0xff]  ;;  %v1013_v30 = vld [vmem:[%s14196_s1 + $0xae0] sm:$0xff] }
 0x175   :  { %v8830_v44 = vpack.c.bf16 %v653_v40, %v652_v35  ;;  %v605_v45 = vmul.f32 0.2, %v514_v41  ;;  %v989_v35 = vld [vmem:[%s14196_s1 + $0xa20] sm:$0xff]  ;;  %v1733_v51 = vunpack.c.l.bf16 %v991_v42 }
 0x176   :  { %3368 = vmatmul.mubr.f32.gmra.mrb[10].mxu1 %v1693_v37  ;;  %v518_v47 = vpop.f32.mrb[78].mxu0  ;;  %v1730_v40 = vunpack.c.h.bf16 %v989_v35 }
 0x177   :  { %3372 = vmatprep.mubr.f32.mxu1 %v1698_v39  ;;  %8831 = vmatpush1.bf16.msra.mxu1 %v8830_v44  ;;  %v519_v49 = vadd.f32 %v10230_v52, %v518_v47  ;;  %v8622_v50 = vpop.f32.mrb[79].mxu0  ;;  %v654_v53 = vmax.f32 %v514_v41, %v605_v45  ;;  %v1729_v45 = vunpack.c.l.bf16 %v989_v35 }
 0x178   :  { %8832 = vmatprep.subr.bf16.mxu1 %v9851_v0 }
 0x179   :  { %v606_v54 = vmul.f32 0.2, %v519_v49 }
 0x17a   :  { %3373 = vmatmul.mubr.f32.gmra.mrb[12].mxu1 %v1697_v46  ;;  %v523_v56 = vpop.f32.mrb[80].mxu0 }
 0x17b   :  { %3377 = vmatprep.mubr.f32.mxu1 %v1702_v48  ;;  %v655_v59 = vmax.f32 %v519_v49, %v606_v54  ;;  %v524_v60 = vadd.f32 %v10230_v52, %v523_v56  ;;  %v8625_v61 = vpop.f32.mrb[81].mxu0  ;;  %v1734_v48 = vunpack.c.h.bf16 %v991_v42  ;;  %v993_v49 = vld [vmem:[%s14196_s1 + $0xa40] sm:$0xff] }
 0x17c   :  { %v1738_v54 = vunpack.c.h.bf16 %v993_v49  ;;  %v1737_v56 = vunpack.c.l.bf16 %v993_v49  ;;  %v1021_v49 = vld [vmem:[%s14196_s1 + $0xb20] sm:$0xff] }
 0x17d   :  { %v8833_v63 = vpack.c.bf16 %v655_v59, %v654_v53  ;;  %v607_v1 = vmul.f32 0.2, %v524_v60  ;;  %v997_v59 = vld [vmem:[%s14196_s1 + $0xa60] sm:$0xff] }
 0x17e   :  { %3378 = vmatmul.mubr.f32.gmra.mrb[14].mxu1 %v1701_v55  ;;  %v528_v4 = vpop.f32.mrb[82].mxu0  ;;  %v995_v55 = vld [vmem:[%s14196_s1 + $0xa50] sm:$0xff]  ;;  %v1746_v61 = vunpack.c.h.bf16 %v997_v59 }
 0x17f   :  { %3382 = vmatprep.mubr.f32.mxu1 %v1706_v57  ;;  %8834 = vmatpush1.bf16.msra.mxu1 %v8833_v63  ;;  %v529_v58 = vadd.f32 %v10230_v52, %v528_v4  ;;  %v8628_v6 = vpop.f32.mrb[83].mxu0  ;;  %v656_v8 = vmax.f32 %v524_v60, %v607_v1  ;;  %v1742_v57 = vunpack.c.h.bf16 %v995_v55  ;;  %v1741_v60 = vunpack.c.l.bf16 %v995_v55  ;;  %v1001_v1 = vld [vmem:[%s14196_s1 + $0xa80] sm:$0xff] }
 0x180   :  { %8835 = vmatprep.subr.bf16.mxu1 %v9851_v0  ;;  %v1745_v63 = vunpack.c.l.bf16 %v997_v59  ;;  %v1754_v4 = vunpack.c.h.bf16 %v1001_v1  ;;  %v669_v59 = vld [vmem:[%s14196_s1 + $0x20] sm:$0xff] }
 0x181   :  { %v608_v9 = vmul.f32 0.2, %v529_v58 }
 0x182   :  { %3383 = vmatmul.mubr.f32.gmra.mrb[16].mxu1 %v1705_v2  ;;  %v533_v11 = vpop.f32.mrb[84].mxu0  ;;  %v1749_v2 = vunpack.c.l.bf16 %v999_v62 }
 0x183   :  { %3387 = vmatprep.mubr.f32.mxu1 %v1710_v5  ;;  %v657_v13 = vmax.f32 %v529_v58, %v608_v9  ;;  %v534_v14 = vadd.f32 %v10230_v52, %v533_v11  ;;  %v8631_v15 = vpop.f32.mrb[85].mxu0  ;;  %v1003_v58 = vld [vmem:[%s14196_s1 + $0xa90] sm:$0xff] }
 0x184   :  { %v1757_v15 = vunpack.c.l.bf16 %v1003_v58 }
 0x185   :  { %v8836_v17 = vpack.c.bf16 %v657_v13, %v656_v8  ;;  %v609_v18 = vmul.f32 0.2, %v534_v14  ;;  %v1753_v8 = vunpack.c.l.bf16 %v1001_v1  ;;  %v671_v1 = vld [vmem:[%s14196_s1 + $0x30] sm:$0xff] }
 0x186   :  { %3388 = vmatmul.mubr.f32.gmra.mrb[18].mxu1 %v1709_v10  ;;  %v538_v20 = vpop.f32.mrb[86].mxu0  ;;  %v1758_v10 = vunpack.c.h.bf16 %v1003_v58  ;;  %v1027_v58 = vld [vmem:[%s14196_s1 + $0xb50] sm:$0xff] }
 0x187   :  { %3392 = vmatprep.mubr.f32.mxu1 %v1714_v12  ;;  %8837 = vmatpush1.bf16.msra.mxu1 %v8836_v17  ;;  %v539_v22 = vadd.f32 %v10230_v52, %v538_v20  ;;  %v8634_v23 = vpop.f32.mrb[87].mxu0  ;;  %v658_v25 = vmax.f32 %v534_v14, %v609_v18  ;;  %v1005_v12 = vld [vmem:[%s14196_s1 + $0xaa0] sm:$0xff] }
 0x188   :  { %8838 = vmatprep.subr.bf16.mxu1 %v9851_v0  ;;  %v1762_v18 = vunpack.c.h.bf16 %v1005_v12 }
 0x189   :  { %v610_v26 = vmul.f32 0.2, %v539_v22 }
 0x18a   :  { %3393 = vmatmul.mubr.f32.gmra.mrb[20].mxu1 %v1713_v19  ;;  %v543_v34 = vpop.f32.mrb[88].mxu0  ;;  %v1007_v19 = vld [vmem:[%s14196_s1 + $0xab0] sm:$0xff] }
 0x18b   :  { %3397 = vmatprep.mubr.f32.mxu1 %v1718_v21  ;;  %v659_v29 = vmax.f32 %v539_v22, %v610_v26  ;;  %v544_v36 = vadd.f32 %v10230_v52, %v543_v34  ;;  %v8637_v37 = vpop.f32.mrb[89].mxu0  ;;  %v1761_v21 = vunpack.c.l.bf16 %v1005_v12  ;;  %v1766_v23 = vunpack.c.h.bf16 %v1007_v19 }
 0x18c   :  { %v1770_v26 = vunpack.c.h.bf16 %v1009_v24  ;;  %v1777_v34 = vunpack.c.l.bf16 %v1013_v30  ;;  %v1805_v12 = vunpack.c.l.bf16 %v1027_v58 }
 0x18d   :  { %v8839_v31 = vpack.c.bf16 %v659_v29, %v658_v25  ;;  %v611_v39 = vmul.f32 0.2, %v544_v36  ;;  %v1765_v25 = vunpack.c.l.bf16 %v1007_v19  ;;  %v677_v19 = vld [vmem:[%s14196_s1 + $0x60] sm:$0xff] }
 0x18e   :  { %3398 = vmatmul.mubr.f32.gmra.mrb[22].mxu1 %v1717_v27  ;;  %v548_v41 = vpop.f32.mrb[90].mxu0  ;;  %v1011_v27 = vld [vmem:[%s14196_s1 + $0xad0] sm:$0xff] }
 0x18f   :  { %3402 = vmatprep.mubr.f32.mxu1 %v1722_v28  ;;  %8840 = vmatpush1.bf16.msra.mxu1 %v8839_v31  ;;  %v549_v43 = vadd.f32 %v10230_v52, %v548_v41  ;;  %v8640_v44 = vpop.f32.mrb[91].mxu0  ;;  %v660_v46 = vmax.f32 %v544_v36, %v611_v39  ;;  %v1769_v28 = vunpack.c.l.bf16 %v1009_v24  ;;  %v1774_v29 = vunpack.c.h.bf16 %v1011_v27  ;;  %v1017_v39 = vld [vmem:[%s14196_s1 + $0xb00] sm:$0xff] }
 0x190   :  { %8841 = vmatprep.subr.bf16.mxu1 %v9851_v0  ;;  %v1773_v31 = vunpack.c.l.bf16 %v1011_v27  ;;  %v1786_v42 = vunpack.c.h.bf16 %v1017_v39  ;;  %v1019_v44 = vld [vmem:[%s14196_s1 + $0xb10] sm:$0xff] }
 0x191   :  { %v612_v47 = vmul.f32 0.2, %v549_v43 }
 0x192   :  { %3403 = vmatmul.mubr.f32.gmra.mrb[24].mxu1 %v1721_v32  ;;  %v553_v5 = vpop.f32.mrb[92].mxu0  ;;  %v1778_v32 = vunpack.c.h.bf16 %v1013_v30 }
 0x193   :  { %3407 = vmatprep.mubr.f32.mxu1 %v1726_v33  ;;  %v661_v50 = vmax.f32 %v549_v43, %v612_v47  ;;  %v554_v6 = vadd.f32 %v10230_v52, %v553_v5  ;;  %v8643_v7 = vpop.f32.mrb[93].mxu0  ;;  %v1015_v33 = vld [vmem:[%s14196_s1 + $0xaf0] sm:$0xff]  ;;  %v1093_v5 = vunpack.c.l.bf16 %v671_v1 }
 0x194   :  { %v1782_v36 = vunpack.c.h.bf16 %v1015_v33  ;;  %v1781_v41 = vunpack.c.l.bf16 %v1015_v33  ;;  %v673_v7 = vld [vmem:[%s14196_s1 + $0x40] sm:$0xff] }
 0x195   :  { %v8842_v53 = vpack.c.bf16 %v661_v50, %v660_v46  ;;  %v613_v9 = vmul.f32 0.2, %v554_v6  ;;  %v1790_v46 = vunpack.c.h.bf16 %v1019_v44  ;;  %v1789_v50 = vunpack.c.l.bf16 %v1019_v44 }
 0x196   :  { %3408 = vmatmul.mubr.f32.gmra.mrb[26].mxu1 %v1725_v38  ;;  %v558_v11 = vpop.f32.mrb[94].mxu0 }
 0x197   :  { %3412 = vmatprep.mubr.f32.mxu1 %v1730_v40  ;;  %8843 = vmatpush1.bf16.msra.mxu1 %v8842_v53  ;;  %v559_v13 = vadd.f32 %v10230_v52, %v558_v11  ;;  %v8646_v14 = vpop.f32.mrb[95].mxu0  ;;  %v662_v16 = vmax.f32 %v554_v6, %v613_v9  ;;  %v1794_v53 = vunpack.c.h.bf16 %v1021_v49  ;;  %v1098_v9 = vunpack.c.h.bf16 %v673_v7  ;;  %v1029_v11 = vld [vmem:[%s14196_s1 + $0xb60] sm:$0xff] }
 0x198   :  { %8844 = vmatprep.subr.bf16.mxu1 %v9851_v0  ;;  %v1750_v0 = vunpack.c.h.bf16 %v999_v62  ;;  %v1089_v62 = vunpack.c.l.bf16 %v669_v59  ;;  %v1810_v14 = vunpack.c.h.bf16 %v1029_v11 }
 0x199   :  { %v614_v17 = vmul.f32 0.2, %v559_v13 }
 0x19a   :  { %3413 = vmatmul.mubr.f32.gmra.mrb[28].mxu1 %v1729_v45  ;;  %v563_v35 = vpop.f32.mrb[96].mxu0  ;;  %v1785_v45 = vunpack.c.l.bf16 %v1017_v39 }
 0x19b   :  { %3417 = vmatprep.mubr.f32.mxu1 %v1734_v48  ;;  %v663_v20 = vmax.f32 %v559_v13, %v614_v17  ;;  %v564_v37 = vadd.f32 %v10230_v52, %v563_v35  ;;  %v8649_v38 = vpop.f32.mrb[97].mxu0  ;;  %v665_v52 = vld [vmem:[%s14196_s1] sm:$0xff]  ;;  %v675_v13 = vld [vmem:[%s14196_s1 + $0x50] sm:$0xff] }
 0x19c   :  { %v1081_v47 = vunpack.c.l.bf16 %v665_v52  ;;  %v1082_v48 = vunpack.c.h.bf16 %v665_v52  ;;  %v1031_v17 = vld [vmem:[%s14196_s1 + $0xb70] sm:$0xff]  ;;  %v1037_v35 = vld [vmem:[%s14196_s1 + $0xba0] sm:$0xff] }
 0x19d   :  { %v8845_v22 = vpack.c.bf16 %v663_v20, %v662_v16  ;;  %v615_v40 = vmul.f32 0.2, %v564_v37  ;;  %v1101_v16 = vunpack.c.l.bf16 %v675_v13  ;;  %v1814_v20 = vunpack.c.h.bf16 %v1031_v17 }
 0x19e   :  { %3418 = vmatmul.mubr.f32.gmra.mrb[30].mxu1 %v1733_v51  ;;  %2602 = vmatprep.mubr.f32.mxu0 %v1082_v48  ;;  %v667_v51 = vld [vmem:[%s14196_s1 + $0x10] sm:$0xff]  ;;  %v1813_v24 = vunpack.c.l.bf16 %v1031_v17  ;;  %v1826_v38 = vunpack.c.h.bf16 %v1037_v35 }
 0x19f   :  { %3422 = vmatprep.mubr.f32.mxu1 %v1738_v54  ;;  %8846 = vmatpush1.bf16.msra.mxu1 %v8845_v22  ;;  %v664_v43 = vmax.f32 %v564_v37, %v615_v40  ;;  %v1086_v54 = vunpack.c.h.bf16 %v667_v51  ;;  %v1085_v55 = vunpack.c.l.bf16 %v667_v51  ;;  %v1105_v22 = vunpack.c.l.bf16 %v677_v19  ;;  %v683_v37 = vld [vmem:[%s14196_s1 + $0x90] sm:$0xff] }
 0x1a0   :  { %3675 = vmatprep.subr.mxu1 %v14209_v3  ;;  %2603 = vmatmul.mubr.f32.vlgmr.msra.gmra.mrb[98].mxu0 %v1081_v47  ;;  %v1118_v39 = vunpack.c.h.bf16 %v683_v37  ;;  %v1117_v40 = vunpack.c.l.bf16 %v683_v37  ;;  %v687_v48 = vld [vmem:[%s14196_s1 + $0xb0] sm:$0xff] }
 0x1a1   :  { %2607 = vmatprep.mubr.f32.mxu0 %v1086_v54  ;;  %v1125_v51 = vunpack.c.l.bf16 %v687_v48 }
 0x1a2   :  { %3423 = vmatmul.mubr.f32.gmra.mrb[32].mxu1 %v1737_v56  ;;  %v1023_v56 = vld [vmem:[%s14196_s1 + $0xb30] sm:$0xff] }
 0x1a3   :  { %3427 = vmatprep.mubr.f32.mxu1 %v1742_v57  ;;  %3676 = vmatpush1.msra.mxu1 %v664_v43  ;;  %v1793_v57 = vunpack.c.l.bf16 %v1021_v49  ;;  %v685_v43 = vld [vmem:[%s14196_s1 + $0xa0] sm:$0xff] }
 0x1a4   :  { %2608 = vmatmul.mubr.f32.gmra.mrb[100].mxu0 %v1085_v55  ;;  %v1121_v52 = vunpack.c.l.bf16 %v685_v43  ;;  %v689_v55 = vld [vmem:[%s14196_s1 + $0xc0] sm:$0xff] }
 0x1a6   :  { %3428 = vmatmul.mubr.f32.gmra.mrb[34].mxu1 %v1741_v60  ;;  %v1798_v60 = vunpack.c.h.bf16 %v1023_v56 }
 0x1a7   :  { %3432 = vmatprep.mubr.f32.mxu1 %v1746_v61  ;;  %v1090_v61 = vunpack.c.h.bf16 %v669_v59  ;;  %v1129_v59 = vunpack.c.l.bf16 %v689_v55 }
 0x1a9   :  { %2612 = vmatprep.mubr.f32.mxu0 %v1090_v61 }
 0x1aa   :  { %3433 = vmatmul.mubr.f32.gmra.mrb[36].mxu1 %v1745_v63  ;;  %v1025_v63 = vld [vmem:[%s14196_s1 + $0xb40] sm:$0xff]  ;;  %2613 = vmatmul.mubr.f32.gmra.mrb[102].mxu0 %v1089_v62  ;;  %v691_v62 = vld [vmem:[%s14196_s1 + $0xd0] sm:$0xff] }
 0x1ab   :  { %3437 = vmatprep.mubr.f32.mxu1 %v1750_v0  ;;  %v1797_v0 = vunpack.c.l.bf16 %v1023_v56  ;;  %v1801_v6 = vunpack.c.l.bf16 %v1025_v63 }
 0x1ae   :  { %3438 = vmatmul.mubr.f32.gmra.mrb[38].mxu1 %v1749_v2  ;;  %v1802_v2 = vunpack.c.h.bf16 %v1025_v63 }
 0x1af   :  { %3442 = vmatprep.mubr.f32.mxu1 %v1754_v4  ;;  %v1094_v4 = vunpack.c.h.bf16 %v671_v1  ;;  %v1133_v1 = vunpack.c.l.bf16 %v691_v62 }
 0x1b1   :  { %2617 = vmatprep.mubr.f32.mxu0 %v1094_v4 }
 0x1b2   :  { %3443 = vmatmul.mubr.f32.gmra.mrb[40].mxu1 %v1753_v8  ;;  %2618 = vmatmul.mubr.f32.gmra.mrb[104].mxu0 %v1093_v5  ;;  %v1806_v8 = vunpack.c.h.bf16 %v1027_v58  ;;  %v693_v5 = vld [vmem:[%s14196_s1 + $0xe0] sm:$0xff] }
 0x1b3   :  { %3447 = vmatprep.mubr.f32.mxu1 %v1758_v10  ;;  %v1097_v10 = vunpack.c.l.bf16 %v673_v7  ;;  %2622 = vmatprep.mubr.f32.mxu0 %v1098_v9  ;;  %v1137_v7 = vunpack.c.l.bf16 %v693_v5 }
 0x1b6   :  { %3448 = vmatmul.mubr.f32.gmra.mrb[42].mxu1 %v1757_v15  ;;  %2623 = vmatmul.mubr.f32.gmra.mrb[106].mxu0 %v1097_v10  ;;  %v1102_v15 = vunpack.c.h.bf16 %v675_v13  ;;  %v695_v10 = vld [vmem:[%s14196_s1 + $0xf0] sm:$0xff] }
 0x1b7   :  { %3452 = vmatprep.mubr.f32.mxu1 %v1762_v18  ;;  %v1809_v18 = vunpack.c.l.bf16 %v1029_v11  ;;  %v1141_v13 = vunpack.c.l.bf16 %v695_v10 }
 0x1b8   :  { %2627 = vmatprep.mubr.f32.mxu0 %v1102_v15 }
 0x1ba   :  { %3453 = vmatmul.mubr.f32.gmra.mrb[44].mxu1 %v1761_v21  ;;  %2628 = vmatmul.mubr.f32.gmra.mrb[108].mxu0 %v1101_v16  ;;  %v1106_v21 = vunpack.c.h.bf16 %v677_v19  ;;  %v697_v16 = vld [vmem:[%s14196_s1 + $0x100] sm:$0xff] }
 0x1bb   :  { %3457 = vmatprep.mubr.f32.mxu1 %v1766_v23  ;;  %v1033_v23 = vld [vmem:[%s14196_s1 + $0xb80] sm:$0xff]  ;;  %v1145_v19 = vunpack.c.l.bf16 %v697_v16 }
 0x1bc   :  { %2632 = vmatprep.mubr.f32.mxu0 %v1106_v21  ;;  %v1817_v30 = vunpack.c.l.bf16 %v1033_v23 }
 0x1be   :  { %3458 = vmatmul.mubr.f32.gmra.mrb[46].mxu1 %v1765_v25  ;;  %2633 = vmatmul.mubr.f32.gmra.mrb[110].mxu0 %v1105_v22  ;;  %v679_v25 = vld [vmem:[%s14196_s1 + $0x70] sm:$0xff] }
 0x1bf   :  { %3462 = vmatprep.mubr.f32.mxu1 %v1770_v26  ;;  %v1818_v26 = vunpack.c.h.bf16 %v1033_v23  ;;  %v1110_v27 = vunpack.c.h.bf16 %v679_v25  ;;  %v699_v22 = vld [vmem:[%s14196_s1 + $0x110] sm:$0xff] }
 0x1c1   :  { %2637 = vmatprep.mubr.f32.mxu0 %v1110_v27 }
 0x1c2   :  { %3463 = vmatmul.mubr.f32.gmra.mrb[48].mxu1 %v1769_v28  ;;  %v1109_v28 = vunpack.c.l.bf16 %v679_v25  ;;  %v1149_v25 = vunpack.c.l.bf16 %v699_v22 }
 0x1c3   :  { %3467 = vmatprep.mubr.f32.mxu1 %v1774_v29  ;;  %v1035_v29 = vld [vmem:[%s14196_s1 + $0xb90] sm:$0xff] }
 0x1c4   :  { %2638 = vmatmul.mubr.f32.gmra.mrb[112].mxu0 %v1109_v28  ;;  %v701_v28 = vld [vmem:[%s14196_s1 + $0x120] sm:$0xff] }
 0x1c6   :  { %3468 = vmatmul.mubr.f32.gmra.mrb[50].mxu1 %v1773_v31  ;;  %v681_v31 = vld [vmem:[%s14196_s1 + $0x80] sm:$0xff] }
 0x1c7   :  { %3472 = vmatprep.mubr.f32.mxu1 %v1778_v32  ;;  %v1822_v32 = vunpack.c.h.bf16 %v1035_v29  ;;  %v1114_v33 = vunpack.c.h.bf16 %v681_v31 }
 0x1c9   :  { %2642 = vmatprep.mubr.f32.mxu0 %v1114_v33 }
 0x1ca   :  { %3473 = vmatmul.mubr.f32.gmra.mrb[52].mxu1 %v1777_v34  ;;  %v1113_v34 = vunpack.c.l.bf16 %v681_v31  ;;  %v1153_v31 = vunpack.c.l.bf16 %v701_v28 }
 0x1cb   :  { %3477 = vmatprep.mubr.f32.mxu1 %v1782_v36  ;;  %v1821_v36 = vunpack.c.l.bf16 %v1035_v29 }
 0x1cc   :  { %2643 = vmatmul.mubr.f32.gmra.mrb[114].mxu0 %v1113_v34  ;;  %v703_v34 = vld [vmem:[%s14196_s1 + $0x130] sm:$0xff] }
 0x1cd   :  { %2647 = vmatprep.mubr.f32.mxu0 %v1118_v39  ;;  %v1157_v37 = vunpack.c.l.bf16 %v703_v34 }
 0x1ce   :  { %3478 = vmatmul.mubr.f32.gmra.mrb[54].mxu1 %v1781_v41  ;;  %v1039_v41 = vld [vmem:[%s14196_s1 + $0xbb0] sm:$0xff] }
 0x1cf   :  { %3482 = vmatprep.mubr.f32.mxu1 %v1786_v42  ;;  %v1825_v42 = vunpack.c.l.bf16 %v1037_v35  ;;  %v1830_v44 = vunpack.c.h.bf16 %v1039_v41  ;;  %v1829_v47 = vunpack.c.l.bf16 %v1039_v41 }
 0x1d0   :  { %2648 = vmatmul.mubr.f32.gmra.mrb[116].mxu0 %v1117_v40  ;;  %v705_v40 = vld [vmem:[%s14196_s1 + $0x140] sm:$0xff] }
 0x1d2   :  { %3483 = vmatmul.mubr.f32.gmra.mrb[56].mxu1 %v1785_v45  ;;  %v1122_v45 = vunpack.c.h.bf16 %v685_v43  ;;  %v1161_v43 = vunpack.c.l.bf16 %v705_v40 }
 0x1d3   :  { %3487 = vmatprep.mubr.f32.mxu1 %v1790_v46  ;;  %v1041_v46 = vld [vmem:[%s14196_s1 + $0xbc0] sm:$0xff] }
 0x1d4   :  { %2652 = vmatprep.mubr.f32.mxu0 %v1122_v45  ;;  %v1834_v49 = vunpack.c.h.bf16 %v1041_v46  ;;  %v1833_v54 = vunpack.c.l.bf16 %v1041_v46 }
 0x1d5   :  { %2653 = vmatmul.mubr.f32.gmra.mrb[118].mxu0 %v1121_v52  ;;  %v707_v52 = vld [vmem:[%s14196_s1 + $0x150] sm:$0xff] }
 0x1d6   :  { %3488 = vmatmul.mubr.f32.gmra.mrb[58].mxu1 %v1789_v50  ;;  %v1126_v50 = vunpack.c.h.bf16 %v687_v48  ;;  %v1165_v48 = vunpack.c.l.bf16 %v707_v52 }
 0x1d7   :  { %3492 = vmatprep.mubr.f32.mxu1 %v1794_v53  ;;  %v1043_v53 = vld [vmem:[%s14196_s1 + $0xbd0] sm:$0xff] }
 0x1d8   :  { %2657 = vmatprep.mubr.f32.mxu0 %v1126_v50  ;;  %v1838_v56 = vunpack.c.h.bf16 %v1043_v53  ;;  %v1837_v61 = vunpack.c.l.bf16 %v1043_v53 }
 0x1d9   :  { %2658 = vmatmul.mubr.f32.gmra.mrb[120].mxu0 %v1125_v51  ;;  %v709_v51 = vld [vmem:[%s14196_s1 + $0x160] sm:$0xff] }
 0x1da   :  { %3493 = vmatmul.mubr.f32.gmra.mrb[60].mxu1 %v1793_v57  ;;  %v1130_v57 = vunpack.c.h.bf16 %v689_v55  ;;  %v1169_v55 = vunpack.c.l.bf16 %v709_v51 }
 0x1db   :  { %3497 = vmatprep.mubr.f32.mxu1 %v1798_v60  ;;  %v1045_v60 = vld [vmem:[%s14196_s1 + $0xbe0] sm:$0xff] }
 0x1dc   :  { %2662 = vmatprep.mubr.f32.mxu0 %v1130_v57  ;;  %v1842_v63 = vunpack.c.h.bf16 %v1045_v60  ;;  %v1841_v4 = vunpack.c.l.bf16 %v1045_v60 }
 0x1dd   :  { %2663 = vmatmul.mubr.f32.gmra.mrb[122].mxu0 %v1129_v59  ;;  %v711_v59 = vld [vmem:[%s14196_s1 + $0x170] sm:$0xff] }
 0x1de   :  { %3498 = vmatmul.mubr.f32.gmra.mrb[62].mxu1 %v1797_v0  ;;  %v1134_v0 = vunpack.c.h.bf16 %v691_v62  ;;  %v1173_v62 = vunpack.c.l.bf16 %v711_v59 }
 0x1df   :  { %3502 = vmatprep.mubr.f32.mxu1 %v1802_v2  ;;  %v1047_v2 = vld [vmem:[%s14196_s1 + $0xbf0] sm:$0xff] }
 0x1e0   :  { %2667 = vmatprep.mubr.f32.mxu0 %v1134_v0  ;;  %v1846_v58 = vunpack.c.h.bf16 %v1047_v2  ;;  %v1845_v9 = vunpack.c.l.bf16 %v1047_v2 }
 0x1e1   :  { %2668 = vmatmul.mubr.f32.gmra.mrb[124].mxu0 %v1133_v1  ;;  %v713_v1 = vld [vmem:[%s14196_s1 + $0x180] sm:$0xff] }
 0x1e2   :  { %3503 = vmatmul.mubr.f32.gmra.mrb[64].mxu1 %v1801_v6  ;;  %v1138_v6 = vunpack.c.h.bf16 %v693_v5  ;;  %v1177_v5 = vunpack.c.l.bf16 %v713_v1 }
 0x1e3   :  { %3507 = vmatprep.mubr.f32.mxu1 %v1806_v8  ;;  %v1049_v8 = vld [vmem:[%s14196_s1 + $0xc00] sm:$0xff] }
 0x1e4   :  { %2672 = vmatprep.mubr.f32.mxu0 %v1138_v6  ;;  %v1850_v11 = vunpack.c.h.bf16 %v1049_v8  ;;  %v1849_v15 = vunpack.c.l.bf16 %v1049_v8 }
 0x1e5   :  { %2673 = vmatmul.mubr.f32.gmra.mrb[126].mxu0 %v1137_v7  ;;  %v715_v7 = vld [vmem:[%s14196_s1 + $0x190] sm:$0xff] }
 0x1e6   :  { %3508 = vmatmul.mubr.f32.gmra.mrb[66].mxu1 %v1805_v12  ;;  %v1142_v12 = vunpack.c.h.bf16 %v695_v10  ;;  %v1181_v10 = vunpack.c.l.bf16 %v715_v7 }
 0x1e7   :  { %3512 = vmatprep.mubr.f32.mxu1 %v1810_v14  ;;  %v1051_v14 = vld [vmem:[%s14196_s1 + $0xc10] sm:$0xff] }
 0x1e8   :  { %2677 = vmatprep.mubr.f32.mxu0 %v1142_v12  ;;  %v1854_v17 = vunpack.c.h.bf16 %v1051_v14  ;;  %v1853_v21 = vunpack.c.l.bf16 %v1051_v14 }
 0x1e9   :  { %2678 = vmatmul.mubr.f32.gmra.mrb[128].mxu0 %v1141_v13  ;;  %v717_v13 = vld [vmem:[%s14196_s1 + $0x1a0] sm:$0xff] }
 0x1ea   :  { %3513 = vmatmul.mubr.f32.gmra.mrb[68].mxu1 %v1809_v18  ;;  %v1146_v18 = vunpack.c.h.bf16 %v697_v16  ;;  %v1185_v16 = vunpack.c.l.bf16 %v717_v13 }
 0x1eb   :  { %3517 = vmatprep.mubr.f32.mxu1 %v1814_v20  ;;  %v1053_v20 = vld [vmem:[%s14196_s1 + $0xc20] sm:$0xff] }
 0x1ec   :  { %2682 = vmatprep.mubr.f32.mxu0 %v1146_v18  ;;  %v1858_v23 = vunpack.c.h.bf16 %v1053_v20  ;;  %v1857_v27 = vunpack.c.l.bf16 %v1053_v20 }
 0x1ed   :  { %2683 = vmatmul.mubr.f32.gmra.mrb[130].mxu0 %v1145_v19  ;;  %v719_v19 = vld [vmem:[%s14196_s1 + $0x1b0] sm:$0xff] }
 0x1ee   :  { %3518 = vmatmul.mubr.f32.gmra.mrb[70].mxu1 %v1813_v24  ;;  %v1150_v24 = vunpack.c.h.bf16 %v699_v22  ;;  %v1189_v22 = vunpack.c.l.bf16 %v719_v19 }
 0x1ef   :  { %3522 = vmatprep.mubr.f32.mxu1 %v1818_v26  ;;  %v1055_v26 = vld [vmem:[%s14196_s1 + $0xc30] sm:$0xff] }
 0x1f0   :  { %2687 = vmatprep.mubr.f32.mxu0 %v1150_v24  ;;  %v1862_v29 = vunpack.c.h.bf16 %v1055_v26  ;;  %v1861_v33 = vunpack.c.l.bf16 %v1055_v26 }
 0x1f1   :  { %2688 = vmatmul.mubr.f32.gmra.mrb[132].mxu0 %v1149_v25  ;;  %v721_v25 = vld [vmem:[%s14196_s1 + $0x1c0] sm:$0xff] }
 0x1f2   :  { %3523 = vmatmul.mubr.f32.gmra.mrb[72].mxu1 %v1817_v30  ;;  %v1154_v30 = vunpack.c.h.bf16 %v701_v28  ;;  %v1193_v28 = vunpack.c.l.bf16 %v721_v25 }
 0x1f3   :  { %3527 = vmatprep.mubr.f32.mxu1 %v1822_v32  ;;  %v1057_v32 = vld [vmem:[%s14196_s1 + $0xc40] sm:$0xff] }
 0x1f4   :  { %2692 = vmatprep.mubr.f32.mxu0 %v1154_v30  ;;  %v1866_v35 = vunpack.c.h.bf16 %v1057_v32  ;;  %v1865_v39 = vunpack.c.l.bf16 %v1057_v32 }
 0x1f5   :  { %2693 = vmatmul.mubr.f32.gmra.mrb[134].mxu0 %v1153_v31  ;;  %v723_v31 = vld [vmem:[%s14196_s1 + $0x1d0] sm:$0xff] }
 0x1f6   :  { %3528 = vmatmul.mubr.f32.gmra.mrb[74].mxu1 %v1821_v36  ;;  %v1158_v36 = vunpack.c.h.bf16 %v703_v34  ;;  %v1197_v34 = vunpack.c.l.bf16 %v723_v31 }
 0x1f7   :  { %3532 = vmatprep.mubr.f32.mxu1 %v1826_v38  ;;  %v1059_v38 = vld [vmem:[%s14196_s1 + $0xc50] sm:$0xff] }
 0x1f8   :  { %2697 = vmatprep.mubr.f32.mxu0 %v1158_v36  ;;  %v1870_v41 = vunpack.c.h.bf16 %v1059_v38  ;;  %v1869_v45 = vunpack.c.l.bf16 %v1059_v38 }
 0x1f9   :  { %2698 = vmatmul.mubr.f32.gmra.mrb[136].mxu0 %v1157_v37  ;;  %v725_v37 = vld [vmem:[%s14196_s1 + $0x1e0] sm:$0xff] }
 0x1fa   :  { %3533 = vmatmul.mubr.f32.gmra.mrb[76].mxu1 %v1825_v42  ;;  %v1162_v42 = vunpack.c.h.bf16 %v705_v40  ;;  %v1201_v40 = vunpack.c.l.bf16 %v725_v37 }
 0x1fb   :  { %3537 = vmatprep.mubr.f32.mxu1 %v1830_v44  ;;  %v1061_v44 = vld [vmem:[%s14196_s1 + $0xc60] sm:$0xff] }
 0x1fc   :  { %2702 = vmatprep.mubr.f32.mxu0 %v1162_v42  ;;  %v1874_v46 = vunpack.c.h.bf16 %v1061_v44  ;;  %v1873_v50 = vunpack.c.l.bf16 %v1061_v44 }
 0x1fd   :  { %2703 = vmatmul.mubr.f32.gmra.mrb[138].mxu0 %v1161_v43  ;;  %v727_v43 = vld [vmem:[%s14196_s1 + $0x1f0] sm:$0xff] }
 0x1fe   :  { %3538 = vmatmul.mubr.f32.gmra.mrb[78].mxu1 %v1829_v47  ;;  %v1166_v47 = vunpack.c.h.bf16 %v707_v52  ;;  %v1205_v52 = vunpack.c.l.bf16 %v727_v43 }
 0x1ff   :  { %3542 = vmatprep.mubr.f32.mxu1 %v1834_v49  ;;  %v1063_v49 = vld [vmem:[%s14196_s1 + $0xc70] sm:$0xff] }
 0x200   :  { %2707 = vmatprep.mubr.f32.mxu0 %v1166_v47  ;;  %v1878_v53 = vunpack.c.h.bf16 %v1063_v49  ;;  %v1877_v57 = vunpack.c.l.bf16 %v1063_v49 }
 0x201   :  { %2708 = vmatmul.mubr.f32.gmra.mrb[140].mxu0 %v1165_v48  ;;  %v729_v48 = vld [vmem:[%s14196_s1 + $0x200] sm:$0xff] }
 0x202   :  { %3543 = vmatmul.mubr.f32.gmra.mrb[80].mxu1 %v1833_v54  ;;  %v1170_v54 = vunpack.c.h.bf16 %v709_v51  ;;  %v1209_v51 = vunpack.c.l.bf16 %v729_v48 }
 0x203   :  { %3547 = vmatprep.mubr.f32.mxu1 %v1838_v56  ;;  %v1065_v56 = vld [vmem:[%s14196_s1 + $0xc80] sm:$0xff] }
 0x204   :  { %2712 = vmatprep.mubr.f32.mxu0 %v1170_v54  ;;  %v1882_v60 = vunpack.c.h.bf16 %v1065_v56  ;;  %v1881_v0 = vunpack.c.l.bf16 %v1065_v56 }
 0x205   :  { %2713 = vmatmul.mubr.f32.gmra.mrb[142].mxu0 %v1169_v55  ;;  %v731_v55 = vld [vmem:[%s14196_s1 + $0x210] sm:$0xff] }
 0x206   :  { %3548 = vmatmul.mubr.f32.gmra.mrb[82].mxu1 %v1837_v61  ;;  %v1174_v61 = vunpack.c.h.bf16 %v711_v59  ;;  %v1213_v59 = vunpack.c.l.bf16 %v731_v55 }
 0x207   :  { %3552 = vmatprep.mubr.f32.mxu1 %v1842_v63  ;;  %v1067_v63 = vld [vmem:[%s14196_s1 + $0xc90] sm:$0xff] }
 0x208   :  { %2717 = vmatprep.mubr.f32.mxu0 %v1174_v61  ;;  %v1886_v2 = vunpack.c.h.bf16 %v1067_v63  ;;  %v1885_v6 = vunpack.c.l.bf16 %v1067_v63 }
 0x209   :  { %2718 = vmatmul.mubr.f32.gmra.mrb[144].mxu0 %v1173_v62  ;;  %v733_v62 = vld [vmem:[%s14196_s1 + $0x220] sm:$0xff] }
 0x20a   :  { %3553 = vmatmul.mubr.f32.gmra.mrb[84].mxu1 %v1841_v4  ;;  %v1178_v4 = vunpack.c.h.bf16 %v713_v1  ;;  %v1217_v1 = vunpack.c.l.bf16 %v733_v62 }
 0x20b   :  { %3557 = vmatprep.mubr.f32.mxu1 %v1846_v58  ;;  %v1069_v58 = vld [vmem:[%s14196_s1 + $0xca0] sm:$0xff] }
 0x20c   :  { %2722 = vmatprep.mubr.f32.mxu0 %v1178_v4  ;;  %v1890_v8 = vunpack.c.h.bf16 %v1069_v58  ;;  %v1889_v12 = vunpack.c.l.bf16 %v1069_v58 }
 0x20d   :  { %2723 = vmatmul.mubr.f32.gmra.mrb[146].mxu0 %v1177_v5  ;;  %v735_v5 = vld [vmem:[%s14196_s1 + $0x230] sm:$0xff] }
 0x20e   :  { %3558 = vmatmul.mubr.f32.gmra.mrb[86].mxu1 %v1845_v9  ;;  %v1182_v9 = vunpack.c.h.bf16 %v715_v7  ;;  %v1221_v7 = vunpack.c.l.bf16 %v735_v5 }
 0x20f   :  { %3562 = vmatprep.mubr.f32.mxu1 %v1850_v11  ;;  %v1071_v11 = vld [vmem:[%s14196_s1 + $0xcb0] sm:$0xff] }
 0x210   :  { %2727 = vmatprep.mubr.f32.mxu0 %v1182_v9  ;;  %v1894_v14 = vunpack.c.h.bf16 %v1071_v11  ;;  %v1893_v18 = vunpack.c.l.bf16 %v1071_v11 }
 0x211   :  { %2728 = vmatmul.mubr.f32.gmra.mrb[148].mxu0 %v1181_v10  ;;  %v737_v10 = vld [vmem:[%s14196_s1 + $0x240] sm:$0xff] }
 0x212   :  { %3563 = vmatmul.mubr.f32.gmra.mrb[88].mxu1 %v1849_v15  ;;  %v1186_v15 = vunpack.c.h.bf16 %v717_v13  ;;  %v1225_v13 = vunpack.c.l.bf16 %v737_v10 }
 0x213   :  { %3567 = vmatprep.mubr.f32.mxu1 %v1854_v17  ;;  %v1073_v17 = vld [vmem:[%s14196_s1 + $0xcc0] sm:$0xff] }
 0x214   :  { %2732 = vmatprep.mubr.f32.mxu0 %v1186_v15  ;;  %v1898_v20 = vunpack.c.h.bf16 %v1073_v17  ;;  %v1897_v24 = vunpack.c.l.bf16 %v1073_v17 }
 0x215   :  { %2733 = vmatmul.mubr.f32.gmra.mrb[150].mxu0 %v1185_v16  ;;  %v739_v16 = vld [vmem:[%s14196_s1 + $0x250] sm:$0xff] }
 0x216   :  { %3568 = vmatmul.mubr.f32.gmra.mrb[90].mxu1 %v1853_v21  ;;  %v1190_v21 = vunpack.c.h.bf16 %v719_v19  ;;  %v1229_v19 = vunpack.c.l.bf16 %v739_v16 }
 0x217   :  { %3572 = vmatprep.mubr.f32.mxu1 %v1858_v23  ;;  %v1075_v23 = vld [vmem:[%s14196_s1 + $0xcd0] sm:$0xff] }
 0x218   :  { %2737 = vmatprep.mubr.f32.mxu0 %v1190_v21  ;;  %v1902_v26 = vunpack.c.h.bf16 %v1075_v23  ;;  %v1901_v30 = vunpack.c.l.bf16 %v1075_v23 }
 0x219   :  { %2738 = vmatmul.mubr.f32.gmra.mrb[152].mxu0 %v1189_v22  ;;  %v741_v22 = vld [vmem:[%s14196_s1 + $0x260] sm:$0xff] }
 0x21a   :  { %3573 = vmatmul.mubr.f32.gmra.mrb[92].mxu1 %v1857_v27  ;;  %v1194_v27 = vunpack.c.h.bf16 %v721_v25  ;;  %v1233_v25 = vunpack.c.l.bf16 %v741_v22 }
 0x21b   :  { %3577 = vmatprep.mubr.f32.mxu1 %v1862_v29  ;;  %v1077_v29 = vld [vmem:[%s14196_s1 + $0xce0] sm:$0xff] }
 0x21c   :  { %2742 = vmatprep.mubr.f32.mxu0 %v1194_v27  ;;  %v1906_v32 = vunpack.c.h.bf16 %v1077_v29  ;;  %v1905_v36 = vunpack.c.l.bf16 %v1077_v29 }
 0x21d   :  { %2743 = vmatmul.mubr.f32.gmra.mrb[154].mxu0 %v1193_v28  ;;  %v743_v28 = vld [vmem:[%s14196_s1 + $0x270] sm:$0xff] }
 0x21e   :  { %3578 = vmatmul.mubr.f32.gmra.mrb[94].mxu1 %v1861_v33  ;;  %v1198_v33 = vunpack.c.h.bf16 %v723_v31  ;;  %v1237_v31 = vunpack.c.l.bf16 %v743_v28 }
 0x21f   :  { %3582 = vmatprep.mubr.f32.mxu1 %v1866_v35  ;;  %v1079_v35 = vld [vmem:[%s14196_s1 + $0xcf0] sm:$0xff] }
 0x220   :  { %2747 = vmatprep.mubr.f32.mxu0 %v1198_v33  ;;  %v1910_v38 = vunpack.c.h.bf16 %v1079_v35  ;;  %v1909_v42 = vunpack.c.l.bf16 %v1079_v35 }
 0x221   :  { %2748 = vmatmul.mubr.f32.gmra.mrb[156].mxu0 %v1197_v34  ;;  %v745_v34 = vld [vmem:[%s14196_s1 + $0x280] sm:$0xff] }
 0x222   :  { %3583 = vmatmul.mubr.f32.gmra.mrb[96].mxu1 %v1865_v39  ;;  %v1202_v39 = vunpack.c.h.bf16 %v725_v37  ;;  %v1241_v37 = vunpack.c.l.bf16 %v745_v34 }
 0x223   :  { %3587 = vmatprep.mubr.f32.mxu1 %v1870_v41  ;;  %v666_v41 = vld [vmem:[%s14196_s1 + $0x8] sm:$0xff] }
 0x224   :  { %2752 = vmatprep.mubr.f32.mxu0 %v1202_v39  ;;  %v1084_v44 = vunpack.c.h.bf16 %v666_v41  ;;  %v1083_v47 = vunpack.c.l.bf16 %v666_v41 }
 0x225   :  { %2753 = vmatmul.mubr.f32.gmra.mrb[158].mxu0 %v1201_v40  ;;  %v747_v40 = vld [vmem:[%s14196_s1 + $0x290] sm:$0xff] }
 0x226   :  { %3588 = vmatmul.mubr.f32.gmra.mrb[98].mxu1 %v1869_v45  ;;  %v1206_v45 = vunpack.c.h.bf16 %v727_v43  ;;  %v1245_v43 = vunpack.c.l.bf16 %v747_v40 }
 0x227   :  { %3592 = vmatprep.mubr.f32.mxu1 %v1874_v46  ;;  %v668_v46 = vld [vmem:[%s14196_s1 + $0x18] sm:$0xff] }
 0x228   :  { %2757 = vmatprep.mubr.f32.mxu0 %v1206_v45  ;;  %v1088_v49 = vunpack.c.h.bf16 %v668_v46  ;;  %v1087_v54 = vunpack.c.l.bf16 %v668_v46 }
 0x229   :  { %2758 = vmatmul.mubr.f32.gmra.mrb[160].mxu0 %v1205_v52  ;;  %v749_v52 = vld [vmem:[%s14196_s1 + $0x2a0] sm:$0xff] }
 0x22a   :  { %3593 = vmatmul.mubr.f32.gmra.mrb[100].mxu1 %v1873_v50  ;;  %v1210_v50 = vunpack.c.h.bf16 %v729_v48  ;;  %v1249_v48 = vunpack.c.l.bf16 %v749_v52 }
 0x22b   :  { %3597 = vmatprep.mubr.f32.mxu1 %v1878_v53  ;;  %v670_v53 = vld [vmem:[%s14196_s1 + $0x28] sm:$0xff] }
 0x22c   :  { %2762 = vmatprep.mubr.f32.mxu0 %v1210_v50  ;;  %v1092_v56 = vunpack.c.h.bf16 %v670_v53  ;;  %v1091_v61 = vunpack.c.l.bf16 %v670_v53 }
 0x22d   :  { %2763 = vmatmul.mubr.f32.gmra.mrb[162].mxu0 %v1209_v51  ;;  %v751_v51 = vld [vmem:[%s14196_s1 + $0x2b0] sm:$0xff] }
 0x22e   :  { %3598 = vmatmul.mubr.f32.gmra.mrb[102].mxu1 %v1877_v57  ;;  %v1214_v57 = vunpack.c.h.bf16 %v731_v55  ;;  %v1253_v55 = vunpack.c.l.bf16 %v751_v51 }
 0x22f   :  { %3602 = vmatprep.mubr.f32.mxu1 %v1882_v60  ;;  %v672_v60 = vld [vmem:[%s14196_s1 + $0x38] sm:$0xff] }
 0x230   :  { %2767 = vmatprep.mubr.f32.mxu0 %v1214_v57  ;;  %v1096_v63 = vunpack.c.h.bf16 %v672_v60  ;;  %v1095_v4 = vunpack.c.l.bf16 %v672_v60 }
 0x231   :  { %2768 = vmatmul.mubr.f32.gmra.mrb[164].mxu0 %v1213_v59  ;;  %v753_v59 = vld [vmem:[%s14196_s1 + $0x2c0] sm:$0xff] }
 0x232   :  { %3603 = vmatmul.mubr.f32.gmra.mrb[104].mxu1 %v1881_v0  ;;  %v1218_v0 = vunpack.c.h.bf16 %v733_v62  ;;  %v1257_v62 = vunpack.c.l.bf16 %v753_v59 }
 0x233   :  { %3607 = vmatprep.mubr.f32.mxu1 %v1886_v2  ;;  %v674_v2 = vld [vmem:[%s14196_s1 + $0x48] sm:$0xff] }
 0x234   :  { %2772 = vmatprep.mubr.f32.mxu0 %v1218_v0  ;;  %v1100_v58 = vunpack.c.h.bf16 %v674_v2  ;;  %v1099_v9 = vunpack.c.l.bf16 %v674_v2 }
 0x235   :  { %2773 = vmatmul.mubr.f32.gmra.mrb[166].mxu0 %v1217_v1  ;;  %v755_v1 = vld [vmem:[%s14196_s1 + $0x2d0] sm:$0xff] }
 0x236   :  { %3608 = vmatmul.mubr.f32.gmra.mrb[106].mxu1 %v1885_v6  ;;  %v1222_v6 = vunpack.c.h.bf16 %v735_v5  ;;  %v1261_v5 = vunpack.c.l.bf16 %v755_v1 }
 0x237   :  { %3612 = vmatprep.mubr.f32.mxu1 %v1890_v8  ;;  %v676_v8 = vld [vmem:[%s14196_s1 + $0x58] sm:$0xff] }
 0x238   :  { %2777 = vmatprep.mubr.f32.mxu0 %v1222_v6  ;;  %v1104_v11 = vunpack.c.h.bf16 %v676_v8  ;;  %v1103_v15 = vunpack.c.l.bf16 %v676_v8 }
 0x239   :  { %2778 = vmatmul.mubr.f32.gmra.mrb[168].mxu0 %v1221_v7  ;;  %v757_v7 = vld [vmem:[%s14196_s1 + $0x2e0] sm:$0xff] }
 0x23a   :  { %3613 = vmatmul.mubr.f32.gmra.mrb[108].mxu1 %v1889_v12  ;;  %v1226_v12 = vunpack.c.h.bf16 %v737_v10  ;;  %v1265_v10 = vunpack.c.l.bf16 %v757_v7 }
 0x23b   :  { %3617 = vmatprep.mubr.f32.mxu1 %v1894_v14  ;;  %v678_v14 = vld [vmem:[%s14196_s1 + $0x68] sm:$0xff] }
 0x23c   :  { %2782 = vmatprep.mubr.f32.mxu0 %v1226_v12  ;;  %v1108_v17 = vunpack.c.h.bf16 %v678_v14  ;;  %v1107_v21 = vunpack.c.l.bf16 %v678_v14 }
 0x23d   :  { %2783 = vmatmul.mubr.f32.gmra.mrb[170].mxu0 %v1225_v13  ;;  %v759_v13 = vld [vmem:[%s14196_s1 + $0x2f0] sm:$0xff] }
 0x23e   :  { %3618 = vmatmul.mubr.f32.gmra.mrb[110].mxu1 %v1893_v18  ;;  %v1230_v18 = vunpack.c.h.bf16 %v739_v16  ;;  %v1269_v16 = vunpack.c.l.bf16 %v759_v13 }
 0x23f   :  { %3622 = vmatprep.mubr.f32.mxu1 %v1898_v20  ;;  %v680_v20 = vld [vmem:[%s14196_s1 + $0x78] sm:$0xff] }
 0x240   :  { %2787 = vmatprep.mubr.f32.mxu0 %v1230_v18  ;;  %v1112_v23 = vunpack.c.h.bf16 %v680_v20  ;;  %v1111_v27 = vunpack.c.l.bf16 %v680_v20 }
 0x241   :  { %2788 = vmatmul.mubr.f32.gmra.mrb[172].mxu0 %v1229_v19  ;;  %v761_v19 = vld [vmem:[%s14196_s1 + $0x300] sm:$0xff] }
 0x242   :  { %3623 = vmatmul.mubr.f32.gmra.mrb[112].mxu1 %v1897_v24  ;;  %v1234_v24 = vunpack.c.h.bf16 %v741_v22  ;;  %v1273_v22 = vunpack.c.l.bf16 %v761_v19 }
 0x243   :  { %3627 = vmatprep.mubr.f32.mxu1 %v1902_v26  ;;  %v682_v26 = vld [vmem:[%s14196_s1 + $0x88] sm:$0xff] }
 0x244   :  { %2792 = vmatprep.mubr.f32.mxu0 %v1234_v24  ;;  %v1116_v29 = vunpack.c.h.bf16 %v682_v26  ;;  %v1115_v33 = vunpack.c.l.bf16 %v682_v26 }
 0x245   :  { %2793 = vmatmul.mubr.f32.gmra.mrb[174].mxu0 %v1233_v25  ;;  %v763_v25 = vld [vmem:[%s14196_s1 + $0x310] sm:$0xff] }
 0x246   :  { %3628 = vmatmul.mubr.f32.gmra.mrb[114].mxu1 %v1901_v30  ;;  %v1238_v30 = vunpack.c.h.bf16 %v743_v28  ;;  %v1277_v28 = vunpack.c.l.bf16 %v763_v25 }
 0x247   :  { %3632 = vmatprep.mubr.f32.mxu1 %v1906_v32  ;;  %v684_v32 = vld [vmem:[%s14196_s1 + $0x98] sm:$0xff] }
 0x248   :  { %2797 = vmatprep.mubr.f32.mxu0 %v1238_v30  ;;  %v1120_v35 = vunpack.c.h.bf16 %v684_v32  ;;  %v1119_v39 = vunpack.c.l.bf16 %v684_v32 }
 0x249   :  { %2798 = vmatmul.mubr.f32.gmra.mrb[176].mxu0 %v1237_v31  ;;  %v765_v31 = vld [vmem:[%s14196_s1 + $0x320] sm:$0xff] }
 0x24a   :  { %3633 = vmatmul.mubr.f32.gmra.mrb[116].mxu1 %v1905_v36  ;;  %v1242_v36 = vunpack.c.h.bf16 %v745_v34  ;;  %v1281_v34 = vunpack.c.l.bf16 %v765_v31 }
 0x24b   :  { %3637 = vmatprep.mubr.f32.mxu1 %v1910_v38  ;;  %v686_v38 = vld [vmem:[%s14196_s1 + $0xa8] sm:$0xff] }
 0x24c   :  { %2802 = vmatprep.mubr.f32.mxu0 %v1242_v36  ;;  %v1124_v41 = vunpack.c.h.bf16 %v686_v38  ;;  %v1123_v45 = vunpack.c.l.bf16 %v686_v38 }
 0x24d   :  { %2803 = vmatmul.mubr.f32.gmra.mrb[178].mxu0 %v1241_v37  ;;  %v767_v37 = vld [vmem:[%s14196_s1 + $0x330] sm:$0xff] }
 0x24e   :  { %3638 = vmatmul.mubr.f32.gmra.mrb[118].mxu1 %v1909_v42  ;;  %v1246_v42 = vunpack.c.h.bf16 %v747_v40  ;;  %v1285_v40 = vunpack.c.l.bf16 %v767_v37 }
 0x24f   :  { %7614 = vmatprep.mubr.msk.f32.mxu1 %vm1913_vm2, %v1084_v44  ;;  %v688_v44 = vld [vmem:[%s14196_s1 + $0xb8] sm:$0xff] }
 0x250   :  { %2807 = vmatprep.mubr.f32.mxu0 %v1246_v42  ;;  %v1128_v46 = vunpack.c.h.bf16 %v688_v44  ;;  %v1127_v50 = vunpack.c.l.bf16 %v688_v44 }
 0x251   :  { %2808 = vmatmul.mubr.f32.gmra.mrb[180].mxu0 %v1245_v43  ;;  %v769_v43 = vld [vmem:[%s14196_s1 + $0x340] sm:$0xff] }
 0x252   :  { %3708 = vmatmul.mubr.f32.vlgmr.msra.gmra.mrb[120].mxu1 %v1083_v47  ;;  %v1250_v47 = vunpack.c.h.bf16 %v749_v52  ;;  %v1289_v52 = vunpack.c.l.bf16 %v769_v43 }
 0x253   :  { %7615 = vmatprep.mubr.msk.f32.mxu1 %vm1913_vm2, %v1088_v49  ;;  %v690_v49 = vld [vmem:[%s14196_s1 + $0xc8] sm:$0xff] }
 0x254   :  { %2812 = vmatprep.mubr.f32.mxu0 %v1250_v47  ;;  %v1132_v53 = vunpack.c.h.bf16 %v690_v49  ;;  %v1131_v57 = vunpack.c.l.bf16 %v690_v49 }
 0x255   :  { %2813 = vmatmul.mubr.f32.gmra.mrb[182].mxu0 %v1249_v48  ;;  %v771_v48 = vld [vmem:[%s14196_s1 + $0x350] sm:$0xff] }
 0x256   :  { %3713 = vmatmul.mubr.f32.gmra.mrb[122].mxu1 %v1087_v54  ;;  %v1254_v54 = vunpack.c.h.bf16 %v751_v51  ;;  %v712_v51 = vld [vmem:[%s14196_s1 + $0x178] sm:$0xff] }
 0x257   :  { %7616 = vmatprep.mubr.msk.f32.mxu1 %vm1913_vm2, %v1092_v56  ;;  %v692_v56 = vld [vmem:[%s14196_s1 + $0xd8] sm:$0xff] }
 0x258   :  { %2817 = vmatprep.mubr.f32.mxu0 %v1254_v54  ;;  %v1136_v60 = vunpack.c.h.bf16 %v692_v56  ;;  %v1135_v0 = vunpack.c.l.bf16 %v692_v56 }
 0x259   :  { %2818 = vmatmul.mubr.f32.gmra.mrb[184].mxu0 %v1253_v55 }
 0x25a   :  { %3718 = vmatmul.mubr.f32.gmra.mrb[124].mxu1 %v1091_v61  ;;  %v1258_v61 = vunpack.c.h.bf16 %v753_v59  ;;  %v1176_v59 = vunpack.c.h.bf16 %v712_v51 }
 0x25b   :  { %7617 = vmatprep.mubr.msk.f32.mxu1 %vm1913_vm2, %v1096_v63  ;;  %v694_v63 = vld [vmem:[%s14196_s1 + $0xe8] sm:$0xff] }
 0x25c   :  { %2822 = vmatprep.mubr.f32.mxu0 %v1258_v61  ;;  %v1140_v2 = vunpack.c.h.bf16 %v694_v63  ;;  %v1139_v6 = vunpack.c.l.bf16 %v694_v63  ;;  %v714_v61 = vld [vmem:[%s14196_s1 + $0x188] sm:$0xff] }
 0x25d   :  { %2823 = vmatmul.mubr.f32.gmra.mrb[186].mxu0 %v1257_v62 }
 0x25e   :  { %3723 = vmatmul.mubr.f32.gmra.mrb[126].mxu1 %v1095_v4  ;;  %v1262_v4 = vunpack.c.h.bf16 %v755_v1 }
 0x25f   :  { %7618 = vmatprep.mubr.msk.f32.mxu1 %vm1913_vm2, %v1100_v58  ;;  %v696_v58 = vld [vmem:[%s14196_s1 + $0xf8] sm:$0xff] }
 0x260   :  { %2827 = vmatprep.mubr.f32.mxu0 %v1262_v4  ;;  %v1144_v8 = vunpack.c.h.bf16 %v696_v58  ;;  %v1143_v12 = vunpack.c.l.bf16 %v696_v58  ;;  %v1180_v4 = vunpack.c.h.bf16 %v714_v61  ;;  %v716_v58 = vld [vmem:[%s14196_s1 + $0x198] sm:$0xff] }
 0x261   :  { %2828 = vmatmul.mubr.f32.gmra.mrb[188].mxu0 %v1261_v5 }
 0x262   :  { %3728 = vmatmul.mubr.f32.gmra.mrb[128].mxu1 %v1099_v9  ;;  %v1266_v9 = vunpack.c.h.bf16 %v757_v7 }
 0x263   :  { %7619 = vmatprep.mubr.msk.f32.mxu1 %vm1913_vm2, %v1104_v11  ;;  %v698_v11 = vld [vmem:[%s14196_s1 + $0x108] sm:$0xff] }
 0x264   :  { %2832 = vmatprep.mubr.f32.mxu0 %v1266_v9  ;;  %v1148_v14 = vunpack.c.h.bf16 %v698_v11  ;;  %v1147_v18 = vunpack.c.l.bf16 %v698_v11  ;;  %v1184_v11 = vunpack.c.h.bf16 %v716_v58 }
 0x265   :  { %2833 = vmatmul.mubr.f32.gmra.mrb[190].mxu0 %v1265_v10  ;;  %v777_v10 = vld [vmem:[%s14196_s1 + $0x380] sm:$0xff] }
 0x266   :  { %3733 = vmatmul.mubr.f32.gmra.mrb[130].mxu1 %v1103_v15  ;;  %v1270_v15 = vunpack.c.h.bf16 %v759_v13  ;;  %v718_v13 = vld [vmem:[%s14196_s1 + $0x1a8] sm:$0xff] }
 0x267   :  { %7620 = vmatprep.mubr.msk.f32.mxu1 %vm1913_vm2, %v1108_v17  ;;  %v700_v17 = vld [vmem:[%s14196_s1 + $0x118] sm:$0xff] }
 0x268   :  { %2837 = vmatprep.mubr.f32.mxu0 %v1270_v15  ;;  %v1152_v20 = vunpack.c.h.bf16 %v700_v17  ;;  %v1151_v24 = vunpack.c.l.bf16 %v700_v17 }
 0x269   :  { %2838 = vmatmul.mubr.f32.gmra.mrb[192].mxu0 %v1269_v16  ;;  %v1183_v16 = vunpack.c.l.bf16 %v716_v58  ;;  %v791_v58 = vld [vmem:[%s14196_s1 + $0x3f0] sm:$0xff] }
 0x26a   :  { %3738 = vmatmul.mubr.f32.gmra.mrb[132].mxu1 %v1107_v21  ;;  %v1274_v21 = vunpack.c.h.bf16 %v761_v19  ;;  %v1188_v19 = vunpack.c.h.bf16 %v718_v13 }
 0x26b   :  { %7621 = vmatprep.mubr.msk.f32.mxu1 %vm1913_vm2, %v1112_v23  ;;  %v702_v23 = vld [vmem:[%s14196_s1 + $0x128] sm:$0xff] }
 0x26c   :  { %2842 = vmatprep.mubr.f32.mxu0 %v1274_v21  ;;  %v1156_v26 = vunpack.c.h.bf16 %v702_v23  ;;  %v1155_v30 = vunpack.c.l.bf16 %v702_v23  ;;  %v720_v21 = vld [vmem:[%s14196_s1 + $0x1b8] sm:$0xff] }
 0x26d   :  { %2843 = vmatmul.mubr.f32.gmra.mrb[194].mxu0 %v1273_v22 }
 0x26e   :  { %3743 = vmatmul.mubr.f32.gmra.mrb[134].mxu1 %v1111_v27  ;;  %v1278_v27 = vunpack.c.h.bf16 %v763_v25 }
 0x26f   :  { %7622 = vmatprep.mubr.msk.f32.mxu1 %vm1913_vm2, %v1116_v29  ;;  %v704_v29 = vld [vmem:[%s14196_s1 + $0x138] sm:$0xff] }
 0x270   :  { %2847 = vmatprep.mubr.f32.mxu0 %v1278_v27  ;;  %v1160_v32 = vunpack.c.h.bf16 %v704_v29  ;;  %v1159_v36 = vunpack.c.l.bf16 %v704_v29  ;;  %v1192_v27 = vunpack.c.h.bf16 %v720_v21  ;;  %v722_v29 = vld [vmem:[%s14196_s1 + $0x1c8] sm:$0xff] }
 0x271   :  { %2848 = vmatmul.mubr.f32.gmra.mrb[196].mxu0 %v1277_v28 }
 0x272   :  { %3748 = vmatmul.mubr.f32.gmra.mrb[136].mxu1 %v1115_v33  ;;  %v1282_v33 = vunpack.c.h.bf16 %v765_v31 }
 0x273   :  { %7623 = vmatprep.mubr.msk.f32.mxu1 %vm1913_vm2, %v1120_v35  ;;  %v706_v35 = vld [vmem:[%s14196_s1 + $0x148] sm:$0xff]  ;;  %v10773_v54 = vpop.f32.mrb[98].mxu0 }
 0x274   :  { %2852 = vmatprep.mubr.f32.mxu0 %v1282_v33  ;;  %v1164_v38 = vunpack.c.h.bf16 %v706_v35  ;;  %v1163_v42 = vunpack.c.l.bf16 %v706_v35  ;;  %v2606_v56 = vpop.f32.mrb[99].mxu0  ;;  %v1196_v35 = vunpack.c.h.bf16 %v722_v29 }
 0x275   :  { %2853 = vmatmul.mubr.f32.gmra.mrb[198].mxu0 %v1281_v34  ;;  %v783_v34 = vld [vmem:[%s14196_s1 + $0x3b0] sm:$0xff] }
 0x276   :  { %3753 = vmatmul.mubr.f32.gmra.mrb[138].mxu1 %v1119_v39  ;;  %v1286_v39 = vunpack.c.h.bf16 %v767_v37  ;;  %v724_v37 = vld [vmem:[%s14196_s1 + $0x1d8] sm:$0xff] }
 0x277   :  { %7624 = vmatprep.mubr.msk.f32.mxu1 %vm1913_vm2, %v1124_v41  ;;  %v708_v41 = vld [vmem:[%s14196_s1 + $0x158] sm:$0xff]  ;;  %v10782_v63 = vpop.f32.mrb[100].mxu0 }
 0x278   :  { %2857 = vmatprep.mubr.f32.mxu0 %v1286_v39  ;;  %v1168_v44 = vunpack.c.h.bf16 %v708_v41  ;;  %v1167_v47 = vunpack.c.l.bf16 %v708_v41  ;;  %v2611_v1 = vpop.f32.mrb[101].mxu0 }
 0x279   :  { %2858 = vmatmul.mubr.f32.gmra.mrb[200].mxu0 %v1285_v40  ;;  %v1195_v40 = vunpack.c.l.bf16 %v722_v29 }
 0x27a   :  { %3758 = vmatmul.mubr.f32.gmra.mrb[140].mxu1 %v1123_v45  ;;  %v1290_v45 = vunpack.c.h.bf16 %v769_v43  ;;  %v1200_v43 = vunpack.c.h.bf16 %v724_v37 }
 0x27b   :  { %7625 = vmatprep.mubr.msk.f32.mxu1 %vm1913_vm2, %v1128_v46  ;;  %v710_v46 = vld [vmem:[%s14196_s1 + $0x168] sm:$0xff] }
 0x27c   :  { %2862 = vmatprep.mubr.f32.mxu0 %v1290_v45  ;;  %v1172_v49 = vunpack.c.h.bf16 %v710_v46  ;;  %v1171_v55 = vunpack.c.l.bf16 %v710_v46  ;;  %v726_v45 = vld [vmem:[%s14196_s1 + $0x1e8] sm:$0xff] }
 0x27d   :  { %2863 = vmatmul.mubr.f32.gmra.mrb[202].mxu0 %v1289_v52  ;;  %v10791_v7 = vpop.f32.mrb[102].mxu0 }
 0x27e   :  { %3763 = vmatmul.mubr.f32.gmra.mrb[142].mxu1 %v1127_v50  ;;  %v1294_v50 = vunpack.c.h.bf16 %v771_v48  ;;  %v2616_v9 = vpop.f32.mrb[103].mxu0 }
 0x27f   :  { %7626 = vmatprep.mubr.msk.f32.mxu1 %vm1913_vm2, %v1132_v53  ;;  %v1293_v53 = vunpack.c.l.bf16 %v771_v48  ;;  %v732_v9 = vld [vmem:[%s14196_s1 + $0x218] sm:$0xff] }
 0x280   :  { %2867 = vmatprep.mubr.f32.mxu0 %v1294_v50  ;;  %v1204_v50 = vunpack.c.h.bf16 %v726_v45 }
 0x281   :  { %2868 = vmatmul.mubr.f32.gmra.mrb[204].mxu0 %v1293_v53  ;;  %v728_v53 = vld [vmem:[%s14196_s1 + $0x1f8] sm:$0xff] }
 0x282   :  { %3768 = vmatmul.mubr.f32.gmra.mrb[144].mxu1 %v1131_v57  ;;  %v773_v57 = vld [vmem:[%s14196_s1 + $0x360] sm:$0xff] }
 0x283   :  { %7627 = vmatprep.mubr.msk.f32.mxu1 %vm1913_vm2, %v1136_v60  ;;  %v1298_v60 = vunpack.c.h.bf16 %v773_v57  ;;  %v1297_v62 = vunpack.c.l.bf16 %v773_v57  ;;  %v1203_v57 = vunpack.c.l.bf16 %v726_v45  ;;  %v740_v45 = vld [vmem:[%s14196_s1 + $0x258] sm:$0xff] }
 0x285   :  { %2872 = vmatprep.mubr.f32.mxu0 %v1298_v60  ;;  %v10800_v15 = vpop.f32.mrb[104].mxu0  ;;  %v789_v60 = vld [vmem:[%s14196_s1 + $0x3e0] sm:$0xff] }
 0x286   :  { %3773 = vmatmul.mubr.f32.gmra.mrb[146].mxu1 %v1135_v0  ;;  %v1175_v0 = vunpack.c.l.bf16 %v712_v51  ;;  %2873 = vmatmul.mubr.f32.gmra.mrb[206].mxu0 %v1297_v62  ;;  %v2621_v17 = vpop.f32.mrb[105].mxu0  ;;  %v1330_v62 = vunpack.c.h.bf16 %v789_v60  ;;  %v1329_v1 = vunpack.c.l.bf16 %v789_v60  ;;  %v1231_v60 = vunpack.c.l.bf16 %v740_v45 }
 0x287   :  { %7628 = vmatprep.mubr.msk.f32.mxu1 %vm1913_vm2, %v1140_v2  ;;  %v775_v2 = vld [vmem:[%s14196_s1 + $0x370] sm:$0xff] }
 0x288   :  { %v1302_v5 = vunpack.c.h.bf16 %v775_v2 }
 0x289   :  { %v10809_v23 = vpop.f32.mrb[106].mxu0 }
 0x28a   :  { %3778 = vmatmul.mubr.f32.gmra.mrb[148].mxu1 %v1139_v6  ;;  %v1301_v6 = vunpack.c.l.bf16 %v775_v2  ;;  %2877 = vmatprep.mubr.f32.mxu0 %v1302_v5  ;;  %v2626_v25 = vpop.f32.mrb[107].mxu0 }
 0x28b   :  { %7629 = vmatprep.mubr.msk.f32.mxu1 %vm1913_vm2, %v1144_v8  ;;  %v1179_v8 = vunpack.c.l.bf16 %v714_v61  ;;  %v1208_v61 = vunpack.c.h.bf16 %v728_v53 }
 0x28c   :  { %2878 = vmatmul.mubr.f32.gmra.mrb[208].mxu0 %v1301_v6 }
 0x28d   :  { %v10818_v31 = vpop.f32.mrb[108].mxu0 }
 0x28e   :  { %3783 = vmatmul.mubr.f32.gmra.mrb[150].mxu1 %v1143_v12  ;;  %v1306_v12 = vunpack.c.h.bf16 %v777_v10  ;;  %v2631_v33 = vpop.f32.mrb[109].mxu0 }
 0x28f   :  { %7630 = vmatprep.mubr.msk.f32.mxu1 %vm1913_vm2, %v1148_v14  ;;  %v1305_v14 = vunpack.c.l.bf16 %v777_v10  ;;  %v1333_v10 = vunpack.c.l.bf16 %v791_v58  ;;  %v797_v33 = vld [vmem:[%s14196_s1 + $0x420] sm:$0xff] }
 0x290   :  { %2882 = vmatprep.mubr.f32.mxu0 %v1306_v12 }
 0x291   :  { %2883 = vmatmul.mubr.f32.gmra.mrb[210].mxu0 %v1305_v14  ;;  %v10827_v39 = vpop.f32.mrb[110].mxu0  ;;  %v793_v14 = vld [vmem:[%s14196_s1 + $0x400] sm:$0xff] }
 0x292   :  { %3788 = vmatmul.mubr.f32.gmra.mrb[152].mxu1 %v1147_v18  ;;  %v779_v18 = vld [vmem:[%s14196_s1 + $0x390] sm:$0xff]  ;;  %v2636_v41 = vpop.f32.mrb[111].mxu0  ;;  %v1338_v17 = vunpack.c.h.bf16 %v793_v14 }
 0x293   :  { %7631 = vmatprep.mubr.msk.f32.mxu1 %vm1913_vm2, %v1152_v20  ;;  %v1310_v20 = vunpack.c.h.bf16 %v779_v18  ;;  %v1309_v22 = vunpack.c.l.bf16 %v779_v18  ;;  %v734_v18 = vld [vmem:[%s14196_s1 + $0x228] sm:$0xff] }
 0x294   :  { %v1220_v25 = vunpack.c.h.bf16 %v734_v18 }
 0x295   :  { %2887 = vmatprep.mubr.f32.mxu0 %v1310_v20 }
 0x296   :  { %3793 = vmatmul.mubr.f32.gmra.mrb[154].mxu1 %v1151_v24  ;;  %v1187_v24 = vunpack.c.l.bf16 %v718_v13  ;;  %2888 = vmatmul.mubr.f32.gmra.mrb[212].mxu0 %v1309_v22 }
 0x297   :  { %7632 = vmatprep.mubr.msk.f32.mxu1 %vm1913_vm2, %v1156_v26  ;;  %v781_v26 = vld [vmem:[%s14196_s1 + $0x3a0] sm:$0xff]  ;;  %v10836_v46 = vpop.f32.mrb[112].mxu0 }
 0x298   :  { %v1314_v28 = vunpack.c.h.bf16 %v781_v26  ;;  %v2641_v48 = vpop.f32.mrb[113].mxu0 }
 0x29a   :  { %3798 = vmatmul.mubr.f32.gmra.mrb[156].mxu1 %v1155_v30  ;;  %v1313_v30 = vunpack.c.l.bf16 %v781_v26  ;;  %2892 = vmatprep.mubr.f32.mxu0 %v1314_v28 }
 0x29b   :  { %7633 = vmatprep.mubr.msk.f32.mxu1 %vm1913_vm2, %v1160_v32  ;;  %v1191_v32 = vunpack.c.l.bf16 %v720_v21  ;;  %v1215_v21 = vunpack.c.l.bf16 %v732_v9 }
 0x29c   :  { %2893 = vmatmul.mubr.f32.gmra.mrb[214].mxu0 %v1313_v30  ;;  %v1219_v30 = vunpack.c.l.bf16 %v734_v18 }
 0x29e   :  { %3803 = vmatmul.mubr.f32.gmra.mrb[158].mxu1 %v1159_v36  ;;  %v1318_v36 = vunpack.c.h.bf16 %v783_v34 }
 0x29f   :  { %7634 = vmatprep.mubr.msk.f32.mxu1 %vm1913_vm2, %v1164_v38  ;;  %v1317_v38 = vunpack.c.l.bf16 %v783_v34  ;;  %v10845_v56 = vpop.f32.mrb[114].mxu0 }
 0x2a0   :  { %2897 = vmatprep.mubr.f32.mxu0 %v1318_v36  ;;  %v738_v36 = vld [vmem:[%s14196_s1 + $0x248] sm:$0xff] }
 0x2a1   :  { %2898 = vmatmul.mubr.f32.gmra.mrb[216].mxu0 %v1317_v38  ;;  %v1227_v48 = vunpack.c.l.bf16 %v738_v36 }
 0x2a2   :  { %3808 = vmatmul.mubr.f32.gmra.mrb[160].mxu1 %v1163_v42  ;;  %v785_v42 = vld [vmem:[%s14196_s1 + $0x3c0] sm:$0xff] }
 0x2a3   :  { %7635 = vmatprep.mubr.msk.f32.mxu1 %vm1913_vm2, %v1168_v44  ;;  %v1322_v44 = vunpack.c.h.bf16 %v785_v42  ;;  %v1321_v52 = vunpack.c.l.bf16 %v785_v42  ;;  %v799_v42 = vld [vmem:[%s14196_s1 + $0x430] sm:$0xff] }
 0x2a5   :  { %2902 = vmatprep.mubr.f32.mxu0 %v1322_v44  ;;  %v1350_v44 = vunpack.c.h.bf16 %v799_v42 }
 0x2a6   :  { %3813 = vmatmul.mubr.f32.gmra.mrb[162].mxu1 %v1167_v47  ;;  %v1199_v47 = vunpack.c.l.bf16 %v724_v37  ;;  %2903 = vmatmul.mubr.f32.gmra.mrb[218].mxu0 %v1321_v52  ;;  %v1345_v37 = vunpack.c.l.bf16 %v797_v33  ;;  %v1349_v52 = vunpack.c.l.bf16 %v799_v42 }
 0x2a7   :  { %7636 = vmatprep.mubr.msk.f32.mxu1 %vm1913_vm2, %v1172_v49  ;;  %v787_v49 = vld [vmem:[%s14196_s1 + $0x3d0] sm:$0xff] }
 0x2a8   :  { %v1326_v51 = vunpack.c.h.bf16 %v787_v49 }
 0x2aa   :  { %3818 = vmatmul.mubr.f32.gmra.mrb[164].mxu1 %v1171_v55  ;;  %v1325_v55 = vunpack.c.l.bf16 %v787_v49  ;;  %2907 = vmatprep.mubr.f32.mxu0 %v1326_v51  ;;  %v1232_v51 = vunpack.c.h.bf16 %v740_v45 }
 0x2ab   :  { %7637 = vmatprep.mubr.msk.f32.mxu1 %vm1913_vm2, %v1176_v59  ;;  %v2646_v59 = vpop.f32.mrb[115].mxu0 }
 0x2ac   :  { %2908 = vmatmul.mubr.f32.gmra.mrb[220].mxu0 %v1325_v55  ;;  %v10854_v2 = vpop.f32.mrb[116].mxu0  ;;  %v742_v55 = vld [vmem:[%s14196_s1 + $0x268] sm:$0xff] }
 0x2ad   :  { %2912 = vmatprep.mubr.f32.mxu0 %v1330_v62  ;;  %v2651_v5 = vpop.f32.mrb[117].mxu0  ;;  %v803_v62 = vld [vmem:[%s14196_s1 + $0x450] sm:$0xff] }
 0x2ae   :  { %3823 = vmatmul.mubr.f32.gmra.mrb[166].mxu1 %v1175_v0  ;;  %v730_v0 = vld [vmem:[%s14196_s1 + $0x208] sm:$0xff]  ;;  %v1357_v5 = vunpack.c.l.bf16 %v803_v62 }
 0x2af   :  { %7638 = vmatprep.mubr.msk.f32.mxu1 %vm1913_vm2, %v1180_v4  ;;  %v1207_v4 = vunpack.c.l.bf16 %v728_v53  ;;  %v1212_v6 = vunpack.c.h.bf16 %v730_v0  ;;  %v1211_v12 = vunpack.c.l.bf16 %v730_v0  ;;  %v1236_v0 = vunpack.c.h.bf16 %v742_v55 }
 0x2b0   :  { %2913 = vmatmul.mubr.f32.gmra.mrb[222].mxu0 %v1329_v1  ;;  %v1358_v1 = vunpack.c.h.bf16 %v803_v62 }
 0x2b2   :  { %3828 = vmatmul.mubr.f32.gmra.mrb[168].mxu1 %v1179_v8  ;;  %v1334_v8 = vunpack.c.h.bf16 %v791_v58 }
 0x2b3   :  { %7639 = vmatprep.mubr.msk.f32.mxu1 %vm1913_vm2, %v1184_v11  ;;  %v10863_v11 = vpop.f32.mrb[118].mxu0 }
 0x2b4   :  { %2917 = vmatprep.mubr.f32.mxu0 %v1334_v8  ;;  %v2656_v13 = vpop.f32.mrb[119].mxu0 }
 0x2b5   :  { %2918 = vmatmul.mubr.f32.gmra.mrb[224].mxu0 %v1333_v10  ;;  %v10872_v20 = vpop.f32.mrb[120].mxu0  ;;  %v746_v13 = vld [vmem:[%s14196_s1 + $0x288] sm:$0xff] }
 0x2b6   :  { %3833 = vmatmul.mubr.f32.gmra.mrb[170].mxu1 %v1183_v16  ;;  %v1216_v16 = vunpack.c.h.bf16 %v732_v9  ;;  %2922 = vmatprep.mubr.f32.mxu0 %v1338_v17  ;;  %v2661_v22 = vpop.f32.mrb[121].mxu0  ;;  %v805_v9 = vld [vmem:[%s14196_s1 + $0x460] sm:$0xff] }
 0x2b7   :  { %7640 = vmatprep.mubr.msk.f32.mxu1 %vm1913_vm2, %v1188_v19  ;;  %v1337_v19 = vunpack.c.l.bf16 %v793_v14  ;;  %v10881_v29 = vpop.f32.mrb[122].mxu0  ;;  %v1361_v14 = vunpack.c.l.bf16 %v805_v9 }
 0x2b9   :  { %2923 = vmatmul.mubr.f32.gmra.mrb[226].mxu0 %v1337_v19  ;;  %v807_v19 = vld [vmem:[%s14196_s1 + $0x470] sm:$0xff] }
 0x2ba   :  { %3838 = vmatmul.mubr.f32.gmra.mrb[172].mxu1 %v1187_v24  ;;  %v795_v24 = vld [vmem:[%s14196_s1 + $0x410] sm:$0xff]  ;;  %v1366_v22 = vunpack.c.h.bf16 %v807_v19 }
 0x2bb   :  { %7641 = vmatprep.mubr.msk.f32.mxu1 %vm1913_vm2, %v1192_v27  ;;  %v1342_v26 = vunpack.c.h.bf16 %v795_v24  ;;  %v736_v27 = vld [vmem:[%s14196_s1 + $0x238] sm:$0xff]  ;;  %v1341_v28 = vunpack.c.l.bf16 %v795_v24 }
 0x2bc   :  { %v1224_v34 = vunpack.c.h.bf16 %v736_v27  ;;  %v748_v24 = vld [vmem:[%s14196_s1 + $0x298] sm:$0xff] }
 0x2bd   :  { %2927 = vmatprep.mubr.f32.mxu0 %v1342_v26 }
 0x2be   :  { %3843 = vmatmul.mubr.f32.gmra.mrb[174].mxu1 %v1191_v32  ;;  %2928 = vmatmul.mubr.f32.gmra.mrb[228].mxu0 %v1341_v28  ;;  %v2666_v32 = vpop.f32.mrb[123].mxu0 }
 0x2bf   :  { %7642 = vmatprep.mubr.msk.f32.mxu1 %vm1913_vm2, %v1196_v35  ;;  %v1346_v35 = vunpack.c.h.bf16 %v797_v33  ;;  %v10890_v38 = vpop.f32.mrb[124].mxu0  ;;  %v1248_v32 = vunpack.c.h.bf16 %v748_v24 }
 0x2c0   :  { %v2671_v41 = vpop.f32.mrb[125].mxu0 }
 0x2c1   :  { %2932 = vmatprep.mubr.f32.mxu0 %v1346_v35  ;;  %v811_v41 = vld [vmem:[%s14196_s1 + $0x490] sm:$0xff] }
 0x2c2   :  { %3848 = vmatmul.mubr.f32.gmra.mrb[176].mxu1 %v1195_v40  ;;  %v1223_v40 = vunpack.c.l.bf16 %v736_v27  ;;  %2933 = vmatmul.mubr.f32.gmra.mrb[230].mxu0 %v1345_v37  ;;  %v1243_v27 = vunpack.c.l.bf16 %v746_v13  ;;  %v1247_v37 = vunpack.c.l.bf16 %v748_v24  ;;  %v1373_v45 = vunpack.c.l.bf16 %v811_v41  ;;  %v819_v24 = vld [vmem:[%s14196_s1 + $0x4d0] sm:$0xff] }
 0x2c3   :  { %7643 = vmatprep.mubr.msk.f32.mxu1 %vm1913_vm2, %v1200_v43  ;;  %v1228_v43 = vunpack.c.h.bf16 %v738_v36  ;;  %2937 = vmatprep.mubr.f32.mxu0 %v1350_v44  ;;  %v752_v44 = vld [vmem:[%s14196_s1 + $0x2b8] sm:$0xff] }
 0x2c6   :  { %3853 = vmatmul.mubr.f32.gmra.mrb[178].mxu1 %v1199_v47  ;;  %v10899_v47 = vpop.f32.mrb[126].mxu0  ;;  %2938 = vmatmul.mubr.f32.gmra.mrb[232].mxu0 %v1349_v52 }
 0x2c7   :  { %7644 = vmatprep.mubr.msk.f32.mxu1 %vm1913_vm2, %v1204_v50  ;;  %v2676_v49 = vpop.f32.mrb[127].mxu0  ;;  %v801_v50 = vld [vmem:[%s14196_s1 + $0x440] sm:$0xff] }
 0x2c8   :  { %v1354_v53 = vunpack.c.h.bf16 %v801_v50  ;;  %v10908_v59 = vpop.f32.mrb[128].mxu0 }
 0x2ca   :  { %3858 = vmatmul.mubr.f32.gmra.mrb[180].mxu1 %v1203_v57  ;;  %v1353_v57 = vunpack.c.l.bf16 %v801_v50  ;;  %2942 = vmatprep.mubr.f32.mxu0 %v1354_v53  ;;  %v813_v50 = vld [vmem:[%s14196_s1 + $0x4a0] sm:$0xff] }
 0x2cb   :  { %7645 = vmatprep.mubr.msk.f32.mxu1 %vm1913_vm2, %v1208_v61  ;;  %v2681_v61 = vpop.f32.mrb[129].mxu0  ;;  %v1378_v53 = vunpack.c.h.bf16 %v813_v50 }
 0x2cc   :  { %2943 = vmatmul.mubr.f32.gmra.mrb[234].mxu0 %v1353_v57  ;;  %v10917_v58 = vpop.f32.mrb[130].mxu0  ;;  %v1377_v57 = vunpack.c.l.bf16 %v813_v50  ;;  %v1255_v61 = vunpack.c.l.bf16 %v752_v44 }
 0x2cd   :  { %2947 = vmatprep.mubr.f32.mxu0 %v1358_v1  ;;  %v2686_v8 = vpop.f32.mrb[131].mxu0 }
 0x2ce   :  { %3863 = vmatmul.mubr.f32.gmra.mrb[182].mxu1 %v1207_v4  ;;  %v744_v4 = vld [vmem:[%s14196_s1 + $0x278] sm:$0xff] }
 0x2cf   :  { %7646 = vmatprep.mubr.msk.f32.mxu1 %vm1913_vm2, %v1212_v6  ;;  %v1235_v6 = vunpack.c.l.bf16 %v742_v55  ;;  %v1240_v10 = vunpack.c.h.bf16 %v744_v4  ;;  %v1239_v17 = vunpack.c.l.bf16 %v744_v4  ;;  %v754_v55 = vld [vmem:[%s14196_s1 + $0x2c8] sm:$0xff] }
 0x2d0   :  { %2948 = vmatmul.mubr.f32.gmra.mrb[236].mxu0 %v1357_v5  ;;  %v1260_v1 = vunpack.c.h.bf16 %v754_v55  ;;  %v756_v5 = vld [vmem:[%s14196_s1 + $0x2d8] sm:$0xff] }
 0x2d2   :  { %3868 = vmatmul.mubr.f32.gmra.mrb[184].mxu1 %v1211_v12  ;;  %v1362_v12 = vunpack.c.h.bf16 %v805_v9  ;;  %v1259_v9 = vunpack.c.l.bf16 %v754_v55 }
 0x2d3   :  { %7647 = vmatprep.mubr.msk.f32.mxu1 %vm1913_vm2, %v1216_v16  ;;  %v10926_v16 = vpop.f32.mrb[132].mxu0 }
 0x2d4   :  { %2952 = vmatprep.mubr.f32.mxu0 %v1362_v12  ;;  %v2691_v18 = vpop.f32.mrb[133].mxu0  ;;  %v817_v12 = vld [vmem:[%s14196_s1 + $0x4c0] sm:$0xff] }
 0x2d5   :  { %2953 = vmatmul.mubr.f32.gmra.mrb[238].mxu0 %v1361_v14  ;;  %v10935_v26 = vpop.f32.mrb[134].mxu0  ;;  %v1386_v14 = vunpack.c.h.bf16 %v817_v12  ;;  %v1385_v18 = vunpack.c.l.bf16 %v817_v12  ;;  %v827_v12 = vld [vmem:[%s14196_s1 + $0x510] sm:$0xff] }
 0x2d6   :  { %3873 = vmatmul.mubr.f32.gmra.mrb[186].mxu1 %v1215_v21  ;;  %v1244_v21 = vunpack.c.h.bf16 %v746_v13  ;;  %2957 = vmatprep.mubr.f32.mxu0 %v1366_v22  ;;  %v2696_v28 = vpop.f32.mrb[135].mxu0  ;;  %v1264_v13 = vunpack.c.h.bf16 %v756_v5 }
 0x2d7   :  { %7648 = vmatprep.mubr.msk.f32.mxu1 %vm1913_vm2, %v1220_v25  ;;  %v1365_v25 = vunpack.c.l.bf16 %v807_v19  ;;  %v10944_v36 = vpop.f32.mrb[136].mxu0  ;;  %v760_v28 = vld [vmem:[%s14196_s1 + $0x2f8] sm:$0xff] }
 0x2d9   :  { %2958 = vmatmul.mubr.f32.gmra.mrb[240].mxu0 %v1365_v25 }
 0x2da   :  { %3878 = vmatmul.mubr.f32.gmra.mrb[188].mxu1 %v1219_v30  ;;  %v809_v30 = vld [vmem:[%s14196_s1 + $0x480] sm:$0xff] }
 0x2db   :  { %7649 = vmatprep.mubr.msk.f32.mxu1 %vm1913_vm2, %v1224_v34  ;;  %v1370_v33 = vunpack.c.h.bf16 %v809_v30  ;;  %v750_v34 = vld [vmem:[%s14196_s1 + $0x2a8] sm:$0xff]  ;;  %v1369_v35 = vunpack.c.l.bf16 %v809_v30  ;;  %v1389_v30 = vunpack.c.l.bf16 %v819_v24 }
 0x2dc   :  { %v1252_v42 = vunpack.c.h.bf16 %v750_v34 }
 0x2dd   :  { %2962 = vmatprep.mubr.f32.mxu0 %v1370_v33 }
 0x2de   :  { %3883 = vmatmul.mubr.f32.gmra.mrb[190].mxu1 %v1223_v40  ;;  %2963 = vmatmul.mubr.f32.gmra.mrb[242].mxu0 %v1369_v35  ;;  %v2701_v40 = vpop.f32.mrb[137].mxu0  ;;  %v821_v35 = vld [vmem:[%s14196_s1 + $0x4e0] sm:$0xff] }
 0x2df   :  { %7650 = vmatprep.mubr.msk.f32.mxu1 %vm1913_vm2, %v1228_v43  ;;  %v1374_v43 = vunpack.c.h.bf16 %v811_v41  ;;  %v10953_v52 = vpop.f32.mrb[138].mxu0  ;;  %v1394_v40 = vunpack.c.h.bf16 %v821_v35  ;;  %v762_v41 = vld [vmem:[%s14196_s1 + $0x308] sm:$0xff] }
 0x2e0   :  { %v2706_v49 = vpop.f32.mrb[139].mxu0 }
 0x2e1   :  { %2967 = vmatprep.mubr.f32.mxu0 %v1374_v43  ;;  %v1276_v49 = vunpack.c.h.bf16 %v762_v41 }
 0x2e2   :  { %3888 = vmatmul.mubr.f32.gmra.mrb[192].mxu1 %v1227_v48  ;;  %v1251_v48 = vunpack.c.l.bf16 %v750_v34  ;;  %2968 = vmatmul.mubr.f32.gmra.mrb[244].mxu0 %v1373_v45 }
 0x2e3   :  { %7651 = vmatprep.mubr.msk.f32.mxu1 %vm1913_vm2, %v1232_v51  ;;  %v1256_v51 = vunpack.c.h.bf16 %v752_v44  ;;  %2972 = vmatprep.mubr.f32.mxu0 %v1378_v53  ;;  %v1271_v44 = vunpack.c.l.bf16 %v760_v28  ;;  %v764_v53 = vld [vmem:[%s14196_s1 + $0x318] sm:$0xff] }
 0x2e6   :  { %3893 = vmatmul.mubr.f32.gmra.mrb[194].mxu1 %v1231_v60  ;;  %v10962_v60 = vpop.f32.mrb[140].mxu0  ;;  %2973 = vmatmul.mubr.f32.gmra.mrb[246].mxu0 %v1377_v57  ;;  %v1275_v57 = vunpack.c.l.bf16 %v762_v41 }
 0x2e7   :  { %7652 = vmatprep.mubr.msk.f32.mxu1 %vm1913_vm2, %v1236_v0  ;;  %v2711_v62 = vpop.f32.mrb[141].mxu0  ;;  %v815_v0 = vld [vmem:[%s14196_s1 + $0x4b0] sm:$0xff] }
 0x2e8   :  { %v1382_v4 = vunpack.c.h.bf16 %v815_v0  ;;  %v10971_v8 = vpop.f32.mrb[142].mxu0  ;;  %v825_v62 = vld [vmem:[%s14196_s1 + $0x500] sm:$0xff] }
 0x2ea   :  { %3898 = vmatmul.mubr.f32.gmra.mrb[196].mxu1 %v1235_v6  ;;  %v1381_v6 = vunpack.c.l.bf16 %v815_v0  ;;  %2977 = vmatprep.mubr.f32.mxu0 %v1382_v4  ;;  %v1280_v0 = vunpack.c.h.bf16 %v764_v53  ;;  %v1402_v4 = vunpack.c.h.bf16 %v825_v62 }
 0x2eb   :  { %7653 = vmatprep.mubr.msk.f32.mxu1 %vm1913_vm2, %v1240_v10  ;;  %v2716_v10 = vpop.f32.mrb[143].mxu0 }
 0x2ec   :  { %2978 = vmatmul.mubr.f32.gmra.mrb[248].mxu0 %v1381_v6  ;;  %v10980_v19 = vpop.f32.mrb[144].mxu0 }
 0x2ed   :  { %2982 = vmatprep.mubr.f32.mxu0 %v1386_v14  ;;  %v2721_v22 = vpop.f32.mrb[145].mxu0  ;;  %v1405_v14 = vunpack.c.l.bf16 %v827_v12 }
 0x2ee   :  { %3903 = vmatmul.mubr.f32.gmra.mrb[198].mxu1 %v1239_v17  ;;  %v758_v17 = vld [vmem:[%s14196_s1 + $0x2e8] sm:$0xff] }
 0x2ef   :  { %7654 = vmatprep.mubr.msk.f32.mxu1 %vm1913_vm2, %v1244_v21  ;;  %v1263_v21 = vunpack.c.l.bf16 %v756_v5  ;;  %v1268_v25 = vunpack.c.h.bf16 %v758_v17  ;;  %v1267_v33 = vunpack.c.l.bf16 %v758_v17  ;;  %v766_v5 = vld [vmem:[%s14196_s1 + $0x328] sm:$0xff]  ;;  %v1406_v17 = vunpack.c.h.bf16 %v827_v12 }
 0x2f0   :  { %2983 = vmatmul.mubr.f32.gmra.mrb[250].mxu0 %v1385_v18  ;;  %v768_v18 = vld [vmem:[%s14196_s1 + $0x338] sm:$0xff]  ;;  %v1283_v22 = vunpack.c.l.bf16 %v766_v5 }
 0x2f2   :  { %3908 = vmatmul.mubr.f32.gmra.mrb[200].mxu1 %v1243_v27  ;;  %v1390_v27 = vunpack.c.h.bf16 %v819_v24 }
 0x2f3   :  { %7655 = vmatprep.mubr.msk.f32.mxu1 %vm1913_vm2, %v1248_v32  ;;  %v10989_v32 = vpop.f32.mrb[146].mxu0 }
 0x2f4   :  { %2987 = vmatprep.mubr.f32.mxu0 %v1390_v27  ;;  %v2726_v34 = vpop.f32.mrb[147].mxu0  ;;  %v1288_v27 = vunpack.c.h.bf16 %v768_v18 }
 0x2f5   :  { %2988 = vmatmul.mubr.f32.gmra.mrb[252].mxu0 %v1389_v30  ;;  %v10998_v43 = vpop.f32.mrb[148].mxu0 }
 0x2f6   :  { %3913 = vmatmul.mubr.f32.gmra.mrb[202].mxu1 %v1247_v37  ;;  %v1272_v37 = vunpack.c.h.bf16 %v760_v28  ;;  %2992 = vmatprep.mubr.f32.mxu0 %v1394_v40  ;;  %v2731_v45 = vpop.f32.mrb[149].mxu0  ;;  %v831_v40 = vld [vmem:[%s14196_s1 + $0x530] sm:$0xff] }
 0x2f7   :  { %7656 = vmatprep.mubr.msk.f32.mxu1 %vm1913_vm2, %v1252_v42  ;;  %v1393_v42 = vunpack.c.l.bf16 %v821_v35  ;;  %v11007_v55 = vpop.f32.mrb[150].mxu0  ;;  %v1287_v35 = vunpack.c.l.bf16 %v768_v18  ;;  %v772_v45 = vld [vmem:[%s14196_s1 + $0x358] sm:$0xff] }
 0x2f9   :  { %2993 = vmatmul.mubr.f32.gmra.mrb[254].mxu0 %v1393_v42  ;;  %v1413_v42 = vunpack.c.l.bf16 %v831_v40 }
 0x2fa   :  { %3918 = vmatmul.mubr.f32.gmra.mrb[204].mxu1 %v1251_v48  ;;  %v823_v48 = vld [vmem:[%s14196_s1 + $0x4f0] sm:$0xff] }
 0x2fb   :  { %7657 = vmatprep.mubr.msk.f32.mxu1 %vm1913_vm2, %v1256_v51  ;;  %v1397_v50 = vunpack.c.l.bf16 %v823_v48  ;;  %v1398_v51 = vunpack.c.h.bf16 %v823_v48 }
 0x2fd   :  { %2997 = vmatprep.mubr.f32.mxu0 %v1398_v51  ;;  %v833_v51 = vld [vmem:[%s14196_s1 + $0x540] sm:$0xff] }
 0x2fe   :  { %3923 = vmatmul.mubr.f32.gmra.mrb[206].mxu1 %v1255_v61  ;;  %2998 = vmatmul.mubr.f32.gmra.mrb[0].mxu0 %v1397_v50  ;;  %v2736_v61 = vpop.f32.mrb[151].mxu0 }
 0x2ff   :  { %7658 = vmatprep.mubr.msk.f32.mxu1 %vm1913_vm2, %v1260_v1  ;;  %v1401_v1 = vunpack.c.l.bf16 %v825_v62  ;;  %v11016_v6 = vpop.f32.mrb[152].mxu0  ;;  %3002 = vmatprep.mubr.f32.mxu0 %v1402_v4  ;;  %v1418_v61 = vunpack.c.h.bf16 %v833_v51  ;;  %v774_v62 = vld [vmem:[%s14196_s1 + $0x368] sm:$0xff] }
 0x300   :  { %v2741_v10 = vpop.f32.mrb[153].mxu0 }
 0x302   :  { %3928 = vmatmul.mubr.f32.gmra.mrb[208].mxu1 %v1259_v9  ;;  %v1279_v9 = vunpack.c.l.bf16 %v764_v53  ;;  %3003 = vmatmul.mubr.f32.gmra.mrb[2].mxu0 %v1401_v1  ;;  %v1296_v53 = vunpack.c.h.bf16 %v772_v45  ;;  %v1295_v1 = vunpack.c.l.bf16 %v772_v45  ;;  %v839_v45 = vld [vmem:[%s14196_s1 + $0x570] sm:$0xff] }
 0x303   :  { %7659 = vmatprep.mubr.msk.f32.mxu1 %vm1913_vm2, %v1264_v13  ;;  %v1284_v13 = vunpack.c.h.bf16 %v766_v5  ;;  %3007 = vmatprep.mubr.f32.mxu0 %v1406_v17  ;;  %v835_v5 = vld [vmem:[%s14196_s1 + $0x550] sm:$0xff] }
 0x304   :  { %v1421_v10 = vunpack.c.l.bf16 %v835_v5  ;;  %v1422_v12 = vunpack.c.h.bf16 %v835_v5  ;;  %v841_v5 = vld [vmem:[%s14196_s1 + $0x580] sm:$0xff] }
 0x306   :  { %3933 = vmatmul.mubr.f32.gmra.mrb[210].mxu1 %v1263_v21  ;;  %v11025_v21 = vpop.f32.mrb[154].mxu0  ;;  %3008 = vmatmul.mubr.f32.gmra.mrb[4].mxu0 %v1405_v14 }
 0x307   :  { %7660 = vmatprep.mubr.msk.f32.mxu1 %vm1913_vm2, %v1268_v25  ;;  %v2746_v24 = vpop.f32.mrb[155].mxu0  ;;  %v829_v25 = vld [vmem:[%s14196_s1 + $0x520] sm:$0xff] }
 0x308   :  { %v1409_v28 = vunpack.c.l.bf16 %v829_v25  ;;  %v1410_v30 = vunpack.c.h.bf16 %v829_v25  ;;  %v11034_v34 = vpop.f32.mrb[156].mxu0  ;;  %v1299_v24 = vunpack.c.l.bf16 %v774_v62 }
 0x30a   :  { %3938 = vmatmul.mubr.f32.gmra.mrb[212].mxu1 %v1267_v33  ;;  %v770_v33 = vld [vmem:[%s14196_s1 + $0x348] sm:$0xff]  ;;  %3012 = vmatprep.mubr.f32.mxu0 %v1410_v30 }
 0x30b   :  { %7661 = vmatprep.mubr.msk.f32.mxu1 %vm1913_vm2, %v1272_v37  ;;  %3013 = vmatmul.mubr.f32.gmra.mrb[6].mxu0 %v1409_v28  ;;  %v2751_v37 = vpop.f32.mrb[157].mxu0  ;;  %v1292_v41 = vunpack.c.h.bf16 %v770_v33 }
 0x30c   :  { %v11043_v48 = vpop.f32.mrb[158].mxu0 }
 0x30d   :  { %v2756_v50 = vpop.f32.mrb[159].mxu0 }
 0x30e   :  { %3943 = vmatmul.mubr.f32.gmra.mrb[214].mxu1 %v1271_v44  ;;  %v1414_v44 = vunpack.c.h.bf16 %v831_v40  ;;  %v1429_v50 = vunpack.c.l.bf16 %v839_v45 }
 0x30f   :  { %7662 = vmatprep.mubr.msk.f32.mxu1 %vm1913_vm2, %v1276_v49  ;;  %v1291_v49 = vunpack.c.l.bf16 %v770_v33 }
 0x310   :  { %3017 = vmatprep.mubr.f32.mxu0 %v1414_v44 }
 0x311   :  { %3018 = vmatmul.mubr.f32.gmra.mrb[8].mxu0 %v1413_v42 }
 0x312   :  { %3948 = vmatmul.mubr.f32.gmra.mrb[216].mxu1 %v1275_v57  ;;  %v1417_v57 = vunpack.c.l.bf16 %v833_v51  ;;  %3022 = vmatprep.mubr.f32.mxu0 %v1418_v61  ;;  %v1430_v51 = vunpack.c.h.bf16 %v839_v45 }
 0x313   :  { %7663 = vmatprep.mubr.msk.f32.mxu1 %vm1913_vm2, %v1280_v0  ;;  %v11052_v0 = vpop.f32.mrb[160].mxu0 }
 0x314   :  { %v2761_v4 = vpop.f32.mrb[161].mxu0 }
 0x315   :  { %3023 = vmatmul.mubr.f32.gmra.mrb[10].mxu0 %v1417_v57  ;;  %v11061_v17 = vpop.f32.mrb[162].mxu0 }
 0x316   :  { %3953 = vmatmul.mubr.f32.gmra.mrb[218].mxu1 %v1279_v9  ;;  %v1300_v9 = vunpack.c.h.bf16 %v774_v62  ;;  %3027 = vmatprep.mubr.f32.mxu0 %v1422_v12  ;;  %v2766_v25 = vpop.f32.mrb[163].mxu0  ;;  %v1434_v12 = vunpack.c.h.bf16 %v841_v5 }
 0x317   :  { %7664 = vmatprep.mubr.msk.f32.mxu1 %vm1913_vm2, %v1284_v13  ;;  %v776_v13 = vld [vmem:[%s14196_s1 + $0x378] sm:$0xff]  ;;  %v11073_v37 = vpop.f32.mrb[164].mxu0 }
 0x318   :  { %v1304_v28 = vunpack.c.h.bf16 %v776_v13  ;;  %v1303_v42 = vunpack.c.l.bf16 %v776_v13  ;;  %v2771_v44 = vpop.f32.mrb[165].mxu0  ;;  %v782_v13 = vld [vmem:[%s14196_s1 + $0x3a8] sm:$0xff] }
 0x319   :  { %3028 = vmatmul.mubr.f32.gmra.mrb[12].mxu0 %v1421_v10  ;;  %v11085_v57 = vpop.f32.mrb[166].mxu0  ;;  %v1433_v10 = vunpack.c.l.bf16 %v841_v5  ;;  %v1315_v45 = vunpack.c.l.bf16 %v782_v13 }
 0x31a   :  { %3958 = vmatmul.mubr.f32.gmra.mrb[220].mxu1 %v1283_v22  ;;  %v2776_v4 = vpop.f32.mrb[167].mxu0 }
 0x31b   :  { %7665 = vmatprep.mubr.msk.f32.mxu1 %vm1913_vm2, %v1288_v27  ;;  %v837_v27 = vld [vmem:[%s14196_s1 + $0x560] sm:$0xff] }
 0x31c   :  { %v1425_v30 = vunpack.c.l.bf16 %v837_v27  ;;  %v1426_v33 = vunpack.c.h.bf16 %v837_v27 }
 0x31e   :  { %3963 = vmatmul.mubr.f32.gmra.mrb[222].mxu1 %v1287_v35  ;;  %v778_v35 = vld [vmem:[%s14196_s1 + $0x388] sm:$0xff]  ;;  %3032 = vmatprep.mubr.f32.mxu0 %v1426_v33 }
 0x31f   :  { %7666 = vmatprep.mubr.msk.f32.mxu1 %vm1913_vm2, %v1292_v41  ;;  %3033 = vmatmul.mubr.f32.gmra.mrb[14].mxu0 %v1425_v30  ;;  %v1316_v30 = vunpack.c.h.bf16 %v782_v13 }
 0x320   :  { %3037 = vmatprep.mubr.f32.mxu0 %v1430_v51 }
 0x322   :  { %3968 = vmatmul.mubr.f32.gmra.mrb[224].mxu1 %v1291_v49  ;;  %v1308_v49 = vunpack.c.h.bf16 %v778_v35 }
 0x323   :  { %7667 = vmatprep.mubr.msk.f32.mxu1 %vm1913_vm2, %v1296_v53  ;;  %v780_v53 = vld [vmem:[%s14196_s1 + $0x398] sm:$0xff]  ;;  %3038 = vmatmul.mubr.f32.gmra.mrb[16].mxu0 %v1429_v50  ;;  %v845_v50 = vld [vmem:[%s14196_s1 + $0x5a0] sm:$0xff] }
 0x324   :  { %3042 = vmatprep.mubr.f32.mxu0 %v1434_v12  ;;  %v1311_v25 = vunpack.c.l.bf16 %v780_v53  ;;  %v847_v12 = vld [vmem:[%s14196_s1 + $0x5b0] sm:$0xff] }
 0x325   :  { %v3709_v14 = vpop.f32.mrb[120].mxu1 }
 0x326   :  { %v11064_v18 = vadd.f32 %v3709_v14, %v10773_v54  ;;  %v3711_v22 = vpop.f32.mrb[121].mxu1  ;;  %3973 = vmatmul.mubr.f32.gmra.mrb[226].mxu1 %v1295_v1  ;;  %v1307_v1 = vunpack.c.l.bf16 %v778_v35  ;;  %v11097_v14 = vpop.f32.mrb[168].mxu0 }
 0x327   :  { %7668 = vmatprep.mubr.msk.f32.mxu1 %vm1913_vm2, %v1300_v9  ;;  %v1312_v9 = vunpack.c.h.bf16 %v780_v53  ;;  %3043 = vmatmul.mubr.f32.gmra.mrb[18].mxu0 %v1433_v10  ;;  %v2781_v27 = vpop.f32.mrb[169].mxu0  ;;  %v1441_v53 = vunpack.c.l.bf16 %v845_v50 }
 0x328   :  { %14210 = vst [vmem:[#allocation3_spill] sm:$0xff] %v11064_v18 }
 0x329   :  { %v3714_v54 = vpop.f32.mrb[122].mxu1 }
 0x32a   :  { %v11076_v40 = vadd.f32 %v3714_v54, %v10782_v63  ;;  %v3716_v41 = vpop.f32.mrb[123].mxu1  ;;  %3978 = vmatmul.mubr.f32.gmra.mrb[228].mxu1 %v1299_v24  ;;  %v784_v54 = vld [vmem:[%s14196_s1 + $0x3b8] sm:$0xff] }
 0x32b   :  { %7669 = vmatprep.mubr.msk.f32.mxu1 %vm1913_vm2, %v1304_v28  ;;  %v843_v28 = vld [vmem:[%s14196_s1 + $0x590] sm:$0xff]  ;;  %v11109_v41 = vpop.f32.mrb[170].mxu0  ;;  %v1320_v51 = vunpack.c.h.bf16 %v784_v54 }
 0x32c   :  { %14211 = vst [vmem:[#allocation4_spill] sm:$0xff] %v11076_v40  ;;  %v1437_v33 = vunpack.c.l.bf16 %v843_v28  ;;  %v1438_v35 = vunpack.c.h.bf16 %v843_v28 }
 0x32d   :  { %v3719_v63 = vpop.f32.mrb[124].mxu1 }
 0x32e   :  { %v11088_v61 = vadd.f32 %v3719_v63, %v10791_v7  ;;  %v3721_v62 = vpop.f32.mrb[125].mxu1  ;;  %3983 = vmatmul.mubr.f32.gmra.mrb[230].mxu1 %v1303_v42  ;;  %3047 = vmatprep.mubr.f32.mxu0 %v1438_v35  ;;  %v1442_v63 = vunpack.c.h.bf16 %v845_v50 }
 0x32f   :  { %7670 = vmatprep.mubr.msk.f32.mxu1 %vm1913_vm2, %v1308_v49  ;;  %3048 = vmatmul.mubr.f32.gmra.mrb[20].mxu0 %v1437_v33  ;;  %v2786_v49 = vpop.f32.mrb[171].mxu0  ;;  %v786_v62 = vld [vmem:[%s14196_s1 + $0x3c8] sm:$0xff] }
 0x330   :  { %14212 = vst [vmem:[#allocation5_spill] sm:$0xff] %v11088_v61  ;;  %3052 = vmatprep.mubr.f32.mxu0 %v1442_v63  ;;  %v1324_v13 = vunpack.c.h.bf16 %v786_v62  ;;  %v1323_v33 = vunpack.c.l.bf16 %v786_v62  ;;  %v790_v49 = vld [vmem:[%s14196_s1 + $0x3e8] sm:$0xff] }
 0x331   :  { %v3724_v7 = vpop.f32.mrb[126].mxu1 }
 0x332   :  { %v11100_v22 = vadd.f32 %v3724_v7, %v10800_v15  ;;  %v3726_v24 = vpop.f32.mrb[127].mxu1  ;;  %3988 = vmatmul.mubr.f32.gmra.mrb[232].mxu1 %v1307_v1  ;;  %v11121_v1 = vpop.f32.mrb[172].mxu0  ;;  %v1445_v7 = vunpack.c.l.bf16 %v847_v12 }
 0x333   :  { %7671 = vmatprep.mubr.msk.f32.mxu1 %vm1913_vm2, %v1312_v9  ;;  %v1319_v9 = vunpack.c.l.bf16 %v784_v54  ;;  %3053 = vmatmul.mubr.f32.gmra.mrb[22].mxu0 %v1441_v53  ;;  %v2791_v10 = vpop.f32.mrb[173].mxu0  ;;  %v1446_v24 = vunpack.c.h.bf16 %v847_v12  ;;  %v849_v54 = vld [vmem:[%s14196_s1 + $0x5c0] sm:$0xff]  ;;  %v792_v12 = vld [vmem:[%s14196_s1 + $0x3f8] sm:$0xff] }
 0x334   :  { %14213 = vst [vmem:[#allocation6_spill] sm:$0xff] %v11100_v22  ;;  %v11133_v27 = vpop.f32.mrb[174].mxu0 }
 0x335   :  { %v3729_v15 = vpop.f32.mrb[128].mxu1  ;;  %3057 = vmatprep.mubr.f32.mxu0 %v1446_v24  ;;  %v2796_v35 = vpop.f32.mrb[175].mxu0 }
 0x336   :  { %v11112_v42 = vadd.f32 %v3729_v15, %v10809_v23  ;;  %v3731_v44 = vpop.f32.mrb[129].mxu1  ;;  %3993 = vmatmul.mubr.f32.gmra.mrb[234].mxu1 %v1311_v25  ;;  %v788_v25 = vld [vmem:[%s14196_s1 + $0x3d8] sm:$0xff]  ;;  %v11145_v50 = vpop.f32.mrb[176].mxu0 }
 0x337   :  { %7672 = vmatprep.mubr.msk.f32.mxu1 %vm1913_vm2, %v1316_v30  ;;  %3058 = vmatmul.mubr.f32.gmra.mrb[24].mxu0 %v1445_v7  ;;  %v1328_v15 = vunpack.c.h.bf16 %v788_v25  ;;  %v1449_v44 = vunpack.c.l.bf16 %v849_v54  ;;  %v1327_v63 = vunpack.c.l.bf16 %v788_v25  ;;  %v2801_v62 = vpop.f32.mrb[177].mxu0  ;;  %v1331_v25 = vunpack.c.l.bf16 %v790_v49 }
 0x338   :  { %14214 = vst [vmem:[#allocation7_spill] sm:$0xff] %v11112_v42 }
 0x339   :  { %v3734_v23 = vpop.f32.mrb[130].mxu1 }
 0x33a   :  { %v11124_v4 = vadd.f32 %v3734_v23, %v10818_v31  ;;  %v3736_v5 = vpop.f32.mrb[131].mxu1  ;;  %3998 = vmatmul.mubr.f32.gmra.mrb[236].mxu1 %v1315_v45  ;;  %v1450_v45 = vunpack.c.h.bf16 %v849_v54  ;;  %v851_v23 = vld [vmem:[%s14196_s1 + $0x5d0] sm:$0xff] }
 0x33b   :  { %7673 = vmatprep.mubr.msk.f32.mxu1 %vm1913_vm2, %v1320_v51  ;;  %v1332_v5 = vunpack.c.h.bf16 %v790_v49  ;;  %v1454_v10 = vunpack.c.h.bf16 %v851_v23 }
 0x33c   :  { %14215 = vst [vmem:[#allocation8_spill] sm:$0xff] %v11124_v4  ;;  %3062 = vmatprep.mubr.f32.mxu0 %v1450_v45 }
 0x33d   :  { %v3739_v31 = vpop.f32.mrb[132].mxu1  ;;  %3063 = vmatmul.mubr.f32.gmra.mrb[26].mxu0 %v1449_v44 }
 0x33e   :  { %v11136_v28 = vadd.f32 %v3739_v31, %v10827_v39  ;;  %v3741_v30 = vpop.f32.mrb[133].mxu1  ;;  %4003 = vmatmul.mubr.f32.gmra.mrb[238].mxu1 %v1319_v9  ;;  %v1453_v9 = vunpack.c.l.bf16 %v851_v23  ;;  %3067 = vmatprep.mubr.f32.mxu0 %v1454_v10 }
 0x33f   :  { %7674 = vmatprep.mubr.msk.f32.mxu1 %vm1913_vm2, %v1324_v13  ;;  %v11157_v13 = vpop.f32.mrb[178].mxu0  ;;  %v853_v30 = vld [vmem:[%s14196_s1 + $0x5e0] sm:$0xff] }
 0x340   :  { %14216 = vst [vmem:[#allocation9_spill] sm:$0xff] %v11136_v28  ;;  %v2806_v31 = vpop.f32.mrb[179].mxu0  ;;  %v1457_v35 = vunpack.c.l.bf16 %v853_v30  ;;  %v1458_v54 = vunpack.c.h.bf16 %v853_v30 }
 0x341   :  { %v3744_v39 = vpop.f32.mrb[134].mxu1  ;;  %3068 = vmatmul.mubr.f32.gmra.mrb[28].mxu0 %v1453_v9  ;;  %v11169_v44 = vpop.f32.mrb[180].mxu0  ;;  %v796_v9 = vld [vmem:[%s14196_s1 + $0x418] sm:$0xff]  ;;  %v857_v31 = vld [vmem:[%s14196_s1 + $0x600] sm:$0xff] }
 0x342   :  { %v11148_v51 = vadd.f32 %v3744_v39, %v10836_v46  ;;  %v3746_v53 = vpop.f32.mrb[135].mxu1  ;;  %4008 = vmatmul.mubr.f32.gmra.mrb[240].mxu1 %v1323_v33  ;;  %v1336_v33 = vunpack.c.h.bf16 %v792_v12  ;;  %3072 = vmatprep.mubr.f32.mxu0 %v1458_v54  ;;  %v1335_v39 = vunpack.c.l.bf16 %v792_v12  ;;  %v1344_v30 = vunpack.c.h.bf16 %v796_v9  ;;  %v798_v54 = vld [vmem:[%s14196_s1 + $0x428] sm:$0xff] }
 0x343   :  { %7675 = vmatprep.mubr.msk.f32.mxu1 %vm1913_vm2, %v1328_v15  ;;  %v794_v15 = vld [vmem:[%s14196_s1 + $0x408] sm:$0xff]  ;;  %v2811_v53 = vpop.f32.mrb[181].mxu0 }
 0x344   :  { %14217 = vst [vmem:[#allocation10_spill] sm:$0xff] %v11148_v51  ;;  %v1340_v62 = vunpack.c.h.bf16 %v794_v15  ;;  %v11181_v10 = vpop.f32.mrb[182].mxu0 }
 0x345   :  { %v3749_v46 = vpop.f32.mrb[136].mxu1  ;;  %3073 = vmatmul.mubr.f32.gmra.mrb[30].mxu0 %v1457_v35  ;;  %v1466_v35 = vunpack.c.h.bf16 %v857_v31 }
 0x346   :  { %v11160_v7 = vadd.f32 %v3749_v46, %v10845_v56  ;;  %v3751_v24 = vpop.f32.mrb[137].mxu1  ;;  %4013 = vmatmul.mubr.f32.gmra.mrb[242].mxu1 %v1327_v63  ;;  %v855_v63 = vld [vmem:[%s14196_s1 + $0x5f0] sm:$0xff] }
 0x347   :  { %7676 = vmatprep.mubr.msk.f32.mxu1 %vm1913_vm2, %v1332_v5  ;;  %v1461_v23 = vunpack.c.l.bf16 %v855_v63  ;;  %v1462_v5 = vunpack.c.h.bf16 %v855_v63  ;;  %v1339_v24 = vunpack.c.l.bf16 %v794_v15  ;;  %v859_v63 = vld [vmem:[%s14196_s1 + $0x610] sm:$0xff] }
 0x348   :  { %14218 = vst [vmem:[#allocation11_spill] sm:$0xff] %v11160_v7 }
 0x349   :  { %v3754_v56 = vpop.f32.mrb[138].mxu1  ;;  %3077 = vmatprep.mubr.f32.mxu0 %v1462_v5  ;;  %v1470_v5 = vunpack.c.h.bf16 %v859_v63 }
 0x34a   :  { %v11172_v45 = vadd.f32 %v3754_v56, %v10854_v2  ;;  %v3756_v49 = vpop.f32.mrb[139].mxu1  ;;  %4018 = vmatmul.mubr.f32.gmra.mrb[244].mxu1 %v1331_v25  ;;  %3078 = vmatmul.mubr.f32.gmra.mrb[32].mxu0 %v1461_v23  ;;  %v2816_v25 = vpop.f32.mrb[183].mxu0  ;;  %v1469_v23 = vunpack.c.l.bf16 %v859_v63 }
 0x34b   :  { %7677 = vmatprep.mubr.msk.f32.mxu1 %vm1913_vm2, %v1336_v33  ;;  %v1465_v33 = vunpack.c.l.bf16 %v857_v31  ;;  %v11193_v56 = vpop.f32.mrb[184].mxu0  ;;  %3082 = vmatprep.mubr.f32.mxu0 %v1466_v35  ;;  %v1347_v25 = vunpack.c.l.bf16 %v798_v54 }
 0x34c   :  { %14219 = vst [vmem:[#allocation12_spill] sm:$0xff] %v11172_v45  ;;  %v2821_v53 = vpop.f32.mrb[185].mxu0 }
 0x34d   :  { %v3759_v2 = vpop.f32.mrb[140].mxu1 }
 0x34e   :  { %v11184_v12 = vadd.f32 %v3759_v2, %v10863_v11  ;;  %v3761_v46 = vpop.f32.mrb[141].mxu1  ;;  %4023 = vmatmul.mubr.f32.gmra.mrb[246].mxu1 %v1335_v39  ;;  %v1343_v39 = vunpack.c.l.bf16 %v796_v9  ;;  %3083 = vmatmul.mubr.f32.gmra.mrb[34].mxu0 %v1465_v33  ;;  %v800_v2 = vld [vmem:[%s14196_s1 + $0x438] sm:$0xff] }
 0x34f   :  { %7678 = vmatprep.mubr.msk.f32.mxu1 %vm1913_vm2, %v1340_v62  ;;  %v1348_v62 = vunpack.c.h.bf16 %v798_v54  ;;  %v11205_v46 = vpop.f32.mrb[186].mxu0  ;;  %3087 = vmatprep.mubr.f32.mxu0 %v1470_v5  ;;  %v1352_v33 = vunpack.c.h.bf16 %v800_v2 }
 0x350   :  { %14220 = vst [vmem:[#allocation13_spill] sm:$0xff] %v11184_v12  ;;  %v2826_v31 = vpop.f32.mrb[187].mxu0 }
 0x351   :  { %v3764_v11 = vpop.f32.mrb[142].mxu1  ;;  %v11217_v53 = vpop.f32.mrb[188].mxu0  ;;  %v804_v31 = vld [vmem:[%s14196_s1 + $0x458] sm:$0xff] }
 0x352   :  { %v11196_v15 = vadd.f32 %v3764_v11, %v10872_v20  ;;  %v3766_v49 = vpop.f32.mrb[143].mxu1  ;;  %4028 = vmatmul.mubr.f32.gmra.mrb[248].mxu1 %v1339_v24  ;;  %3088 = vmatmul.mubr.f32.gmra.mrb[36].mxu0 %v1469_v23  ;;  %v2831_v63 = vpop.f32.mrb[189].mxu0 }
 0x353   :  { %7679 = vmatprep.mubr.msk.f32.mxu1 %vm1913_vm2, %v1344_v30  ;;  %v861_v30 = vld [vmem:[%s14196_s1 + $0x620] sm:$0xff]  ;;  %v802_v49 = vld [vmem:[%s14196_s1 + $0x448] sm:$0xff] }
 0x354   :  { %14221 = vst [vmem:[#allocation14_spill] sm:$0xff] %v11196_v15  ;;  %v1473_v35 = vunpack.c.l.bf16 %v861_v30  ;;  %v1474_v11 = vunpack.c.h.bf16 %v861_v30  ;;  %v1356_v5 = vunpack.c.h.bf16 %v802_v49 }
 0x355   :  { %v3769_v20 = vpop.f32.mrb[144].mxu1 }
 0x356   :  { %v11208_v9 = vadd.f32 %v3769_v20, %v10881_v29  ;;  %v3771_v24 = vpop.f32.mrb[145].mxu1  ;;  %4033 = vmatmul.mubr.f32.gmra.mrb[250].mxu1 %v1343_v39  ;;  %3092 = vmatprep.mubr.f32.mxu0 %v1474_v11  ;;  %v1351_v39 = vunpack.c.l.bf16 %v800_v2  ;;  %v11229_v2 = vpop.f32.mrb[190].mxu0 }
 0x357   :  { %7680 = vmatprep.mubr.msk.f32.mxu1 %vm1913_vm2, %v1348_v62  ;;  %3093 = vmatmul.mubr.f32.gmra.mrb[38].mxu0 %v1473_v35  ;;  %v863_v62 = vld [vmem:[%s14196_s1 + $0x630] sm:$0xff]  ;;  %v1355_v35 = vunpack.c.l.bf16 %v802_v49  ;;  %v2836_v11 = vpop.f32.mrb[191].mxu0 }
 0x358   :  { %14222 = vst [vmem:[#allocation15_spill] sm:$0xff] %v11208_v9  ;;  %v1477_v20 = vunpack.c.l.bf16 %v863_v62  ;;  %v1478_v24 = vunpack.c.h.bf16 %v863_v62  ;;  %v806_v62 = vld [vmem:[%s14196_s1 + $0x468] sm:$0xff]  ;;  %v11241_v49 = vpop.f32.mrb[192].mxu0 }
 0x359   :  { %v3774_v29 = vpop.f32.mrb[146].mxu1 }
 0x35a   :  { %v3776_v54 = vpop.f32.mrb[147].mxu1  ;;  %4038 = vmatmul.mubr.f32.gmra.mrb[252].mxu1 %v1347_v25  ;;  %v11223_v23 = vadd.f32 %v3774_v29, %v10890_v38  ;;  %3097 = vmatprep.mubr.f32.mxu0 %v1478_v24  ;;  %v865_v38 = vld [vmem:[%s14196_s1 + $0x640] sm:$0xff]  ;;  %v1360_v29 = vunpack.c.h.bf16 %v804_v31 }
 0x35b   :  { %7681 = vmatprep.mubr.msk.f32.mxu1 %vm1913_vm2, %v1352_v33  ;;  %3098 = vmatmul.mubr.f32.gmra.mrb[40].mxu0 %v1477_v20  ;;  %v1481_v54 = vunpack.c.l.bf16 %v865_v38  ;;  %v1482_v63 = vunpack.c.h.bf16 %v865_v38 }
 0x35d   :  { %v3779_v25 = vpop.f32.mrb[148].mxu1  ;;  %3102 = vmatprep.mubr.f32.mxu0 %v1482_v63  ;;  %v808_v63 = vld [vmem:[%s14196_s1 + $0x478] sm:$0xff] }
 0x35e   :  { %v3781_v30 = vpop.f32.mrb[149].mxu1  ;;  %4043 = vmatmul.mubr.f32.gmra.mrb[254].mxu1 %v1351_v39  ;;  %v11235_v33 = vadd.f32 %v3779_v25, %v10899_v47  ;;  %v1359_v47 = vunpack.c.l.bf16 %v804_v31  ;;  %v2841_v25 = vpop.f32.mrb[193].mxu0 }
 0x35f   :  { %7682 = vmatprep.mubr.msk.f32.mxu1 %vm1913_vm2, %v1356_v5  ;;  %3103 = vmatmul.mubr.f32.gmra.mrb[42].mxu0 %v1481_v54  ;;  %v867_v5 = vld [vmem:[%s14196_s1 + $0x650] sm:$0xff]  ;;  %v1364_v30 = vunpack.c.h.bf16 %v806_v62  ;;  %v1363_v54 = vunpack.c.l.bf16 %v806_v62  ;;  %v1368_v25 = vunpack.c.h.bf16 %v808_v63 }
 0x360   :  { %v1485_v11 = vunpack.c.l.bf16 %v867_v5  ;;  %v1486_v38 = vunpack.c.h.bf16 %v867_v5 }
 0x361   :  { %v3784_v39 = vpop.f32.mrb[150].mxu1 }
 0x362   :  { %v11244_v20 = vadd.f32 %v3784_v39, %v10908_v59  ;;  %v3786_v24 = vpop.f32.mrb[151].mxu1  ;;  %4048 = vmatmul.mubr.f32.gmra.mrb[120].mxu1 %v1355_v35  ;;  %v11253_v39 = vpop.f32.mrb[194].mxu0  ;;  %3107 = vmatprep.mubr.f32.mxu0 %v1486_v38  ;;  %v810_v38 = vld [vmem:[%s14196_s1 + $0x488] sm:$0xff] }
 0x363   :  { %7683 = vmatprep.mubr.msk.f32.mxu1 %vm1913_vm2, %v1360_v29  ;;  %3108 = vmatmul.mubr.f32.gmra.mrb[44].mxu0 %v1485_v11  ;;  %v2846_v24 = vpop.f32.mrb[195].mxu0  ;;  %v869_v29 = vld [vmem:[%s14196_s1 + $0x660] sm:$0xff]  ;;  %v1367_v11 = vunpack.c.l.bf16 %v808_v63 }
 0x364   :  { %v1489_v5 = vunpack.c.l.bf16 %v869_v29  ;;  %v1490_v3 = vunpack.c.h.bf16 %v869_v29  ;;  %v1372_v24 = vunpack.c.h.bf16 %v810_v38 }
 0x365   :  { %v3789_v59 = vpop.f32.mrb[152].mxu1 }
 0x366   :  { %v11256_v31 = vadd.f32 %v3789_v59, %v10917_v58  ;;  %v3791_v35 = vpop.f32.mrb[153].mxu1  ;;  %4053 = vmatmul.mubr.f32.gmra.mrb[122].mxu1 %v1359_v47  ;;  %v11265_v59 = vpop.f32.mrb[196].mxu0  ;;  %3112 = vmatprep.mubr.f32.mxu0 %v1490_v3  ;;  %v812_v3 = vld [vmem:[%s14196_s1 + $0x498] sm:$0xff] }
 0x367   :  { %7684 = vmatprep.mubr.msk.f32.mxu1 %vm1913_vm2, %v1364_v30  ;;  %3113 = vmatmul.mubr.f32.gmra.mrb[46].mxu0 %v1489_v5  ;;  %v2851_v35 = vpop.f32.mrb[197].mxu0  ;;  %v871_v30 = vld [vmem:[%s14196_s1 + $0x670] sm:$0xff]  ;;  %v1371_v5 = vunpack.c.l.bf16 %v810_v38 }
 0x368   :  { %v1493_v29 = vunpack.c.l.bf16 %v871_v30  ;;  %v1494_v7 = vunpack.c.h.bf16 %v871_v30  ;;  %v1376_v35 = vunpack.c.h.bf16 %v812_v3 }
 0x369   :  { %v3794_v58 = vpop.f32.mrb[154].mxu1 }
 0x36a   :  { %v11268_v62 = vadd.f32 %v3794_v58, %v10926_v16  ;;  %v3796_v47 = vpop.f32.mrb[155].mxu1  ;;  %4058 = vmatmul.mubr.f32.gmra.mrb[124].mxu1 %v1363_v54  ;;  %v11277_v58 = vpop.f32.mrb[198].mxu0  ;;  %3117 = vmatprep.mubr.f32.mxu0 %v1494_v7  ;;  %v814_v7 = vld [vmem:[%s14196_s1 + $0x4a8] sm:$0xff] }
 0x36b   :  { %7685 = vmatprep.mubr.msk.f32.mxu1 %vm1913_vm2, %v1368_v25  ;;  %3118 = vmatmul.mubr.f32.gmra.mrb[48].mxu0 %v1493_v29  ;;  %v2856_v47 = vpop.f32.mrb[199].mxu0  ;;  %v873_v25 = vld [vmem:[%s14196_s1 + $0x680] sm:$0xff]  ;;  %v1375_v29 = vunpack.c.l.bf16 %v812_v3 }
 0x36c   :  { %v1497_v30 = vunpack.c.l.bf16 %v873_v25  ;;  %v1498_v51 = vunpack.c.h.bf16 %v873_v25  ;;  %v1380_v47 = vunpack.c.h.bf16 %v814_v7 }
 0x36d   :  { %v3799_v16 = vpop.f32.mrb[156].mxu1 }
 0x36e   :  { %v11280_v63 = vadd.f32 %v3799_v16, %v10935_v26  ;;  %v3801_v54 = vpop.f32.mrb[157].mxu1  ;;  %4063 = vmatmul.mubr.f32.gmra.mrb[126].mxu1 %v1367_v11  ;;  %v11289_v16 = vpop.f32.mrb[200].mxu0  ;;  %3122 = vmatprep.mubr.f32.mxu0 %v1498_v51  ;;  %v816_v51 = vld [vmem:[%s14196_s1 + $0x4b8] sm:$0xff] }
 0x36f   :  { %7686 = vmatprep.mubr.msk.f32.mxu1 %vm1913_vm2, %v1372_v24  ;;  %3123 = vmatmul.mubr.f32.gmra.mrb[50].mxu0 %v1497_v30  ;;  %v2861_v54 = vpop.f32.mrb[201].mxu0  ;;  %v875_v24 = vld [vmem:[%s14196_s1 + $0x690] sm:$0xff]  ;;  %v1379_v30 = vunpack.c.l.bf16 %v814_v7 }
 0x370   :  { %v1501_v25 = vunpack.c.l.bf16 %v875_v24  ;;  %v1502_v28 = vunpack.c.h.bf16 %v875_v24  ;;  %v1384_v54 = vunpack.c.h.bf16 %v816_v51 }
 0x371   :  { %v3804_v26 = vpop.f32.mrb[158].mxu1 }
 0x372   :  { %v11292_v38 = vadd.f32 %v3804_v26, %v10944_v36  ;;  %v3806_v11 = vpop.f32.mrb[159].mxu1  ;;  %4068 = vmatmul.mubr.f32.gmra.mrb[128].mxu1 %v1371_v5  ;;  %v11301_v26 = vpop.f32.mrb[202].mxu0  ;;  %3127 = vmatprep.mubr.f32.mxu0 %v1502_v28  ;;  %v818_v28 = vld [vmem:[%s14196_s1 + $0x4c8] sm:$0xff] }
 0x373   :  { %7687 = vmatprep.mubr.msk.f32.mxu1 %vm1913_vm2, %v1376_v35  ;;  %3128 = vmatmul.mubr.f32.gmra.mrb[52].mxu0 %v1501_v25  ;;  %v2866_v11 = vpop.f32.mrb[203].mxu0  ;;  %v877_v35 = vld [vmem:[%s14196_s1 + $0x6a0] sm:$0xff]  ;;  %v1383_v25 = vunpack.c.l.bf16 %v816_v51 }
 0x374   :  { %v1505_v24 = vunpack.c.l.bf16 %v877_v35  ;;  %v1506_v4 = vunpack.c.h.bf16 %v877_v35  ;;  %v1388_v11 = vunpack.c.h.bf16 %v818_v28 }
 0x375   :  { %v3809_v36 = vpop.f32.mrb[160].mxu1 }
 0x376   :  { %v11304_v3 = vadd.f32 %v3809_v36, %v10953_v52  ;;  %v3811_v5 = vpop.f32.mrb[161].mxu1  ;;  %4073 = vmatmul.mubr.f32.gmra.mrb[130].mxu1 %v1375_v29  ;;  %v11313_v36 = vpop.f32.mrb[204].mxu0  ;;  %3132 = vmatprep.mubr.f32.mxu0 %v1506_v4  ;;  %v820_v4 = vld [vmem:[%s14196_s1 + $0x4d8] sm:$0xff] }
 0x377   :  { %7688 = vmatprep.mubr.msk.f32.mxu1 %vm1913_vm2, %v1380_v47  ;;  %3133 = vmatmul.mubr.f32.gmra.mrb[54].mxu0 %v1505_v24  ;;  %v2871_v5 = vpop.f32.mrb[205].mxu0  ;;  %v879_v47 = vld [vmem:[%s14196_s1 + $0x6b0] sm:$0xff]  ;;  %v1387_v24 = vunpack.c.l.bf16 %v818_v28 }
 0x378   :  { %v1509_v35 = vunpack.c.l.bf16 %v879_v47  ;;  %v1510_v42 = vunpack.c.h.bf16 %v879_v47  ;;  %v1392_v5 = vunpack.c.h.bf16 %v820_v4 }
 0x379   :  { %v3814_v52 = vpop.f32.mrb[162].mxu1 }
 0x37a   :  { %v11316_v7 = vadd.f32 %v3814_v52, %v10962_v60  ;;  %v3816_v29 = vpop.f32.mrb[163].mxu1  ;;  %4078 = vmatmul.mubr.f32.gmra.mrb[132].mxu1 %v1379_v30  ;;  %v11325_v52 = vpop.f32.mrb[206].mxu0  ;;  %3137 = vmatprep.mubr.f32.mxu0 %v1510_v42  ;;  %v822_v42 = vld [vmem:[%s14196_s1 + $0x4e8] sm:$0xff] }
 0x37b   :  { %7689 = vmatprep.mubr.msk.f32.mxu1 %vm1913_vm2, %v1384_v54  ;;  %3138 = vmatmul.mubr.f32.gmra.mrb[56].mxu0 %v1509_v35  ;;  %v2876_v29 = vpop.f32.mrb[207].mxu0  ;;  %v881_v54 = vld [vmem:[%s14196_s1 + $0x6c0] sm:$0xff]  ;;  %v1391_v35 = vunpack.c.l.bf16 %v820_v4 }
 0x37c   :  { %v1513_v47 = vunpack.c.l.bf16 %v881_v54  ;;  %v1514_v22 = vunpack.c.h.bf16 %v881_v54  ;;  %v1396_v29 = vunpack.c.h.bf16 %v822_v42 }
 0x37d   :  { %v3819_v60 = vpop.f32.mrb[164].mxu1 }
 0x37e   :  { %v11328_v51 = vadd.f32 %v3819_v60, %v10971_v8  ;;  %v3821_v30 = vpop.f32.mrb[165].mxu1  ;;  %4083 = vmatmul.mubr.f32.gmra.mrb[134].mxu1 %v1383_v25  ;;  %v11337_v60 = vpop.f32.mrb[208].mxu0  ;;  %3142 = vmatprep.mubr.f32.mxu0 %v1514_v22  ;;  %v824_v22 = vld [vmem:[%s14196_s1 + $0x4f8] sm:$0xff] }
 0x37f   :  { %7690 = vmatprep.mubr.msk.f32.mxu1 %vm1913_vm2, %v1388_v11  ;;  %3143 = vmatmul.mubr.f32.gmra.mrb[58].mxu0 %v1513_v47  ;;  %v2881_v30 = vpop.f32.mrb[209].mxu0  ;;  %v883_v11 = vld [vmem:[%s14196_s1 + $0x6d0] sm:$0xff]  ;;  %v1395_v47 = vunpack.c.l.bf16 %v822_v42 }
 0x380   :  { %v1517_v54 = vunpack.c.l.bf16 %v883_v11  ;;  %v1518_v61 = vunpack.c.h.bf16 %v883_v11  ;;  %v1400_v30 = vunpack.c.h.bf16 %v824_v22 }
 0x381   :  { %v3824_v8 = vpop.f32.mrb[166].mxu1 }
 0x382   :  { %v11340_v28 = vadd.f32 %v3824_v8, %v10980_v19  ;;  %v3826_v25 = vpop.f32.mrb[167].mxu1  ;;  %4088 = vmatmul.mubr.f32.gmra.mrb[136].mxu1 %v1387_v24  ;;  %v11349_v8 = vpop.f32.mrb[210].mxu0  ;;  %3147 = vmatprep.mubr.f32.mxu0 %v1518_v61  ;;  %v826_v61 = vld [vmem:[%s14196_s1 + $0x508] sm:$0xff] }
 0x383   :  { %7691 = vmatprep.mubr.msk.f32.mxu1 %vm1913_vm2, %v1392_v5  ;;  %3148 = vmatmul.mubr.f32.gmra.mrb[60].mxu0 %v1517_v54  ;;  %v2886_v25 = vpop.f32.mrb[211].mxu0  ;;  %v885_v5 = vld [vmem:[%s14196_s1 + $0x6e0] sm:$0xff]  ;;  %v1399_v54 = vunpack.c.l.bf16 %v824_v22 }
 0x384   :  { %v1521_v11 = vunpack.c.l.bf16 %v885_v5  ;;  %v1522_v40 = vunpack.c.h.bf16 %v885_v5  ;;  %v1404_v25 = vunpack.c.h.bf16 %v826_v61 }
 0x385   :  { %v3829_v19 = vpop.f32.mrb[168].mxu1 }
 0x386   :  { %v11352_v4 = vadd.f32 %v3829_v19, %v10989_v32  ;;  %v3831_v24 = vpop.f32.mrb[169].mxu1  ;;  %4093 = vmatmul.mubr.f32.gmra.mrb[138].mxu1 %v1391_v35  ;;  %v11361_v19 = vpop.f32.mrb[212].mxu0  ;;  %3152 = vmatprep.mubr.f32.mxu0 %v1522_v40  ;;  %v828_v40 = vld [vmem:[%s14196_s1 + $0x518] sm:$0xff] }
 0x387   :  { %7692 = vmatprep.mubr.msk.f32.mxu1 %vm1913_vm2, %v1396_v29  ;;  %3153 = vmatmul.mubr.f32.gmra.mrb[62].mxu0 %v1521_v11  ;;  %v2891_v24 = vpop.f32.mrb[213].mxu0  ;;  %v887_v29 = vld [vmem:[%s14196_s1 + $0x6f0] sm:$0xff]  ;;  %v1403_v11 = vunpack.c.l.bf16 %v826_v61 }
 0x388   :  { %v1525_v5 = vunpack.c.l.bf16 %v887_v29  ;;  %v1526_v18 = vunpack.c.h.bf16 %v887_v29  ;;  %v1408_v24 = vunpack.c.h.bf16 %v828_v40 }
 0x389   :  { %v3834_v32 = vpop.f32.mrb[170].mxu1 }
 0x38a   :  { %v11364_v42 = vadd.f32 %v3834_v32, %v10998_v43  ;;  %v3836_v35 = vpop.f32.mrb[171].mxu1  ;;  %4098 = vmatmul.mubr.f32.gmra.mrb[140].mxu1 %v1395_v47  ;;  %v11373_v32 = vpop.f32.mrb[214].mxu0  ;;  %3157 = vmatprep.mubr.f32.mxu0 %v1526_v18  ;;  %v830_v18 = vld [vmem:[%s14196_s1 + $0x528] sm:$0xff] }
 0x38b   :  { %7693 = vmatprep.mubr.msk.f32.mxu1 %vm1913_vm2, %v1400_v30  ;;  %3158 = vmatmul.mubr.f32.gmra.mrb[64].mxu0 %v1525_v5  ;;  %v2896_v35 = vpop.f32.mrb[215].mxu0  ;;  %v889_v30 = vld [vmem:[%s14196_s1 + $0x700] sm:$0xff]  ;;  %v1407_v5 = vunpack.c.l.bf16 %v828_v40 }
 0x38c   :  { %v1529_v29 = vunpack.c.l.bf16 %v889_v30  ;;  %v1530_v9 = vunpack.c.h.bf16 %v889_v30  ;;  %v1412_v35 = vunpack.c.h.bf16 %v830_v18 }
 0x38d   :  { %v3839_v43 = vpop.f32.mrb[172].mxu1 }
 0x38e   :  { %v11376_v22 = vadd.f32 %v3839_v43, %v11007_v55  ;;  %v3841_v47 = vpop.f32.mrb[173].mxu1  ;;  %4103 = vmatmul.mubr.f32.gmra.mrb[142].mxu1 %v1399_v54  ;;  %v11385_v43 = vpop.f32.mrb[216].mxu0  ;;  %3162 = vmatprep.mubr.f32.mxu0 %v1530_v9  ;;  %v832_v9 = vld [vmem:[%s14196_s1 + $0x538] sm:$0xff] }
 0x38f   :  { %7694 = vmatprep.mubr.msk.f32.mxu1 %vm1913_vm2, %v1404_v25  ;;  %3163 = vmatmul.mubr.f32.gmra.mrb[66].mxu0 %v1529_v29  ;;  %v2901_v47 = vpop.f32.mrb[217].mxu0  ;;  %v891_v25 = vld [vmem:[%s14196_s1 + $0x710] sm:$0xff]  ;;  %v1411_v29 = vunpack.c.l.bf16 %v830_v18 }
 0x390   :  { %14223 = vst [vmem:[#allocation16_spill] sm:$0xff] %v11376_v22  ;;  %v1533_v30 = vunpack.c.l.bf16 %v891_v25  ;;  %v1534_v15 = vunpack.c.h.bf16 %v891_v25  ;;  %v1416_v47 = vunpack.c.h.bf16 %v832_v9 }
 0x391   :  { %v3844_v55 = vpop.f32.mrb[174].mxu1 }
 0x392   :  { %v11388_v61 = vadd.f32 %v3844_v55, %v11016_v6  ;;  %v3846_v54 = vpop.f32.mrb[175].mxu1  ;;  %4108 = vmatmul.mubr.f32.gmra.mrb[144].mxu1 %v1403_v11  ;;  %v11397_v55 = vpop.f32.mrb[218].mxu0  ;;  %3167 = vmatprep.mubr.f32.mxu0 %v1534_v15  ;;  %v834_v15 = vld [vmem:[%s14196_s1 + $0x548] sm:$0xff] }
 0x393   :  { %7695 = vmatprep.mubr.msk.f32.mxu1 %vm1913_vm2, %v1408_v24  ;;  %3168 = vmatmul.mubr.f32.gmra.mrb[68].mxu0 %v1533_v30  ;;  %v2906_v54 = vpop.f32.mrb[219].mxu0  ;;  %v893_v24 = vld [vmem:[%s14196_s1 + $0x720] sm:$0xff]  ;;  %v1415_v30 = vunpack.c.l.bf16 %v832_v9 }
 0x394   :  { %14224 = vst [vmem:[#allocation17_spill] sm:$0xff] %v11388_v61  ;;  %v1537_v25 = vunpack.c.l.bf16 %v893_v24  ;;  %v1538_v12 = vunpack.c.h.bf16 %v893_v24  ;;  %v1420_v54 = vunpack.c.h.bf16 %v834_v15 }
 0x395   :  { %v3849_v6 = vpop.f32.mrb[176].mxu1 }
 0x396   :  { %v11400_v40 = vadd.f32 %v3849_v6, %v11025_v21  ;;  %v3851_v11 = vpop.f32.mrb[177].mxu1  ;;  %4113 = vmatmul.mubr.f32.gmra.mrb[146].mxu1 %v1407_v5  ;;  %v11409_v6 = vpop.f32.mrb[220].mxu0  ;;  %3172 = vmatprep.mubr.f32.mxu0 %v1538_v12  ;;  %v836_v12 = vld [vmem:[%s14196_s1 + $0x558] sm:$0xff] }
 0x397   :  { %7696 = vmatprep.mubr.msk.f32.mxu1 %vm1913_vm2, %v1412_v35  ;;  %3173 = vmatmul.mubr.f32.gmra.mrb[70].mxu0 %v1537_v25  ;;  %v2911_v11 = vpop.f32.mrb[221].mxu0  ;;  %v895_v35 = vld [vmem:[%s14196_s1 + $0x730] sm:$0xff]  ;;  %v1419_v25 = vunpack.c.l.bf16 %v834_v15 }
 0x398   :  { %14225 = vst [vmem:[#allocation18_spill] sm:$0xff] %v11400_v40  ;;  %v1541_v24 = vunpack.c.l.bf16 %v895_v35  ;;  %v1542_v45 = vunpack.c.h.bf16 %v895_v35  ;;  %v1424_v11 = vunpack.c.h.bf16 %v836_v12 }
 0x399   :  { %v3854_v21 = vpop.f32.mrb[178].mxu1 }
 0x39a   :  { %v11412_v18 = vadd.f32 %v3854_v21, %v11034_v34  ;;  %v3856_v5 = vpop.f32.mrb[179].mxu1  ;;  %4118 = vmatmul.mubr.f32.gmra.mrb[148].mxu1 %v1411_v29  ;;  %v11421_v21 = vpop.f32.mrb[222].mxu0  ;;  %3177 = vmatprep.mubr.f32.mxu0 %v1542_v45  ;;  %v838_v45 = vld [vmem:[%s14196_s1 + $0x568] sm:$0xff] }
 0x39b   :  { %7697 = vmatprep.mubr.msk.f32.mxu1 %vm1913_vm2, %v1416_v47  ;;  %3178 = vmatmul.mubr.f32.gmra.mrb[72].mxu0 %v1541_v24  ;;  %v2916_v5 = vpop.f32.mrb[223].mxu0  ;;  %v897_v47 = vld [vmem:[%s14196_s1 + $0x740] sm:$0xff]  ;;  %v1423_v24 = vunpack.c.l.bf16 %v836_v12 }
 0x39c   :  { %14226 = vst [vmem:[#allocation19_spill] sm:$0xff] %v11412_v18  ;;  %v1545_v35 = vunpack.c.l.bf16 %v897_v47  ;;  %v1546_v18 = vunpack.c.h.bf16 %v897_v47  ;;  %v1428_v5 = vunpack.c.h.bf16 %v838_v45 }
 0x39d   :  { %v3859_v34 = vpop.f32.mrb[180].mxu1 }
 0x39e   :  { %v11424_v9 = vadd.f32 %v3859_v34, %v11043_v48  ;;  %v3861_v29 = vpop.f32.mrb[181].mxu1  ;;  %4123 = vmatmul.mubr.f32.gmra.mrb[150].mxu1 %v1415_v30  ;;  %v11433_v34 = vpop.f32.mrb[224].mxu0  ;;  %3182 = vmatprep.mubr.f32.mxu0 %v1546_v18  ;;  %v840_v18 = vld [vmem:[%s14196_s1 + $0x578] sm:$0xff] }
 0x39f   :  { %7698 = vmatprep.mubr.msk.f32.mxu1 %vm1913_vm2, %v1420_v54  ;;  %3183 = vmatmul.mubr.f32.gmra.mrb[74].mxu0 %v1545_v35  ;;  %v2921_v29 = vpop.f32.mrb[225].mxu0  ;;  %v899_v54 = vld [vmem:[%s14196_s1 + $0x750] sm:$0xff]  ;;  %v1427_v35 = vunpack.c.l.bf16 %v838_v45 }
 0x3a0   :  { %14227 = vst [vmem:[#allocation20_spill] sm:$0xff] %v11424_v9  ;;  %v1549_v47 = vunpack.c.l.bf16 %v899_v54  ;;  %v1550_v9 = vunpack.c.h.bf16 %v899_v54  ;;  %v1432_v29 = vunpack.c.h.bf16 %v840_v18 }
 0x3a1   :  { %v3864_v48 = vpop.f32.mrb[182].mxu1 }
 0x3a2   :  { %v11436_v15 = vadd.f32 %v3864_v48, %v11052_v0  ;;  %v3866_v30 = vpop.f32.mrb[183].mxu1  ;;  %4128 = vmatmul.mubr.f32.gmra.mrb[152].mxu1 %v1419_v25  ;;  %v11445_v48 = vpop.f32.mrb[226].mxu0  ;;  %3187 = vmatprep.mubr.f32.mxu0 %v1550_v9  ;;  %v842_v9 = vld [vmem:[%s14196_s1 + $0x588] sm:$0xff] }
 0x3a3   :  { %7699 = vmatprep.mubr.msk.f32.mxu1 %vm1913_vm2, %v1424_v11  ;;  %3188 = vmatmul.mubr.f32.gmra.mrb[76].mxu0 %v1549_v47  ;;  %v2926_v30 = vpop.f32.mrb[227].mxu0  ;;  %v901_v11 = vld [vmem:[%s14196_s1 + $0x760] sm:$0xff]  ;;  %v1431_v47 = vunpack.c.l.bf16 %v840_v18 }
 0x3a4   :  { %14228 = vst [vmem:[#allocation21_spill] sm:$0xff] %v11436_v15  ;;  %v1553_v54 = vunpack.c.l.bf16 %v901_v11  ;;  %v1554_v15 = vunpack.c.h.bf16 %v901_v11  ;;  %v1436_v30 = vunpack.c.h.bf16 %v842_v9 }
 0x3a5   :  { %v3869_v0 = vpop.f32.mrb[184].mxu1 }
 0x3a6   :  { %v11448_v12 = vadd.f32 %v3869_v0, %v11061_v17  ;;  %v3871_v25 = vpop.f32.mrb[185].mxu1  ;;  %4133 = vmatmul.mubr.f32.gmra.mrb[154].mxu1 %v1423_v24  ;;  %v11457_v0 = vpop.f32.mrb[228].mxu0  ;;  %3192 = vmatprep.mubr.f32.mxu0 %v1554_v15  ;;  %v844_v15 = vld [vmem:[%s14196_s1 + $0x598] sm:$0xff] }
 0x3a7   :  { %7700 = vmatprep.mubr.msk.f32.mxu1 %vm1913_vm2, %v1428_v5  ;;  %3193 = vmatmul.mubr.f32.gmra.mrb[78].mxu0 %v1553_v54  ;;  %v2931_v25 = vpop.f32.mrb[229].mxu0  ;;  %v903_v5 = vld [vmem:[%s14196_s1 + $0x770] sm:$0xff]  ;;  %v1435_v54 = vunpack.c.l.bf16 %v842_v9 }
 0x3a8   :  { %14229 = vst [vmem:[#allocation22_spill] sm:$0xff] %v11448_v12  ;;  %v1557_v11 = vunpack.c.l.bf16 %v903_v5  ;;  %v1558_v12 = vunpack.c.h.bf16 %v903_v5  ;;  %v1440_v25 = vunpack.c.h.bf16 %v844_v15 }
 0x3a9   :  { %v3874_v17 = vpop.f32.mrb[186].mxu1 }
 0x3aa   :  { %v11460_v45 = vadd.f32 %v3874_v17, %v11073_v37  ;;  %v3876_v24 = vpop.f32.mrb[187].mxu1  ;;  %4138 = vmatmul.mubr.f32.gmra.mrb[156].mxu1 %v1427_v35  ;;  %v11469_v17 = vpop.f32.mrb[230].mxu0  ;;  %3197 = vmatprep.mubr.f32.mxu0 %v1558_v12  ;;  %v846_v12 = vld [vmem:[%s14196_s1 + $0x5a8] sm:$0xff] }
 0x3ab   :  { %7701 = vmatprep.mubr.msk.f32.mxu1 %vm1913_vm2, %v1432_v29  ;;  %3198 = vmatmul.mubr.f32.gmra.mrb[80].mxu0 %v1557_v11  ;;  %v2936_v24 = vpop.f32.mrb[231].mxu0  ;;  %v905_v29 = vld [vmem:[%s14196_s1 + $0x780] sm:$0xff]  ;;  %v1439_v11 = vunpack.c.l.bf16 %v844_v15 }
 0x3ac   :  { %14230 = vst [vmem:[#allocation23_spill] sm:$0xff] %v11460_v45  ;;  %v1561_v5 = vunpack.c.l.bf16 %v905_v29  ;;  %v1562_v45 = vunpack.c.h.bf16 %v905_v29  ;;  %v1444_v24 = vunpack.c.h.bf16 %v846_v12 }
 0x3ad   :  { %v3879_v37 = vpop.f32.mrb[188].mxu1 }
 0x3ae   :  { %v11472_v18 = vadd.f32 %v3879_v37, %v11085_v57  ;;  %v3881_v35 = vpop.f32.mrb[189].mxu1  ;;  %4143 = vmatmul.mubr.f32.gmra.mrb[158].mxu1 %v1431_v47  ;;  %v11481_v37 = vpop.f32.mrb[232].mxu0  ;;  %3202 = vmatprep.mubr.f32.mxu0 %v1562_v45  ;;  %v848_v45 = vld [vmem:[%s14196_s1 + $0x5b8] sm:$0xff] }
 0x3af   :  { %7702 = vmatprep.mubr.msk.f32.mxu1 %vm1913_vm2, %v1436_v30  ;;  %3203 = vmatmul.mubr.f32.gmra.mrb[82].mxu0 %v1561_v5  ;;  %v2941_v35 = vpop.f32.mrb[233].mxu0  ;;  %v907_v30 = vld [vmem:[%s14196_s1 + $0x790] sm:$0xff]  ;;  %v1443_v5 = vunpack.c.l.bf16 %v846_v12 }
 0x3b0   :  { %14231 = vst [vmem:[#allocation24_spill] sm:$0xff] %v11472_v18  ;;  %v1565_v29 = vunpack.c.l.bf16 %v907_v30  ;;  %v1566_v18 = vunpack.c.h.bf16 %v907_v30  ;;  %v1448_v35 = vunpack.c.h.bf16 %v848_v45 }
 0x3b1   :  { %v3884_v57 = vpop.f32.mrb[190].mxu1 }
 0x3b2   :  { %v11484_v9 = vadd.f32 %v3884_v57, %v11097_v14  ;;  %v3886_v47 = vpop.f32.mrb[191].mxu1  ;;  %4148 = vmatmul.mubr.f32.gmra.mrb[160].mxu1 %v1435_v54  ;;  %v11493_v57 = vpop.f32.mrb[234].mxu0  ;;  %3207 = vmatprep.mubr.f32.mxu0 %v1566_v18  ;;  %v850_v18 = vld [vmem:[%s14196_s1 + $0x5c8] sm:$0xff] }
 0x3b3   :  { %7703 = vmatprep.mubr.msk.f32.mxu1 %vm1913_vm2, %v1440_v25  ;;  %3208 = vmatmul.mubr.f32.gmra.mrb[84].mxu0 %v1565_v29  ;;  %v2946_v47 = vpop.f32.mrb[235].mxu0  ;;  %v909_v25 = vld [vmem:[%s14196_s1 + $0x7a0] sm:$0xff]  ;;  %v1447_v29 = vunpack.c.l.bf16 %v848_v45 }
 0x3b4   :  { %14232 = vst [vmem:[#allocation25_spill] sm:$0xff] %v11484_v9  ;;  %v1569_v30 = vunpack.c.l.bf16 %v909_v25  ;;  %v1570_v9 = vunpack.c.h.bf16 %v909_v25  ;;  %v1452_v47 = vunpack.c.h.bf16 %v850_v18 }
 0x3b5   :  { %v3889_v14 = vpop.f32.mrb[192].mxu1 }
 0x3b6   :  { %v11496_v15 = vadd.f32 %v3889_v14, %v11109_v41  ;;  %v3891_v54 = vpop.f32.mrb[193].mxu1  ;;  %4153 = vmatmul.mubr.f32.gmra.mrb[162].mxu1 %v1439_v11  ;;  %v11505_v14 = vpop.f32.mrb[236].mxu0  ;;  %3212 = vmatprep.mubr.f32.mxu0 %v1570_v9  ;;  %v852_v9 = vld [vmem:[%s14196_s1 + $0x5d8] sm:$0xff] }
 0x3b7   :  { %7704 = vmatprep.mubr.msk.f32.mxu1 %vm1913_vm2, %v1444_v24  ;;  %3213 = vmatmul.mubr.f32.gmra.mrb[86].mxu0 %v1569_v30  ;;  %v2951_v54 = vpop.f32.mrb[237].mxu0  ;;  %v911_v24 = vld [vmem:[%s14196_s1 + $0x7b0] sm:$0xff]  ;;  %v1451_v30 = vunpack.c.l.bf16 %v850_v18 }
 0x3b8   :  { %14233 = vst [vmem:[#allocation26_spill] sm:$0xff] %v11496_v15  ;;  %v1573_v25 = vunpack.c.l.bf16 %v911_v24  ;;  %v1574_v15 = vunpack.c.h.bf16 %v911_v24  ;;  %v1456_v54 = vunpack.c.h.bf16 %v852_v9 }
 0x3b9   :  { %v3894_v41 = vpop.f32.mrb[194].mxu1 }
 0x3ba   :  { %v11508_v12 = vadd.f32 %v3894_v41, %v11121_v1  ;;  %v3896_v11 = vpop.f32.mrb[195].mxu1  ;;  %4158 = vmatmul.mubr.f32.gmra.mrb[164].mxu1 %v1443_v5  ;;  %v11517_v41 = vpop.f32.mrb[238].mxu0  ;;  %3217 = vmatprep.mubr.f32.mxu0 %v1574_v15  ;;  %v854_v15 = vld [vmem:[%s14196_s1 + $0x5e8] sm:$0xff] }
 0x3bb   :  { %7705 = vmatprep.mubr.msk.f32.mxu1 %vm1913_vm2, %v1448_v35  ;;  %3218 = vmatmul.mubr.f32.gmra.mrb[88].mxu0 %v1573_v25  ;;  %v2956_v11 = vpop.f32.mrb[239].mxu0  ;;  %v913_v35 = vld [vmem:[%s14196_s1 + $0x7c0] sm:$0xff]  ;;  %v1455_v25 = vunpack.c.l.bf16 %v852_v9  ;;  %v1459_v61 = vunpack.c.l.bf16 %v854_v15 }
 0x3bc   :  { %14234 = vst [vmem:[#allocation27_spill] sm:$0xff] %v11508_v12  ;;  %v1577_v24 = vunpack.c.l.bf16 %v913_v35  ;;  %v1578_v12 = vunpack.c.h.bf16 %v913_v35  ;;  %v1460_v11 = vunpack.c.h.bf16 %v854_v15  ;;  %v5547_v35 = vld [vmem:[%s14197_s5 + $0x80] sm:$0xff] }
 0x3bd   :  { %v3899_v1 = vpop.f32.mrb[196].mxu1 }
 0x3be   :  { %v11520_v45 = vadd.f32 %v3899_v1, %v11133_v27  ;;  %v3901_v5 = vpop.f32.mrb[197].mxu1  ;;  %4163 = vmatmul.mubr.f32.gmra.mrb[166].mxu1 %v1447_v29  ;;  %v11529_v1 = vpop.f32.mrb[240].mxu0  ;;  %3222 = vmatprep.mubr.f32.mxu0 %v1578_v12  ;;  %v5531_v12 = vld [vmem:[%s14197_s5] sm:$0xff] }
 0x3bf   :  { %7706 = vmatprep.mubr.msk.f32.mxu1 %vm1913_vm2, %v1452_v47  ;;  %3223 = vmatmul.mubr.f32.gmra.mrb[90].mxu0 %v1577_v24  ;;  %v2961_v5 = vpop.f32.mrb[241].mxu0  ;;  %v915_v47 = vld [vmem:[%s14196_s1 + $0x7d0] sm:$0xff] }
 0x3c0   :  { %14235 = vst [vmem:[#allocation28_spill] sm:$0xff] %v11520_v45  ;;  %v1582_v9 = vunpack.c.h.bf16 %v915_v47 }
 0x3c1   :  { %v3904_v27 = vpop.f32.mrb[198].mxu1 }
 0x3c2   :  { %v11532_v18 = vadd.f32 %v3904_v27, %v11145_v50  ;;  %v3906_v29 = vpop.f32.mrb[199].mxu1  ;;  %4168 = vmatmul.mubr.f32.gmra.mrb[168].mxu1 %v1451_v30  ;;  %v5548_v50 = vld [vmem:[%s14197_s5 + $0x88] sm:$0xff]  ;;  %v856_v30 = vld [vmem:[%s14196_s1 + $0x5f8] sm:$0xff]  ;;  %v1581_v27 = vunpack.c.l.bf16 %v915_v47  ;;  %3227 = vmatprep.mubr.f32.mxu0 %v1582_v9 }
 0x3c3   :  { %7707 = vmatprep.mubr.msk.f32.mxu1 %vm1913_vm2, %v1456_v54  ;;  %v8847_v24 = vpack.c.bf16 %v5548_v50, %v5547_v35  ;;  %v5532_v54 = vld [vmem:[%s14197_s5 + $0x8] sm:$0xff]  ;;  %v917_v35 = vld [vmem:[%s14196_s1 + $0x7e0] sm:$0xff]  ;;  %v1464_v47 = vunpack.c.h.bf16 %v856_v30  ;;  %v1463_v9 = vunpack.c.l.bf16 %v856_v30 }
 0x3c4   :  { %14236 = vst [vmem:[#allocation29_spill] sm:$0xff] %v11532_v18  ;;  %v8849_v5 = vpack.c.bf16 %v5532_v54, %v5531_v12  ;;  %v11553_v18 = vpop.f32.mrb[242].mxu0  ;;  %v1586_v50 = vunpack.c.h.bf16 %v917_v35  ;;  %v858_v12 = vld [vmem:[%s14196_s1 + $0x608] sm:$0xff]  ;;  %3228 = vmatmul.mubr.f32.gmra.mrb[92].mxu0 %v1581_v27 }
 0x3c5   :  { %v3909_v29 = vpop.f32.mrb[200].mxu1  ;;  %8848 = vmatprep.subr.bf16.mxu0 %v8847_v24  ;;  %v2966_v22 = vpop.f32.mrb[243].mxu0  ;;  %v919_v24 = vld [vmem:[%s14196_s1 + $0x7f0] sm:$0xff]  ;;  %v1468_v54 = vunpack.c.h.bf16 %v858_v12 }
 0x3c6   :  { %v11556_v45 = vadd.f32 %v3909_v29, %v11157_v13  ;;  %v3911_v40 = vpop.f32.mrb[201].mxu1  ;;  %4173 = vmatmul.mubr.f32.gmra.mrb[170].mxu1 %v1455_v25  ;;  %8850 = vmatpush3.bf16.msra.mxu0 %v8849_v5  ;;  %v1585_v13 = vunpack.c.l.bf16 %v917_v35  ;;  %v11565_v25 = vpop.f32.mrb[244].mxu0  ;;  %v1590_v27 = vunpack.c.h.bf16 %v919_v24  ;;  %v860_v29 = vld [vmem:[%s14196_s1 + $0x618] sm:$0xff]  ;;  %v1589_v5 = vunpack.c.l.bf16 %v919_v24 }
 0x3c7   :  { %7708 = vmatprep.mubr.msk.f32.mxu1 %vm1913_vm2, %v1460_v11  ;;  %3232 = vmatprep.mubr.f32.mxu0 %v1586_v50  ;;  %v2971_v11 = vpop.f32.mrb[245].mxu0  ;;  %v1467_v50 = vunpack.c.l.bf16 %v858_v12 }
 0x3c8   :  { %3233 = vmatmul.mubr.f32.gmra.mrb[94].mxu0 %v1585_v13  ;;  %v11577_v35 = vpop.f32.mrb[246].mxu0  ;;  %v862_v11 = vld [vmem:[%s14196_s1 + $0x628] sm:$0xff] }
 0x3c9   :  { %v3914_v40 = vpop.f32.mrb[202].mxu1  ;;  %3237 = vmatprep.mubr.f32.mxu0 %v1590_v27 }
 0x3ca   :  { %v11568_v22 = vadd.f32 %v3914_v40, %v11169_v44  ;;  %v3916_v15 = vpop.f32.mrb[203].mxu1  ;;  %4178 = vmatmul.mubr.f32.gmra.mrb[172].mxu1 %v1459_v61  ;;  %v2976_v40 = vpop.f32.mrb[247].mxu0 }
 0x3cb   :  { %7709 = vmatprep.mubr.msk.f32.mxu1 %vm1913_vm2, %v1464_v47  ;;  %v921_v47 = vld [vmem:[%s14196_s1 + $0x800] sm:$0xff]  ;;  %v1472_v15 = vunpack.c.h.bf16 %v860_v29  ;;  %v11589_v27 = vpop.f32.mrb[248].mxu0  ;;  %v1476_v40 = vunpack.c.h.bf16 %v862_v11 }
 0x3cc   :  { %14237 = vst [vmem:[#allocation30_spill] sm:$0xff] %v11568_v22  ;;  %v1594_v13 = vunpack.c.h.bf16 %v921_v47  ;;  %3238 = vmatmul.mubr.f32.gmra.mrb[96].mxu0 %v1589_v5  ;;  %v1593_v24 = vunpack.c.l.bf16 %v921_v47  ;;  %v864_v47 = vld [vmem:[%s14196_s1 + $0x638] sm:$0xff] }
 0x3cd   :  { %v3919_v44 = vpop.f32.mrb[204].mxu1 }
 0x3ce   :  { %v11580_v61 = vadd.f32 %v3919_v44, %v11181_v10  ;;  %v3921_v30 = vpop.f32.mrb[205].mxu1  ;;  %4183 = vmatmul.mubr.f32.gmra.mrb[174].mxu1 %v1463_v9  ;;  %3242 = vmatprep.mubr.f32.mxu0 %v1594_v13  ;;  %v1471_v44 = vunpack.c.l.bf16 %v860_v29 }
 0x3cf   :  { %7710 = vmatprep.mubr.msk.f32.mxu1 %vm1913_vm2, %v1468_v54  ;;  %v2981_v30 = vpop.f32.mrb[249].mxu0  ;;  %v923_v54 = vld [vmem:[%s14196_s1 + $0x810] sm:$0xff] }
 0x3d0   :  { %14238 = vst [vmem:[#allocation31_spill] sm:$0xff] %v11580_v61  ;;  %v1598_v5 = vunpack.c.h.bf16 %v923_v54  ;;  %3243 = vmatmul.mubr.f32.gmra.mrb[248].mxu0 %v1593_v24  ;;  %v1597_v13 = vunpack.c.l.bf16 %v923_v54  ;;  %v866_v54 = vld [vmem:[%s14196_s1 + $0x648] sm:$0xff]  ;;  %v953_v61 = vld [vmem:[%s14196_s1 + $0x900] sm:$0xff] }
 0x3d1   :  { %v3924_v10 = vpop.f32.mrb[206].mxu1 }
 0x3d2   :  { %v11592_v12 = vadd.f32 %v3924_v10, %v11193_v56  ;;  %v3926_v9 = vpop.f32.mrb[207].mxu1  ;;  %4188 = vmatmul.mubr.f32.gmra.mrb[176].mxu1 %v1467_v50  ;;  %v11601_v10 = vpop.f32.mrb[250].mxu0  ;;  %3247 = vmatprep.mubr.f32.mxu0 %v1598_v5 }
 0x3d3   :  { %7711 = vmatprep.mubr.msk.f32.mxu1 %vm1913_vm2, %v1472_v15  ;;  %v1475_v9 = vunpack.c.l.bf16 %v862_v11  ;;  %v2986_v30 = vpop.f32.mrb[251].mxu0  ;;  %v925_v15 = vld [vmem:[%s14196_s1 + $0x820] sm:$0xff] }
 0x3d4   :  { %14239 = vst [vmem:[#allocation32_spill] sm:$0xff] %v11592_v12  ;;  %v1480_v12 = vunpack.c.h.bf16 %v864_v47  ;;  %v1602_v24 = vunpack.c.h.bf16 %v925_v15  ;;  %3248 = vmatmul.mubr.f32.gmra.mrb[250].mxu0 %v1597_v13  ;;  %v1601_v5 = vunpack.c.l.bf16 %v925_v15  ;;  %v868_v15 = vld [vmem:[%s14196_s1 + $0x658] sm:$0xff] }
 0x3d5   :  { %v3929_v56 = vpop.f32.mrb[208].mxu1 }
 0x3d6   :  { %v11604_v29 = vadd.f32 %v3929_v56, %v11205_v46  ;;  %v3931_v50 = vpop.f32.mrb[209].mxu1  ;;  %4193 = vmatmul.mubr.f32.gmra.mrb[178].mxu1 %v1471_v44  ;;  %v11613_v56 = vpop.f32.mrb[252].mxu0  ;;  %3252 = vmatprep.mubr.f32.mxu0 %v1602_v24 }
 0x3d7   :  { %7712 = vmatprep.mubr.msk.f32.mxu1 %vm1913_vm2, %v1476_v40  ;;  %v1479_v50 = vunpack.c.l.bf16 %v864_v47  ;;  %v2991_v30 = vpop.f32.mrb[253].mxu0  ;;  %v927_v40 = vld [vmem:[%s14196_s1 + $0x830] sm:$0xff] }
 0x3d8   :  { %14240 = vst [vmem:[#allocation33_spill] sm:$0xff] %v11604_v29  ;;  %v1484_v29 = vunpack.c.h.bf16 %v866_v54  ;;  %v1606_v13 = vunpack.c.h.bf16 %v927_v40  ;;  %3253 = vmatmul.mubr.f32.gmra.mrb[252].mxu0 %v1601_v5  ;;  %v1605_v24 = vunpack.c.l.bf16 %v927_v40  ;;  %v870_v40 = vld [vmem:[%s14196_s1 + $0x668] sm:$0xff] }
 0x3d9   :  { %v3934_v46 = vpop.f32.mrb[210].mxu1 }
 0x3da   :  { %v11616_v11 = vadd.f32 %v3934_v46, %v11217_v53  ;;  %v3936_v44 = vpop.f32.mrb[211].mxu1  ;;  %4198 = vmatmul.mubr.f32.gmra.mrb[180].mxu1 %v1475_v9  ;;  %v11625_v46 = vpop.f32.mrb[254].mxu0  ;;  %3257 = vmatprep.mubr.f32.mxu0 %v1606_v13 }
 0x3db   :  { %7713 = vmatprep.mubr.msk.f32.mxu1 %vm1913_vm2, %v1480_v12  ;;  %v1483_v44 = vunpack.c.l.bf16 %v866_v54  ;;  %v2996_v30 = vpop.f32.mrb[255].mxu0  ;;  %v929_v12 = vld [vmem:[%s14196_s1 + $0x840] sm:$0xff] }
 0x3dc   :  { %14241 = vst [vmem:[#allocation34_spill] sm:$0xff] %v11616_v11  ;;  %v1488_v11 = vunpack.c.h.bf16 %v868_v15  ;;  %v1610_v5 = vunpack.c.h.bf16 %v929_v12  ;;  %3258 = vmatmul.mubr.f32.gmra.mrb[254].mxu0 %v1605_v24  ;;  %v1609_v13 = vunpack.c.l.bf16 %v929_v12  ;;  %v872_v12 = vld [vmem:[%s14196_s1 + $0x678] sm:$0xff] }
 0x3dd   :  { %v3939_v53 = vpop.f32.mrb[212].mxu1 }
 0x3de   :  { %v11628_v47 = vadd.f32 %v3939_v53, %v11229_v2  ;;  %v3941_v9 = vpop.f32.mrb[213].mxu1  ;;  %4203 = vmatmul.mubr.f32.gmra.mrb[182].mxu1 %v1479_v50  ;;  %v11637_v53 = vpop.f32.mrb[0].mxu0  ;;  %3262 = vmatprep.mubr.f32.mxu0 %v1610_v5 }
 0x3df   :  { %7714 = vmatprep.mubr.msk.f32.mxu1 %vm1913_vm2, %v1484_v29  ;;  %v1487_v9 = vunpack.c.l.bf16 %v868_v15  ;;  %v3001_v30 = vpop.f32.mrb[1].mxu0  ;;  %v931_v29 = vld [vmem:[%s14196_s1 + $0x850] sm:$0xff] }
 0x3e0   :  { %14242 = vst [vmem:[#allocation35_spill] sm:$0xff] %v11628_v47  ;;  %v1492_v47 = vunpack.c.h.bf16 %v870_v40  ;;  %v1614_v24 = vunpack.c.h.bf16 %v931_v29  ;;  %3263 = vmatmul.mubr.f32.gmra.mrb[0].mxu0 %v1609_v13  ;;  %v1613_v5 = vunpack.c.l.bf16 %v931_v29  ;;  %v874_v29 = vld [vmem:[%s14196_s1 + $0x688] sm:$0xff] }
 0x3e1   :  { %v3944_v2 = vpop.f32.mrb[214].mxu1 }
 0x3e2   :  { %v11640_v54 = vadd.f32 %v3944_v2, %v11241_v49  ;;  %v3946_v50 = vpop.f32.mrb[215].mxu1  ;;  %4208 = vmatmul.mubr.f32.gmra.mrb[184].mxu1 %v1483_v44  ;;  %v11649_v2 = vpop.f32.mrb[2].mxu0  ;;  %3267 = vmatprep.mubr.f32.mxu0 %v1614_v24 }
 0x3e3   :  { %7715 = vmatprep.mubr.msk.f32.mxu1 %vm1913_vm2, %v1488_v11  ;;  %v1491_v50 = vunpack.c.l.bf16 %v870_v40  ;;  %v3006_v30 = vpop.f32.mrb[3].mxu0  ;;  %v933_v11 = vld [vmem:[%s14196_s1 + $0x860] sm:$0xff] }
 0x3e4   :  { %14243 = vst [vmem:[#allocation36_spill] sm:$0xff] %v11640_v54  ;;  %v1496_v54 = vunpack.c.h.bf16 %v872_v12  ;;  %v1618_v13 = vunpack.c.h.bf16 %v933_v11  ;;  %3268 = vmatmul.mubr.f32.gmra.mrb[2].mxu0 %v1613_v5  ;;  %v1617_v24 = vunpack.c.l.bf16 %v933_v11  ;;  %v876_v11 = vld [vmem:[%s14196_s1 + $0x698] sm:$0xff] }
 0x3e5   :  { %v3949_v49 = vpop.f32.mrb[216].mxu1 }
 0x3e6   :  { %v11652_v15 = vadd.f32 %v3949_v49, %v11253_v39  ;;  %v3951_v44 = vpop.f32.mrb[217].mxu1  ;;  %4213 = vmatmul.mubr.f32.gmra.mrb[186].mxu1 %v1487_v9  ;;  %v11661_v49 = vpop.f32.mrb[4].mxu0  ;;  %3272 = vmatprep.mubr.f32.mxu0 %v1618_v13 }
 0x3e7   :  { %7716 = vmatprep.mubr.msk.f32.mxu1 %vm1913_vm2, %v1492_v47  ;;  %v1495_v44 = vunpack.c.l.bf16 %v872_v12  ;;  %v3011_v30 = vpop.f32.mrb[5].mxu0  ;;  %v935_v47 = vld [vmem:[%s14196_s1 + $0x870] sm:$0xff] }
 0x3e8   :  { %14244 = vst [vmem:[#allocation37_spill] sm:$0xff] %v11652_v15  ;;  %v1500_v15 = vunpack.c.h.bf16 %v874_v29  ;;  %v1622_v5 = vunpack.c.h.bf16 %v935_v47  ;;  %3273 = vmatmul.mubr.f32.gmra.mrb[4].mxu0 %v1617_v24  ;;  %v1621_v13 = vunpack.c.l.bf16 %v935_v47  ;;  %v878_v47 = vld [vmem:[%s14196_s1 + $0x6a8] sm:$0xff] }
 0x3e9   :  { %v3954_v39 = vpop.f32.mrb[218].mxu1 }
 0x3ea   :  { %v11664_v40 = vadd.f32 %v3954_v39, %v11265_v59  ;;  %v3956_v9 = vpop.f32.mrb[219].mxu1  ;;  %4218 = vmatmul.mubr.f32.gmra.mrb[188].mxu1 %v1491_v50  ;;  %v11673_v39 = vpop.f32.mrb[6].mxu0  ;;  %3277 = vmatprep.mubr.f32.mxu0 %v1622_v5 }
 0x3eb   :  { %7717 = vmatprep.mubr.msk.f32.mxu1 %vm1913_vm2, %v1496_v54  ;;  %v1499_v9 = vunpack.c.l.bf16 %v874_v29  ;;  %v3016_v30 = vpop.f32.mrb[7].mxu0  ;;  %v937_v54 = vld [vmem:[%s14196_s1 + $0x880] sm:$0xff] }
 0x3ec   :  { %14245 = vst [vmem:[#allocation38_spill] sm:$0xff] %v11664_v40  ;;  %v1504_v40 = vunpack.c.h.bf16 %v876_v11  ;;  %v1626_v24 = vunpack.c.h.bf16 %v937_v54  ;;  %3278 = vmatmul.mubr.f32.gmra.mrb[6].mxu0 %v1621_v13  ;;  %v1625_v5 = vunpack.c.l.bf16 %v937_v54  ;;  %v880_v54 = vld [vmem:[%s14196_s1 + $0x6b8] sm:$0xff] }
 0x3ed   :  { %v3959_v59 = vpop.f32.mrb[220].mxu1 }
 0x3ee   :  { %v11676_v12 = vadd.f32 %v3959_v59, %v11277_v58  ;;  %v3961_v50 = vpop.f32.mrb[221].mxu1  ;;  %4223 = vmatmul.mubr.f32.gmra.mrb[190].mxu1 %v1495_v44  ;;  %v11685_v59 = vpop.f32.mrb[8].mxu0  ;;  %3282 = vmatprep.mubr.f32.mxu0 %v1626_v24 }
 0x3ef   :  { %7718 = vmatprep.mubr.msk.f32.mxu1 %vm1913_vm2, %v1500_v15  ;;  %v1503_v50 = vunpack.c.l.bf16 %v876_v11  ;;  %v3021_v30 = vpop.f32.mrb[9].mxu0  ;;  %v939_v15 = vld [vmem:[%s14196_s1 + $0x890] sm:$0xff] }
 0x3f0   :  { %14246 = vst [vmem:[#allocation39_spill] sm:$0xff] %v11676_v12  ;;  %v1508_v12 = vunpack.c.h.bf16 %v878_v47  ;;  %v1630_v13 = vunpack.c.h.bf16 %v939_v15  ;;  %3283 = vmatmul.mubr.f32.gmra.mrb[8].mxu0 %v1625_v5  ;;  %v1629_v24 = vunpack.c.l.bf16 %v939_v15  ;;  %v882_v15 = vld [vmem:[%s14196_s1 + $0x6c8] sm:$0xff] }
 0x3f1   :  { %v3964_v58 = vpop.f32.mrb[222].mxu1 }
 0x3f2   :  { %v11688_v29 = vadd.f32 %v3964_v58, %v11289_v16  ;;  %v3966_v44 = vpop.f32.mrb[223].mxu1  ;;  %4228 = vmatmul.mubr.f32.gmra.mrb[192].mxu1 %v1499_v9  ;;  %v11697_v58 = vpop.f32.mrb[10].mxu0  ;;  %3287 = vmatprep.mubr.f32.mxu0 %v1630_v13 }
 0x3f3   :  { %7719 = vmatprep.mubr.msk.f32.mxu1 %vm1913_vm2, %v1504_v40  ;;  %v1507_v44 = vunpack.c.l.bf16 %v878_v47  ;;  %v3026_v30 = vpop.f32.mrb[11].mxu0  ;;  %v941_v40 = vld [vmem:[%s14196_s1 + $0x8a0] sm:$0xff] }
 0x3f4   :  { %14247 = vst [vmem:[#allocation40_spill] sm:$0xff] %v11688_v29  ;;  %v1512_v29 = vunpack.c.h.bf16 %v880_v54  ;;  %v1634_v5 = vunpack.c.h.bf16 %v941_v40  ;;  %3288 = vmatmul.mubr.f32.gmra.mrb[10].mxu0 %v1629_v24  ;;  %v1633_v13 = vunpack.c.l.bf16 %v941_v40  ;;  %v884_v40 = vld [vmem:[%s14196_s1 + $0x6d8] sm:$0xff] }
 0x3f5   :  { %v3969_v16 = vpop.f32.mrb[224].mxu1 }
 0x3f6   :  { %v11700_v11 = vadd.f32 %v3969_v16, %v11301_v26  ;;  %v3971_v9 = vpop.f32.mrb[225].mxu1  ;;  %4233 = vmatmul.mubr.f32.gmra.mrb[194].mxu1 %v1503_v50  ;;  %v11709_v16 = vpop.f32.mrb[12].mxu0  ;;  %3292 = vmatprep.mubr.f32.mxu0 %v1634_v5 }
 0x3f7   :  { %7720 = vmatprep.mubr.msk.f32.mxu1 %vm1913_vm2, %v1508_v12  ;;  %v1511_v9 = vunpack.c.l.bf16 %v880_v54  ;;  %v3031_v30 = vpop.f32.mrb[13].mxu0  ;;  %v943_v12 = vld [vmem:[%s14196_s1 + $0x8b0] sm:$0xff] }
 0x3f8   :  { %14248 = vst [vmem:[#allocation41_spill] sm:$0xff] %v11700_v11  ;;  %v1516_v11 = vunpack.c.h.bf16 %v882_v15  ;;  %v1638_v24 = vunpack.c.h.bf16 %v943_v12  ;;  %3293 = vmatmul.mubr.f32.gmra.mrb[12].mxu0 %v1633_v13  ;;  %v1637_v5 = vunpack.c.l.bf16 %v943_v12  ;;  %v886_v12 = vld [vmem:[%s14196_s1 + $0x6e8] sm:$0xff] }
 0x3f9   :  { %v3974_v26 = vpop.f32.mrb[226].mxu1 }
 0x3fa   :  { %v11712_v47 = vadd.f32 %v3974_v26, %v11313_v36  ;;  %v3976_v50 = vpop.f32.mrb[227].mxu1  ;;  %4238 = vmatmul.mubr.f32.gmra.mrb[196].mxu1 %v1507_v44  ;;  %v11721_v26 = vpop.f32.mrb[14].mxu0  ;;  %3297 = vmatprep.mubr.f32.mxu0 %v1638_v24 }
 0x3fb   :  { %7721 = vmatprep.mubr.msk.f32.mxu1 %vm1913_vm2, %v1512_v29  ;;  %v1515_v50 = vunpack.c.l.bf16 %v882_v15  ;;  %v3036_v30 = vpop.f32.mrb[15].mxu0  ;;  %v945_v29 = vld [vmem:[%s14196_s1 + $0x8c0] sm:$0xff] }
 0x3fc   :  { %14249 = vst [vmem:[#allocation42_spill] sm:$0xff] %v11712_v47  ;;  %v1520_v47 = vunpack.c.h.bf16 %v884_v40  ;;  %v1642_v13 = vunpack.c.h.bf16 %v945_v29  ;;  %3298 = vmatmul.mubr.f32.gmra.mrb[14].mxu0 %v1637_v5  ;;  %v1641_v24 = vunpack.c.l.bf16 %v945_v29  ;;  %v888_v29 = vld [vmem:[%s14196_s1 + $0x6f8] sm:$0xff] }
 0x3fd   :  { %v3979_v36 = vpop.f32.mrb[228].mxu1 }
 0x3fe   :  { %v11724_v54 = vadd.f32 %v3979_v36, %v11325_v52  ;;  %v3981_v44 = vpop.f32.mrb[229].mxu1  ;;  %4243 = vmatmul.mubr.f32.gmra.mrb[198].mxu1 %v1511_v9  ;;  %v11733_v36 = vpop.f32.mrb[16].mxu0  ;;  %3302 = vmatprep.mubr.f32.mxu0 %v1642_v13 }
 0x3ff   :  { %7722 = vmatprep.mubr.msk.f32.mxu1 %vm1913_vm2, %v1516_v11  ;;  %v1519_v44 = vunpack.c.l.bf16 %v884_v40  ;;  %v3041_v30 = vpop.f32.mrb[17].mxu0  ;;  %v947_v11 = vld [vmem:[%s14196_s1 + $0x8d0] sm:$0xff] }
 0x400   :  { %14250 = vst [vmem:[#allocation43_spill] sm:$0xff] %v11724_v54  ;;  %v1524_v54 = vunpack.c.h.bf16 %v886_v12  ;;  %v1646_v5 = vunpack.c.h.bf16 %v947_v11  ;;  %3303 = vmatmul.mubr.f32.gmra.mrb[16].mxu0 %v1641_v24  ;;  %v1645_v13 = vunpack.c.l.bf16 %v947_v11  ;;  %v890_v11 = vld [vmem:[%s14196_s1 + $0x708] sm:$0xff] }
 0x401   :  { %v3984_v52 = vpop.f32.mrb[230].mxu1 }
 0x402   :  { %v11736_v15 = vadd.f32 %v3984_v52, %v11337_v60  ;;  %v3986_v9 = vpop.f32.mrb[231].mxu1  ;;  %4248 = vmatmul.mubr.f32.gmra.mrb[200].mxu1 %v1515_v50  ;;  %v11745_v52 = vpop.f32.mrb[18].mxu0  ;;  %3307 = vmatprep.mubr.f32.mxu0 %v1646_v5 }
 0x403   :  { %7723 = vmatprep.mubr.msk.f32.mxu1 %vm1913_vm2, %v1520_v47  ;;  %v1523_v9 = vunpack.c.l.bf16 %v886_v12  ;;  %v3046_v30 = vpop.f32.mrb[19].mxu0  ;;  %v949_v47 = vld [vmem:[%s14196_s1 + $0x8e0] sm:$0xff] }
 0x404   :  { %14251 = vst [vmem:[#allocation44_spill] sm:$0xff] %v11736_v15  ;;  %v1528_v15 = vunpack.c.h.bf16 %v888_v29  ;;  %v1650_v24 = vunpack.c.h.bf16 %v949_v47  ;;  %3308 = vmatmul.mubr.f32.gmra.mrb[18].mxu0 %v1645_v13  ;;  %v1649_v5 = vunpack.c.l.bf16 %v949_v47  ;;  %v892_v47 = vld [vmem:[%s14196_s1 + $0x718] sm:$0xff] }
 0x405   :  { %v3989_v60 = vpop.f32.mrb[232].mxu1  ;;  %v1536_v22 = vunpack.c.h.bf16 %v892_v47 }
 0x406   :  { %v11748_v40 = vadd.f32 %v3989_v60, %v11349_v8  ;;  %v3991_v50 = vpop.f32.mrb[233].mxu1  ;;  %4253 = vmatmul.mubr.f32.gmra.mrb[202].mxu1 %v1519_v44  ;;  %v11757_v60 = vpop.f32.mrb[20].mxu0  ;;  %3312 = vmatprep.mubr.f32.mxu0 %v1650_v24 }
 0x407   :  { %7724 = vmatprep.mubr.msk.f32.mxu1 %vm1913_vm2, %v1524_v54  ;;  %v1527_v50 = vunpack.c.l.bf16 %v888_v29  ;;  %v3051_v30 = vpop.f32.mrb[21].mxu0  ;;  %v951_v54 = vld [vmem:[%s14196_s1 + $0x8f0] sm:$0xff]  ;;  %v5550_v29 = vld [vmem:[%s14197_s5 + $0x98] sm:$0xff] }
 0x408   :  { %14252 = vst [vmem:[#allocation45_spill] sm:$0xff] %v11748_v40  ;;  %v1532_v40 = vunpack.c.h.bf16 %v890_v11  ;;  %v1654_v13 = vunpack.c.h.bf16 %v951_v54  ;;  %3313 = vmatmul.mubr.f32.gmra.mrb[20].mxu0 %v1649_v5  ;;  %v1531_v5 = vunpack.c.l.bf16 %v890_v11  ;;  %v5534_v11 = vld [vmem:[%s14197_s5 + $0x18] sm:$0xff] }
 0x409   :  { %v3994_v8 = vpop.f32.mrb[234].mxu1 }
 0x40a   :  { %v11760_v12 = vadd.f32 %v3994_v8, %v11361_v19  ;;  %v3996_v44 = vpop.f32.mrb[235].mxu1  ;;  %4258 = vmatmul.mubr.f32.gmra.mrb[204].mxu1 %v1523_v9  ;;  %v5549_v19 = vld [vmem:[%s14197_s5 + $0x90] sm:$0xff]  ;;  %v1653_v9 = vunpack.c.l.bf16 %v951_v54  ;;  %3317 = vmatprep.mubr.f32.mxu0 %v1654_v13  ;;  %v1658_v54 = vunpack.c.h.bf16 %v953_v61  ;;  %v894_v13 = vld [vmem:[%s14196_s1 + $0x728] sm:$0xff] }
 0x40b   :  { %7725 = vmatprep.mubr.msk.f32.mxu1 %vm1913_vm2, %v1528_v15  ;;  %v8851_v8 = vpack.c.bf16 %v5550_v29, %v5549_v19  ;;  %v11775_v44 = vpop.f32.mrb[22].mxu0 }
 0x40c   :  { %14253 = vst [vmem:[#allocation46_spill] sm:$0xff] %v11760_v12  ;;  %v3056_v12 = vpop.f32.mrb[23].mxu0  ;;  %3318 = vmatmul.mubr.f32.gmra.mrb[22].mxu0 %v1653_v9  ;;  %v1540_v9 = vunpack.c.h.bf16 %v894_v13 }
 0x40d   :  { %v3999_v24 = vpop.f32.mrb[236].mxu1  ;;  %8852 = vmatprep.subr.bf16.mxu0 %v8851_v8  ;;  %v1657_v12 = vunpack.c.l.bf16 %v953_v61  ;;  %3322 = vmatprep.mubr.f32.mxu0 %v1658_v54  ;;  %v1535_v8 = vunpack.c.l.bf16 %v892_v47  ;;  %v896_v54 = vld [vmem:[%s14196_s1 + $0x738] sm:$0xff] }
 0x40e   :  { %v11778_v15 = vadd.f32 %v3999_v24, %v11373_v32  ;;  %v4001_v30 = vpop.f32.mrb[237].mxu1  ;;  %4263 = vmatmul.mubr.f32.gmra.mrb[206].mxu1 %v1527_v50  ;;  %v5533_v32 = vld [vmem:[%s14197_s5 + $0x10] sm:$0xff] }
 0x40f   :  { %7726 = vmatprep.mubr.msk.f32.mxu1 %vm1913_vm2, %v1532_v40  ;;  %v8853_v19 = vpack.c.bf16 %v5534_v11, %v5533_v32  ;;  %v11793_v40 = vpop.f32.mrb[24].mxu0 }
 0x410   :  { %14254 = vst [vmem:[#allocation47_spill] sm:$0xff] %v11778_v15  ;;  %v3061_v30 = vpop.f32.mrb[25].mxu0  ;;  %v955_v15 = vld [vmem:[%s14196_s1 + $0x910] sm:$0xff]  ;;  %3323 = vmatmul.mubr.f32.gmra.mrb[24].mxu0 %v1657_v12 }
 0x411   :  { %v4004_v50 = vpop.f32.mrb[238].mxu1  ;;  %8854 = vmatpush3.bf16.msra.mxu0 %v8853_v19  ;;  %v1662_v61 = vunpack.c.h.bf16 %v955_v15  ;;  %v11805_v11 = vpop.f32.mrb[26].mxu0  ;;  %v957_v19 = vld [vmem:[%s14196_s1 + $0x920] sm:$0xff] }
 0x412   :  { %v11796_v29 = vadd.f32 %v4004_v50, %v11385_v43  ;;  %v4006_v24 = vpop.f32.mrb[239].mxu1  ;;  %4268 = vmatmul.mubr.f32.gmra.mrb[208].mxu1 %v1531_v5  ;;  %v1661_v43 = vunpack.c.l.bf16 %v955_v15  ;;  %v1539_v50 = vunpack.c.l.bf16 %v894_v13  ;;  %v1666_v12 = vunpack.c.h.bf16 %v957_v19  ;;  %v898_v15 = vld [vmem:[%s14196_s1 + $0x748] sm:$0xff] }
 0x413   :  { %7727 = vmatprep.mubr.msk.f32.mxu1 %vm1913_vm2, %v1536_v22  ;;  %3327 = vmatprep.mubr.f32.mxu0 %v1662_v61  ;;  %v3066_v22 = vpop.f32.mrb[27].mxu0  ;;  %v1544_v24 = vunpack.c.h.bf16 %v896_v54  ;;  %v1665_v30 = vunpack.c.l.bf16 %v957_v19  ;;  %v900_v19 = vld [vmem:[%s14196_s1 + $0x758] sm:$0xff] }
 0x414   :  { %14255 = vst [vmem:[#allocation48_spill] sm:$0xff] %v11796_v29  ;;  %3328 = vmatmul.mubr.f32.gmra.mrb[26].mxu0 %v1661_v43  ;;  %v11817_v61 = vpop.f32.mrb[28].mxu0  ;;  %v1548_v22 = vunpack.c.h.bf16 %v898_v15 }
 0x415   :  { %v4009_v32 = vpop.f32.mrb[240].mxu1  ;;  %3332 = vmatprep.mubr.f32.mxu0 %v1666_v12 }
 0x416   :  { %v11808_v47 = vadd.f32 %v4009_v32, %v11397_v55  ;;  %v4011_v5 = vpop.f32.mrb[241].mxu1  ;;  %4273 = vmatmul.mubr.f32.gmra.mrb[210].mxu1 %v1535_v8  ;;  %v1543_v32 = vunpack.c.l.bf16 %v896_v54 }
 0x417   :  { %7728 = vmatprep.mubr.msk.f32.mxu1 %vm1913_vm2, %v1540_v9  ;;  %v3071_v5 = vpop.f32.mrb[29].mxu0  ;;  %v959_v9 = vld [vmem:[%s14196_s1 + $0x930] sm:$0xff] }
 0x418   :  { %14256 = vst [vmem:[#allocation49_spill] sm:$0xff] %v11808_v47  ;;  %v1670_v43 = vunpack.c.h.bf16 %v959_v9  ;;  %3333 = vmatmul.mubr.f32.gmra.mrb[28].mxu0 %v1665_v30  ;;  %v1669_v12 = vunpack.c.l.bf16 %v959_v9  ;;  %v902_v47 = vld [vmem:[%s14196_s1 + $0x768] sm:$0xff] }
 0x419   :  { %v4014_v55 = vpop.f32.mrb[242].mxu1 }
 0x41a   :  { %v11820_v13 = vadd.f32 %v4014_v55, %v11409_v6  ;;  %v4016_v8 = vpop.f32.mrb[243].mxu1  ;;  %4278 = vmatmul.mubr.f32.gmra.mrb[212].mxu1 %v1539_v50  ;;  %v11829_v55 = vpop.f32.mrb[30].mxu0  ;;  %3337 = vmatprep.mubr.f32.mxu0 %v1670_v43 }
 0x41b   :  { %7729 = vmatprep.mubr.msk.f32.mxu1 %vm1913_vm2, %v1544_v24  ;;  %v1547_v8 = vunpack.c.l.bf16 %v898_v15  ;;  %v3076_v5 = vpop.f32.mrb[31].mxu0  ;;  %v1552_v24 = vunpack.c.h.bf16 %v900_v19  ;;  %v1556_v15 = vunpack.c.h.bf16 %v902_v47 }
 0x41c   :  { %3338 = vmatmul.mubr.f32.gmra.mrb[30].mxu0 %v1669_v12 }
 0x41d   :  { %v4019_v6 = vpop.f32.mrb[244].mxu1  ;;  %v11838_v9 = vpop.f32.mrb[32].mxu0 }
 0x41e   :  { %v11832_v54 = vadd.f32 %v4019_v6, %v11421_v21  ;;  %v4021_v50 = vpop.f32.mrb[245].mxu1  ;;  %4283 = vmatmul.mubr.f32.gmra.mrb[214].mxu1 %v1543_v32  ;;  %v1551_v6 = vunpack.c.l.bf16 %v900_v19  ;;  %v3081_v32 = vpop.f32.mrb[33].mxu0 }
 0x41f   :  { %7730 = vmatprep.mubr.msk.f32.mxu1 %vm1913_vm2, %v1548_v22  ;;  %v904_v22 = vld [vmem:[%s14196_s1 + $0x778] sm:$0xff] }
 0x420   :  { %v1560_v19 = vunpack.c.h.bf16 %v904_v22 }
 0x421   :  { %v4024_v30 = vpop.f32.mrb[246].mxu1  ;;  %v11847_v5 = vpop.f32.mrb[34].mxu0 }
 0x422   :  { %v11841_v43 = vadd.f32 %v4024_v30, %v11433_v34  ;;  %v4026_v21 = vpop.f32.mrb[247].mxu1  ;;  %4288 = vmatmul.mubr.f32.gmra.mrb[216].mxu1 %v1547_v8  ;;  %v1555_v34 = vunpack.c.l.bf16 %v902_v47  ;;  %v3086_v30 = vpop.f32.mrb[35].mxu0  ;;  %v906_v8 = vld [vmem:[%s14196_s1 + $0x788] sm:$0xff] }
 0x423   :  { %7731 = vmatprep.mubr.msk.f32.mxu1 %vm1913_vm2, %v1552_v24 }
 0x424   :  { %14257 = vst [vmem:[#allocation50_spill] sm:$0xff] %v11841_v43  ;;  %v1559_v43 = vunpack.c.l.bf16 %v904_v22  ;;  %v1563_v22 = vunpack.c.l.bf16 %v906_v8 }
 0x425   :  { %v4029_v50 = vpop.f32.mrb[248].mxu1  ;;  %v11856_v21 = vpop.f32.mrb[36].mxu0 }
 0x426   :  { %v11850_v12 = vadd.f32 %v4029_v50, %v11445_v48  ;;  %v4031_v29 = vpop.f32.mrb[249].mxu1  ;;  %4293 = vmatmul.mubr.f32.gmra.mrb[218].mxu1 %v1551_v6  ;;  %v3091_v50 = vpop.f32.mrb[37].mxu0  ;;  %v908_v6 = vld [vmem:[%s14196_s1 + $0x798] sm:$0xff] }
 0x427   :  { %7732 = vmatprep.mubr.msk.f32.mxu1 %vm1913_vm2, %v1556_v15  ;;  %v1564_v29 = vunpack.c.h.bf16 %v906_v8 }
 0x428   :  { %14258 = vst [vmem:[#allocation51_spill] sm:$0xff] %v11850_v12 }
 0x429   :  { %v4034_v24 = vpop.f32.mrb[250].mxu1 }
 0x42a   :  { %v4036_v32 = vpop.f32.mrb[251].mxu1  ;;  %4298 = vmatmul.mubr.f32.gmra.mrb[220].mxu1 %v1555_v34  ;;  %v4035_v48 = vadd.f32 %v4034_v24, %v11457_v0  ;;  %v11864_v30 = vpop.f32.mrb[38].mxu0  ;;  %v910_v24 = vld [vmem:[%s14196_s1 + $0x7a8] sm:$0xff] }
 0x42b   :  { %7733 = vmatprep.mubr.msk.f32.mxu1 %vm1913_vm2, %v1560_v19  ;;  %v3096_v34 = vpop.f32.mrb[39].mxu0  ;;  %v1568_v19 = vunpack.c.h.bf16 %v908_v6  ;;  %v1572_v50 = vunpack.c.h.bf16 %v910_v24 }
 0x42c   :  { %v9373_v47 = vpack.i.bf16 %v11223_v23, %v4035_v48 }
 0x42d   :  { %v4039_v15 = vpop.f32.mrb[252].mxu1 }
 0x42e   :  { %v4041_v12 = vpop.f32.mrb[253].mxu1  ;;  %4303 = vmatmul.mubr.f32.gmra.mrb[222].mxu1 %v1559_v43  ;;  %9374 = vrot.lane.b32.xlu0 %v9373_v47, %s9854_s18  ;;  %v4040_v0 = vadd.f32 %v4039_v15, %v11469_v17  ;;  %v11873_v48 = vpop.f32.mrb[40].mxu0  ;;  %v1567_v17 = vunpack.c.l.bf16 %v908_v6  ;;  %v1571_v6 = vunpack.c.l.bf16 %v910_v24 }
 0x42f   :  { %7734 = vmatprep.mubr.msk.f32.mxu1 %vm1913_vm2, %v1564_v29  ;;  %v3101_v8 = vpop.f32.mrb[41].mxu0  ;;  %v912_v29 = vld [vmem:[%s14196_s1 + $0x7b8] sm:$0xff] }
 0x430   :  { %v9378_v23 = vpack.i.bf16 %v11235_v33, %v4040_v0  ;;  %v1576_v34 = vunpack.c.h.bf16 %v912_v29  ;;  %v1575_v24 = vunpack.c.l.bf16 %v912_v29  ;;  %v916_v8 = vld [vmem:[%s14196_s1 + $0x7d8] sm:$0xff] }
 0x431   :  { %v4044_v32 = vpop.f32.mrb[254].mxu1 }
 0x432   :  { %v4045_v43 = vadd.f32 %v4044_v32, %v11481_v37  ;;  %v4046_v12 = vpop.f32.mrb[255].mxu1  ;;  %4308 = vmatmul.mubr.f32.gmra.mrb[224].mxu1 %v1563_v22  ;;  %9379 = vrot.lane.b32.xlu1 %v9378_v23, %s9854_s18  ;;  %v11882_v15 = vpop.f32.mrb[42].mxu0 }
 0x433   :  { %7735 = vmatprep.mubr.msk.f32.mxu1 %vm1913_vm2, %v1568_v19  ;;  %v3106_v22 = vpop.f32.mrb[43].mxu0  ;;  %v914_v19 = vld [vmem:[%s14196_s1 + $0x7c8] sm:$0xff] }
 0x434   :  { %v9383_v33 = vpack.i.bf16 %v11244_v20, %v4045_v43  ;;  %v1579_v29 = vunpack.c.l.bf16 %v914_v19 }
 0x435   :  { %v4049_v47 = vpop.f32.mrb[120].mxu1 }
 0x436   :  { %v4050_v37 = vadd.f32 %v4049_v47, %v11493_v57  ;;  %v4051_v0 = vpop.f32.mrb[121].mxu1  ;;  %4313 = vmatmul.mubr.f32.gmra.mrb[226].mxu1 %v1567_v17  ;;  %9384 = vrot.lane.b32.xlu0 %v9383_v33, %s9854_s18  ;;  %v11891_v32 = vpop.f32.mrb[44].mxu0  ;;  %v1580_v17 = vunpack.c.h.bf16 %v914_v19  ;;  %v1583_v19 = vunpack.c.l.bf16 %v916_v8 }
 0x437   :  { %7736 = vmatprep.mubr.msk.f32.mxu1 %vm1913_vm2, %v1572_v50  ;;  %v3111_v12 = vpop.f32.mrb[45].mxu0  ;;  %v1584_v0 = vunpack.c.h.bf16 %v916_v8 }
 0x438   :  { %v9388_v20 = vpack.i.bf16 %v11256_v31, %v4050_v37 }
 0x439   :  { %v4054_v23 = vpop.f32.mrb[122].mxu1 }
 0x43a   :  { %v4055_v57 = vadd.f32 %v4054_v23, %v11505_v14  ;;  %v4056_v43 = vpop.f32.mrb[123].mxu1  ;;  %4318 = vmatmul.mubr.f32.gmra.mrb[228].mxu1 %v1571_v6  ;;  %9389 = vrot.lane.b32.xlu1 %v9388_v20, %s9854_s18  ;;  %v11900_v33 = vpop.f32.mrb[46].mxu0  ;;  %v918_v6 = vld [vmem:[%s14196_s1 + $0x7e8] sm:$0xff] }
 0x43b   :  { %7737 = vmatprep.mubr.msk.f32.mxu1 %vm1913_vm2, %v1576_v34  ;;  %v3116_v37 = vpop.f32.mrb[47].mxu0  ;;  %v920_v43 = vld [vmem:[%s14196_s1 + $0x7f8] sm:$0xff] }
 0x43c   :  { %v9393_v31 = vpack.i.bf16 %v11268_v62, %v4055_v57  ;;  %v1588_v57 = vunpack.c.h.bf16 %v918_v6 }
 0x43d   :  { %v4059_v50 = vpop.f32.mrb[124].mxu1 }
 0x43e   :  { %v4060_v14 = vadd.f32 %v4059_v50, %v11517_v41  ;;  %v4061_v47 = vpop.f32.mrb[125].mxu1  ;;  %4323 = vmatmul.mubr.f32.gmra.mrb[230].mxu1 %v1575_v24  ;;  %9394 = vrot.lane.b32.xlu0 %v9393_v31, %s9854_s18  ;;  %v11909_v34 = vpop.f32.mrb[48].mxu0  ;;  %v1587_v31 = vunpack.c.l.bf16 %v918_v6  ;;  %v1592_v50 = vunpack.c.h.bf16 %v920_v43 }
 0x43f   :  { %7738 = vmatprep.mubr.msk.f32.mxu1 %vm1913_vm2, %v1580_v17  ;;  %v3121_v23 = vpop.f32.mrb[49].mxu0 }
 0x440   :  { %v9398_v62 = vpack.i.bf16 %v11280_v63, %v4060_v14  ;;  %v922_v14 = vld [vmem:[%s14196_s1 + $0x808] sm:$0xff] }
 0x441   :  { %v4064_v22 = vpop.f32.mrb[126].mxu1  ;;  %v1596_v6 = vunpack.c.h.bf16 %v922_v14  ;;  %v1595_v23 = vunpack.c.l.bf16 %v922_v14 }
 0x442   :  { %v4065_v41 = vadd.f32 %v4064_v22, %v11529_v1  ;;  %v4066_v20 = vpop.f32.mrb[127].mxu1  ;;  %4328 = vmatmul.mubr.f32.gmra.mrb[232].mxu1 %v1579_v29  ;;  %9399 = vrot.lane.b32.xlu1 %v9398_v62, %s9854_s18  ;;  %v11918_v12 = vpop.f32.mrb[50].mxu0  ;;  %v924_v22 = vld [vmem:[%s14196_s1 + $0x818] sm:$0xff] }
 0x443   :  { %7739 = vmatprep.mubr.msk.f32.mxu1 %vm1913_vm2, %v1584_v0  ;;  %v3126_v8 = vpop.f32.mrb[51].mxu0  ;;  %v1591_v0 = vunpack.c.l.bf16 %v920_v43  ;;  %v926_v43 = vld [vmem:[%s14196_s1 + $0x828] sm:$0xff] }
 0x444   :  { %v9403_v63 = vpack.i.bf16 %v11292_v38, %v4065_v41 }
 0x445   :  { %v4069_v24 = vpop.f32.mrb[128].mxu1 }
 0x446   :  { %v4070_v1 = vadd.f32 %v4069_v24, %v11553_v18  ;;  %v4071_v17 = vpop.f32.mrb[129].mxu1  ;;  %4333 = vmatmul.mubr.f32.gmra.mrb[234].mxu1 %v1583_v19  ;;  %9404 = vrot.lane.b32.xlu0 %v9403_v63, %s9854_s18  ;;  %v11927_v29 = vpop.f32.mrb[52].mxu0  ;;  %v1600_v63 = vunpack.c.h.bf16 %v924_v22 }
 0x447   :  { %7740 = vmatprep.mubr.msk.f32.mxu1 %vm1913_vm2, %v1588_v57  ;;  %v3131_v62 = vpop.f32.mrb[53].mxu0 }
 0x448   :  { %v9408_v38 = vpack.i.bf16 %v11304_v3, %v4070_v1 }
 0x449   :  { %v4074_v47 = vpop.f32.mrb[130].mxu1 }
 0x44a   :  { %v4075_v18 = vadd.f32 %v4074_v47, %v11565_v25  ;;  %v4076_v37 = vpop.f32.mrb[131].mxu1  ;;  %4338 = vmatmul.mubr.f32.gmra.mrb[236].mxu1 %v1587_v31  ;;  %9409 = vrot.lane.b32.xlu1 %v9408_v38, %s9854_s18  ;;  %v11936_v20 = vpop.f32.mrb[54].mxu0  ;;  %v1599_v31 = vunpack.c.l.bf16 %v924_v22  ;;  %v928_v38 = vld [vmem:[%s14196_s1 + $0x838] sm:$0xff]  ;;  %v930_v22 = vld [vmem:[%s14196_s1 + $0x848] sm:$0xff] }
 0x44b   :  { %7741 = vmatprep.mubr.msk.f32.mxu1 %vm1913_vm2, %v1592_v50  ;;  %v3136_v57 = vpop.f32.mrb[55].mxu0  ;;  %v1604_v50 = vunpack.c.h.bf16 %v926_v43  ;;  %v1603_v37 = vunpack.c.l.bf16 %v926_v43  ;;  %v1608_v62 = vunpack.c.h.bf16 %v928_v38 }
 0x44c   :  { %v9413_v3 = vpack.i.bf16 %v11316_v7, %v4075_v18 }
 0x44d   :  { %v4079_v41 = vpop.f32.mrb[132].mxu1 }
 0x44e   :  { %v4080_v25 = vadd.f32 %v4079_v41, %v11577_v35  ;;  %v4081_v19 = vpop.f32.mrb[133].mxu1  ;;  %4343 = vmatmul.mubr.f32.gmra.mrb[238].mxu1 %v1591_v0  ;;  %9414 = vrot.lane.b32.xlu0 %v9413_v3, %s9854_s18  ;;  %v11945_v1 = vpop.f32.mrb[56].mxu0 }
 0x44f   :  { %7742 = vmatprep.mubr.msk.f32.mxu1 %vm1913_vm2, %v1596_v6  ;;  %v3141_v8 = vpop.f32.mrb[57].mxu0  ;;  %v5552_v6 = vld [vmem:[%s14197_s5 + $0xa8] sm:$0xff] }
 0x450   :  { %v9418_v7 = vpack.i.bf16 %v11328_v51, %v4080_v25  ;;  %v5536_v25 = vld [vmem:[%s14197_s5 + $0x28] sm:$0xff] }
 0x451   :  { %v4084_v24 = vpop.f32.mrb[134].mxu1 }
 0x452   :  { %v4085_v35 = vadd.f32 %v4084_v24, %v11589_v27  ;;  %v4086_v17 = vpop.f32.mrb[135].mxu1  ;;  %4348 = vmatmul.mubr.f32.gmra.mrb[240].mxu1 %v1595_v23  ;;  %9419 = vrot.lane.b32.xlu1 %v9418_v7, %s9854_s18  ;;  %v11954_v47 = vpop.f32.mrb[58].mxu0  ;;  %v1612_v24 = vunpack.c.h.bf16 %v930_v22 }
 0x453   :  { %7743 = vmatprep.mubr.msk.f32.mxu1 %vm1913_vm2, %v1600_v63  ;;  %v3146_v0 = vpop.f32.mrb[59].mxu0  ;;  %v932_v17 = vld [vmem:[%s14196_s1 + $0x858] sm:$0xff] }
 0x454   :  { %v9423_v51 = vpack.i.bf16 %v11340_v28, %v4085_v35  ;;  %v5551_v28 = vld [vmem:[%s14197_s5 + $0xa0] sm:$0xff] }
 0x455   :  { %v4089_v14 = vpop.f32.mrb[136].mxu1  ;;  %v8855_v41 = vpack.c.bf16 %v5552_v6, %v5551_v28  ;;  %v1615_v28 = vunpack.c.l.bf16 %v932_v17 }
 0x456   :  { %v4090_v27 = vadd.f32 %v4089_v14, %v11601_v10  ;;  %v4091_v18 = vpop.f32.mrb[137].mxu1  ;;  %4353 = vmatmul.mubr.f32.gmra.mrb[242].mxu1 %v1599_v31  ;;  %9424 = vrot.lane.b32.xlu0 %v9423_v51, %s9854_s18  ;;  %v5535_v10 = vld [vmem:[%s14197_s5 + $0x20] sm:$0xff]  ;;  %v11975_v57 = vpop.f32.mrb[60].mxu0  ;;  %v1611_v51 = vunpack.c.l.bf16 %v930_v22  ;;  %v1616_v14 = vunpack.c.h.bf16 %v932_v17 }
 0x457   :  { %7744 = vmatprep.mubr.msk.f32.mxu1 %vm1913_vm2, %v1604_v50  ;;  %v8857_v23 = vpack.c.bf16 %v5536_v25, %v5535_v10  ;;  %v3151_v43 = vpop.f32.mrb[61].mxu0  ;;  %8856 = vmatprep.subr.bf16.mxu0 %v8855_v41  ;;  %v934_v18 = vld [vmem:[%s14196_s1 + $0x868] sm:$0xff]  ;;  %v936_v41 = vld [vmem:[%s14196_s1 + $0x878] sm:$0xff] }
 0x458   :  { %v9428_v3 = vpack.i.bf16 %v11352_v4, %v4090_v27  ;;  %v1607_v4 = vunpack.c.l.bf16 %v928_v38  ;;  %v1620_v10 = vunpack.c.h.bf16 %v934_v18  ;;  %v14261_v43 = vld [vmem:[#allocation18_spill] sm:$0xff] }
 0x459   :  { %v4094_v19 = vpop.f32.mrb[138].mxu1  ;;  %8858 = vmatpush3.bf16.msra.mxu0 %v8857_v23 }
 0x45a   :  { %v4095_v63 = vadd.f32 %v4094_v19, %v11613_v56  ;;  %v4096_v7 = vpop.f32.mrb[139].mxu1  ;;  %4358 = vmatmul.mubr.f32.gmra.mrb[244].mxu1 %v1603_v37  ;;  %9429 = vrot.lane.b32.xlu1 %v9428_v3, %s9854_s18  ;;  %v11984_v8 = vpop.f32.mrb[62].mxu0  ;;  %v14260_v3 = vld [vmem:[#allocation17_spill] sm:$0xff] }
 0x45b   :  { %7745 = vmatprep.mubr.msk.f32.mxu1 %vm1913_vm2, %v1608_v62  ;;  %v3156_v38 = vpop.f32.mrb[63].mxu0 }
 0x45c   :  { %v9433_v35 = vpack.i.bf16 %v11364_v42, %v4095_v63  ;;  %v14259_v42 = vld [vmem:[#allocation16_spill] sm:$0xff]  ;;  %v1619_v63 = vunpack.c.l.bf16 %v934_v18 }
 0x45d   :  { %v4099_v31 = vpop.f32.mrb[140].mxu1 }
 0x45e   :  { %v4100_v56 = vadd.f32 %v4099_v31, %v11625_v46  ;;  %v4101_v50 = vpop.f32.mrb[141].mxu1  ;;  %4363 = vmatmul.mubr.f32.gmra.mrb[246].mxu1 %v1607_v4  ;;  %9434 = vrot.lane.b32.xlu0 %v9433_v35, %s9854_s18  ;;  %v11993_v0 = vpop.f32.mrb[64].mxu0  ;;  %v1624_v4 = vunpack.c.h.bf16 %v936_v41  ;;  %v938_v35 = vld [vmem:[%s14196_s1 + $0x888] sm:$0xff] }
 0x45f   :  { %7746 = vmatprep.mubr.msk.f32.mxu1 %vm1913_vm2, %v1612_v24  ;;  %v3161_v6 = vpop.f32.mrb[65].mxu0  ;;  %v1623_v50 = vunpack.c.l.bf16 %v936_v41  ;;  %v1628_v38 = vunpack.c.h.bf16 %v938_v35 }
 0x460   :  { %v9438_v27 = vpack.i.bf16 %v14259_v42, %v4100_v56 }
 0x461   :  { %v4104_v37 = vpop.f32.mrb[142].mxu1 }
 0x462   :  { %v4105_v46 = vadd.f32 %v4104_v37, %v11637_v53  ;;  %v4106_v62 = vpop.f32.mrb[143].mxu1  ;;  %4368 = vmatmul.mubr.f32.gmra.mrb[248].mxu1 %v1611_v51  ;;  %9439 = vrot.lane.b32.xlu0 %v9438_v27, %s9855_s19  ;;  %v12002_v19 = vpop.f32.mrb[66].mxu0  ;;  %v940_v27 = vld [vmem:[%s14196_s1 + $0x898] sm:$0xff] }
 0x463   :  { %7747 = vmatprep.mubr.msk.f32.mxu1 %vm1913_vm2, %v1616_v14  ;;  %v3166_v7 = vpop.f32.mrb[67].mxu0  ;;  %v14262_v14 = vld [vmem:[#allocation19_spill] sm:$0xff]  ;;  %v1627_v62 = vunpack.c.l.bf16 %v938_v35  ;;  %v1632_v6 = vunpack.c.h.bf16 %v940_v27 }
 0x464   :  { %v9443_v22 = vpack.i.bf16 %v14260_v3, %v4105_v46 }
 0x465   :  { %v4109_v25 = vpop.f32.mrb[144].mxu1 }
 0x466   :  { %v4110_v53 = vadd.f32 %v4109_v25, %v11649_v2  ;;  %v4111_v23 = vpop.f32.mrb[145].mxu1  ;;  %4373 = vmatmul.mubr.f32.gmra.mrb[250].mxu1 %v1615_v28  ;;  %9444 = vrot.lane.b32.xlu0 %v9443_v22, %s9855_s19  ;;  %v12011_v31 = vpop.f32.mrb[68].mxu0  ;;  %v942_v22 = vld [vmem:[%s14196_s1 + $0x8a8] sm:$0xff] }
 0x467   :  { %7748 = vmatprep.mubr.msk.f32.mxu1 %vm1913_vm2, %v1620_v10  ;;  %v3171_v51 = vpop.f32.mrb[69].mxu0  ;;  %v14263_v10 = vld [vmem:[#allocation20_spill] sm:$0xff]  ;;  %v1631_v23 = vunpack.c.l.bf16 %v940_v27  ;;  %v1636_v7 = vunpack.c.h.bf16 %v942_v22  ;;  %v5538_v27 = vld [vmem:[%s14197_s5 + $0x38] sm:$0xff] }
 0x468   :  { %v9448_v24 = vpack.i.bf16 %v14261_v43, %v4110_v53  ;;  %v5553_v51 = vld [vmem:[%s14197_s5 + $0xb0] sm:$0xff] }
 0x469   :  { %v4114_v17 = vpop.f32.mrb[146].mxu1 }
 0x46a   :  { %v4115_v2 = vadd.f32 %v4114_v17, %v11661_v49  ;;  %v4116_v56 = vpop.f32.mrb[147].mxu1  ;;  %4378 = vmatmul.mubr.f32.gmra.mrb[252].mxu1 %v1619_v63  ;;  %9449 = vrot.lane.b32.xlu1 %v9448_v24, %s9855_s19  ;;  %v12020_v37 = vpop.f32.mrb[70].mxu0  ;;  %v944_v24 = vld [vmem:[%s14196_s1 + $0x8b8] sm:$0xff] }
 0x46b   :  { %7749 = vmatprep.mubr.msk.f32.mxu1 %vm1913_vm2, %v1624_v4  ;;  %v3176_v28 = vpop.f32.mrb[71].mxu0  ;;  %v14264_v4 = vld [vmem:[#allocation21_spill] sm:$0xff]  ;;  %v1635_v56 = vunpack.c.l.bf16 %v942_v22  ;;  %v1639_v22 = vunpack.c.l.bf16 %v944_v24 }
 0x46c   :  { %v9453_v42 = vpack.i.bf16 %v14262_v14, %v4115_v2  ;;  %v1640_v14 = vunpack.c.h.bf16 %v944_v24  ;;  %v948_v24 = vld [vmem:[%s14196_s1 + $0x8d8] sm:$0xff] }
 0x46d   :  { %v4119_v18 = vpop.f32.mrb[148].mxu1 }
 0x46e   :  { %v4120_v49 = vadd.f32 %v4119_v18, %v11673_v39  ;;  %v4121_v46 = vpop.f32.mrb[149].mxu1  ;;  %4383 = vmatmul.mubr.f32.gmra.mrb[254].mxu1 %v1623_v50  ;;  %9454 = vrot.lane.b32.xlu0 %v9453_v42, %s9855_s19  ;;  %v12029_v25 = vpop.f32.mrb[72].mxu0  ;;  %v14265_v18 = vld [vmem:[#allocation22_spill] sm:$0xff] }
 0x46f   :  { %7750 = vmatprep.mubr.msk.f32.mxu1 %vm1913_vm2, %v1628_v38  ;;  %v3181_v63 = vpop.f32.mrb[73].mxu0  ;;  %v5554_v38 = vld [vmem:[%s14197_s5 + $0xb8] sm:$0xff]  ;;  %v946_v46 = vld [vmem:[%s14196_s1 + $0x8c8] sm:$0xff] }
 0x470   :  { %v9458_v3 = vpack.i.bf16 %v14263_v10, %v4120_v49  ;;  %v8859_v42 = vpack.c.bf16 %v5554_v38, %v5553_v51  ;;  %v1643_v51 = vunpack.c.l.bf16 %v946_v46 }
 0x471   :  { %v4124_v41 = vpop.f32.mrb[150].mxu1 }
 0x472   :  { %v4125_v39 = vadd.f32 %v4124_v41, %v11685_v59  ;;  %v4126_v53 = vpop.f32.mrb[151].mxu1  ;;  %4388 = vmatmul.mubr.f32.gmra.mrb[120].mxu1 %v1627_v62  ;;  %9459 = vrot.lane.b32.xlu1 %v9458_v3, %s9855_s19  ;;  %v12038_v17 = vpop.f32.mrb[74].mxu0 }
 0x473   :  { %7751 = vmatprep.mubr.msk.f32.mxu1 %vm1913_vm2, %v1632_v6  ;;  %v3186_v50 = vpop.f32.mrb[75].mxu0  ;;  %8860 = vmatprep.subr.bf16.mxu0 %v8859_v42  ;;  %v5556_v53 = vld [vmem:[%s14197_s5 + $0xc8] sm:$0xff]  ;;  %v5558_v42 = vld [vmem:[%s14197_s5 + $0xd8] sm:$0xff] }
 0x474   :  { %v9463_v43 = vpack.i.bf16 %v14264_v4, %v4125_v39  ;;  %v5555_v39 = vld [vmem:[%s14197_s5 + $0xc0] sm:$0xff] }
 0x475   :  { %v4129_v35 = vpop.f32.mrb[152].mxu1  ;;  %v8863_v63 = vpack.c.bf16 %v5556_v53, %v5555_v39  ;;  %v14266_v4 = vld [vmem:[#allocation23_spill] sm:$0xff]  ;;  %v1647_v39 = vunpack.c.l.bf16 %v948_v24 }
 0x476   :  { %v4130_v59 = vadd.f32 %v4129_v35, %v11697_v58  ;;  %v4131_v2 = vpop.f32.mrb[153].mxu1  ;;  %4393 = vmatmul.mubr.f32.gmra.mrb[122].mxu1 %v1631_v23  ;;  %9464 = vrot.lane.b32.xlu0 %v9463_v43, %s9855_s19  ;;  %v5537_v58 = vld [vmem:[%s14197_s5 + $0x30] sm:$0xff]  ;;  %v12059_v6 = vpop.f32.mrb[76].mxu0  ;;  %v1644_v23 = vunpack.c.h.bf16 %v946_v46 }
 0x477   :  { %7752 = vmatprep.mubr.msk.f32.mxu1 %vm1913_vm2, %v1636_v7  ;;  %v8861_v62 = vpack.c.bf16 %v5538_v27, %v5537_v58  ;;  %v3191_v41 = vpop.f32.mrb[77].mxu0  ;;  %v5540_v7 = vld [vmem:[%s14197_s5 + $0x48] sm:$0xff]  ;;  %v1648_v58 = vunpack.c.h.bf16 %v948_v24 }
 0x478   :  { %v9468_v49 = vpack.i.bf16 %v14265_v18, %v4130_v59  ;;  %v5542_v18 = vld [vmem:[%s14197_s5 + $0x58] sm:$0xff] }
 0x479   :  { %v4134_v28 = vpop.f32.mrb[154].mxu1  ;;  %8862 = vmatpush3.bf16.msra.mxu0 %v8861_v62  ;;  %v950_v62 = vld [vmem:[%s14196_s1 + $0x8e8] sm:$0xff] }
 0x47a   :  { %v4135_v10 = vadd.f32 %v4134_v28, %v11709_v16  ;;  %v4136_v3 = vpop.f32.mrb[155].mxu1  ;;  %4398 = vmatmul.mubr.f32.gmra.mrb[124].mxu1 %v1635_v56  ;;  %9469 = vrot.lane.b32.xlu1 %v9468_v49, %s9855_s19  ;;  %v5539_v16 = vld [vmem:[%s14197_s5 + $0x40] sm:$0xff]  ;;  %v12080_v2 = vpop.f32.mrb[78].mxu0  ;;  %v14267_v49 = vld [vmem:[#allocation24_spill] sm:$0xff] }
 0x47b   :  { %7753 = vmatprep.mubr.msk.f32.mxu1 %vm1913_vm2, %v1640_v14  ;;  %v8865_v35 = vpack.c.bf16 %v5540_v7, %v5539_v16  ;;  %8864 = vmatprep.subr.bf16.mxu0 %v8863_v63  ;;  %v3196_v38 = vpop.f32.mrb[79].mxu0  ;;  %v5557_v14 = vld [vmem:[%s14197_s5 + $0xd0] sm:$0xff]  ;;  %v5560_v63 = vld [vmem:[%s14197_s5 + $0xe8] sm:$0xff]  ;;  %v1652_v16 = vunpack.c.h.bf16 %v950_v62 }
 0x47c   :  { %v9473_v43 = vpack.i.bf16 %v14266_v4, %v4135_v10  ;;  %v8867_v27 = vpack.c.bf16 %v5558_v42, %v5557_v14  ;;  %v5544_v4 = vld [vmem:[%s14197_s5 + $0x68] sm:$0xff]  ;;  %v1651_v14 = vunpack.c.l.bf16 %v950_v62 }
 0x47d   :  { %v4139_v59 = vpop.f32.mrb[156].mxu1  ;;  %8866 = vmatpush3.bf16.msra.mxu0 %v8865_v35  ;;  %v952_v35 = vld [vmem:[%s14196_s1 + $0x8f8] sm:$0xff] }
 0x47e   :  { %v4140_v56 = vadd.f32 %v4139_v59, %v11721_v26  ;;  %v4141_v50 = vpop.f32.mrb[157].mxu1  ;;  %4403 = vmatmul.mubr.f32.gmra.mrb[126].mxu1 %v1639_v22  ;;  %9474 = vrot.lane.b32.xlu0 %v9473_v43, %s9855_s19  ;;  %v5541_v26 = vld [vmem:[%s14197_s5 + $0x50] sm:$0xff]  ;;  %v12101_v3 = vpop.f32.mrb[80].mxu0 }
 0x47f   :  { %7754 = vmatprep.mubr.msk.f32.mxu1 %vm1913_vm2, %v1644_v23  ;;  %v8869_v28 = vpack.c.bf16 %v5542_v18, %v5541_v26  ;;  %8868 = vmatprep.subr.bf16.mxu0 %v8867_v27  ;;  %v3201_v53 = vpop.f32.mrb[81].mxu0  ;;  %v5559_v23 = vld [vmem:[%s14197_s5 + $0xe0] sm:$0xff]  ;;  %v14268_v43 = vld [vmem:[#allocation25_spill] sm:$0xff]  ;;  %v5562_v27 = vld [vmem:[%s14197_s5 + $0xf8] sm:$0xff]  ;;  %v1656_v26 = vunpack.c.h.bf16 %v952_v35 }
 0x480   :  { %v9478_v46 = vpack.i.bf16 %v14267_v49, %v4140_v56  ;;  %v8871_v7 = vpack.c.bf16 %v5560_v63, %v5559_v23  ;;  %v5546_v49 = vld [vmem:[%s14197_s5 + $0x78] sm:$0xff]  ;;  %v1655_v23 = vunpack.c.l.bf16 %v952_v35 }
 0x481   :  { %v4144_v10 = vpop.f32.mrb[158].mxu1  ;;  %8870 = vmatpush3.bf16.msra.mxu0 %v8869_v28  ;;  %v954_v28 = vld [vmem:[%s14196_s1 + $0x908] sm:$0xff] }
 0x482   :  { %v4145_v22 = vadd.f32 %v4144_v10, %v11733_v36  ;;  %v4146_v41 = vpop.f32.mrb[159].mxu1  ;;  %4408 = vmatmul.mubr.f32.gmra.mrb[128].mxu1 %v1643_v51  ;;  %9479 = vrot.lane.b32.xlu1 %v9478_v46, %s9855_s19  ;;  %v5543_v36 = vld [vmem:[%s14197_s5 + $0x60] sm:$0xff]  ;;  %v12122_v50 = vpop.f32.mrb[82].mxu0  ;;  %v14269_v46 = vld [vmem:[#allocation26_spill] sm:$0xff]  ;;  %v1659_v35 = vunpack.c.l.bf16 %v954_v28 }
 0x483   :  { %7755 = vmatprep.mubr.msk.f32.mxu1 %vm1913_vm2, %v1648_v58  ;;  %v8873_v59 = vpack.c.bf16 %v5544_v4, %v5543_v36  ;;  %8872 = vmatprep.subr.bf16.mxu0 %v8871_v7  ;;  %v3206_v42 = vpop.f32.mrb[83].mxu0  ;;  %v5561_v58 = vld [vmem:[%s14197_s5 + $0xf0] sm:$0xff]  ;;  %v14270_v7 = vld [vmem:[#allocation27_spill] sm:$0xff]  ;;  %v956_v4 = vld [vmem:[%s14196_s1 + $0x918] sm:$0xff] }
 0x484   :  { %v9483_v24 = vpack.i.bf16 %v14268_v43, %v4145_v22  ;;  %v8875_v18 = vpack.c.bf16 %v5562_v27, %v5561_v58  ;;  %v958_v42 = vld [vmem:[%s14196_s1 + $0x928] sm:$0xff] }
 0x485   :  { %v4149_v56 = vpop.f32.mrb[160].mxu1  ;;  %8874 = vmatpush3.bf16.msra.mxu0 %v8873_v59 }
 0x486   :  { %v4150_v51 = vadd.f32 %v4149_v56, %v11745_v52  ;;  %v4151_v38 = vpop.f32.mrb[161].mxu1  ;;  %4413 = vmatmul.mubr.f32.gmra.mrb[130].mxu1 %v1647_v39  ;;  %9484 = vrot.lane.b32.xlu0 %v9483_v24, %s9855_s19  ;;  %v5545_v52 = vld [vmem:[%s14197_s5 + $0x70] sm:$0xff]  ;;  %v12143_v41 = vpop.f32.mrb[84].mxu0 }
 0x487   :  { %7756 = vmatprep.mubr.msk.f32.mxu1 %vm1913_vm2, %v1652_v16  ;;  %v8877_v10 = vpack.c.bf16 %v5546_v49, %v5545_v52  ;;  %8876 = vmatprep.subr.bf16.mxu0 %v8875_v18  ;;  %v3211_v63 = vpop.f32.mrb[85].mxu0  ;;  %v1660_v16 = vunpack.c.h.bf16 %v954_v28  ;;  %v14271_v38 = vld [vmem:[#allocation28_spill] sm:$0xff]  ;;  %v1663_v18 = vunpack.c.l.bf16 %v956_v4  ;;  %v1668_v49 = vunpack.c.h.bf16 %v958_v42  ;;  %v960_v28 = vld [vmem:[%s14196_s1 + $0x938] sm:$0xff] }
 0x488   :  { %v9488_v62 = vpack.i.bf16 %v14269_v46, %v4150_v51  ;;  %v1664_v51 = vunpack.c.h.bf16 %v956_v4  ;;  %v14272_v46 = vld [vmem:[#allocation29_spill] sm:$0xff]  ;;  %v1672_v63 = vunpack.c.h.bf16 %v960_v28 }
 0x489   :  { %v4154_v22 = vpop.f32.mrb[162].mxu1  ;;  %8878 = vmatpush3.bf16.msra.mxu0 %v8877_v10 }
 0x48a   :  { %v4155_v39 = vadd.f32 %v4154_v22, %v11757_v60  ;;  %v4156_v53 = vpop.f32.mrb[163].mxu1  ;;  %4418 = vmatmul.mubr.f32.gmra.mrb[132].mxu1 %v1651_v14  ;;  %9489 = vrot.lane.b32.xlu1 %v9488_v62, %s9855_s19  ;;  %v12152_v24 = vpop.f32.mrb[86].mxu0 }
 0x48b   :  { %7757 = vmatprep.mubr.msk.f32.mxu1 %vm1913_vm2, %v1656_v26  ;;  %v3216_v56 = vpop.f32.mrb[87].mxu0  ;;  %v1667_v53 = vunpack.c.l.bf16 %v958_v42 }
 0x48c   :  { %v9493_v36 = vpack.i.bf16 %v14270_v7, %v4155_v39  ;;  %v962_v7 = vld [vmem:[%s14196_s1 + $0x948] sm:$0xff] }
 0x48d   :  { %v4159_v43 = vpop.f32.mrb[164].mxu1  ;;  %v1675_v42 = vunpack.c.l.bf16 %v962_v7 }
 0x48e   :  { %v4160_v60 = vadd.f32 %v4159_v43, %v11775_v44  ;;  %v4161_v59 = vpop.f32.mrb[165].mxu1  ;;  %4423 = vmatmul.mubr.f32.gmra.mrb[134].mxu1 %v1655_v23  ;;  %9494 = vrot.lane.b32.xlu0 %v9493_v36, %s9855_s19  ;;  %v12161_v27 = vpop.f32.mrb[88].mxu0  ;;  %v1671_v43 = vunpack.c.l.bf16 %v960_v28 }
 0x48f   :  { %7758 = vmatprep.mubr.msk.f32.mxu1 %vm1913_vm2, %v1660_v16  ;;  %v3221_v52 = vpop.f32.mrb[89].mxu0 }
 0x490   :  { %v9498_v14 = vpack.i.bf16 %v14271_v38, %v4160_v60  ;;  %v1676_v60 = vunpack.c.h.bf16 %v962_v7  ;;  %v966_v52 = vld [vmem:[%s14196_s1 + $0x968] sm:$0xff] }
 0x491   :  { %v4164_v58 = vpop.f32.mrb[166].mxu1 }
 0x492   :  { %v4165_v44 = vadd.f32 %v4164_v58, %v11793_v40  ;;  %v4166_v26 = vpop.f32.mrb[167].mxu1  ;;  %4428 = vmatmul.mubr.f32.gmra.mrb[136].mxu1 %v1659_v35  ;;  %9499 = vrot.lane.b32.xlu1 %v9498_v14, %s9855_s19  ;;  %v12170_v22 = vpop.f32.mrb[90].mxu0  ;;  %v14273_v35 = vld [vmem:[#allocation30_spill] sm:$0xff] }
 0x493   :  { %7759 = vmatprep.mubr.msk.f32.mxu1 %vm1913_vm2, %v1664_v51  ;;  %v3226_v23 = vpop.f32.mrb[91].mxu0  ;;  %v14274_v26 = vld [vmem:[#allocation31_spill] sm:$0xff] }
 0x494   :  { %v9503_v62 = vpack.i.bf16 %v14272_v46, %v4165_v44  ;;  %v968_v23 = vld [vmem:[%s14196_s1 + $0x978] sm:$0xff] }
 0x495   :  { %v4169_v10 = vpop.f32.mrb[168].mxu1 }
 0x496   :  { %v4170_v40 = vadd.f32 %v4169_v10, %v11805_v11  ;;  %v4171_v39 = vpop.f32.mrb[169].mxu1  ;;  %4433 = vmatmul.mubr.f32.gmra.mrb[138].mxu1 %v1663_v18  ;;  %9504 = vrot.lane.b32.xlu1 %v9503_v62, %s9856_s22  ;;  %v1684_v10 = vunpack.c.h.bf16 %v966_v52 }
 0x497   :  { %7760 = vmatprep.mubr.msk.f32.mxu1 %vm1913_vm2, %v1668_v49  ;;  %v12182_v59 = vpop.f32.mrb[92].mxu0  ;;  %v14275_v39 = vld [vmem:[#allocation32_spill] sm:$0xff] }
 0x498   :  { %v9508_v16 = vpack.i.bf16 %v11556_v45, %v4170_v40  ;;  %v964_v45 = vld [vmem:[%s14196_s1 + $0x958] sm:$0xff]  ;;  %v3231_v51 = vpop.f32.mrb[93].mxu0 }
 0x499   :  { %v4174_v36 = vpop.f32.mrb[170].mxu1  ;;  %v1680_v58 = vunpack.c.h.bf16 %v964_v45  ;;  %v1679_v28 = vunpack.c.l.bf16 %v964_v45 }
 0x49a   :  { %v4175_v4 = vadd.f32 %v4174_v36, %v11817_v61  ;;  %v4176_v11 = vpop.f32.mrb[171].mxu1  ;;  %4438 = vmatmul.mubr.f32.gmra.mrb[140].mxu1 %v1667_v53  ;;  %9509 = vrot.lane.b32.xlu1 %v9508_v16, %s9856_s22  ;;  %v1683_v36 = vunpack.c.l.bf16 %v966_v52 }
 0x49b   :  { %7761 = vmatprep.mubr.msk.f32.mxu1 %vm1913_vm2, %v1672_v63  ;;  %v12191_v44 = vpop.f32.mrb[94].mxu0 }
 0x49c   :  { %v9513_v56 = vpack.i.bf16 %v14273_v35, %v4175_v4  ;;  %v3236_v49 = vpop.f32.mrb[95].mxu0  ;;  %v1688_v4 = vunpack.c.h.bf16 %v968_v23  ;;  %v970_v35 = vld [vmem:[%s14196_s1 + $0x988] sm:$0xff] }
 0x49d   :  { %v4179_v38 = vpop.f32.mrb[172].mxu1 }
 0x49e   :  { %v4180_v61 = vadd.f32 %v4179_v38, %v11829_v55  ;;  %v4181_v14 = vpop.f32.mrb[173].mxu1  ;;  %4443 = vmatmul.mubr.f32.gmra.mrb[142].mxu1 %v1671_v43  ;;  %9514 = vrot.lane.b32.xlu0 %v9513_v56, %s9856_s22  ;;  %v14276_v43 = vld [vmem:[#allocation33_spill] sm:$0xff]  ;;  %v1687_v38 = vunpack.c.l.bf16 %v968_v23 }
 0x49f   :  { %7762 = vmatprep.mubr.msk.f32.mxu1 %vm1913_vm2, %v1676_v60  ;;  %v12200_v40 = vpop.f32.mrb[96].mxu0 }
 0x4a0   :  { %v9518_v18 = vpack.i.bf16 %v14274_v26, %v4180_v61  ;;  %v3241_v63 = vpop.f32.mrb[97].mxu0  ;;  %v1692_v61 = vunpack.c.h.bf16 %v970_v35  ;;  %v972_v26 = vld [vmem:[%s14196_s1 + $0x998] sm:$0xff] }
 0x4a1   :  { %v4184_v46 = vpop.f32.mrb[174].mxu1 }
 0x4a2   :  { %v4185_v55 = vadd.f32 %v4184_v46, %v11838_v9  ;;  %v4186_v62 = vpop.f32.mrb[175].mxu1  ;;  %4448 = vmatmul.mubr.f32.gmra.mrb[0].mxu1 %v1675_v42  ;;  %9519 = vrot.lane.b32.xlu1 %v9518_v18, %s9856_s22  ;;  %v14277_v42 = vld [vmem:[#allocation34_spill] sm:$0xff]  ;;  %v1691_v46 = vunpack.c.l.bf16 %v970_v35 }
 0x4a3   :  { %7763 = vmatprep.mubr.msk.f32.mxu1 %vm1913_vm2, %v1680_v58  ;;  %v12209_v11 = vpop.f32.mrb[248].mxu0 }
 0x4a4   :  { %v9523_v53 = vpack.i.bf16 %v14275_v39, %v4185_v55  ;;  %v3246_v56 = vpop.f32.mrb[249].mxu0  ;;  %v1696_v55 = vunpack.c.h.bf16 %v972_v26  ;;  %v974_v39 = vld [vmem:[%s14196_s1 + $0x9a8] sm:$0xff] }
 0x4a5   :  { %v4189_v16 = vpop.f32.mrb[176].mxu1 }
 0x4a6   :  { %v4190_v9 = vadd.f32 %v4189_v16, %v11847_v5  ;;  %v4191_v7 = vpop.f32.mrb[177].mxu1  ;;  %4453 = vmatmul.mubr.f32.gmra.mrb[2].mxu1 %v1679_v28  ;;  %9524 = vrot.lane.b32.xlu0 %v9523_v53, %s9856_s22  ;;  %v14278_v28 = vld [vmem:[#allocation35_spill] sm:$0xff]  ;;  %v1695_v16 = vunpack.c.l.bf16 %v972_v26  ;;  %v14280_v26 = vld [vmem:[#allocation37_spill] sm:$0xff] }
 0x4a7   :  { %7764 = vmatprep.mubr.msk.f32.mxu1 %vm1913_vm2, %v1684_v10  ;;  %v12218_v14 = vpop.f32.mrb[250].mxu0  ;;  %v1700_v7 = vunpack.c.h.bf16 %v974_v39 }
 0x4a8   :  { %v9528_v60 = vpack.i.bf16 %v14276_v43, %v4190_v9  ;;  %v3251_v18 = vpop.f32.mrb[251].mxu0  ;;  %v12235_v9 = vpop.permute.xlu0 %9374  ;;  %v14279_v43 = vld [vmem:[#allocation36_spill] sm:$0xff] }
 0x4a9   :  { %v4194_v45 = vpop.f32.mrb[178].mxu1 }
 0x4aa   :  { %v4195_v5 = vadd.f32 %v4194_v45, %v11856_v21  ;;  %v4196_v51 = vpop.f32.mrb[179].mxu1  ;;  %4458 = vmatmul.mubr.f32.gmra.mrb[4].mxu1 %v1683_v36  ;;  %9529 = vrot.lane.b32.xlu1 %v9528_v60, %s9856_s22 }
 0x4ab   :  { %7765 = vmatprep.mubr.msk.f32.mxu1 %vm1913_vm2, %v1688_v4  ;;  %v12227_v62 = vpop.f32.mrb[252].mxu0  ;;  %v12240_v4 = vpop.permute.xlu1 %9379  ;;  %v1699_v51 = vunpack.c.l.bf16 %v974_v39 }
 0x4ac   :  { %v9533_v58 = vpack.i.bf16 %v14277_v42, %v4195_v5  ;;  %v3256_v53 = vpop.f32.mrb[253].mxu0 }
 0x4ad   :  { %v4199_v52 = vpop.f32.mrb[180].mxu1 }
 0x4ae   :  { %v4200_v21 = vadd.f32 %v4199_v52, %v11864_v30  ;;  %v4201_v49 = vpop.f32.mrb[181].mxu1  ;;  %4463 = vmatmul.mubr.f32.gmra.mrb[6].mxu1 %v1687_v38  ;;  %9534 = vrot.lane.b32.xlu0 %v9533_v58, %s9856_s22  ;;  %v12248_v38 = vpop.permute.xlu0 %9384 }
 0x4af   :  { %7766 = vmatprep.mubr.msk.f32.mxu1 %vm1913_vm2, %v1692_v61  ;;  %v12238_v36 = vpop.f32.mrb[254].mxu0  ;;  %v12253_v58 = vpop.permute.xlu1 %9389 }
 0x4b0   :  { %v9538_v10 = vpack.i.bf16 %v14278_v28, %v4200_v21  ;;  %v3261_v35 = vpop.f32.mrb[255].mxu0 }
 0x4b1   :  { %v4204_v23 = vpop.f32.mrb[182].mxu1 }
 0x4b2   :  { %v4205_v30 = vadd.f32 %v4204_v23, %v11873_v48  ;;  %v4206_v63 = vpop.f32.mrb[183].mxu1  ;;  %4468 = vmatmul.mubr.f32.gmra.mrb[8].mxu1 %v1691_v46  ;;  %9539 = vrot.lane.b32.xlu1 %v9538_v10, %s9856_s22  ;;  %v976_v48 = vld [vmem:[%s14196_s1 + $0x9b8] sm:$0xff]  ;;  %v12261_v28 = vpop.permute.xlu0 %9394 }
 0x4b3   :  { %7767 = vmatprep.mubr.msk.f32.mxu1 %vm1913_vm2, %v1696_v55  ;;  %v1704_v61 = vunpack.c.h.bf16 %v976_v48  ;;  %v12251_v42 = vpop.f32.mrb[0].mxu0  ;;  %v1703_v55 = vunpack.c.l.bf16 %v976_v48  ;;  %v14281_v23 = vld [vmem:[#allocation38_spill] sm:$0xff] }
 0x4b4   :  { %v9543_v60 = vpack.i.bf16 %v14279_v43, %v4205_v30  ;;  %v3266_v52 = vpop.f32.mrb[1].mxu0  ;;  %v12266_v53 = vpop.permute.xlu1 %9399 }
 0x4b5   :  { %v4209_v56 = vpop.f32.mrb[184].mxu1 }
 0x4b6   :  { %v4210_v45 = vadd.f32 %v4209_v56, %v11882_v15  ;;  %v4211_v5 = vpop.f32.mrb[185].mxu1  ;;  %4473 = vmatmul.mubr.f32.gmra.mrb[10].mxu1 %v1695_v16  ;;  %9544 = vrot.lane.b32.xlu0 %v9543_v60, %s9856_s22  ;;  %v978_v15 = vld [vmem:[%s14196_s1 + $0x9c8] sm:$0xff] }
 0x4b7   :  { %7768 = vmatprep.mubr.msk.f32.mxu1 %vm1913_vm2, %v1700_v7  ;;  %v1708_v10 = vunpack.c.h.bf16 %v978_v15  ;;  %v12264_v39 = vpop.f32.mrb[2].mxu0  ;;  %v1707_v60 = vunpack.c.l.bf16 %v978_v15  ;;  %v14283_v5 = vld [vmem:[#allocation39_spill] sm:$0xff] }
 0x4b8   :  { %v9548_v18 = vpack.i.bf16 %v14280_v26, %v4210_v45  ;;  %v3271_v63 = vpop.f32.mrb[3].mxu0  ;;  %v12274_v48 = vpop.permute.xlu0 %9404 }
 0x4b9   :  { %v4214_v21 = vpop.f32.mrb[186].mxu1 }
 0x4ba   :  { %v4215_v49 = vadd.f32 %v4214_v21, %v11891_v32  ;;  %v4216_v46 = vpop.f32.mrb[187].mxu1  ;;  %4478 = vmatmul.mubr.f32.gmra.mrb[12].mxu1 %v1699_v51  ;;  %9549 = vrot.lane.b32.xlu1 %v9548_v18, %s9856_s22  ;;  %v980_v32 = vld [vmem:[%s14196_s1 + $0x9d8] sm:$0xff] }
 0x4bb   :  { %7769 = vmatprep.mubr.msk.f32.mxu1 %vm1913_vm2, %v1704_v61  ;;  %v1712_v35 = vunpack.c.h.bf16 %v980_v32  ;;  %v12277_v56 = vpop.f32.mrb[4].mxu0  ;;  %v1711_v52 = vunpack.c.l.bf16 %v980_v32 }
 0x4bc   :  { %v9553_v30 = vpack.i.bf16 %v14281_v23, %v4215_v49  ;;  %14282 = vst [vmem:[#allocation16_spill] sm:$0xff] %v12277_v56  ;;  %v12279_v45 = vpop.permute.xlu1 %9409  ;;  %v3276_v61 = vpop.f32.mrb[5].mxu0  ;;  %v14323_v56 = vld [vmem:[#allocation4_spill] sm:$0xff] }
 0x4bd   :  { %v4219_v16 = vpop.f32.mrb[188].mxu1 }
 0x4be   :  { %v4220_v7 = vadd.f32 %v4219_v16, %v11900_v33  ;;  %v4221_v43 = vpop.f32.mrb[189].mxu1  ;;  %4483 = vmatmul.mubr.f32.gmra.mrb[14].mxu1 %v1703_v55  ;;  %9554 = vrot.lane.b32.xlu0 %v9553_v30, %s9856_s22  ;;  %v982_v33 = vld [vmem:[%s14196_s1 + $0x9e8] sm:$0xff]  ;;  %v984_v30 = vld [vmem:[%s14196_s1 + $0x9f8] sm:$0xff] }
 0x4bf   :  { %7770 = vmatprep.mubr.msk.f32.mxu1 %vm1913_vm2, %v1708_v10  ;;  %v1716_v49 = vunpack.c.h.bf16 %v982_v33  ;;  %v12290_v46 = vpop.f32.mrb[6].mxu0  ;;  %v14285_v55 = vld [vmem:[#allocation40_spill] sm:$0xff] }
 0x4c0   :  { %v9558_v51 = vpack.i.bf16 %v14283_v5, %v4220_v7  ;;  %v12287_v21 = vpop.permute.xlu0 %9414  ;;  %14284 = vst [vmem:[#allocation17_spill] sm:$0xff] %v12290_v46 }
 0x4c1   :  { %v4224_v26 = vpop.f32.mrb[190].mxu1 }
 0x4c2   :  { %v4225_v18 = vadd.f32 %v4224_v26, %v11909_v34  ;;  %v4226_v15 = vpop.f32.mrb[191].mxu1  ;;  %4488 = vmatmul.mubr.f32.gmra.mrb[16].mxu1 %v1707_v60  ;;  %9559 = vrot.lane.b32.xlu1 %v9558_v51, %s9856_s22  ;;  %v3281_v34 = vpop.f32.mrb[7].mxu0  ;;  %v1715_v60 = vunpack.c.l.bf16 %v982_v33  ;;  %v1720_v51 = vunpack.c.h.bf16 %v984_v30 }
 0x4c3   :  { %7771 = vmatprep.mubr.msk.f32.mxu1 %vm1913_vm2, %v1712_v35  ;;  %v14287_v35 = vld [vmem:[#allocation12_spill] sm:$0xff]  ;;  %v12309_v26 = vpop.f32.mrb[8].mxu0  ;;  %v14290_v34 = vld [vmem:[#allocation13_spill] sm:$0xff] }
 0x4c4   :  { %v9563_v10 = vpack.i.bf16 %v14285_v55, %v4225_v18  ;;  %v9420_v23 = vpop.permute.xlu1 %9419  ;;  %14288 = vst [vmem:[#allocation19_spill] sm:$0xff] %v12309_v26  ;;  %v986_v18 = vld [vmem:[%s14196_s1 + $0xa08] sm:$0xff]  ;;  %v3286_v15 = vpop.f32.mrb[9].mxu0 }
 0x4c5   :  { %v9422_v63 = vunpack.i.h.bf16 %v9420_v23  ;;  %v9421_v16 = vunpack.i.l.bf16 %v9420_v23  ;;  %v4229_v7 = vpop.f32.mrb[192].mxu1  ;;  %v1719_v23 = vunpack.c.l.bf16 %v984_v30 }
 0x4c6   :  { %v12297_v32 = vadd.f32 %v4229_v7, %v11918_v12  ;;  %v4231_v43 = vpop.f32.mrb[193].mxu1  ;;  %4493 = vmatmul.mubr.f32.gmra.mrb[18].mxu1 %v1711_v52  ;;  %9564 = vrot.lane.b32.xlu0 %v9563_v10, %s9856_s22 }
 0x4c7   :  { %v12302_v5 = vsel %vm5372_vm3, %v14287_v35, %v9422_v63  ;;  %7772 = vmatprep.mubr.msk.f32.mxu1 %vm1913_vm2, %v1716_v49  ;;  %v12307_v61 = vsel %vm5372_vm3, %v11820_v13, %v9421_v16  ;;  %v1724_v63 = vunpack.c.h.bf16 %v986_v18  ;;  %v12326_v7 = vpop.f32.mrb[10].mxu0 }
 0x4c8   :  { %14286 = vst [vmem:[#allocation18_spill] sm:$0xff] %v12297_v32  ;;  %v9425_v12 = vpop.permute.xlu0 %9424  ;;  %14291 = vst [vmem:[#allocation21_spill] sm:$0xff] %v12326_v7 }
 0x4c9   :  { %v9427_v33 = vunpack.i.h.bf16 %v9425_v12  ;;  %v9426_v52 = vunpack.i.l.bf16 %v9425_v12  ;;  %v4234_v55 = vpop.f32.mrb[194].mxu1 }
 0x4ca   :  { %v12315_v10 = vadd.f32 %v4234_v55, %v11927_v29  ;;  %v4236_v49 = vpop.f32.mrb[195].mxu1  ;;  %4498 = vmatmul.mubr.f32.gmra.mrb[20].mxu1 %v1715_v60  ;;  %v988_v29 = vld [vmem:[%s14196_s1 + $0xa18] sm:$0xff]  ;;  %v3291_v60 = vpop.f32.mrb[11].mxu0 }
 0x4cb   :  { %v12319_v13 = vsel %vm5372_vm3, %v14290_v34, %v9427_v33  ;;  %7773 = vmatprep.mubr.msk.f32.mxu1 %vm1913_vm2, %v1720_v51  ;;  %v12324_v16 = vsel %vm5372_vm3, %v11832_v54, %v9426_v52  ;;  %v1723_v33 = vunpack.c.l.bf16 %v986_v18  ;;  %v14293_v55 = vld [vmem:[#allocation14_spill] sm:$0xff]  ;;  %v1728_v52 = vunpack.c.h.bf16 %v988_v29  ;;  %v12343_v60 = vpop.f32.mrb[12].mxu0 }
 0x4cc   :  { %14289 = vst [vmem:[#allocation20_spill] sm:$0xff] %v12315_v10  ;;  %v9430_v43 = vpop.permute.xlu1 %9429  ;;  %v14294_v49 = vld [vmem:[#allocation50_spill] sm:$0xff]  ;;  %14295 = vst [vmem:[#allocation23_spill] sm:$0xff] %v12343_v60  ;;  %v14298_v10 = vld [vmem:[#allocation51_spill] sm:$0xff] }
 0x4cd   :  { %v9432_v30 = vunpack.i.h.bf16 %v9430_v43  ;;  %v9431_v35 = vunpack.i.l.bf16 %v9430_v43  ;;  %v4239_v12 = vpop.f32.mrb[196].mxu1 }
 0x4ce   :  { %v12332_v15 = vadd.f32 %v4239_v12, %v11936_v20  ;;  %v4241_v51 = vpop.f32.mrb[197].mxu1  ;;  %4503 = vmatmul.mubr.f32.gmra.mrb[22].mxu1 %v1719_v23  ;;  %v990_v20 = vld [vmem:[%s14196_s1 + $0xa28] sm:$0xff]  ;;  %v3296_v23 = vpop.f32.mrb[13].mxu0 }
 0x4cf   :  { %v12336_v54 = vsel %vm5372_vm3, %v14293_v55, %v9432_v30  ;;  %7774 = vmatprep.mubr.msk.f32.mxu1 %vm1913_vm2, %v1724_v63  ;;  %v12341_v34 = vsel %vm5372_vm3, %v14294_v49, %v9431_v35  ;;  %v1727_v55 = vunpack.c.l.bf16 %v988_v29  ;;  %v1732_v49 = vunpack.c.h.bf16 %v990_v20  ;;  %v12360_v23 = vpop.f32.mrb[14].mxu0 }
 0x4d0   :  { %14292 = vst [vmem:[#allocation22_spill] sm:$0xff] %v12332_v15  ;;  %v9435_v43 = vpop.permute.xlu0 %9434  ;;  %v14297_v15 = vld [vmem:[#allocation15_spill] sm:$0xff]  ;;  %14299 = vst [vmem:[#allocation25_spill] sm:$0xff] %v12360_v23 }
 0x4d1   :  { %v9437_v18 = vunpack.i.h.bf16 %v9435_v43  ;;  %v9436_v12 = vunpack.i.l.bf16 %v9435_v43  ;;  %v4244_v51 = vpop.f32.mrb[198].mxu1  ;;  %v3301_v43 = vpop.f32.mrb[15].mxu0 }
 0x4d2   :  { %v12349_v30 = vadd.f32 %v4244_v51, %v11945_v1  ;;  %v4246_v63 = vpop.f32.mrb[199].mxu1  ;;  %4508 = vmatmul.mubr.f32.gmra.mrb[24].mxu1 %v1723_v33  ;;  %v992_v1 = vld [vmem:[%s14196_s1 + $0xa38] sm:$0xff] }
 0x4d3   :  { %v12353_v35 = vsel %vm5372_vm3, %v14297_v15, %v9437_v18  ;;  %7775 = vmatprep.mubr.msk.f32.mxu1 %vm1913_vm2, %v1728_v52  ;;  %v12358_v32 = vsel %vm5372_vm3, %v14298_v10, %v9436_v12  ;;  %v1731_v18 = vunpack.c.l.bf16 %v990_v20  ;;  %v1736_v52 = vunpack.c.h.bf16 %v992_v1  ;;  %v12369_v51 = vpop.f32.mrb[16].mxu0  ;;  %v994_v10 = vld [vmem:[%s14196_s1 + $0xa48] sm:$0xff] }
 0x4d4   :  { %14296 = vst [vmem:[#allocation24_spill] sm:$0xff] %v12349_v30  ;;  %14301 = vst [vmem:[#allocation27_spill] sm:$0xff] %v12369_v51  ;;  %v3306_v12 = vpop.f32.mrb[17].mxu0  ;;  %v1740_v20 = vunpack.c.h.bf16 %v994_v10  ;;  %v9381_v51 = vunpack.i.l.bf16 %v12240_v4 }
 0x4d5   :  { %v4249_v33 = vpop.f32.mrb[200].mxu1 }
 0x4d6   :  { %v12366_v29 = vadd.f32 %v4249_v33, %v11954_v47  ;;  %v4251_v15 = vpop.f32.mrb[201].mxu1  ;;  %4513 = vmatmul.mubr.f32.gmra.mrb[26].mxu1 %v1727_v55  ;;  %v1735_v47 = vunpack.c.l.bf16 %v992_v1 }
 0x4d7   :  { %7776 = vmatprep.mubr.msk.f32.mxu1 %vm1913_vm2, %v1732_v49  ;;  %v12378_v55 = vpop.f32.mrb[18].mxu0  ;;  %v996_v49 = vld [vmem:[%s14196_s1 + $0xa58] sm:$0xff] }
 0x4d8   :  { %14300 = vst [vmem:[#allocation26_spill] sm:$0xff] %v12366_v29  ;;  %14303 = vst [vmem:[#allocation29_spill] sm:$0xff] %v12378_v55  ;;  %v3311_v33 = vpop.f32.mrb[19].mxu0 }
 0x4d9   :  { %v4254_v63 = vpop.f32.mrb[202].mxu1 }
 0x4da   :  { %v12375_v43 = vadd.f32 %v4254_v63, %v11975_v57  ;;  %v4256_v30 = vpop.f32.mrb[203].mxu1  ;;  %4518 = vmatmul.mubr.f32.gmra.mrb[28].mxu1 %v1731_v18  ;;  %v1739_v57 = vunpack.c.l.bf16 %v994_v10  ;;  %v998_v18 = vld [vmem:[%s14196_s1 + $0xa68] sm:$0xff] }
 0x4db   :  { %7777 = vmatprep.mubr.msk.f32.mxu1 %vm1913_vm2, %v1736_v52  ;;  %v1744_v30 = vunpack.c.h.bf16 %v996_v49  ;;  %v12387_v1 = vpop.f32.mrb[20].mxu0 }
 0x4dc   :  { %14302 = vst [vmem:[#allocation28_spill] sm:$0xff] %v12375_v43  ;;  %14305 = vst [vmem:[#allocation31_spill] sm:$0xff] %v12387_v1  ;;  %v3316_v52 = vpop.f32.mrb[21].mxu0  ;;  %v14321_v1 = vld [vmem:[#allocation3_spill] sm:$0xff] }
 0x4dd   :  { %v4259_v15 = vpop.f32.mrb[204].mxu1 }
 0x4de   :  { %v12384_v12 = vadd.f32 %v4259_v15, %v11984_v8  ;;  %v4261_v29 = vpop.f32.mrb[205].mxu1  ;;  %4523 = vmatmul.mubr.f32.gmra.mrb[30].mxu1 %v1735_v47  ;;  %v1743_v8 = vunpack.c.l.bf16 %v996_v49  ;;  %v1000_v47 = vld [vmem:[%s14196_s1 + $0xa78] sm:$0xff] }
 0x4df   :  { %7778 = vmatprep.mubr.msk.f32.mxu1 %vm1913_vm2, %v1740_v20  ;;  %v1748_v29 = vunpack.c.h.bf16 %v998_v18  ;;  %v12396_v10 = vpop.f32.mrb[22].mxu0 }
 0x4e0   :  { %14304 = vst [vmem:[#allocation30_spill] sm:$0xff] %v12384_v12  ;;  %14307 = vst [vmem:[#allocation33_spill] sm:$0xff] %v12396_v10  ;;  %v3321_v20 = vpop.f32.mrb[23].mxu0  ;;  %v9376_v10 = vunpack.i.l.bf16 %v12235_v9 }
 0x4e1   :  { %v4264_v63 = vpop.f32.mrb[206].mxu1 }
 0x4e2   :  { %v12393_v33 = vadd.f32 %v4264_v63, %v11993_v0  ;;  %v4266_v43 = vpop.f32.mrb[207].mxu1  ;;  %4528 = vmatmul.mubr.f32.gmra.mrb[32].mxu1 %v1739_v57  ;;  %v1747_v0 = vunpack.c.l.bf16 %v998_v18  ;;  %v1002_v57 = vld [vmem:[%s14196_s1 + $0xa88] sm:$0xff] }
 0x4e3   :  { %7779 = vmatprep.mubr.msk.f32.mxu1 %vm1913_vm2, %v1744_v30  ;;  %v1752_v43 = vunpack.c.h.bf16 %v1000_v47  ;;  %v12405_v49 = vpop.f32.mrb[24].mxu0 }
 0x4e4   :  { %14306 = vst [vmem:[#allocation32_spill] sm:$0xff] %v12393_v33  ;;  %14309 = vst [vmem:[#allocation35_spill] sm:$0xff] %v12405_v49  ;;  %v3326_v30 = vpop.f32.mrb[25].mxu0 }
 0x4e5   :  { %v4269_v15 = vpop.f32.mrb[208].mxu1 }
 0x4e6   :  { %v12402_v52 = vadd.f32 %v4269_v15, %v12002_v19  ;;  %v4271_v12 = vpop.f32.mrb[209].mxu1  ;;  %4533 = vmatmul.mubr.f32.gmra.mrb[34].mxu1 %v1743_v8  ;;  %v1751_v19 = vunpack.c.l.bf16 %v1000_v47  ;;  %v1004_v8 = vld [vmem:[%s14196_s1 + $0xa98] sm:$0xff] }
 0x4e7   :  { %7780 = vmatprep.mubr.msk.f32.mxu1 %vm1913_vm2, %v1748_v29  ;;  %v1756_v12 = vunpack.c.h.bf16 %v1002_v57  ;;  %v12414_v18 = vpop.f32.mrb[26].mxu0 }
 0x4e8   :  { %14308 = vst [vmem:[#allocation34_spill] sm:$0xff] %v12402_v52  ;;  %14311 = vst [vmem:[#allocation37_spill] sm:$0xff] %v12414_v18  ;;  %v3331_v29 = vpop.f32.mrb[27].mxu0 }
 0x4e9   :  { %v4274_v63 = vpop.f32.mrb[210].mxu1 }
 0x4ea   :  { %v12411_v20 = vadd.f32 %v4274_v63, %v12011_v31  ;;  %v4276_v33 = vpop.f32.mrb[211].mxu1  ;;  %4538 = vmatmul.mubr.f32.gmra.mrb[36].mxu1 %v1747_v0  ;;  %v1755_v31 = vunpack.c.l.bf16 %v1002_v57  ;;  %v12425_v0 = vpop.permute.xlu1 %9449  ;;  %v1759_v57 = vunpack.c.l.bf16 %v1004_v8 }
 0x4eb   :  { %7781 = vmatprep.mubr.msk.f32.mxu1 %vm1913_vm2, %v1752_v43  ;;  %v1760_v33 = vunpack.c.h.bf16 %v1004_v8  ;;  %v12423_v47 = vpop.f32.mrb[28].mxu0  ;;  %v1006_v43 = vld [vmem:[%s14196_s1 + $0xaa8] sm:$0xff] }
 0x4ec   :  { %14310 = vst [vmem:[#allocation36_spill] sm:$0xff] %v12411_v20  ;;  %14313 = vst [vmem:[#allocation39_spill] sm:$0xff] %v12423_v47  ;;  %v3336_v63 = vpop.f32.mrb[29].mxu0  ;;  %v12430_v20 = vpop.permute.xlu0 %9439 }
 0x4ed   :  { %v4279_v15 = vpop.f32.mrb[212].mxu1  ;;  %v1008_v63 = vld [vmem:[%s14196_s1 + $0xab8] sm:$0xff] }
 0x4ee   :  { %v12420_v30 = vadd.f32 %v4279_v15, %v12020_v37  ;;  %v4281_v52 = vpop.f32.mrb[213].mxu1  ;;  %4543 = vmatmul.mubr.f32.gmra.mrb[38].mxu1 %v1751_v19  ;;  %v1764_v19 = vunpack.c.h.bf16 %v1006_v43  ;;  %v12438_v15 = vpop.permute.xlu1 %9459  ;;  %v1768_v8 = vunpack.c.h.bf16 %v1008_v63 }
 0x4ef   :  { %7782 = vmatprep.mubr.msk.f32.mxu1 %vm1913_vm2, %v1756_v12  ;;  %v12436_v12 = vpop.f32.mrb[30].mxu0 }
 0x4f0   :  { %14312 = vst [vmem:[#allocation38_spill] sm:$0xff] %v12420_v30  ;;  %14315 = vst [vmem:[#allocation12_spill] sm:$0xff] %v12436_v12  ;;  %v3341_v30 = vpop.f32.mrb[31].mxu0 }
 0x4f1   :  { %v4284_v29 = vpop.f32.mrb[214].mxu1 }
 0x4f2   :  { %v12433_v37 = vadd.f32 %v4284_v29, %v12029_v25  ;;  %v4286_v52 = vpop.f32.mrb[215].mxu1  ;;  %4548 = vmatmul.mubr.f32.gmra.mrb[40].mxu1 %v1755_v31  ;;  %v1763_v31 = vunpack.c.l.bf16 %v1006_v43  ;;  %v12449_v29 = vpop.permute.xlu1 %9469 }
 0x4f3   :  { %7783 = vmatprep.mubr.msk.f32.mxu1 %vm1913_vm2, %v1760_v33  ;;  %v12447_v33 = vpop.permute.xlu0 %9444  ;;  %v1010_v52 = vld [vmem:[%s14196_s1 + $0xac8] sm:$0xff] }
 0x4f4   :  { %14314 = vst [vmem:[#allocation40_spill] sm:$0xff] %v12433_v37  ;;  %v1772_v43 = vunpack.c.h.bf16 %v1010_v52 }
 0x4f5   :  { %v4289_v47 = vpop.f32.mrb[216].mxu1 }
 0x4f6   :  { %v12444_v18 = vadd.f32 %v4289_v47, %v12038_v17  ;;  %v4291_v25 = vpop.f32.mrb[217].mxu1  ;;  %4553 = vmatmul.mubr.f32.gmra.mrb[42].mxu1 %v1759_v57  ;;  %v1767_v47 = vunpack.c.l.bf16 %v1008_v63 }
 0x4f7   :  { %7784 = vmatprep.mubr.msk.f32.mxu1 %vm1913_vm2, %v1764_v19  ;;  %v12458_v57 = vpop.permute.xlu0 %9454  ;;  %v12460_v19 = vpop.permute.xlu1 %9479  ;;  %v1012_v25 = vld [vmem:[%s14196_s1 + $0xad8] sm:$0xff] }
 0x4f8   :  { %14316 = vst [vmem:[#allocation13_spill] sm:$0xff] %v12444_v18  ;;  %v1776_v63 = vunpack.c.h.bf16 %v1012_v25 }
 0x4f9   :  { %v4294_v37 = vpop.f32.mrb[218].mxu1 }
 0x4fa   :  { %v12455_v30 = vadd.f32 %v4294_v37, %v12059_v6  ;;  %v4296_v17 = vpop.f32.mrb[219].mxu1  ;;  %4558 = vmatmul.mubr.f32.gmra.mrb[44].mxu1 %v1763_v31  ;;  %v1771_v37 = vunpack.c.l.bf16 %v1010_v52 }
 0x4fb   :  { %7785 = vmatprep.mubr.msk.f32.mxu1 %vm1913_vm2, %v1768_v8  ;;  %v12469_v31 = vpop.permute.xlu0 %9464  ;;  %v1014_v17 = vld [vmem:[%s14196_s1 + $0xae8] sm:$0xff] }
 0x4fc   :  { %14317 = vst [vmem:[#allocation14_spill] sm:$0xff] %v12455_v30  ;;  %v12471_v8 = vpop.permute.xlu1 %9489  ;;  %v1780_v52 = vunpack.c.h.bf16 %v1014_v17 }
 0x4fd   :  { %v4299_v18 = vpop.f32.mrb[220].mxu1 }
 0x4fe   :  { %v12466_v12 = vadd.f32 %v4299_v18, %v12080_v2  ;;  %v4301_v6 = vpop.f32.mrb[221].mxu1  ;;  %4563 = vmatmul.mubr.f32.gmra.mrb[46].mxu1 %v1767_v47  ;;  %v1775_v18 = vunpack.c.l.bf16 %v1012_v25  ;;  %v9377_v47 = vunpack.i.h.bf16 %v12235_v9  ;;  %v9441_v25 = vunpack.i.l.bf16 %v12430_v20 }
 0x4ff   :  { %7786 = vmatprep.mubr.msk.f32.mxu1 %vm1913_vm2, %v1772_v43  ;;  %v12481_v43 = vpop.permute.xlu0 %9474  ;;  %v9382_v9 = vunpack.i.h.bf16 %v12240_v4  ;;  %v9446_v4 = vunpack.i.l.bf16 %v12447_v33 }
 0x500   :  { %14318 = vst [vmem:[#allocation50_spill] sm:$0xff] %v12466_v12  ;;  %v1016_v12 = vld [vmem:[%s14196_s1 + $0xaf8] sm:$0xff]  ;;  %v5373_v55 = vsel %vm5372_vm3, %v14321_v1, %v9377_v47 }
 0x501   :  { %v4304_v30 = vpop.f32.mrb[222].mxu1 }
 0x502   :  { %v12477_v49 = vadd.f32 %v4304_v30, %v12101_v3  ;;  %v4306_v2 = vpop.f32.mrb[223].mxu1  ;;  %4568 = vmatmul.mubr.f32.gmra.mrb[48].mxu1 %v1771_v37  ;;  %v9442_v30 = vunpack.i.h.bf16 %v12430_v20 }
 0x503   :  { %7787 = vmatprep.mubr.msk.f32.mxu1 %vm1913_vm2, %v1776_v63  ;;  %v1779_v2 = vunpack.c.l.bf16 %v1014_v17  ;;  %v12499_v23 = vpop.permute.xlu0 %9484  ;;  %v1018_v17 = vld [vmem:[%s14196_s1 + $0xb08] sm:$0xff] }
 0x504   :  { %14319 = vst [vmem:[#allocation15_spill] sm:$0xff] %v12477_v49  ;;  %v12483_v6 = vpop.permute.xlu1 %9499  ;;  %v1784_v49 = vunpack.c.h.bf16 %v1016_v12  ;;  %v5387_v47 = vsel %vm5386_vm4, %v5373_v55, %v9442_v30  ;;  %v9387_v55 = vunpack.i.h.bf16 %v12248_v38  ;;  %v14324_v30 = vld [vmem:[#allocation42_spill] sm:$0xff] }
 0x505   :  { %v4309_v3 = vpop.f32.mrb[224].mxu1 }
 0x506   :  { %v12492_v37 = vadd.f32 %v4309_v3, %v12122_v50  ;;  %v4311_v63 = vpop.f32.mrb[225].mxu1  ;;  %4573 = vmatmul.mubr.f32.gmra.mrb[50].mxu1 %v1775_v18  ;;  %v1783_v50 = vunpack.c.l.bf16 %v1016_v12  ;;  %v9447_v18 = vunpack.i.h.bf16 %v12447_v33 }
 0x507   :  { %7788 = vmatprep.mubr.msk.f32.mxu1 %vm1913_vm2, %v1780_v52  ;;  %v12519_v33 = vpop.permute.xlu0 %9494 }
 0x508   :  { %14320 = vst [vmem:[#allocation51_spill] sm:$0xff] %v12492_v37  ;;  %v9505_v20 = vpop.permute.xlu1 %9504  ;;  %v14322_v37 = vld [vmem:[#allocation41_spill] sm:$0xff] }
 0x509   :  { %v9507_v3 = vunpack.i.h.bf16 %v9505_v20  ;;  %v9506_v52 = vunpack.i.l.bf16 %v9505_v20  ;;  %v4314_v63 = vpop.f32.mrb[226].mxu1  ;;  %v5414_v1 = vsel %vm5372_vm3, %v14322_v37, %v9376_v10  ;;  %v1788_v20 = vunpack.c.h.bf16 %v1018_v17 }
 0x50a   :  { %v12510_v60 = vadd.f32 %v4314_v63, %v12143_v41  ;;  %v4316_v12 = vpop.f32.mrb[227].mxu1  ;;  %4578 = vmatmul.mubr.f32.gmra.mrb[52].mxu1 %v1779_v2  ;;  %v5427_v7 = vsel %vm5386_vm4, %v5414_v1, %v9441_v25  ;;  %v5374_v10 = vsel %vm5372_vm3, %v14323_v56, %v9382_v9  ;;  %v5415_v37 = vsel %vm5372_vm3, %v14324_v30, %v9381_v51 }
 0x50b   :  { %v5401_v26 = vsel %vm5400_vm5, %v5387_v47, %v9507_v3  ;;  %v5440_v46 = vsel %vm5400_vm5, %v5427_v7, %v9506_v52  ;;  %7789 = vmatprep.mubr.msk.f32.mxu1 %vm1913_vm2, %v1784_v49  ;;  %v1787_v25 = vunpack.c.l.bf16 %v1018_v17  ;;  %v1020_v7 = vld [vmem:[%s14196_s1 + $0xb18] sm:$0xff]  ;;  %v9386_v49 = vunpack.i.l.bf16 %v12248_v38  ;;  %v14325_v47 = vld [vmem:[#allocation5_spill] sm:$0xff] }
 0x50c   :  { %v9510_v41 = vpop.permute.xlu1 %9509  ;;  %5666 = vmatprep.mubr.f32.mxu0 %v5440_v46  ;;  %v5388_v2 = vsel %vm5386_vm4, %v5374_v10, %v9447_v18  ;;  %v9452_v52 = vunpack.i.h.bf16 %v12425_v0  ;;  %v9451_v46 = vunpack.i.l.bf16 %v12425_v0  ;;  %v5428_v17 = vsel %vm5386_vm4, %v5415_v37, %v9446_v4  ;;  %v14326_v37 = vld [vmem:[#allocation43_spill] sm:$0xff] }
 0x50d   :  { %v9512_v3 = vunpack.i.h.bf16 %v9510_v41  ;;  %v9511_v56 = vunpack.i.l.bf16 %v9510_v41  ;;  %v4319_v9 = vpop.f32.mrb[228].mxu1  ;;  %5667 = vmatmul.mubr.f32.vlgmr.msra.gmra.mrb[98].mxu0 %v5401_v26  ;;  %v1792_v18 = vunpack.c.h.bf16 %v1020_v7  ;;  %v5375_v26 = vsel %vm5372_vm3, %v14325_v47, %v9387_v55 }
 0x50e   :  { %v12531_v63 = vadd.f32 %v4319_v9, %v12152_v24  ;;  %v4321_v51 = vpop.f32.mrb[229].mxu1  ;;  %4583 = vmatmul.mubr.f32.gmra.mrb[54].mxu1 %v1783_v50  ;;  %v9392_v12 = vunpack.i.h.bf16 %v12253_v58  ;;  %v9391_v0 = vunpack.i.l.bf16 %v12253_v58  ;;  %v1791_v10 = vunpack.c.l.bf16 %v1020_v7  ;;  %v1022_v50 = vld [vmem:[%s14196_s1 + $0xb28] sm:$0xff] }
 0x50f   :  { %v5441_v1 = vsel %vm5400_vm5, %v5428_v17, %v9511_v56  ;;  %7790 = vmatprep.mubr.msk.f32.mxu1 %vm1913_vm2, %v1788_v20  ;;  %v5402_v38 = vsel %vm5400_vm5, %v5388_v2, %v9512_v3  ;;  %v9457_v4 = vunpack.i.h.bf16 %v12458_v57  ;;  %v5416_v55 = vsel %vm5372_vm3, %v14326_v37, %v9386_v49 }
 0x510   :  { %v9515_v24 = vpop.permute.xlu0 %9514  ;;  %5671 = vmatprep.mubr.f32.mxu0 %v5441_v1  ;;  %v5389_v2 = vsel %vm5386_vm4, %v5375_v26, %v9452_v52  ;;  %v9456_v58 = vunpack.i.l.bf16 %v12458_v57  ;;  %v5429_v56 = vsel %vm5386_vm4, %v5416_v55, %v9451_v46  ;;  %v1796_v17 = vunpack.c.h.bf16 %v1022_v50  ;;  %v14327_v1 = vld [vmem:[#allocation6_spill] sm:$0xff]  ;;  %v14329_v55 = vld [vmem:[#allocation7_spill] sm:$0xff] }
 0x511   :  { %v9517_v20 = vunpack.i.h.bf16 %v9515_v24  ;;  %v9516_v41 = vunpack.i.l.bf16 %v9515_v24  ;;  %v4324_v30 = vpop.f32.mrb[230].mxu1  ;;  %5672 = vmatmul.mubr.f32.gmra.mrb[100].mxu0 %v5402_v38  ;;  %v5376_v49 = vsel %vm5372_vm3, %v14327_v1, %v9392_v12  ;;  %v9397_v52 = vunpack.i.h.bf16 %v12261_v28  ;;  %v1024_v46 = vld [vmem:[%s14196_s1 + $0xb38] sm:$0xff]  ;;  %v14330_v1 = vld [vmem:[#allocation45_spill] sm:$0xff] }
 0x512   :  { %v12550_v3 = vadd.f32 %v4324_v30, %v12161_v27  ;;  %v4326_v7 = vpop.f32.mrb[231].mxu1  ;;  %4588 = vmatmul.mubr.f32.gmra.mrb[56].mxu1 %v1787_v25  ;;  %v14328_v27 = vld [vmem:[#allocation44_spill] sm:$0xff]  ;;  %v1795_v25 = vunpack.c.l.bf16 %v1022_v50  ;;  %v5390_v47 = vsel %vm5386_vm4, %v5376_v49, %v9457_v4  ;;  %v9462_v12 = vunpack.i.h.bf16 %v12438_v15 }
 0x513   :  { %v5442_v9 = vsel %vm5400_vm5, %v5429_v56, %v9516_v41  ;;  %7791 = vmatprep.mubr.msk.f32.mxu1 %vm1913_vm2, %v1792_v18  ;;  %v5403_v51 = vsel %vm5400_vm5, %v5389_v2, %v9517_v20  ;;  %v5417_v38 = vsel %vm5372_vm3, %v14328_v27, %v9391_v0  ;;  %v9396_v18 = vunpack.i.l.bf16 %v12261_v28 }
 0x514   :  { %v9520_v57 = vpop.permute.xlu1 %9519  ;;  %5676 = vmatprep.mubr.f32.mxu0 %v5442_v9  ;;  %v9461_v41 = vunpack.i.l.bf16 %v12438_v15  ;;  %v5430_v50 = vsel %vm5386_vm4, %v5417_v38, %v9456_v58  ;;  %v1800_v4 = vunpack.c.h.bf16 %v1024_v46  ;;  %v5377_v2 = vsel %vm5372_vm3, %v14329_v55, %v9397_v52 }
 0x515   :  { %v9522_v26 = vunpack.i.h.bf16 %v9520_v57  ;;  %v9521_v24 = vunpack.i.l.bf16 %v9520_v57  ;;  %v4329_v20 = vpop.f32.mrb[232].mxu1  ;;  %5677 = vmatmul.mubr.f32.gmra.mrb[102].mxu0 %v5403_v51  ;;  %v9402_v7 = vunpack.i.h.bf16 %v12266_v53  ;;  %v9401_v15 = vunpack.i.l.bf16 %v12266_v53 }
 0x516   :  { %v12569_v30 = vadd.f32 %v4329_v20, %v12170_v22  ;;  %v4331_v0 = vpop.f32.mrb[233].mxu1  ;;  %4593 = vmatmul.mubr.f32.gmra.mrb[58].mxu1 %v1791_v10  ;;  %v1799_v56 = vunpack.c.l.bf16 %v1024_v46  ;;  %v1026_v10 = vld [vmem:[%s14196_s1 + $0xb48] sm:$0xff]  ;;  %v9467_v58 = vunpack.i.h.bf16 %v12469_v31  ;;  %v5418_v49 = vsel %vm5372_vm3, %v14330_v1, %v9396_v18 }
 0x517   :  { %v5443_v37 = vsel %vm5400_vm5, %v5430_v50, %v9521_v24  ;;  %7792 = vmatprep.mubr.msk.f32.mxu1 %vm1913_vm2, %v1796_v17  ;;  %v5404_v28 = vsel %vm5400_vm5, %v5390_v47, %v9522_v26  ;;  %v5391_v52 = vsel %vm5386_vm4, %v5377_v2, %v9462_v12  ;;  %v9466_v53 = vunpack.i.l.bf16 %v12469_v31  ;;  %v14331_v24 = vld [vmem:[#allocation8_spill] sm:$0xff] }
 0x518   :  { %5681 = vmatprep.mubr.f32.mxu0 %v5443_v37  ;;  %v9525_v22 = vpop.permute.xlu0 %9524  ;;  %v5431_v38 = vsel %vm5386_vm4, %v5418_v49, %v9461_v41  ;;  %v1804_v26 = vunpack.c.h.bf16 %v1026_v10  ;;  %v5378_v18 = vsel %vm5372_vm3, %v14331_v24, %v9402_v7  ;;  %v9407_v20 = vunpack.i.h.bf16 %v12274_v48  ;;  %v1028_v41 = vld [vmem:[%s14196_s1 + $0xb58] sm:$0xff] }
 0x519   :  { %v9527_v9 = vunpack.i.h.bf16 %v9525_v22  ;;  %v9526_v51 = vunpack.i.l.bf16 %v9525_v22  ;;  %v4334_v17 = vpop.f32.mrb[234].mxu1  ;;  %5682 = vmatmul.mubr.f32.gmra.mrb[104].mxu0 %v5404_v28  ;;  %v9406_v0 = vunpack.i.l.bf16 %v12274_v48  ;;  %v5392_v50 = vsel %vm5386_vm4, %v5378_v18, %v9467_v58 }
 0x51a   :  { %v12588_v57 = vadd.f32 %v4334_v17, %v12182_v59  ;;  %v4336_v27 = vpop.f32.mrb[235].mxu1  ;;  %4598 = vmatmul.mubr.f32.gmra.mrb[60].mxu1 %v1795_v25  ;;  %v14332_v59 = vld [vmem:[#allocation46_spill] sm:$0xff]  ;;  %v1803_v25 = vunpack.c.l.bf16 %v1026_v10  ;;  %v9472_v55 = vunpack.i.h.bf16 %v12449_v29  ;;  %v9471_v2 = vunpack.i.l.bf16 %v12449_v29 }
 0x51b   :  { %v5444_v46 = vsel %vm5400_vm5, %v5431_v38, %v9526_v51  ;;  %7793 = vmatprep.mubr.msk.f32.mxu1 %vm1913_vm2, %v1800_v4  ;;  %v5405_v47 = vsel %vm5400_vm5, %v5391_v52, %v9527_v9  ;;  %v5419_v12 = vsel %vm5372_vm3, %v14332_v59, %v9401_v15  ;;  %v1808_v58 = vunpack.c.h.bf16 %v1028_v41  ;;  %v14333_v9 = vld [vmem:[#allocation9_spill] sm:$0xff]  ;;  %v14334_v38 = vld [vmem:[#allocation47_spill] sm:$0xff] }
 0x51c   :  { %5686 = vmatprep.mubr.f32.mxu0 %v5444_v46  ;;  %v9530_v31 = vpop.permute.xlu1 %9529  ;;  %v5432_v22 = vsel %vm5386_vm4, %v5419_v12, %v9466_v53  ;;  %v5379_v51 = vsel %vm5372_vm3, %v14333_v9, %v9407_v20  ;;  %v9412_v17 = vunpack.i.h.bf16 %v12279_v45  ;;  %v9411_v29 = vunpack.i.l.bf16 %v12279_v45  ;;  %v14335_v12 = vld [vmem:[#allocation10_spill] sm:$0xff] }
 0x51d   :  { %v9532_v37 = vunpack.i.h.bf16 %v9530_v31  ;;  %v9531_v28 = vunpack.i.l.bf16 %v9530_v31  ;;  %v4339_v4 = vpop.f32.mrb[236].mxu1  ;;  %5687 = vmatmul.mubr.f32.gmra.mrb[106].mxu0 %v5405_v47  ;;  %v1807_v1 = vunpack.c.l.bf16 %v1028_v41  ;;  %v9477_v49 = vunpack.i.h.bf16 %v12481_v43 }
 0x51e   :  { %v12607_v7 = vadd.f32 %v4339_v4, %v12191_v44  ;;  %v4341_v15 = vpop.f32.mrb[237].mxu1  ;;  %4603 = vmatmul.mubr.f32.gmra.mrb[62].mxu1 %v1799_v56  ;;  %v1030_v56 = vld [vmem:[%s14196_s1 + $0xb68] sm:$0xff]  ;;  %v5420_v46 = vsel %vm5372_vm3, %v14334_v38, %v9406_v0  ;;  %v5393_v47 = vsel %vm5386_vm4, %v5379_v51, %v9472_v55  ;;  %v9476_v45 = vunpack.i.l.bf16 %v12481_v43 }
 0x51f   :  { %v5445_v10 = vsel %vm5400_vm5, %v5432_v22, %v9531_v28  ;;  %7794 = vmatprep.mubr.msk.f32.mxu1 %vm1913_vm2, %v1804_v26  ;;  %v5406_v48 = vsel %vm5400_vm5, %v5392_v50, %v9532_v37  ;;  %v5433_v18 = vsel %vm5386_vm4, %v5420_v46, %v9471_v2  ;;  %v1812_v59 = vunpack.c.h.bf16 %v1030_v56  ;;  %v1032_v37 = vld [vmem:[%s14196_s1 + $0xb78] sm:$0xff] }
 0x520   :  { %5691 = vmatprep.mubr.f32.mxu0 %v5445_v10  ;;  %v9535_v44 = vpop.permute.xlu0 %9534  ;;  %v5380_v41 = vsel %vm5372_vm3, %v14335_v12, %v9412_v17  ;;  %v9417_v0 = vunpack.i.h.bf16 %v12287_v21  ;;  %v9416_v28 = vunpack.i.l.bf16 %v12287_v21  ;;  %v9482_v22 = vunpack.i.h.bf16 %v12460_v19 }
 0x521   :  { %v9537_v52 = vunpack.i.h.bf16 %v9535_v44  ;;  %v9536_v53 = vunpack.i.l.bf16 %v9535_v44  ;;  %v4344_v27 = vpop.f32.mrb[238].mxu1  ;;  %5692 = vmatmul.mubr.f32.gmra.mrb[108].mxu0 %v5406_v48  ;;  %v5394_v4 = vsel %vm5386_vm4, %v5380_v41, %v9477_v49  ;;  %v9481_v10 = vunpack.i.l.bf16 %v12460_v19 }
 0x522   :  { %v12626_v26 = vadd.f32 %v4344_v27, %v12200_v40  ;;  %v4346_v24 = vpop.f32.mrb[239].mxu1  ;;  %4608 = vmatmul.mubr.f32.gmra.mrb[64].mxu1 %v1803_v25  ;;  %v14336_v40 = vld [vmem:[#allocation48_spill] sm:$0xff]  ;;  %v1811_v25 = vunpack.c.l.bf16 %v1030_v56  ;;  %v1816_v17 = vunpack.c.h.bf16 %v1032_v37  ;;  %v1815_v19 = vunpack.c.l.bf16 %v1032_v37  ;;  %v14338_v27 = vld [vmem:[#allocation49_spill] sm:$0xff] }
 0x523   :  { %v5446_v20 = vsel %vm5400_vm5, %v5433_v18, %v9536_v53  ;;  %7795 = vmatprep.mubr.msk.f32.mxu1 %vm1913_vm2, %v1808_v58  ;;  %v5407_v31 = vsel %vm5400_vm5, %v5393_v47, %v9537_v52  ;;  %v5421_v50 = vsel %vm5372_vm3, %v14336_v40, %v9411_v29  ;;  %v14337_v29 = vld [vmem:[#allocation11_spill] sm:$0xff]  ;;  %v5422_v38 = vsel %vm5372_vm3, %v14338_v27, %v9416_v28 }
 0x524   :  { %5696 = vmatprep.mubr.f32.mxu0 %v5446_v20  ;;  %v9540_v43 = vpop.permute.xlu1 %9539  ;;  %v5434_v9 = vsel %vm5386_vm4, %v5421_v50, %v9476_v45  ;;  %v5381_v44 = vsel %vm5372_vm3, %v14337_v29, %v9417_v0  ;;  %v9486_v47 = vunpack.i.l.bf16 %v12499_v23  ;;  %v5435_v18 = vsel %vm5386_vm4, %v5422_v38, %v9481_v10 }
 0x525   :  { %v9542_v55 = vunpack.i.h.bf16 %v9540_v43  ;;  %v9541_v2 = vunpack.i.l.bf16 %v9540_v43  ;;  %v4349_v15 = vpop.f32.mrb[240].mxu1  ;;  %5697 = vmatmul.mubr.f32.gmra.mrb[110].mxu0 %v5407_v31  ;;  %v5395_v46 = vsel %vm5386_vm4, %v5381_v44, %v9482_v22  ;;  %v9492_v50 = vunpack.i.h.bf16 %v12471_v8 }
 0x526   :  { %v12645_v48 = vadd.f32 %v4349_v15, %v12209_v11  ;;  %v4351_v58 = vpop.f32.mrb[241].mxu1  ;;  %4613 = vmatmul.mubr.f32.gmra.mrb[66].mxu1 %v1807_v1  ;;  %v1034_v11 = vld [vmem:[%s14196_s1 + $0xb88] sm:$0xff]  ;;  %v9487_v1 = vunpack.i.h.bf16 %v12499_v23  ;;  %v1036_v23 = vld [vmem:[%s14196_s1 + $0xb98] sm:$0xff] }
 0x527   :  { %v5447_v51 = vsel %vm5400_vm5, %v5434_v9, %v9541_v2  ;;  %7796 = vmatprep.mubr.msk.f32.mxu1 %vm1913_vm2, %v1812_v59  ;;  %v5408_v21 = vsel %vm5400_vm5, %v5394_v4, %v9542_v55  ;;  %v1820_v59 = vunpack.c.h.bf16 %v1034_v11  ;;  %v1819_v40 = vunpack.c.l.bf16 %v1034_v11 }
 0x528   :  { %5701 = vmatprep.mubr.f32.mxu0 %v5447_v51  ;;  %v9545_v56 = vpop.permute.xlu0 %9544  ;;  %v5436_v4 = vsel %vm5386_vm4, %v12307_v61, %v9486_v47  ;;  %v1824_v2 = vunpack.c.h.bf16 %v1036_v23  ;;  %v1823_v61 = vunpack.c.l.bf16 %v1036_v23  ;;  %v5397_v9 = vsel %vm5386_vm4, %v12319_v13, %v9492_v50  ;;  %v1040_v13 = vld [vmem:[%s14196_s1 + $0xbb8] sm:$0xff] }
 0x529   :  { %v9547_v49 = vunpack.i.h.bf16 %v9545_v56  ;;  %v9546_v52 = vunpack.i.l.bf16 %v9545_v56  ;;  %v4354_v53 = vpop.f32.mrb[242].mxu1  ;;  %5702 = vmatmul.mubr.f32.gmra.mrb[112].mxu0 %v5408_v21  ;;  %v9496_v51 = vunpack.i.l.bf16 %v12519_v33 }
 0x52a   :  { %v12662_v45 = vadd.f32 %v4354_v53, %v12218_v14  ;;  %v4356_v24 = vpop.f32.mrb[243].mxu1  ;;  %4618 = vmatmul.mubr.f32.gmra.mrb[68].mxu1 %v1811_v25  ;;  %v5396_v14 = vsel %vm5386_vm4, %v12302_v5, %v9487_v1  ;;  %v9491_v25 = vunpack.i.l.bf16 %v12471_v8  ;;  %v1038_v8 = vld [vmem:[%s14196_s1 + $0xba8] sm:$0xff]  ;;  %v9501_v53 = vunpack.i.l.bf16 %v12483_v6 }
 0x52b   :  { %v5448_v20 = vsel %vm5400_vm5, %v5435_v18, %v9546_v52  ;;  %7797 = vmatprep.mubr.msk.f32.mxu1 %vm1913_vm2, %v1816_v17  ;;  %v5409_v31 = vsel %vm5400_vm5, %v5395_v46, %v9547_v49  ;;  %v9502_v52 = vunpack.i.h.bf16 %v12483_v6  ;;  %v5438_v46 = vsel %vm5386_vm4, %v12341_v34, %v9496_v51  ;;  %v1042_v6 = vld [vmem:[%s14196_s1 + $0xbc8] sm:$0xff] }
 0x52c   :  { %5706 = vmatprep.mubr.f32.mxu0 %v5448_v20  ;;  %v9550_v12 = vpop.permute.xlu1 %9549  ;;  %v5437_v29 = vsel %vm5386_vm4, %v12324_v16, %v9491_v25  ;;  %v1827_v16 = vunpack.c.l.bf16 %v1038_v8  ;;  %v1832_v24 = vunpack.c.h.bf16 %v1040_v13  ;;  %v5439_v23 = vsel %vm5386_vm4, %v12358_v32, %v9501_v53 }
 0x52d   :  { %v9552_v41 = vunpack.i.h.bf16 %v9550_v12  ;;  %v9551_v0 = vunpack.i.l.bf16 %v9550_v12  ;;  %v4359_v43 = vpop.f32.mrb[244].mxu1  ;;  %5707 = vmatmul.mubr.f32.gmra.mrb[114].mxu0 %v5409_v31  ;;  %v5399_v34 = vsel %vm5386_vm4, %v12353_v35, %v9502_v52  ;;  %v1044_v35 = vld [vmem:[%s14196_s1 + $0xbd8] sm:$0xff]  ;;  %v1835_v32 = vunpack.c.l.bf16 %v1042_v6 }
 0x52e   :  { %v12676_v37 = vadd.f32 %v4359_v43, %v12227_v62  ;;  %v4361_v28 = vpop.f32.mrb[245].mxu1  ;;  %4623 = vmatmul.mubr.f32.gmra.mrb[70].mxu1 %v1815_v19  ;;  %v9497_v62 = vunpack.i.h.bf16 %v12519_v33  ;;  %v1828_v19 = vunpack.c.h.bf16 %v1038_v8  ;;  %v1836_v43 = vunpack.c.h.bf16 %v1042_v6 }
 0x52f   :  { %v5449_v55 = vsel %vm5400_vm5, %v5436_v4, %v9551_v0  ;;  %7798 = vmatprep.mubr.msk.f32.mxu1 %vm1913_vm2, %v1820_v59  ;;  %v5410_v5 = vsel %vm5400_vm5, %v5396_v14, %v9552_v41  ;;  %v1831_v14 = vunpack.c.l.bf16 %v1040_v13  ;;  %v1840_v28 = vunpack.c.h.bf16 %v1044_v35  ;;  %v1046_v4 = vld [vmem:[%s14196_s1 + $0xbe8] sm:$0xff] }
 0x530   :  { %5711 = vmatprep.mubr.f32.mxu0 %v5449_v55  ;;  %v9555_v15 = vpop.permute.xlu0 %9554  ;;  %v1839_v8 = vunpack.c.l.bf16 %v1044_v35  ;;  %v1843_v51 = vunpack.c.l.bf16 %v1046_v4  ;;  %v14346_v35 = vld [vmem:[#allocation29_spill] sm:$0xff] }
 0x531   :  { %v9557_v22 = vunpack.i.h.bf16 %v9555_v15  ;;  %v9556_v10 = vunpack.i.l.bf16 %v9555_v15  ;;  %v4364_v58 = vpop.f32.mrb[246].mxu1  ;;  %5712 = vmatmul.mubr.f32.gmra.mrb[116].mxu0 %v5410_v5  ;;  %v14340_v5 = vld [vmem:[#allocation17_spill] sm:$0xff] }
 0x532   :  { %v12691_v21 = vadd.f32 %v4364_v58, %v12238_v36  ;;  %v4366_v17 = vpop.f32.mrb[247].mxu1  ;;  %4628 = vmatmul.mubr.f32.gmra.mrb[72].mxu1 %v1819_v40  ;;  %v5398_v36 = vsel %vm5386_vm4, %v12336_v54, %v9497_v62  ;;  %v14339_v40 = vld [vmem:[#allocation16_spill] sm:$0xff]  ;;  %v1844_v62 = vunpack.c.h.bf16 %v1046_v4  ;;  %v14341_v58 = vld [vmem:[#allocation19_spill] sm:$0xff] }
 0x533   :  { %v5450_v44 = vsel %vm5400_vm5, %v5437_v29, %v9556_v10  ;;  %7799 = vmatprep.mubr.msk.f32.mxu1 %vm1913_vm2, %v1824_v2  ;;  %v5411_v56 = vsel %vm5400_vm5, %v5397_v9, %v9557_v22  ;;  %v1048_v22 = vld [vmem:[%s14196_s1 + $0xbf8] sm:$0xff]  ;;  %v1050_v29 = vld [vmem:[%s14196_s1 + $0xc08] sm:$0xff] }
 0x534   :  { %5716 = vmatprep.mubr.f32.mxu0 %v5450_v44  ;;  %v9560_v11 = vpop.permute.xlu1 %9559  ;;  %v1848_v17 = vunpack.c.h.bf16 %v1048_v22  ;;  %v1847_v13 = vunpack.c.l.bf16 %v1048_v22  ;;  %v1851_v53 = vunpack.c.l.bf16 %v1050_v29  ;;  %v1062_v22 = vld [vmem:[%s14196_s1 + $0xc68] sm:$0xff] }
 0x535   :  { %v9562_v33 = vunpack.i.h.bf16 %v9560_v11  ;;  %v9561_v1 = vunpack.i.l.bf16 %v9560_v11  ;;  %v4369_v49 = vpop.f32.mrb[248].mxu1  ;;  %5717 = vmatmul.mubr.f32.gmra.mrb[118].mxu0 %v5411_v56  ;;  %v14342_v56 = vld [vmem:[#allocation21_spill] sm:$0xff] }
 0x536   :  { %v12706_v27 = vadd.f32 %v4369_v49, %v12251_v42  ;;  %v4371_v38 = vpop.f32.mrb[249].mxu1  ;;  %4633 = vmatmul.mubr.f32.gmra.mrb[74].mxu1 %v1823_v61  ;;  %v14343_v49 = vld [vmem:[#allocation23_spill] sm:$0xff] }
 0x537   :  { %v5451_v47 = vsel %vm5400_vm5, %v5438_v46, %v9561_v1  ;;  %7800 = vmatprep.mubr.msk.f32.mxu1 %vm1913_vm2, %v1828_v19  ;;  %v5412_v54 = vsel %vm5400_vm5, %v5398_v36, %v9562_v33  ;;  %v1852_v36 = vunpack.c.h.bf16 %v1050_v29  ;;  %v1052_v33 = vld [vmem:[%s14196_s1 + $0xc18] sm:$0xff]  ;;  %v1054_v46 = vld [vmem:[%s14196_s1 + $0xc28] sm:$0xff]  ;;  %v1876_v29 = vunpack.c.h.bf16 %v1062_v22 }
 0x538   :  { %5721 = vmatprep.mubr.f32.mxu0 %v5451_v47  ;;  %v9565_v18 = vpop.permute.xlu0 %9564  ;;  %v1856_v38 = vunpack.c.h.bf16 %v1052_v33  ;;  %v1855_v6 = vunpack.c.l.bf16 %v1052_v33  ;;  %v1875_v33 = vunpack.c.l.bf16 %v1062_v22 }
 0x539   :  { %v9567_v42 = vunpack.i.h.bf16 %v9565_v18  ;;  %v9566_v20 = vunpack.i.l.bf16 %v9565_v18  ;;  %v4374_v31 = vpop.f32.mrb[250].mxu1  ;;  %5722 = vmatmul.mubr.f32.gmra.mrb[120].mxu0 %v5412_v54  ;;  %v14344_v54 = vld [vmem:[#allocation25_spill] sm:$0xff] }
 0x53a   :  { %v12719_v59 = vadd.f32 %v4374_v31, %v12264_v39  ;;  %v4376_v12 = vpop.f32.mrb[251].mxu1  ;;  %4638 = vmatmul.mubr.f32.gmra.mrb[76].mxu1 %v1827_v16 }
 0x53b   :  { %v5452_v41 = vsel %vm5400_vm5, %v5439_v23, %v9566_v20  ;;  %7801 = vmatprep.mubr.msk.f32.mxu1 %vm1913_vm2, %v1832_v24  ;;  %v5413_v0 = vsel %vm5400_vm5, %v5399_v34, %v9567_v42  ;;  %v1860_v42 = vunpack.c.h.bf16 %v1054_v46  ;;  %v1056_v20 = vld [vmem:[%s14196_s1 + $0xc38] sm:$0xff]  ;;  %v14345_v34 = vld [vmem:[#allocation27_spill] sm:$0xff] }
 0x53c   :  { %5726 = vmatprep.mubr.f32.mxu0 %v5452_v41  ;;  %v1864_v41 = vunpack.c.h.bf16 %v1056_v20 }
 0x53d   :  { %v4379_v39 = vpop.f32.mrb[252].mxu1  ;;  %5727 = vmatmul.mubr.f32.gmra.mrb[122].mxu0 %v5413_v0  ;;  %v1058_v0 = vld [vmem:[%s14196_s1 + $0xc48] sm:$0xff] }
 0x53e   :  { %v12730_v50 = vadd.f32 %v4379_v39, %v14339_v40  ;;  %v4381_v25 = vpop.f32.mrb[253].mxu1  ;;  %4643 = vmatmul.mubr.f32.gmra.mrb[78].mxu1 %v1831_v14  ;;  %v1859_v14 = vunpack.c.l.bf16 %v1054_v46 }
 0x53f   :  { %7802 = vmatprep.mubr.msk.f32.mxu1 %vm1913_vm2, %v1836_v43  ;;  %v1863_v25 = vunpack.c.l.bf16 %v1056_v20 }
 0x541   :  { %v4384_v55 = vpop.f32.mrb[254].mxu1 }
 0x542   :  { %v12737_v2 = vadd.f32 %v4384_v55, %v14340_v5  ;;  %v4386_v15 = vpop.f32.mrb[255].mxu1  ;;  %4648 = vmatmul.mubr.f32.gmra.mrb[80].mxu1 %v1835_v32  ;;  %v1868_v32 = vunpack.c.h.bf16 %v1058_v0  ;;  %v14347_v55 = vld [vmem:[#allocation31_spill] sm:$0xff] }
 0x543   :  { %7803 = vmatprep.mubr.msk.f32.mxu1 %vm1913_vm2, %v1840_v28  ;;  %v1060_v28 = vld [vmem:[%s14196_s1 + $0xc58] sm:$0xff] }
 0x545   :  { %v4389_v10 = vpop.f32.mrb[120].mxu1 }
 0x546   :  { %v12744_v61 = vadd.f32 %v4389_v10, %v14341_v58  ;;  %v4391_v9 = vpop.f32.mrb[121].mxu1  ;;  %4653 = vmatmul.mubr.f32.gmra.mrb[82].mxu1 %v1839_v8  ;;  %v1867_v8 = vunpack.c.l.bf16 %v1058_v0  ;;  %v14348_v58 = vld [vmem:[#allocation33_spill] sm:$0xff]  ;;  %v14352_v0 = vld [vmem:[#allocation12_spill] sm:$0xff] }
 0x547   :  { %7804 = vmatprep.mubr.msk.f32.mxu1 %vm1913_vm2, %v1844_v62  ;;  %v1872_v62 = vunpack.c.h.bf16 %v1060_v28 }
 0x549   :  { %v4394_v44 = vpop.f32.mrb[122].mxu1 }
 0x54a   :  { %v12751_v19 = vadd.f32 %v4394_v44, %v14342_v56  ;;  %v4396_v11 = vpop.f32.mrb[123].mxu1  ;;  %4658 = vmatmul.mubr.f32.gmra.mrb[84].mxu1 %v1843_v51  ;;  %v1064_v44 = vld [vmem:[%s14196_s1 + $0xc78] sm:$0xff] }
 0x54b   :  { %7805 = vmatprep.mubr.msk.f32.mxu1 %vm1913_vm2, %v1848_v17  ;;  %v1871_v17 = vunpack.c.l.bf16 %v1060_v28  ;;  %v14349_v11 = vld [vmem:[#allocation35_spill] sm:$0xff] }
 0x54d   :  { %v4399_v1 = vpop.f32.mrb[124].mxu1 }
 0x54e   :  { %v12758_v16 = vadd.f32 %v4399_v1, %v14343_v49  ;;  %v4401_v52 = vpop.f32.mrb[125].mxu1  ;;  %4663 = vmatmul.mubr.f32.gmra.mrb[86].mxu1 %v1847_v13  ;;  %v1880_v1 = vunpack.c.h.bf16 %v1064_v44  ;;  %v1066_v49 = vld [vmem:[%s14196_s1 + $0xc88] sm:$0xff] }
 0x54f   :  { %7806 = vmatprep.mubr.msk.f32.mxu1 %vm1913_vm2, %v1852_v36 }
 0x551   :  { %v4404_v47 = vpop.f32.mrb[126].mxu1 }
 0x552   :  { %v12765_v24 = vadd.f32 %v4404_v47, %v14344_v54  ;;  %v4406_v18 = vpop.f32.mrb[127].mxu1  ;;  %4668 = vmatmul.mubr.f32.gmra.mrb[88].mxu1 %v1851_v53  ;;  %v14350_v53 = vld [vmem:[#allocation37_spill] sm:$0xff]  ;;  %v1879_v47 = vunpack.c.l.bf16 %v1064_v44  ;;  %v1884_v54 = vunpack.c.h.bf16 %v1066_v49 }
 0x553   :  { %7807 = vmatprep.mubr.msk.f32.mxu1 %vm1913_vm2, %v1856_v38  ;;  %v1068_v18 = vld [vmem:[%s14196_s1 + $0xc98] sm:$0xff] }
 0x555   :  { %v4409_v31 = vpop.f32.mrb[128].mxu1 }
 0x556   :  { %v12772_v12 = vadd.f32 %v4409_v31, %v14345_v34  ;;  %v4411_v23 = vpop.f32.mrb[129].mxu1  ;;  %4673 = vmatmul.mubr.f32.gmra.mrb[90].mxu1 %v1855_v6  ;;  %v1883_v34 = vunpack.c.l.bf16 %v1066_v49 }
 0x557   :  { %7808 = vmatprep.mubr.msk.f32.mxu1 %vm1913_vm2, %v1860_v42  ;;  %v14351_v42 = vld [vmem:[#allocation39_spill] sm:$0xff]  ;;  %v1888_v23 = vunpack.c.h.bf16 %v1068_v18 }
 0x559   :  { %v4414_v43 = vpop.f32.mrb[130].mxu1 }
 0x55a   :  { %v12779_v39 = vadd.f32 %v4414_v43, %v14346_v35  ;;  %v4416_v40 = vpop.f32.mrb[131].mxu1  ;;  %4678 = vmatmul.mubr.f32.gmra.mrb[92].mxu1 %v1859_v14  ;;  %v1070_v14 = vld [vmem:[%s14196_s1 + $0xca8] sm:$0xff] }
 0x55b   :  { %7809 = vmatprep.mubr.msk.f32.mxu1 %vm1913_vm2, %v1864_v41  ;;  %v1887_v40 = vunpack.c.l.bf16 %v1068_v18 }
 0x55d   :  { %v4419_v4 = vpop.f32.mrb[132].mxu1 }
 0x55e   :  { %v12786_v5 = vadd.f32 %v4419_v4, %v14347_v55  ;;  %v4421_v15 = vpop.f32.mrb[133].mxu1  ;;  %4683 = vmatmul.mubr.f32.gmra.mrb[94].mxu1 %v1863_v25  ;;  %v1892_v25 = vunpack.c.h.bf16 %v1070_v14  ;;  %v1891_v55 = vunpack.c.l.bf16 %v1070_v14 }
 0x55f   :  { %7810 = vmatprep.mubr.msk.f32.mxu1 %vm1913_vm2, %v1868_v32  ;;  %v1072_v32 = vld [vmem:[%s14196_s1 + $0xcb8] sm:$0xff] }
 0x560   :  { %v1896_v15 = vunpack.c.h.bf16 %v1072_v32 }
 0x561   :  { %v4424_v10 = vpop.f32.mrb[134].mxu1 }
 0x562   :  { %v12793_v9 = vadd.f32 %v4424_v10, %v14348_v58  ;;  %v4426_v51 = vpop.f32.mrb[135].mxu1  ;;  %4688 = vmatmul.mubr.f32.gmra.mrb[96].mxu1 %v1867_v8  ;;  %v1074_v8 = vld [vmem:[%s14196_s1 + $0xcc8] sm:$0xff]  ;;  %v1895_v10 = vunpack.c.l.bf16 %v1072_v32 }
 0x563   :  { %7811 = vmatprep.mubr.msk.f32.mxu1 %vm1913_vm2, %v1872_v62  ;;  %v1900_v58 = vunpack.c.h.bf16 %v1074_v8  ;;  %v1076_v51 = vld [vmem:[%s14196_s1 + $0xcd8] sm:$0xff]  ;;  %v1899_v44 = vunpack.c.l.bf16 %v1074_v8 }
 0x565   :  { %v4429_v56 = vpop.f32.mrb[136].mxu1 }
 0x566   :  { %v12800_v13 = vadd.f32 %v4429_v56, %v14349_v11  ;;  %v4431_v36 = vpop.f32.mrb[137].mxu1  ;;  %4693 = vmatmul.mubr.f32.gmra.mrb[98].mxu1 %v1871_v17  ;;  %v1904_v56 = vunpack.c.h.bf16 %v1076_v51  ;;  %v1078_v11 = vld [vmem:[%s14196_s1 + $0xce8] sm:$0xff] }
 0x567   :  { %7812 = vmatprep.mubr.msk.f32.mxu1 %vm1913_vm2, %v1876_v29  ;;  %v1908_v49 = vunpack.c.h.bf16 %v1078_v11 }
 0x569   :  { %v4434_v52 = vpop.f32.mrb[138].mxu1 }
 0x56a   :  { %v12807_v38 = vadd.f32 %v4434_v52, %v14350_v53  ;;  %v4436_v46 = vpop.f32.mrb[139].mxu1  ;;  %4698 = vmatmul.mubr.f32.gmra.mrb[100].mxu1 %v1875_v33  ;;  %v1080_v52 = vld [vmem:[%s14196_s1 + $0xcf8] sm:$0xff] }
 0x56b   :  { %7813 = vmatprep.mubr.msk.f32.mxu1 %vm1913_vm2, %v1880_v1  ;;  %v1903_v1 = vunpack.c.l.bf16 %v1076_v51 }
 0x56d   :  { %v4439_v6 = vpop.f32.mrb[140].mxu1 }
 0x56e   :  { %v12814_v20 = vadd.f32 %v4439_v6, %v14351_v42  ;;  %v4441_v31 = vpop.f32.mrb[141].mxu1  ;;  %4703 = vmatmul.mubr.f32.gmra.mrb[102].mxu1 %v1879_v47  ;;  %v1907_v47 = vunpack.c.l.bf16 %v1078_v11  ;;  %v1911_v42 = vunpack.c.l.bf16 %v1080_v52 }
 0x56f   :  { %7814 = vmatprep.mubr.msk.f32.mxu1 %vm1913_vm2, %v1884_v54  ;;  %v1912_v54 = vunpack.c.h.bf16 %v1080_v52 }
 0x571   :  { %v4444_v41 = vpop.f32.mrb[142].mxu1 }
 0x572   :  { %v12821_v43 = vadd.f32 %v4444_v41, %v14352_v0  ;;  %v4446_v35 = vpop.f32.mrb[143].mxu1  ;;  %4708 = vmatmul.mubr.f32.gmra.mrb[104].mxu1 %v1883_v34 }
 0x573   :  { %7815 = vmatprep.mubr.msk.f32.mxu1 %vm1913_vm2, %v1888_v23 }
 0x575   :  { %v12827_v28 = vpop.f32.mrb[0].mxu1 }
 0x576   :  { %v4451_v4 = vpop.f32.mrb[1].mxu1  ;;  %4713 = vmatmul.mubr.f32.gmra.mrb[106].mxu1 %v1887_v40 }
 0x577   :  { %7816 = vmatprep.mubr.msk.f32.mxu1 %vm1913_vm2, %v1892_v25 }
 0x579   :  { %v12833_v62 = vpop.f32.mrb[2].mxu1 }
 0x57a   :  { %v4456_v22 = vpop.f32.mrb[3].mxu1  ;;  %4718 = vmatmul.mubr.f32.gmra.mrb[108].mxu1 %v1891_v55 }
 0x57b   :  { %7817 = vmatprep.mubr.msk.f32.mxu1 %vm1913_vm2, %v1896_v15 }
 0x57d   :  { %v12839_v17 = vpop.f32.mrb[4].mxu1 }
 0x57e   :  { %v4461_v29 = vpop.f32.mrb[5].mxu1  ;;  %4723 = vmatmul.mubr.f32.gmra.mrb[110].mxu1 %v1895_v10 }
 0x57f   :  { %7818 = vmatprep.mubr.msk.f32.mxu1 %vm1913_vm2, %v1900_v58 }
 0x581   :  { %v12845_v36 = vpop.f32.mrb[6].mxu1 }
 0x582   :  { %v4466_v33 = vpop.f32.mrb[7].mxu1  ;;  %4728 = vmatmul.mubr.f32.gmra.mrb[112].mxu1 %v1899_v44 }
 0x583   :  { %7819 = vmatprep.mubr.msk.f32.mxu1 %vm1913_vm2, %v1904_v56 }
 0x585   :  { %v12851_v53 = vpop.f32.mrb[8].mxu1 }
 0x586   :  { %v4471_v46 = vpop.f32.mrb[9].mxu1  ;;  %4733 = vmatmul.mubr.f32.gmra.mrb[114].mxu1 %v1903_v1 }
 0x587   :  { %7820 = vmatprep.mubr.msk.f32.mxu1 %vm1913_vm2, %v1908_v49 }
 0x589   :  { %v12854_v18 = vpop.f32.mrb[10].mxu1 }
 0x58a   :  { %v4476_v6 = vpop.f32.mrb[11].mxu1  ;;  %4738 = vmatmul.mubr.f32.gmra.mrb[116].mxu1 %v1907_v47 }
 0x58b   :  { %7821 = vmatprep.mubr.msk.f32.mxu1 %vm1913_vm2, %v1912_v54 }
 0x58d   :  { %v12857_v31 = vpop.f32.mrb[12].mxu1 }
 0x58e   :  { %v4481_v34 = vpop.f32.mrb[13].mxu1  ;;  %4743 = vmatmul.mubr.f32.gmra.mrb[118].mxu1 %v1911_v42 }
 0x58f   :  { %v14356_v34 = vld [vmem:[#allocation14_spill] sm:$0xff] }
 0x591   :  { %v12859_v23 = vpop.f32.mrb[14].mxu1 }
 0x592   :  { %v4486_v14 = vpop.f32.mrb[15].mxu1 }
 0x595   :  { %v12861_v41 = vpop.f32.mrb[16].mxu1 }
 0x596   :  { %v4491_v0 = vpop.f32.mrb[17].mxu1 }
 0x599   :  { %v12863_v35 = vpop.f32.mrb[18].mxu1 }
 0x59a   :  { %v4496_v40 = vpop.f32.mrb[19].mxu1 }
 0x59d   :  { %v12865_v25 = vpop.f32.mrb[20].mxu1 }
 0x59e   :  { %v4501_v32 = vpop.f32.mrb[21].mxu1 }
 0x59f   :  { %v14357_v32 = vld [vmem:[#allocation50_spill] sm:$0xff] }
 0x5a1   :  { %v12867_v4 = vpop.f32.mrb[22].mxu1 }
 0x5a2   :  { %v4506_v55 = vpop.f32.mrb[23].mxu1 }
 0x5a5   :  { %v12869_v15 = vpop.f32.mrb[24].mxu1 }
 0x5a6   :  { %v4511_v8 = vpop.f32.mrb[25].mxu1 }
 0x5a9   :  { %v12871_v22 = vpop.f32.mrb[26].mxu1 }
 0x5aa   :  { %v4516_v10 = vpop.f32.mrb[27].mxu1 }
 0x5ad   :  { %v12873_v58 = vpop.f32.mrb[28].mxu1 }
 0x5ae   :  { %v4521_v51 = vpop.f32.mrb[29].mxu1 }
 0x5af   :  { %v14358_v51 = vld [vmem:[#allocation15_spill] sm:$0xff] }
 0x5b1   :  { %v12875_v29 = vpop.f32.mrb[30].mxu1 }
 0x5b2   :  { %v4526_v44 = vpop.f32.mrb[31].mxu1 }
 0x5b5   :  { %v12877_v56 = vpop.f32.mrb[32].mxu1 }
 0x5b6   :  { %v4531_v11 = vpop.f32.mrb[33].mxu1 }
 0x5b9   :  { %v12879_v33 = vpop.f32.mrb[34].mxu1 }
 0x5ba   :  { %v4536_v1 = vpop.f32.mrb[35].mxu1 }
 0x5bd   :  { %v12881_v49 = vpop.f32.mrb[36].mxu1 }
 0x5be   :  { %14353 = vst [vmem:[#allocation3_spill] sm:$0xff] %v12881_v49  ;;  %v4541_v52 = vpop.f32.mrb[37].mxu1 }
 0x5bf   :  { %v14359_v52 = vld [vmem:[#allocation51_spill] sm:$0xff] }
 0x5c1   :  { %v12883_v46 = vpop.f32.mrb[38].mxu1 }
 0x5c2   :  { %14354 = vst [vmem:[#allocation41_spill] sm:$0xff] %v12883_v46  ;;  %v4546_v47 = vpop.f32.mrb[39].mxu1 }
 0x5c5   :  { %v12885_v54 = vpop.f32.mrb[40].mxu1 }
 0x5c6   :  { %14355 = vst [vmem:[#allocation4_spill] sm:$0xff] %v12885_v54  ;;  %v4551_v6 = vpop.f32.mrb[41].mxu1 }
 0x5c9   :  { %v4554_v42 = vpop.f32.mrb[42].mxu1 }
 0x5ca   :  { %v9568_v14 = vpack.i.bf16 %v14356_v34, %v4554_v42  ;;  %v4556_v0 = vpop.f32.mrb[43].mxu1 }
 0x5cc   :  { %9569 = vrot.lane.b32.xlu1 %v9568_v14, %s9854_s18 }
 0x5cd   :  { %v4559_v40 = vpop.f32.mrb[44].mxu1 }
 0x5ce   :  { %v9573_v55 = vpack.i.bf16 %v14357_v32, %v4559_v40  ;;  %v4561_v8 = vpop.f32.mrb[45].mxu1 }
 0x5d0   :  { %9574 = vrot.lane.b32.xlu0 %v9573_v55, %s9854_s18 }
 0x5d1   :  { %v4564_v10 = vpop.f32.mrb[46].mxu1 }
 0x5d2   :  { %v9578_v44 = vpack.i.bf16 %v14358_v51, %v4564_v10  ;;  %v4566_v11 = vpop.f32.mrb[47].mxu1 }
 0x5d4   :  { %9579 = vrot.lane.b32.xlu1 %v9578_v44, %s9854_s18 }
 0x5d5   :  { %v4569_v1 = vpop.f32.mrb[48].mxu1 }
 0x5d6   :  { %v9583_v47 = vpack.i.bf16 %v14359_v52, %v4569_v1  ;;  %v4571_v6 = vpop.f32.mrb[49].mxu1 }
 0x5d8   :  { %9584 = vrot.lane.b32.xlu0 %v9583_v47, %s9854_s18 }
 0x5d9   :  { %v4574_v42 = vpop.f32.mrb[50].mxu1 }
 0x5da   :  { %v9588_v34 = vpack.i.bf16 %v12510_v60, %v4574_v42  ;;  %v4576_v14 = vpop.f32.mrb[51].mxu1 }
 0x5dc   :  { %9589 = vrot.lane.b32.xlu1 %v9588_v34, %s9854_s18 }
 0x5dd   :  { %v4579_v0 = vpop.f32.mrb[52].mxu1 }
 0x5de   :  { %v9593_v40 = vpack.i.bf16 %v12531_v63, %v4579_v0  ;;  %v4581_v32 = vpop.f32.mrb[53].mxu1 }
 0x5e0   :  { %9594 = vrot.lane.b32.xlu0 %v9593_v40, %s9854_s18  ;;  %v8136_v55 = vpop.f32.mrb[98].mxu0 }
 0x5e1   :  { %v4584_v8 = vpop.f32.mrb[54].mxu1  ;;  %v8137_v10 = vpop.f32.mrb[99].mxu0 }
 0x5e2   :  { %v9598_v51 = vpack.i.bf16 %v12550_v3, %v4584_v8  ;;  %v12900_v44 = vadd.f32 %v8137_v10, %v8136_v55  ;;  %v4586_v11 = vpop.f32.mrb[55].mxu1 }
 0x5e4   :  { %14360 = vst [vmem:[#allocation42_spill] sm:$0xff] %v12900_v44  ;;  %9599 = vrot.lane.b32.xlu1 %v9598_v51, %s9854_s18  ;;  %v8139_v60 = vpop.f32.mrb[100].mxu0 }
 0x5e5   :  { %v12903_v1 = vpop.f32.mrb[56].mxu1  ;;  %v8140_v52 = vpop.f32.mrb[101].mxu0 }
 0x5e6   :  { %v12907_v47 = vadd.f32 %v8140_v52, %v8139_v60  ;;  %v4591_v6 = vpop.f32.mrb[57].mxu1 }
 0x5e8   :  { %14361 = vst [vmem:[#allocation5_spill] sm:$0xff] %v12907_v47  ;;  %v8142_v42 = vpop.f32.mrb[102].mxu0 }
 0x5e9   :  { %v12909_v34 = vpop.f32.mrb[58].mxu1  ;;  %v8143_v14 = vpop.f32.mrb[103].mxu0 }
 0x5ea   :  { %v12913_v0 = vadd.f32 %v8143_v14, %v8142_v42  ;;  %v4596_v40 = vpop.f32.mrb[59].mxu1 }
 0x5ec   :  { %14362 = vst [vmem:[#allocation43_spill] sm:$0xff] %v12913_v0  ;;  %v8145_v32 = vpop.f32.mrb[104].mxu0 }
 0x5ed   :  { %v12915_v55 = vpop.f32.mrb[60].mxu1  ;;  %v8146_v8 = vpop.f32.mrb[105].mxu0 }
 0x5ee   :  { %v12919_v51 = vadd.f32 %v8146_v8, %v8145_v32  ;;  %v4601_v11 = vpop.f32.mrb[61].mxu1 }
 0x5f0   :  { %14363 = vst [vmem:[#allocation6_spill] sm:$0xff] %v12919_v51  ;;  %v8148_v60 = vpop.f32.mrb[106].mxu0 }
 0x5f1   :  { %v12921_v52 = vpop.f32.mrb[62].mxu1  ;;  %v8149_v6 = vpop.f32.mrb[107].mxu0 }
 0x5f2   :  { %v12925_v42 = vadd.f32 %v8149_v6, %v8148_v60  ;;  %v4606_v14 = vpop.f32.mrb[63].mxu1 }
 0x5f4   :  { %14364 = vst [vmem:[#allocation44_spill] sm:$0xff] %v12925_v42  ;;  %v8151_v40 = vpop.f32.mrb[108].mxu0 }
 0x5f5   :  { %v12927_v63 = vpop.f32.mrb[64].mxu1  ;;  %v8152_v0 = vpop.f32.mrb[109].mxu0 }
 0x5f6   :  { %v12931_v32 = vadd.f32 %v8152_v0, %v8151_v40  ;;  %v4611_v8 = vpop.f32.mrb[65].mxu1 }
 0x5f8   :  { %14365 = vst [vmem:[#allocation7_spill] sm:$0xff] %v12931_v32  ;;  %v8154_v11 = vpop.f32.mrb[110].mxu0 }
 0x5f9   :  { %v12933_v51 = vpop.f32.mrb[66].mxu1  ;;  %v8155_v47 = vpop.f32.mrb[111].mxu0 }
 0x5fa   :  { %v12937_v60 = vadd.f32 %v8155_v47, %v8154_v11  ;;  %v4616_v6 = vpop.f32.mrb[67].mxu1 }
 0x5fc   :  { %v8157_v14 = vpop.f32.mrb[112].mxu0 }
 0x5fd   :  { %v4619_v42 = vpop.f32.mrb[68].mxu1  ;;  %v8158_v44 = vpop.f32.mrb[113].mxu0 }
 0x5fe   :  { %v9603_v54 = vpack.i.bf16 %v12676_v37, %v4619_v42  ;;  %v12940_v46 = vadd.f32 %v8158_v44, %v8157_v14  ;;  %v4621_v0 = vpop.f32.mrb[69].mxu1 }
 0x600   :  { %9604 = vrot.lane.b32.xlu0 %v9603_v54, %s9855_s19  ;;  %v8160_v40 = vpop.f32.mrb[114].mxu0 }
 0x601   :  { %v4624_v8 = vpop.f32.mrb[70].mxu1  ;;  %v8161_v10 = vpop.f32.mrb[115].mxu0 }
 0x602   :  { %v9608_v32 = vpack.i.bf16 %v12691_v21, %v4624_v8  ;;  %v12944_v49 = vadd.f32 %v8161_v10, %v8160_v40  ;;  %v4626_v47 = vpop.f32.mrb[71].mxu1  ;;  %v5579_v21 = vld [vmem:[%s14197_s5 + $0x180] sm:$0xff]  ;;  %v5580_v10 = vld [vmem:[%s14197_s5 + $0x188] sm:$0xff] }
 0x603   :  { %v8879_v0 = vpack.c.bf16 %v5580_v10, %v5579_v21 }
 0x604   :  { %9609 = vrot.lane.b32.xlu1 %v9608_v32, %s9855_s19  ;;  %v8163_v11 = vpop.f32.mrb[116].mxu0 }
 0x605   :  { %v4629_v6 = vpop.f32.mrb[72].mxu1  ;;  %v8164_v3 = vpop.f32.mrb[117].mxu0  ;;  %8880 = vmatprep.subr.bf16.mxu0 %v8879_v0 }
 0x606   :  { %v9613_v37 = vpack.i.bf16 %v12706_v27, %v4629_v6  ;;  %v12948_v44 = vadd.f32 %v8164_v3, %v8163_v11  ;;  %v4631_v42 = vpop.f32.mrb[73].mxu1  ;;  %v5563_v27 = vld [vmem:[%s14197_s5 + $0x100] sm:$0xff]  ;;  %v5564_v3 = vld [vmem:[%s14197_s5 + $0x108] sm:$0xff] }
 0x607   :  { %v8881_v11 = vpack.c.bf16 %v5564_v3, %v5563_v27  ;;  %v5582_v42 = vld [vmem:[%s14197_s5 + $0x198] sm:$0xff] }
 0x608   :  { %9614 = vrot.lane.b32.xlu0 %v9613_v37, %s9855_s19  ;;  %v8166_v54 = vpop.f32.mrb[118].mxu0  ;;  %v5581_v37 = vld [vmem:[%s14197_s5 + $0x190] sm:$0xff] }
 0x609   :  { %v4634_v32 = vpop.f32.mrb[74].mxu1  ;;  %v8167_v14 = vpop.f32.mrb[119].mxu0  ;;  %8882 = vmatpush3.bf16.msra.mxu0 %v8881_v11  ;;  %v5567_v11 = vld [vmem:[%s14197_s5 + $0x120] sm:$0xff] }
 0x60a   :  { %v9618_v40 = vpack.i.bf16 %v12719_v59, %v4634_v32  ;;  %v12964_v8 = vadd.f32 %v8167_v14, %v8166_v54  ;;  %v4636_v47 = vpop.f32.mrb[75].mxu1  ;;  %v8883_v59 = vpack.c.bf16 %v5582_v42, %v5581_v37  ;;  %v5565_v54 = vld [vmem:[%s14197_s5 + $0x110] sm:$0xff]  ;;  %v5566_v32 = vld [vmem:[%s14197_s5 + $0x118] sm:$0xff]  ;;  %v5583_v14 = vld [vmem:[%s14197_s5 + $0x1a0] sm:$0xff] }
 0x60b   :  { %v5584_v47 = vld [vmem:[%s14197_s5 + $0x1a8] sm:$0xff] }
 0x60c   :  { %9619 = vrot.lane.b32.xlu1 %v9618_v40, %s9855_s19  ;;  %v8169_v6 = vpop.f32.mrb[120].mxu0  ;;  %v8885_v40 = vpack.c.bf16 %v5566_v32, %v5565_v54  ;;  %v5568_v37 = vld [vmem:[%s14197_s5 + $0x128] sm:$0xff]  ;;  %8884 = vmatprep.subr.bf16.mxu0 %v8883_v59  ;;  %v8887_v42 = vpack.c.bf16 %v5584_v47, %v5583_v14  ;;  %v5569_v59 = vld [vmem:[%s14197_s5 + $0x130] sm:$0xff]  ;;  %v5570_v14 = vld [vmem:[%s14197_s5 + $0x138] sm:$0xff] }
 0x60d   :  { %v4639_v21 = vpop.f32.mrb[76].mxu1  ;;  %v8170_v10 = vpop.f32.mrb[121].mxu0 }
 0x60e   :  { %v9623_v0 = vpack.i.bf16 %v12730_v50, %v4639_v21  ;;  %v12983_v27 = vadd.f32 %v8170_v10, %v8169_v6  ;;  %v4641_v3 = vpop.f32.mrb[77].mxu1  ;;  %v5585_v50 = vld [vmem:[%s14197_s5 + $0x1b0] sm:$0xff]  ;;  %v5586_v6 = vld [vmem:[%s14197_s5 + $0x1b8] sm:$0xff]  ;;  %8886 = vmatpush3.bf16.msra.mxu0 %v8885_v40  ;;  %v8889_v10 = vpack.c.bf16 %v5568_v37, %v5567_v11  ;;  %v5587_v40 = vld [vmem:[%s14197_s5 + $0x1c0] sm:$0xff]  ;;  %v8893_v37 = vpack.c.bf16 %v5570_v14, %v5569_v59 }
 0x60f   :  { %8888 = vmatprep.subr.bf16.mxu0 %v8887_v42  ;;  %v8891_v3 = vpack.c.bf16 %v5586_v6, %v5585_v50  ;;  %v5588_v11 = vld [vmem:[%s14197_s5 + $0x1c8] sm:$0xff] }
 0x610   :  { %14366 = vst [vmem:[#allocation45_spill] sm:$0xff] %v12983_v27  ;;  %9624 = vrot.lane.b32.xlu0 %v9623_v0, %s9855_s19  ;;  %v8172_v21 = vpop.f32.mrb[122].mxu0  ;;  %v8895_v50 = vpack.c.bf16 %v5588_v11, %v5587_v40  ;;  %v5572_v6 = vld [vmem:[%s14197_s5 + $0x148] sm:$0xff]  ;;  %v5591_v11 = vld [vmem:[%s14197_s5 + $0x1e0] sm:$0xff] }
 0x611   :  { %v4644_v54 = vpop.f32.mrb[78].mxu1  ;;  %v8173_v32 = vpop.f32.mrb[123].mxu0 }
 0x612   :  { %v9628_v47 = vpack.i.bf16 %v12737_v2, %v4644_v54  ;;  %v13008_v27 = vadd.f32 %v8173_v32, %v8172_v21  ;;  %v4646_v0 = vpop.f32.mrb[79].mxu1  ;;  %8890 = vmatpush3.bf16.msra.mxu0 %v8889_v10  ;;  %v5571_v2 = vld [vmem:[%s14197_s5 + $0x140] sm:$0xff]  ;;  %v5589_v32 = vld [vmem:[%s14197_s5 + $0x1d0] sm:$0xff]  ;;  %v5590_v10 = vld [vmem:[%s14197_s5 + $0x1d8] sm:$0xff] }
 0x613   :  { %8892 = vmatprep.subr.bf16.mxu0 %v8891_v3  ;;  %v8897_v3 = vpack.c.bf16 %v5572_v6, %v5571_v2  ;;  %v8899_v14 = vpack.c.bf16 %v5590_v10, %v5589_v32  ;;  %v5575_v6 = vld [vmem:[%s14197_s5 + $0x160] sm:$0xff] }
 0x614   :  { %9629 = vrot.lane.b32.xlu1 %v9628_v47, %s9855_s19  ;;  %v5574_v47 = vld [vmem:[%s14197_s5 + $0x158] sm:$0xff] }
 0x615   :  { %v4649_v42 = vpop.f32.mrb[80].mxu1 }
 0x616   :  { %v9633_v21 = vpack.i.bf16 %v12744_v61, %v4649_v42  ;;  %v4651_v54 = vpop.f32.mrb[81].mxu1  ;;  %8894 = vmatpush3.bf16.msra.mxu0 %v8893_v37  ;;  %v5573_v61 = vld [vmem:[%s14197_s5 + $0x150] sm:$0xff]  ;;  %v5592_v37 = vld [vmem:[%s14197_s5 + $0x1e8] sm:$0xff] }
 0x617   :  { %8896 = vmatprep.subr.bf16.mxu0 %v8895_v50  ;;  %v8901_v42 = vpack.c.bf16 %v5574_v47, %v5573_v61  ;;  %v8903_v2 = vpack.c.bf16 %v5592_v37, %v5591_v11  ;;  %v5594_v61 = vld [vmem:[%s14197_s5 + $0x1f8] sm:$0xff] }
 0x618   :  { %9634 = vrot.lane.b32.xlu0 %v9633_v21, %s9855_s19 }
 0x619   :  { %v4654_v59 = vpop.f32.mrb[82].mxu1 }
 0x61a   :  { %v9653_v0 = vpack.i.bf16 %v12751_v19, %v4654_v59  ;;  %v4656_v40 = vpop.f32.mrb[83].mxu1  ;;  %8898 = vmatpush3.bf16.msra.mxu0 %v8897_v3  ;;  %v5576_v19 = vld [vmem:[%s14197_s5 + $0x168] sm:$0xff] }
 0x61b   :  { %8900 = vmatprep.subr.bf16.mxu0 %v8899_v14  ;;  %v8905_v32 = vpack.c.bf16 %v5576_v19, %v5575_v6  ;;  %v5593_v14 = vld [vmem:[%s14197_s5 + $0x1f0] sm:$0xff] }
 0x61c   :  { %v8907_v40 = vpack.c.bf16 %v5594_v61, %v5593_v14 }
 0x61d   :  { %v4659_v50 = vpop.f32.mrb[84].mxu1 }
 0x61e   :  { %v9673_v21 = vpack.i.bf16 %v12758_v16, %v4659_v50  ;;  %v4661_v54 = vpop.f32.mrb[85].mxu1  ;;  %8902 = vmatpush3.bf16.msra.mxu0 %v8901_v42  ;;  %v5577_v16 = vld [vmem:[%s14197_s5 + $0x170] sm:$0xff] }
 0x61f   :  { %8904 = vmatprep.subr.bf16.mxu0 %v8903_v2 }
 0x621   :  { %v4664_v10 = vpop.f32.mrb[86].mxu1 }
 0x622   :  { %v9693_v3 = vpack.i.bf16 %v12765_v24, %v4664_v10  ;;  %v4666_v59 = vpop.f32.mrb[87].mxu1  ;;  %8906 = vmatpush3.bf16.msra.mxu0 %v8905_v32  ;;  %v5578_v24 = vld [vmem:[%s14197_s5 + $0x178] sm:$0xff] }
 0x623   :  { %v8909_v42 = vpack.c.bf16 %v5578_v24, %v5577_v16  ;;  %8908 = vmatprep.subr.bf16.mxu0 %v8907_v40  ;;  %v14367_v24 = vpack.i.bf16 %v12569_v30, %v12903_v1 }
 0x625   :  { %v4669_v47 = vpop.f32.mrb[88].mxu1 }
 0x626   :  { %v9713_v11 = vpack.i.bf16 %v12772_v12, %v4669_v47  ;;  %v4671_v37 = vpop.f32.mrb[89].mxu1  ;;  %8910 = vmatpush3.bf16.msra.mxu0 %v8909_v42 }
 0x629   :  { %v4674_v50 = vpop.f32.mrb[90].mxu1 }
 0x62a   :  { %v9733_v2 = vpack.i.bf16 %v12779_v39, %v4674_v50  ;;  %v4676_v6 = vpop.f32.mrb[91].mxu1 }
 0x62d   :  { %v13066_v19 = vpop.f32.mrb[92].mxu1 }
 0x62e   :  { %v9753_v54 = vpack.i.bf16 %v12786_v5, %v13066_v19  ;;  %v4681_v32 = vpop.f32.mrb[93].mxu1 }
 0x631   :  { %v4684_v10 = vpop.f32.mrb[94].mxu1 }
 0x632   :  { %v9638_v59 = vpack.i.bf16 %v12793_v9, %v4684_v10  ;;  %v4686_v14 = vpop.f32.mrb[95].mxu1 }
 0x634   :  { %9639 = vrot.lane.b32.xlu1 %v9638_v59, %s9856_s22 }
 0x635   :  { %v4689_v12 = vpop.f32.mrb[96].mxu1 }
 0x636   :  { %v9643_v61 = vpack.i.bf16 %v12800_v13, %v4689_v12  ;;  %v4691_v47 = vpop.f32.mrb[97].mxu1 }
 0x638   :  { %9654 = vrot.lane.b32.xlu1 %v9653_v0, %s9855_s19  ;;  %9644 = vrot.lane.b32.xlu0 %v9643_v61, %s9856_s22  ;;  %v14368_v0 = vpack.i.bf16 %v12588_v57, %v12909_v34 }
 0x639   :  { %v4694_v39 = vpop.f32.mrb[98].mxu1 }
 0x63a   :  { %v9658_v40 = vpack.i.bf16 %v12807_v38, %v4694_v39  ;;  %v4696_v16 = vpop.f32.mrb[99].mxu1 }
 0x63c   :  { %9649 = vrot.lane.b32.xlu0 %v14367_v24, %s9854_s18  ;;  %9659 = vrot.lane.b32.xlu1 %v9658_v40, %s9856_s22 }
 0x63d   :  { %v4699_v9 = vpop.f32.mrb[100].mxu1 }
 0x63e   :  { %v9668_v37 = vpack.i.bf16 %v12814_v20, %v4699_v9  ;;  %v4701_v13 = vpop.f32.mrb[101].mxu1 }
 0x640   :  { %9664 = vrot.lane.b32.xlu1 %v14368_v0, %s9854_s18  ;;  %9669 = vrot.lane.b32.xlu0 %v9668_v37, %s9856_s22 }
 0x641   :  { %v4704_v38 = vpop.f32.mrb[102].mxu1 }
 0x642   :  { %v9678_v42 = vpack.i.bf16 %v12821_v43, %v4704_v38  ;;  %v4706_v50 = vpop.f32.mrb[103].mxu1  ;;  %v14369_v43 = vpack.i.bf16 %v12607_v7, %v12915_v55 }
 0x644   :  { %9674 = vrot.lane.b32.xlu0 %v9673_v21, %s9855_s19  ;;  %9679 = vrot.lane.b32.xlu1 %v9678_v42, %s9856_s22 }
 0x645   :  { %v4709_v30 = vpop.f32.mrb[104].mxu1 }
 0x646   :  { %v9683_v1 = vpack.i.bf16 %v12827_v28, %v4709_v30  ;;  %v4711_v20 = vpop.f32.mrb[105].mxu1 }
 0x648   :  { %9684 = vrot.lane.b32.xlu0 %v9683_v1, %s9856_s22  ;;  %9694 = vrot.lane.b32.xlu1 %v9693_v3, %s9855_s19  ;;  %v14370_v3 = vpack.i.bf16 %v12626_v26, %v12921_v52  ;;  %v14373_v1 = vld [vmem:[#allocation18_spill] sm:$0xff] }
 0x649   :  { %v4714_v57 = vpop.f32.mrb[106].mxu1 }
 0x64a   :  { %v9698_v34 = vpack.i.bf16 %v12833_v62, %v4714_v57  ;;  %v4716_v6 = vpop.f32.mrb[107].mxu1 }
 0x64c   :  { %9689 = vrot.lane.b32.xlu0 %v14369_v43, %s9854_s18  ;;  %9699 = vrot.lane.b32.xlu1 %v9698_v34, %s9856_s22 }
 0x64d   :  { %v4719_v21 = vpop.f32.mrb[108].mxu1 }
 0x64e   :  { %v9708_v32 = vpack.i.bf16 %v12839_v17, %v4719_v21  ;;  %v4721_v28 = vpop.f32.mrb[109].mxu1 }
 0x650   :  { %9709 = vrot.lane.b32.xlu0 %v9708_v32, %s9856_s22  ;;  %9704 = vrot.lane.b32.xlu1 %v14370_v3, %s9854_s18 }
 0x651   :  { %v4724_v62 = vpop.f32.mrb[110].mxu1 }
 0x652   :  { %v9718_v10 = vpack.i.bf16 %v12845_v36, %v4724_v62  ;;  %v4726_v59 = vpop.f32.mrb[111].mxu1  ;;  %v14371_v36 = vpack.i.bf16 %v12645_v48, %v12927_v63  ;;  %v9570_v48 = vpop.permute.xlu1 %9569 }
 0x653   :  { %v9571_v37 = vunpack.i.l.bf16 %v9570_v48 }
 0x654   :  { %9714 = vrot.lane.b32.xlu0 %v9713_v11, %s9855_s19  ;;  %9719 = vrot.lane.b32.xlu1 %v9718_v10, %s9856_s22  ;;  %v14374_v10 = vld [vmem:[#allocation20_spill] sm:$0xff] }
 0x655   :  { %v4729_v7 = vpop.f32.mrb[112].mxu1  ;;  %v5492_v6 = vsel %vm5372_vm3, %v12861_v41, %v9571_v37 }
 0x656   :  { %v9723_v55 = vpack.i.bf16 %v12851_v53, %v4729_v7  ;;  %v4731_v17 = vpop.f32.mrb[113].mxu1  ;;  %v9580_v63 = vpop.permute.xlu1 %9579 }
 0x657   :  { %v9582_v17 = vunpack.i.h.bf16 %v9580_v63 }
 0x658   :  { %9724 = vrot.lane.b32.xlu0 %v9723_v55, %s9856_s22  ;;  %9734 = vrot.lane.b32.xlu1 %v9733_v2, %s9855_s19  ;;  %v14372_v2 = vpack.i.bf16 %v12662_v45, %v12933_v51 }
 0x659   :  { %v4734_v14 = vpop.f32.mrb[114].mxu1 }
 0x65a   :  { %v9738_v26 = vpack.i.bf16 %v12854_v18, %v4734_v14  ;;  %v4736_v52 = vpop.f32.mrb[115].mxu1  ;;  %v13131_v40 = vpop.permute.xlu1 %9589  ;;  %v9581_v14 = vunpack.i.l.bf16 %v9580_v63 }
 0x65c   :  { %9729 = vrot.lane.b32.xlu0 %v14371_v36, %s9854_s18  ;;  %9739 = vrot.lane.b32.xlu1 %v9738_v26, %s9856_s22 }
 0x65d   :  { %v4739_v11 = vpop.f32.mrb[116].mxu1 }
 0x65e   :  { %v9748_v12 = vpack.i.bf16 %v12857_v31, %v4739_v11  ;;  %v4741_v53 = vpop.f32.mrb[117].mxu1  ;;  %v9575_v31 = vpop.permute.xlu0 %9574 }
 0x65f   :  { %v13135_v51 = vpop.permute.xlu1 %9599  ;;  %v9577_v38 = vunpack.i.h.bf16 %v9575_v31  ;;  %v9576_v42 = vunpack.i.l.bf16 %v9575_v31  ;;  %v14375_v31 = vld [vmem:[#allocation22_spill] sm:$0xff] }
 0x660   :  { %9749 = vrot.lane.b32.xlu0 %v9748_v12, %s9856_s22  ;;  %9744 = vrot.lane.b32.xlu1 %v14372_v2, %s9854_s18  ;;  %v5455_v63 = vsel %vm5372_vm3, %v14375_v31, %v9582_v17 }
 0x661   :  { %v4744_v18 = vpop.f32.mrb[118].mxu1  ;;  %v5454_v59 = vsel %vm5372_vm3, %v14374_v10, %v9577_v38  ;;  %v5493_v41 = vsel %vm5372_vm3, %v12863_v35, %v9576_v42  ;;  %v14376_v42 = vld [vmem:[#allocation24_spill] sm:$0xff] }
 0x662   :  { %v9758_v61 = vpack.i.bf16 %v12859_v23, %v4744_v18  ;;  %v4746_v47 = vpop.f32.mrb[119].mxu1  ;;  %v13129_v39 = vpop.permute.xlu0 %9584 }
 0x663   :  { %v9586_v47 = vunpack.i.l.bf16 %v13129_v39 }
 0x664   :  { %9754 = vrot.lane.b32.xlu0 %v9753_v54, %s9855_s19  ;;  %9759 = vrot.lane.b32.xlu1 %v9758_v61, %s9856_s22  ;;  %v9572_v54 = vunpack.i.h.bf16 %v9570_v48  ;;  %v9587_v61 = vunpack.i.h.bf16 %v13129_v39 }
 0x666   :  { %v13133_v45 = vpop.permute.xlu0 %9594  ;;  %v5453_v20 = vsel %vm5372_vm3, %v14373_v1, %v9572_v54 }
 0x667   :  { %v9596_v10 = vunpack.i.l.bf16 %v13133_v45 }
 0x672   :  { %v9605_v23 = vpop.permute.xlu0 %9604 }
 0x673   :  { %v9607_v13 = vunpack.i.h.bf16 %v9605_v23  ;;  %v9606_v0 = vunpack.i.l.bf16 %v9605_v23 }
 0x675   :  { %v5466_v43 = vsel %vm5386_vm4, %v5453_v20, %v9607_v13  ;;  %v5505_v28 = vsel %vm5386_vm4, %v5492_v6, %v9606_v0 }
 0x676   :  { %v9610_v16 = vpop.permute.xlu1 %9609 }
 0x677   :  { %v9612_v21 = vunpack.i.h.bf16 %v9610_v16  ;;  %v9611_v32 = vunpack.i.l.bf16 %v9610_v16 }
 0x679   :  { %v5467_v36 = vsel %vm5386_vm4, %v5454_v59, %v9612_v21  ;;  %v5506_v53 = vsel %vm5386_vm4, %v5493_v41, %v9611_v32 }
 0x67a   :  { %v9615_v24 = vpop.permute.xlu0 %9614 }
 0x67b   :  { %v9617_v11 = vunpack.i.h.bf16 %v9615_v24  ;;  %v9616_v12 = vunpack.i.l.bf16 %v9615_v24  ;;  %v5494_v24 = vsel %vm5372_vm3, %v12865_v25, %v9581_v14  ;;  %v5495_v25 = vsel %vm5372_vm3, %v12867_v4, %v9586_v47 }
 0x67c   :  { %v9597_v4 = vunpack.i.h.bf16 %v13133_v45  ;;  %v9602_v47 = vunpack.i.h.bf16 %v13135_v51 }
 0x67d   :  { %v5468_v54 = vsel %vm5386_vm4, %v5455_v63, %v9617_v11  ;;  %v5507_v39 = vsel %vm5386_vm4, %v5494_v24, %v9616_v12 }
 0x67e   :  { %v13137_v9 = vpop.permute.xlu1 %9619 }
 0x67f   :  { %v9622_v37 = vunpack.i.h.bf16 %v13137_v9  ;;  %v9621_v13 = vunpack.i.l.bf16 %v13137_v9  ;;  %v9591_v9 = vunpack.i.l.bf16 %v13131_v40 }
 0x682   :  { %v13139_v5 = vpop.permute.xlu0 %9624 }
 0x683   :  { %v9627_v21 = vunpack.i.h.bf16 %v13139_v5  ;;  %v9626_v32 = vunpack.i.l.bf16 %v13139_v5  ;;  %v5496_v5 = vsel %vm5372_vm3, %v12869_v15, %v9591_v9  ;;  %v5497_v15 = vsel %vm5372_vm3, %v12871_v22, %v9596_v10 }
 0x685   :  { %v5509_v45 = vsel %vm5386_vm4, %v5496_v5, %v9626_v32 }
 0x686   :  { %v13141_v19 = vpop.permute.xlu1 %9629 }
 0x68a   :  { %v13143_v50 = vpop.permute.xlu0 %9634 }
 0x6a6   :  { %v9640_v30 = vpop.permute.xlu1 %9639 }
 0x6a7   :  { %v9642_v57 = vunpack.i.h.bf16 %v9640_v30  ;;  %v9641_v34 = vunpack.i.l.bf16 %v9640_v30  ;;  %v5456_v30 = vsel %vm5372_vm3, %v14376_v42, %v9587_v61 }
 0x6a9   :  { %v5479_v3 = vsel %vm5400_vm5, %v5466_v43, %v9642_v57  ;;  %v5518_v62 = vsel %vm5400_vm5, %v5505_v28, %v9641_v34  ;;  %v9592_v57 = vunpack.i.h.bf16 %v13131_v40  ;;  %v5469_v43 = vsel %vm5386_vm4, %v5456_v30, %v9622_v37 }
 0x6aa   :  { %v13155_v7 = vpop.permute.xlu1 %9654  ;;  %5796 = vmatprep.mubr.f32.mxu0 %v5518_v62  ;;  %v9645_v55 = vpop.permute.xlu0 %9644  ;;  %v5508_v28 = vsel %vm5386_vm4, %v5495_v25, %v9621_v13  ;;  %v14380_v25 = vld [vmem:[#allocation32_spill] sm:$0xff] }
 0x6ab   :  { %v9647_v26 = vunpack.i.h.bf16 %v9645_v55  ;;  %v9646_v52 = vunpack.i.l.bf16 %v9645_v55  ;;  %5797 = vmatmul.mubr.f32.vlgmr.msra.gmra.mrb[124].mxu0 %v5479_v3  ;;  %v14377_v55 = vld [vmem:[#allocation26_spill] sm:$0xff] }
 0x6ac   :  { %v5457_v41 = vsel %vm5372_vm3, %v14377_v55, %v9592_v57 }
 0x6ad   :  { %v5519_v2 = vsel %vm5400_vm5, %v5506_v53, %v9646_v52  ;;  %v5480_v18 = vsel %vm5400_vm5, %v5467_v36, %v9647_v26  ;;  %v5470_v26 = vsel %vm5386_vm4, %v5457_v41, %v9627_v21  ;;  %v9632_v52 = vunpack.i.h.bf16 %v13141_v19  ;;  %v14378_v53 = vld [vmem:[#allocation28_spill] sm:$0xff] }
 0x6ae   :  { %v13165_v35 = vpop.permute.xlu0 %9649  ;;  %5801 = vmatprep.mubr.f32.mxu0 %v5519_v2  ;;  %v9660_v48 = vpop.permute.xlu1 %9659  ;;  %v9631_v36 = vunpack.i.l.bf16 %v13141_v19  ;;  %v5458_v2 = vsel %vm5372_vm3, %v14378_v53, %v9597_v4  ;;  %v9601_v19 = vunpack.i.l.bf16 %v13135_v51  ;;  %v9656_v21 = vunpack.i.l.bf16 %v13155_v7  ;;  %v14382_v53 = vld [vmem:[#allocation36_spill] sm:$0xff] }
 0x6af   :  { %v9662_v23 = vunpack.i.h.bf16 %v9660_v48  ;;  %v9661_v16 = vunpack.i.l.bf16 %v9660_v48  ;;  %5802 = vmatmul.mubr.f32.gmra.mrb[126].mxu0 %v5480_v18  ;;  %v5471_v63 = vsel %vm5386_vm4, %v5458_v2, %v9632_v52  ;;  %v9651_v37 = vunpack.i.l.bf16 %v13165_v35 }
 0x6b0   :  { %v5510_v24 = vsel %vm5386_vm4, %v5497_v15, %v9631_v36 }
 0x6b1   :  { %v5520_v0 = vsel %vm5400_vm5, %v5507_v39, %v9661_v16  ;;  %v5481_v38 = vsel %vm5400_vm5, %v5468_v54, %v9662_v23  ;;  %v9637_v23 = vunpack.i.h.bf16 %v13143_v50  ;;  %v9636_v16 = vunpack.i.l.bf16 %v13143_v50 }
 0x6b2   :  { %v13179_v1 = vpop.permute.xlu1 %9664  ;;  %5806 = vmatprep.mubr.f32.mxu0 %v5520_v0  ;;  %v9670_v20 = vpop.permute.xlu0 %9669  ;;  %v9652_v54 = vunpack.i.h.bf16 %v13165_v35  ;;  %v14379_v0 = vld [vmem:[#allocation30_spill] sm:$0xff]  ;;  %v5498_v50 = vsel %vm5372_vm3, %v12873_v58, %v9601_v19 }
 0x6b3   :  { %v9672_v34 = vunpack.i.h.bf16 %v9670_v20  ;;  %v9671_v6 = vunpack.i.l.bf16 %v9670_v20  ;;  %5807 = vmatmul.mubr.f32.gmra.mrb[128].mxu0 %v5481_v38  ;;  %v5459_v38 = vsel %vm5372_vm3, %v14379_v0, %v9602_v47  ;;  %v5511_v35 = vsel %vm5386_vm4, %v5498_v50, %v9636_v16 }
 0x6b4   :  { %v5472_v20 = vsel %vm5386_vm4, %v5459_v38, %v9637_v23  ;;  %v5460_v57 = vsel %vm5372_vm3, %v14380_v25, %v9652_v54 }
 0x6b5   :  { %v5521_v3 = vsel %vm5400_vm5, %v5508_v28, %v9671_v6  ;;  %v5482_v62 = vsel %vm5400_vm5, %v5469_v43, %v9672_v34  ;;  %v5499_v6 = vsel %vm5372_vm3, %v12875_v29, %v9651_v37  ;;  %v9657_v43 = vunpack.i.h.bf16 %v13155_v7 }
 0x6b6   :  { %v13193_v40 = vpop.permute.xlu0 %9674  ;;  %5811 = vmatprep.mubr.f32.mxu0 %v5521_v3  ;;  %v9680_v59 = vpop.permute.xlu1 %9679  ;;  %v9667_v28 = vunpack.i.h.bf16 %v13179_v1  ;;  %v9666_v3 = vunpack.i.l.bf16 %v13179_v1  ;;  %v5512_v29 = vsel %vm5386_vm4, %v5499_v6, %v9656_v21  ;;  %v14381_v1 = vld [vmem:[#allocation34_spill] sm:$0xff] }
 0x6b7   :  { %v9682_v17 = vunpack.i.h.bf16 %v9680_v59  ;;  %v9681_v14 = vunpack.i.l.bf16 %v9680_v59  ;;  %5812 = vmatmul.mubr.f32.gmra.mrb[130].mxu0 %v5482_v62  ;;  %v9677_v10 = vunpack.i.h.bf16 %v13193_v40  ;;  %v9676_v59 = vunpack.i.l.bf16 %v13193_v40 }
 0x6b8   :  { %v5473_v55 = vsel %vm5386_vm4, %v5460_v57, %v9657_v43  ;;  %v5461_v52 = vsel %vm5372_vm3, %v14381_v1, %v9667_v28  ;;  %v5500_v40 = vsel %vm5372_vm3, %v12877_v56, %v9666_v3 }
 0x6b9   :  { %v5522_v11 = vsel %vm5400_vm5, %v5509_v45, %v9681_v14  ;;  %v5483_v12 = vsel %vm5400_vm5, %v5470_v26, %v9682_v17 }
 0x6ba   :  { %v9685_v18 = vpop.permute.xlu0 %9684  ;;  %v13207_v61 = vpop.permute.xlu1 %9694  ;;  %5816 = vmatprep.mubr.f32.mxu0 %v5522_v11  ;;  %v5474_v11 = vsel %vm5386_vm4, %v5461_v52, %v9677_v10 }
 0x6bb   :  { %v9687_v48 = vunpack.i.h.bf16 %v9685_v18  ;;  %v9686_v31 = vunpack.i.l.bf16 %v9685_v18  ;;  %5817 = vmatmul.mubr.f32.gmra.mrb[132].mxu0 %v5483_v12  ;;  %v5513_v12 = vsel %vm5386_vm4, %v5500_v40, %v9676_v59  ;;  %v9697_v19 = vunpack.i.h.bf16 %v13207_v61  ;;  %v14387_v40 = vld [vmem:[#allocation13_spill] sm:$0xff] }
 0x6bd   :  { %v5523_v22 = vsel %vm5400_vm5, %v5510_v24, %v9686_v31  ;;  %v5484_v13 = vsel %vm5400_vm5, %v5471_v63, %v9687_v48  ;;  %v9696_v48 = vunpack.i.l.bf16 %v13207_v61 }
 0x6be   :  { %v9690_v51 = vpop.permute.xlu0 %9689  ;;  %v9700_v39 = vpop.permute.xlu1 %9699  ;;  %5821 = vmatprep.mubr.f32.mxu0 %v5523_v22 }
 0x6bf   :  { %v9702_v42 = vunpack.i.h.bf16 %v9700_v39  ;;  %v9701_v30 = vunpack.i.l.bf16 %v9700_v39  ;;  %5822 = vmatmul.mubr.f32.gmra.mrb[134].mxu0 %v5484_v13  ;;  %v9692_v41 = vunpack.i.h.bf16 %v9690_v51  ;;  %v9691_v7 = vunpack.i.l.bf16 %v9690_v51  ;;  %v14383_v39 = vld [vmem:[#allocation38_spill] sm:$0xff] }
 0x6c1   :  { %v5524_v9 = vsel %vm5400_vm5, %v5511_v35, %v9701_v30  ;;  %v5485_v34 = vsel %vm5400_vm5, %v5472_v20, %v9702_v42  ;;  %v5462_v2 = vsel %vm5372_vm3, %v14382_v53, %v9692_v41  ;;  %v5501_v47 = vsel %vm5372_vm3, %v12879_v33, %v9691_v7  ;;  %v14384_v42 = vld [vmem:[#allocation3_spill] sm:$0xff] }
 0x6c2   :  { %v9710_v32 = vpop.permute.xlu0 %9709  ;;  %v9705_v58 = vpop.permute.xlu1 %9704  ;;  %5826 = vmatprep.mubr.f32.mxu0 %v5524_v9  ;;  %v5514_v22 = vsel %vm5386_vm4, %v5501_v47, %v9696_v48  ;;  %v5475_v13 = vsel %vm5386_vm4, %v5462_v2, %v9697_v19  ;;  %v13288_v19 = vld [vmem:[%s14198_s6] ss:$0 sm:$0xff] }
 0x6c3   :  { %v9712_v62 = vunpack.i.h.bf16 %v9710_v32  ;;  %v9711_v4 = vunpack.i.l.bf16 %v9710_v32  ;;  %5827 = vmatmul.mubr.f32.gmra.mrb[136].mxu0 %v5485_v34  ;;  %v9707_v31 = vunpack.i.h.bf16 %v9705_v58  ;;  %v9706_v56 = vunpack.i.l.bf16 %v9705_v58  ;;  %v14385_v34 = vld [vmem:[#allocation40_spill] sm:$0xff]  ;;  %v14386_v32 = vld [vmem:[#allocation41_spill] sm:$0xff] }
 0x6c5   :  { %v5525_v17 = vsel %vm5400_vm5, %v5512_v29, %v9711_v4  ;;  %v5486_v14 = vsel %vm5400_vm5, %v5473_v55, %v9712_v62  ;;  %v5463_v61 = vsel %vm5372_vm3, %v14383_v39, %v9707_v31  ;;  %v5502_v30 = vsel %vm5372_vm3, %v14384_v42, %v9706_v56  ;;  %v14389_v56 = vld [vmem:[#allocation42_spill] sm:$0xff] }
 0x6c6   :  { %v9715_v5 = vpop.permute.xlu0 %9714  ;;  %v9720_v26 = vpop.permute.xlu1 %9719  ;;  %5831 = vmatprep.mubr.f32.mxu0 %v5525_v17 }
 0x6c7   :  { %v9722_v36 = vunpack.i.h.bf16 %v9720_v26  ;;  %v9721_v45 = vunpack.i.l.bf16 %v9720_v26  ;;  %5832 = vmatmul.mubr.f32.gmra.mrb[138].mxu0 %v5486_v14  ;;  %v9717_v54 = vunpack.i.h.bf16 %v9715_v5  ;;  %v9716_v37 = vunpack.i.l.bf16 %v9715_v5 }
 0x6c9   :  { %v5526_v18 = vsel %vm5400_vm5, %v5513_v12, %v9721_v45  ;;  %v5487_v15 = vsel %vm5400_vm5, %v5474_v11, %v9722_v36  ;;  %v5476_v57 = vsel %vm5386_vm4, %v5463_v61, %v9717_v54  ;;  %v5515_v9 = vsel %vm5386_vm4, %v5502_v30, %v9716_v37  ;;  %v14388_v12 = vld [vmem:[#allocation4_spill] sm:$0xff]  ;;  %v14390_v37 = vld [vmem:[#allocation5_spill] sm:$0xff]  ;;  %v14391_v61 = vld [vmem:[#allocation43_spill] sm:$0xff] }
 0x6ca   :  { %v9725_v63 = vpop.permute.xlu0 %9724  ;;  %v9735_v23 = vpop.permute.xlu1 %9734  ;;  %5836 = vmatprep.mubr.f32.mxu0 %v5526_v18 }
 0x6cb   :  { %v9727_v16 = vunpack.i.h.bf16 %v9725_v63  ;;  %v9726_v24 = vunpack.i.l.bf16 %v9725_v63  ;;  %5837 = vmatmul.mubr.f32.gmra.mrb[140].mxu0 %v5487_v15  ;;  %v9737_v28 = vunpack.i.h.bf16 %v9735_v23  ;;  %v9736_v3 = vunpack.i.l.bf16 %v9735_v23 }
 0x6cc   :  { %v5669_v63 = vadd.f32 %v14389_v56, %v13288_v19 }
 0x6cd   :  { %v5527_v33 = vsel %vm5400_vm5, %v5514_v22, %v9726_v24  ;;  %v5488_v51 = vsel %vm5400_vm5, %v5475_v13, %v9727_v16  ;;  %v5674_v22 = vadd.f32 %v14390_v37, %v13288_v19 }
 0x6ce   :  { %v9730_v0 = vpop.permute.xlu0 %9729  ;;  %v9740_v38 = vpop.permute.xlu1 %9739  ;;  %5841 = vmatprep.mubr.f32.mxu0 %v5527_v33 }
 0x6cf   :  { %v9732_v50 = vunpack.i.h.bf16 %v9730_v0  ;;  %v9731_v20 = vunpack.i.l.bf16 %v9730_v0  ;;  %v9742_v35 = vunpack.i.h.bf16 %v9740_v38  ;;  %v9741_v25 = vunpack.i.l.bf16 %v9740_v38  ;;  %5842 = vmatmul.mubr.f32.gmra.mrb[142].mxu0 %v5488_v51 }
 0x6d0   :  { %v5679_v0 = vadd.f32 %v14391_v61, %v13288_v19 }
 0x6d1   :  { %v5464_v6 = vsel %vm5372_vm3, %v14385_v34, %v9732_v50  ;;  %v5528_v43 = vsel %vm5400_vm5, %v5515_v9, %v9741_v25  ;;  %v5489_v21 = vsel %vm5400_vm5, %v5476_v57, %v9742_v35  ;;  %v5503_v58 = vsel %vm5372_vm3, %v14386_v32, %v9731_v20  ;;  %v14392_v57 = vld [vmem:[#allocation6_spill] sm:$0xff] }
 0x6d2   :  { %v9750_v62 = vpop.permute.xlu0 %9749  ;;  %v9745_v4 = vpop.permute.xlu1 %9744  ;;  %5846 = vmatprep.mubr.f32.mxu0 %v5528_v43  ;;  %v5516_v41 = vsel %vm5386_vm4, %v5503_v58, %v9736_v3  ;;  %v5477_v7 = vsel %vm5386_vm4, %v5464_v6, %v9737_v28  ;;  %v5684_v9 = vadd.f32 %v14392_v57, %v13288_v19  ;;  %v14393_v28 = vld [vmem:[#allocation44_spill] sm:$0xff]  ;;  %v13349_v57 = vld [vmem:[%s14199_s2] sm:$0xff]  }
 0x6d3   :  { %v9752_v10 = vunpack.i.h.bf16 %v9750_v62  ;;  %v9751_v59 = vunpack.i.l.bf16 %v9750_v62  ;;  %5847 = vmatmul.mubr.f32.gmra.mrb[144].mxu0 %v5489_v21  ;;  %v9747_v29 = vunpack.i.h.bf16 %v9745_v4  ;;  %v9746_v55 = vunpack.i.l.bf16 %v9745_v4 }
 0x6d4   :  { %v5689_v3 = vadd.f32 %v14393_v28, %v13288_v19 }
 0x6d5   :  { %v5529_v17 = vsel %vm5400_vm5, %v5516_v41, %v9751_v59  ;;  %v5490_v14 = vsel %vm5400_vm5, %v5477_v7, %v9752_v10  ;;  %v5465_v11 = vsel %vm5372_vm3, %v14387_v40, %v9747_v29  ;;  %v5504_v53 = vsel %vm5372_vm3, %v14388_v12, %v9746_v55  ;;  %v14394_v41 = vld [vmem:[#allocation7_spill] sm:$0xff] }
 0x6d6   :  { %v9755_v5 = vpop.permute.xlu0 %9754  ;;  %v9760_v26 = vpop.permute.xlu1 %9759  ;;  %5851 = vmatprep.mubr.f32.mxu0 %v5529_v17  ;;  %v5694_v7 = vadd.f32 %v14394_v41, %v13288_v19  ;;  %v5729_v41 = vadd.f32 %v13008_v27, %v13288_v19 }
 0x6d7   :  { %v9757_v1 = vunpack.i.h.bf16 %v9755_v5  ;;  %v9756_v52 = vunpack.i.l.bf16 %v9755_v5  ;;  %v9762_v36 = vunpack.i.h.bf16 %v9760_v26  ;;  %v9761_v45 = vunpack.i.l.bf16 %v9760_v26  ;;  %5852 = vmatmul.mubr.f32.gmra.mrb[146].mxu0 %v5490_v14 }
 0x6d9   :  { %v5478_v2 = vsel %vm5386_vm4, %v5465_v11, %v9757_v1  ;;  %v5517_v18 = vsel %vm5386_vm4, %v5504_v53, %v9756_v52 }
 0x6da   :  { %v5530_v15 = vsel %vm5400_vm5, %v5517_v18, %v9761_v45  ;;  %v5491_v47 = vsel %vm5400_vm5, %v5478_v2, %v9762_v36  ;;  %v5699_v36 = vadd.f32 %v12937_v60, %v13288_v19  ;;  %v5704_v18 = vadd.f32 %v12940_v46, %v13288_v19 }
 0x6db   :  { %5856 = vmatprep.mubr.f32.mxu0 %v5530_v15 }
 0x6dc   :  { %5857 = vmatmul.mubr.f32.gmra.mrb[148].mxu0 %v5491_v47 }
 0x77e   :  { %v8207_v48 = vpop.f32.mrb[124].mxu0 }
 0x77f   :  { %v8208_v31 = vpop.f32.mrb[125].mxu0 }
 0x780   :  { %v8209_v23 = vadd.f32 %v8208_v31, %v8207_v48 }
 0x782   :  { %v13292_v16 = vadd.f32 %v8209_v23, %v5669_v63  ;;  %v8210_v24 = vpop.f32.mrb[126].mxu0  ;;  %v5709_v63 = vadd.f32 %v12944_v49, %v13288_v19 }
 0x783   :  { %v8211_v54 = vpop.f32.mrb[127].mxu0 }
 0x784   :  { %v8212_v13 = vadd.f32 %v8211_v54, %v8210_v24  ;;  %v5930_v38 = vsel %vm5386_vm4, %v13292_v16, 0.0 }
 0x786   :  { %v13296_v33 = vadd.f32 %v8212_v13, %v5674_v22  ;;  %v8213_v51 = vpop.f32.mrb[128].mxu0  ;;  %v5864_v13 = vlaneseq }
 0x787   :  { %v8214_v39 = vpop.f32.mrb[129].mxu0 }
 0x788   :  { %v5931_v42 = vsel %vm5386_vm4, %v13296_v33, 0.0  ;;  %v8215_v30 = vadd.f32 %v8214_v39, %v8213_v51  ;;  %v5714_v51 = vadd.f32 %v12948_v44, %v13288_v19  ;;  %v5865_v49 = vshrl.u32 %v5864_v13, 7 }
 0x789   :  { %v5932_v50 = vadd.f32 %v5931_v42, %v5930_v38 }
 0x78a   :  { %v13304_v20 = vadd.f32 %v8215_v30, %v5679_v0  ;;  %v8216_v35 = vpop.f32.mrb[130].mxu0 }
 0x78b   :  { %v8217_v25 = vpop.f32.mrb[131].mxu0 }
 0x78c   :  { %v5933_v34 = vsel %vm5386_vm4, %v13304_v20, 0.0  ;;  %v8218_v6 = vadd.f32 %v8217_v25, %v8216_v35 }
 0x78d   :  { %v5934_v43 = vadd.f32 %v5933_v34, %v5932_v50  ;;  %v5719_v50 = vadd.f32 %v12964_v8, %v13288_v19  ;;  %v14395_v8 = vld [vmem:[#allocation45_spill] sm:$0xff] }
 0x78e   :  { %v13310_v21 = vadd.f32 %v8218_v6, %v5684_v9  ;;  %v8219_v32 = vpop.f32.mrb[132].mxu0  ;;  %v7896_v9 = vunpack.c.l.bf16 %v13349_v57 }
 0x78f   :  { %v8220_v58 = vpop.f32.mrb[133].mxu0 }
 0x790   :  { %v5935_v62 = vsel %vm5386_vm4, %v13310_v21, 0.0  ;;  %v8221_v4 = vadd.f32 %v8220_v58, %v8219_v32  ;;  %v5877_v32 = vadd.s32 96, %v5865_v49  ;;  %8676 = vmatprep.mubr.msk.f32.mxu0 %vm6240_vm6, %v7896_v9  ;;  %v5724_v58 = vadd.f32 %v14395_v8, %v13288_v19 }
 0x791   :  { %v5936_v10 = vadd.f32 %v5935_v62, %v5934_v43 }
 0x792   :  { %v13316_v59 = vadd.f32 %v8221_v4, %v5689_v3  ;;  %v8222_v29 = vpop.f32.mrb[134].mxu0  ;;  %vm5890_vm7 = vcmp.lt.s32.totalorder %v5877_v32, 98 }
 0x793   :  { %v8223_v55 = vpop.f32.mrb[135].mxu0 }
 0x794   :  { %v5937_v17 = vsel %vm5386_vm4, %v13316_v59, 0.0  ;;  %v8224_v14 = vadd.f32 %v8223_v55, %v8222_v29 }
 0x795   :  { %v5938_v5 = vadd.f32 %v5937_v17, %v5936_v10 }
 0x796   :  { %v13322_v26 = vadd.f32 %v8224_v14, %v5694_v7  ;;  %v8225_v1 = vpop.f32.mrb[136].mxu0  ;;  %v14396_v14 = vmov 0.0  }
 0x797   :  { %v8226_v52 = vpop.f32.mrb[137].mxu0 }
 0x798   :  { %v5939_v45 = vsel %vm5386_vm4, %v13322_v26, 0.0  ;;  %v8227_v40 = vadd.f32 %v8226_v52, %v8225_v1 }
 0x799   :  { %v5940_v11 = vadd.f32 %v5939_v45, %v5938_v5  ;;  %v7823_v5 = vsel %vm5890_vm7, 1.0, %v14396_v14 }
 0x79a   :  { %v13328_v12 = vadd.f32 %v8227_v40, %v5699_v36  ;;  %v8228_v53 = vpop.f32.mrb[138].mxu0 }
 0x79b   :  { %v8229_v2 = vpop.f32.mrb[139].mxu0 }
 0x79c   :  { %v5941_v15 = vsel %vm5386_vm4, %v13328_v12, 0.0  ;;  %v8230_v47 = vadd.f32 %v8229_v2, %v8228_v53 }
 0x79d   :  { %v5942_v48 = vadd.f32 %v5941_v15, %v5940_v11 }
 0x79e   :  { %v13334_v31 = vadd.f32 %v8230_v47, %v5704_v18  ;;  %v8231_v60 = vpop.f32.mrb[140].mxu0 }
 0x79f   :  { %v8232_v56 = vpop.f32.mrb[141].mxu0 }
 0x7a0   :  { %v5943_v23 = vsel %vm5386_vm4, %v13334_v31, 0.0  ;;  %v8233_v24 = vadd.f32 %v8232_v56, %v8231_v60 }
 0x7a1   :  { %v5944_v54 = vadd.f32 %v5943_v23, %v5942_v48 }
 0x7a2   :  { %v5839_v37 = vadd.f32 %v8233_v24, %v5709_v63  ;;  %v8234_v22 = vpop.f32.mrb[142].mxu0 }
 0x7a3   :  { %v8235_v46 = vpop.f32.mrb[143].mxu0 }
 0x7a4   :  { %v5945_v39 = vsel %vm5386_vm4, %v5839_v37, 0.0  ;;  %v8236_v61 = vadd.f32 %v8235_v46, %v8234_v22 }
 0x7a5   :  { %v5946_v0 = vadd.f32 %v5945_v39, %v5944_v54 }
 0x7a6   :  { %v5844_v38 = vadd.f32 %v8236_v61, %v5714_v51  ;;  %v8237_v42 = vpop.f32.mrb[144].mxu0 }
 0x7a7   :  { %v8238_v30 = vpop.f32.mrb[145].mxu0 }
 0x7a8   :  { %v5947_v35 = vsel %vm5386_vm4, %v5844_v38, 0.0  ;;  %v8239_v25 = vadd.f32 %v8238_v30, %v8237_v42 }
 0x7a9   :  { %v5948_v44 = vadd.f32 %v5947_v35, %v5946_v0 }
 0x7aa   :  { %v5849_v34 = vadd.f32 %v8239_v25, %v5719_v50  ;;  %v8240_v6 = vpop.f32.mrb[146].mxu0 }
 0x7ab   :  { %v8241_v43 = vpop.f32.mrb[147].mxu0 }
 0x7ac   :  { %v5949_v28 = vsel %vm5386_vm4, %v5849_v34, 0.0  ;;  %v8242_v3 = vadd.f32 %v8241_v43, %v8240_v6 }
 0x7ad   :  { %v5950_v62 = vadd.f32 %v5949_v28, %v5948_v44 }
 0x7ae   :  { %v5854_v4 = vadd.f32 %v8242_v3, %v5724_v58 }
 0x7af   :  { %v8243_v10 = vpop.f32.mrb[148].mxu0 }
 0x7b0   :  { %v5951_v29 = vsel %vm5386_vm4, %v5854_v4, 0.0  ;;  %v8244_v55 = vpop.f32.mrb[149].mxu0 }
 0x7b1   :  { %v5952_v7 = vadd.f32 %v5951_v29, %v5950_v62  ;;  %v8245_v17 = vadd.f32 %v8244_v55, %v8243_v10 }
 0x7b3   :  { %v5859_v1 = vadd.f32 %v8245_v17, %v5729_v41 }
 0x7b5   :  { %v5929_v52 = vmul.f32 %v7823_v5, %v5859_v1 }
 0x7b7   :  { %v5953_v36 = vsel %vm5386_vm4, %v5929_v52, 0.0 }
 0x7b8   :  { %v5954_v45 = vadd.f32 %v5953_v36, %v5952_v7 }
 0x7ba   :  { %v5955_v40 = vrot.slane %v5954_v45, 4 }
 0x7bc   :  { %v5956_v11 = vadd.f32 %v5955_v40, %v5954_v45 }
 0x7be   :  { %v5957_v53 = vrot.slane %v5956_v11, 2 }
 0x7c0   :  { %v5958_v2 = vadd.f32 %v5957_v53, %v5956_v11 }
 0x7c2   :  { %v5959_v18 = vrot.slane %v5958_v2, 1 }
 0x7c4   :  { %v5960_v15 = vadd.f32 %v5959_v18, %v5958_v2 }
 0x7c6   :  { %v5961_v47 = vmul.f32 0.010204081, %v5960_v15 }
 0x7c8   :  { %v13362_v48 = vsub.f32 %v13292_v16, %v5961_v47  ;;  %v13365_v27 = vsub.f32 %v13296_v33, %v5961_v47  ;;  %v13368_v19 = vsub.f32 %v13304_v20, %v5961_v47  ;;  %v13371_v60 = vsub.f32 %v13310_v21, %v5961_v47 }
 0x7c9   :  { %v13374_v56 = vsub.f32 %v13316_v59, %v5961_v47  ;;  %v13377_v63 = vsub.f32 %v13322_v26, %v5961_v47  ;;  %v13380_v23 = vsub.f32 %v13328_v12, %v5961_v47  ;;  %v13383_v16 = vsub.f32 %v13334_v31, %v5961_v47 }
 0x7ca   :  { %v13385_v33 = vsub.f32 %v5839_v37, %v5961_v47  ;;  %v13387_v24 = vsub.f32 %v5844_v38, %v5961_v47  ;;  %v13389_v20 = vsub.f32 %v5849_v34, %v5961_v47  ;;  %v13391_v21 = vsub.f32 %v5854_v4, %v5961_v47 }
 0x7cb   :  { %v5974_v54 = vsub.f32 %v5859_v1, %v5961_v47  ;;  %v5975_v59 = vmul.f32 %v13362_v48, %v13362_v48  ;;  %v5976_v26 = vmul.f32 %v13365_v27, %v13365_v27  ;;  %v5977_v12 = vmul.f32 %v13368_v19, %v13368_v19 }
 0x7cc   :  { %v5978_v31 = vmul.f32 %v13371_v60, %v13371_v60  ;;  %v5979_v13 = vmul.f32 %v13374_v56, %v13374_v56  ;;  %v5980_v61 = vmul.f32 %v13377_v63, %v13377_v63  ;;  %v5981_v42 = vmul.f32 %v13380_v23, %v13380_v23 }
 0x7cd   :  { %v6001_v37 = vsel %vm5386_vm4, %v5975_v59, 0.0  ;;  %v6002_v22 = vsel %vm5386_vm4, %v5976_v26, 0.0  ;;  %v6004_v51 = vsel %vm5386_vm4, %v5977_v12, 0.0  ;;  %v5982_v50 = vmul.f32 %v13383_v16, %v13383_v16 }
 0x7ce   :  { %v6003_v46 = vadd.f32 %v6002_v22, %v6001_v37  ;;  %v6006_v0 = vsel %vm5386_vm4, %v5978_v31, 0.0  ;;  %v6008_v30 = vsel %vm5386_vm4, %v5979_v13, 0.0  ;;  %v6010_v35 = vsel %vm5386_vm4, %v5980_v61, 0.0  ;;  %v13443_v31 = vld [vmem:[%s14201_s8] ss:$0 sm:$0xff] }
 0x7cf   :  { %v5983_v44 = vmul.f32 %v13385_v33, %v13385_v33  ;;  %v6012_v9 = vsel %vm5386_vm4, %v5981_v42, 0.0  ;;  %v5984_v6 = vmul.f32 %v13387_v24, %v13387_v24  ;;  %v6014_v43 = vsel %vm5386_vm4, %v5982_v50, 0.0 }
 0x7d0   :  { %v6005_v39 = vadd.f32 %v6004_v51, %v6003_v46  ;;  %v5985_v8 = vmul.f32 %v13389_v20, %v13389_v20  ;;  %v5987_v58 = vmul.f32 %v5974_v54, %v5974_v54  ;;  %v5986_v62 = vmul.f32 %v13391_v21, %v13391_v21 }
 0x7d1   :  { %v6016_v28 = vsel %vm5386_vm4, %v5983_v44, 0.0  ;;  %v6018_v4 = vsel %vm5386_vm4, %v5984_v6, 0.0 }
 0x7d2   :  { %v6007_v38 = vadd.f32 %v6006_v0, %v6005_v39  ;;  %v6000_v29 = vmul.f32 %v7823_v5, %v5987_v58  ;;  %v6020_v55 = vsel %vm5386_vm4, %v5985_v8, 0.0  ;;  %v6022_v7 = vsel %vm5386_vm4, %v5986_v62, 0.0  ;;  %v13433_v5 = vld [vmem:[%s14200_s7] ss:$0 sm:$0xff] }
 0x7d4   :  { %v6009_v49 = vadd.f32 %v6008_v30, %v6007_v38  ;;  %v6024_v14 = vsel %vm5386_vm4, %v6000_v29, 0.0 }
 0x7d6   :  { %v6011_v25 = vadd.f32 %v6010_v35, %v6009_v49 }
 0x7d8   :  { %v6013_v34 = vadd.f32 %v6012_v9, %v6011_v25 }
 0x7da   :  { %v6015_v32 = vadd.f32 %v6014_v43, %v6013_v34 }
 0x7dc   :  { %v6017_v3 = vadd.f32 %v6016_v28, %v6015_v32 }
 0x7de   :  { %v6019_v10 = vadd.f32 %v6018_v4, %v6017_v3 }
 0x7e0   :  { %v6021_v41 = vadd.f32 %v6020_v55, %v6019_v10 }
 0x7e2   :  { %v6023_v17 = vadd.f32 %v6022_v7, %v6021_v41 }
 0x7e4   :  { %v6025_v1 = vadd.f32 %v6024_v14, %v6023_v17 }
 0x7e6   :  { %v6026_v52 = vrot.slane %v6025_v1, 4 }
 0x7e8   :  { %v6027_v36 = vadd.f32 %v6026_v52, %v6025_v1 }
 0x7ea   :  { %v6028_v45 = vrot.slane %v6027_v36, 2 }
 0x7ec   :  { %v6029_v40 = vadd.f32 %v6028_v45, %v6027_v36 }
 0x7ee   :  { %v6030_v11 = vrot.slane %v6029_v40, 1 }
 0x7f0   :  { %v6031_v53 = vadd.f32 %v6030_v11, %v6029_v40 }
 0x7f2   :  { %v6032_v2 = vmul.f32 0.010204081, %v6031_v53 }
 0x7f4   :  { %v6033_v18 = vadd.f32 1e-05, %v6032_v2 }
 0x7f6   :  { %9843 = vrsqrt.f32 %v6033_v18 }
 0x800   :  { %v9844_v15 = vpop.eup %9843 }
 0x801   :  { %v13435_v47 = vmul.f32 %v9844_v15, %v5974_v54  ;;  %v6035_v59 = vmul.f32 %v9844_v15, %v13362_v48  ;;  %v6036_v26 = vmul.f32 %v9844_v15, %v13365_v27  ;;  %v6037_v12 = vmul.f32 %v9844_v15, %v13368_v19 }
 0x802   :  { %v6038_v37 = vmul.f32 %v9844_v15, %v13371_v60  ;;  %v6039_v22 = vmul.f32 %v9844_v15, %v13374_v56  ;;  %v6040_v46 = vmul.f32 %v9844_v15, %v13377_v63  ;;  %v6041_v54 = vmul.f32 %v9844_v15, %v13380_v23 }
 0x803   :  { %v6054_v13 = vmul.f32 %v13433_v5, %v6035_v59  ;;  %v6055_v48 = vmul.f32 %v13433_v5, %v6036_v26  ;;  %v6056_v27 = vmul.f32 %v13433_v5, %v6037_v12  ;;  %v6042_v19 = vmul.f32 %v9844_v15, %v13383_v16 }
 0x804   :  { %v6057_v51 = vmul.f32 %v13433_v5, %v6038_v37  ;;  %v6058_v39 = vmul.f32 %v13433_v5, %v6039_v22  ;;  %v6059_v60 = vmul.f32 %v13433_v5, %v6040_v46  ;;  %v6060_v56 = vmul.f32 %v13433_v5, %v6041_v54 }
 0x805   :  { %v6073_v63 = vadd.f32 %v13443_v31, %v6054_v13  ;;  %v6074_v23 = vadd.f32 %v13443_v31, %v6055_v48  ;;  %v6075_v61 = vadd.f32 %v13443_v31, %v6056_v27  ;;  %v6061_v0 = vmul.f32 %v13433_v5, %v6042_v19  ;;  %v8022_v19 = vld [vmem:[%s14199_s2 + $0x8] sm:$0xff]  }
 0x806   :  { %v6076_v38 = vadd.f32 %v13443_v31, %v6057_v51  ;;  %v6077_v16 = vadd.f32 %v13443_v31, %v6058_v39  ;;  %v6078_v42 = vadd.f32 %v13443_v31, %v6059_v60  ;;  %v6079_v30 = vadd.f32 %v13443_v31, %v6060_v56  ;;  %v8024_v60 = vld [vmem:[%s14199_s2 + $0x18] sm:$0xff]  }
 0x807   :  { %v6086_v49 = vmul.f32 0.2, %v6073_v63  ;;  %v6087_v50 = vmul.f32 0.2, %v6074_v23  ;;  %v6088_v35 = vmul.f32 0.2, %v6075_v61  ;;  %v6080_v25 = vadd.f32 %v13443_v31, %v6061_v0 }
 0x808   :  { %v6089_v44 = vmul.f32 0.2, %v6076_v38  ;;  %v6090_v9 = vmul.f32 0.2, %v6077_v16  ;;  %v6091_v34 = vmul.f32 0.2, %v6078_v42  ;;  %v6043_v6 = vmul.f32 %v9844_v15, %v13385_v33 }
 0x809   :  { %v6099_v43 = vmax.f32 %v6073_v63, %v6086_v49  ;;  %v6100_v32 = vmax.f32 %v6074_v23, %v6087_v50  ;;  %v6101_v8 = vmax.f32 %v6075_v61, %v6088_v35  ;;  %v6092_v58 = vmul.f32 0.2, %v6079_v30  ;;  %v8025_v63 = vld [vmem:[%s14199_s2 + $0x20] sm:$0xff]   ;;  %v8026_v0 = vld [vmem:[%s14199_s2 + $0x28] sm:$0xff]   ;;  %v8028_v50 = vld [vmem:[%s14199_s2 + $0x38] sm:$0xff]  }
 0x80a   :  { %v6102_v28 = vmax.f32 %v6076_v38, %v6089_v44  ;;  %v6103_v3 = vmax.f32 %v6077_v16, %v6090_v9  ;;  %v6104_v62 = vmax.f32 %v6078_v42, %v6091_v34  ;;  %v6093_v4 = vmul.f32 0.2, %v6080_v25  ;;  %v8027_v42 = vld [vmem:[%s14199_s2 + $0x30] sm:$0xff]   ;;  %v8029_v44 = vld [vmem:[%s14199_s2 + $0x40] sm:$0xff]  }
 0x80b   :  { %v8911_v10 = vpack.c.bf16 %v6100_v32, %v6099_v43  ;;  %v6105_v29 = vmax.f32 %v6079_v30, %v6092_v58  ;;  %v6044_v55 = vmul.f32 %v9844_v15, %v13387_v24  ;;  %v6062_v41 = vmul.f32 %v13433_v5, %v6043_v6  ;;  %v8030_v6 = vld [vmem:[%s14199_s2 + $0x48] sm:$0xff]  }
 0x80c   :  { %v8915_v7 = vpack.c.bf16 %v6102_v28, %v6101_v8  ;;  %v8919_v17 = vpack.c.bf16 %v6104_v62, %v6103_v3  ;;  %v6106_v14 = vmax.f32 %v6080_v25, %v6093_v4  ;;  %v6045_v1 = vmul.f32 %v9844_v15, %v13389_v20  ;;  %v8031_v8 = vld [vmem:[%s14199_s2 + $0x50] sm:$0xff]   ;;  %v8032_v3 = vld [vmem:[%s14199_s2 + $0x58] sm:$0xff]  }
 0x80d   :  { %8912 = vmatprep.subr.bf16.mxu0 %v8911_v10  ;;  %v6063_v33 = vmul.f32 %v13433_v5, %v6044_v55  ;;  %v6081_v52 = vadd.f32 %v13443_v31, %v6062_v41  ;;  %v6046_v36 = vmul.f32 %v9844_v15, %v13391_v21  ;;  %v6066_v46 = vmul.f32 %v13433_v5, %v13435_v47  ;;  %v8023_v47 = vld [vmem:[%s14199_s2 + $0x10] sm:$0xff]   ;;  %v8034_v41 = vld [vmem:[%s14199_s2 + $0x68] sm:$0xff]  }
 0x80e   :  { %8914 = vmatpush3.bf16.msra.mxu0 %v8911_v10  ;;  %v8923_v45 = vpack.c.bf16 %v6106_v14, %v6105_v29  ;;  %v6064_v40 = vmul.f32 %v13433_v5, %v6045_v1  ;;  %v7897_v51 = vunpack.c.h.bf16 %v13349_v57  ;;  %v7904_v39 = vunpack.c.l.bf16 %v8023_v47  ;;  %v8033_v10 = vld [vmem:[%s14199_s2 + $0x60] sm:$0xff]   ;;  %v8035_v14 = vld [vmem:[%s14199_s2 + $0x70] sm:$0xff]  }
 0x80f   :  { %8916 = vmatprep.subr.bf16.mxu0 %v8915_v7  ;;  %v6082_v24 = vadd.f32 %v13443_v31, %v6063_v33  ;;  %v6094_v11 = vmul.f32 0.2, %v6081_v52  ;;  %v6065_v53 = vmul.f32 %v13433_v5, %v6046_v36  ;;  %v6085_v13 = vadd.f32 %v13443_v31, %v6066_v46 }
 0x810   :  { %v6083_v2 = vadd.f32 %v13443_v31, %v6064_v40  ;;  %v7900_v5 = vunpack.c.l.bf16 %v8022_v19  ;;  %v7905_v56 = vunpack.c.h.bf16 %v8023_v47  ;;  %v7908_v57 = vunpack.c.l.bf16 %v8024_v60  ;;  %v8037_v40 = vld [vmem:[%s14199_s2 + $0x80] sm:$0xff]  }
 0x811   :  { %v6095_v20 = vmul.f32 0.2, %v6082_v24  ;;  %v6107_v18 = vmax.f32 %v6081_v52, %v6094_v11  ;;  %v6084_v59 = vadd.f32 %v13443_v31, %v6065_v53  ;;  %v6098_v48 = vmul.f32 0.2, %v6085_v13  ;;  %v8036_v52 = vld [vmem:[%s14199_s2 + $0x78] sm:$0xff]   ;;  %v8038_v53 = vld [vmem:[%s14199_s2 + $0x88] sm:$0xff]  }
 0x812   :  { %8918 = vmatpush3.bf16.msra.mxu0 %v8915_v7  ;;  %v6096_v26 = vmul.f32 0.2, %v6083_v2  ;;  %v7901_v31 = vunpack.c.h.bf16 %v8022_v19  ;;  %v7909_v23 = vunpack.c.h.bf16 %v8024_v60  ;;  %v7912_v61 = vunpack.c.l.bf16 %v8025_v63 }
 0x813   :  { %8920 = vmatprep.subr.bf16.mxu0 %v8919_v17  ;;  %v6108_v21 = vmax.f32 %v6082_v24, %v6095_v20  ;;  %v6097_v15 = vmul.f32 0.2, %v6084_v59  ;;  %v6111_v27 = vmax.f32 %v6085_v13, %v6098_v48  ;;  %v7913_v38 = vunpack.c.h.bf16 %v8025_v63 }
 0x814   :  { %v6109_v12 = vmax.f32 %v6083_v2, %v6096_v26  ;;  %v7916_v16 = vunpack.c.l.bf16 %v8026_v0  ;;  %v7917_v30 = vunpack.c.h.bf16 %v8026_v0  ;;  %v7920_v49 = vunpack.c.l.bf16 %v8027_v42 }
 0x815   :  { %v8927_v37 = vpack.c.bf16 %v6108_v21, %v6107_v18  ;;  %v6110_v22 = vmax.f32 %v6084_v59, %v6097_v15  ;;  %v7921_v35 = vunpack.c.h.bf16 %v8027_v42  ;;  %v7924_v25 = vunpack.c.l.bf16 %v8028_v50  ;;  %v8039_v18 = vld [vmem:[%s14199_s2 + $0x90] sm:$0xff]   ;;  %v8040_v21 = vld [vmem:[%s14199_s2 + $0x98] sm:$0xff]  }
 0x816   :  { %8922 = vmatpush3.bf16.msra.mxu0 %v8919_v17  ;;  %v7925_v9 = vunpack.c.h.bf16 %v8028_v50  ;;  %v7928_v34 = vunpack.c.l.bf16 %v8029_v44  ;;  %v7929_v43 = vunpack.c.h.bf16 %v8029_v44  ;;  %v7932_v32 = vunpack.c.l.bf16 %v8030_v6 }
 0x817   :  { %8924 = vmatprep.subr.bf16.mxu0 %v8923_v45  ;;  %v8931_v54 = vpack.c.bf16 %v6110_v22, %v6109_v12  ;;  %v7933_v58 = vunpack.c.h.bf16 %v8030_v6  ;;  %v7936_v28 = vunpack.c.l.bf16 %v8031_v8  ;;  %v7937_v62 = vunpack.c.h.bf16 %v8031_v8 }
 0x818   :  { %v7940_v4 = vunpack.c.l.bf16 %v8032_v3  ;;  %v7941_v29 = vunpack.c.h.bf16 %v8032_v3  ;;  %v7944_v55 = vunpack.c.l.bf16 %v8033_v10  ;;  %v7945_v7 = vunpack.c.h.bf16 %v8033_v10  ;;  %v6994_v3 = vld [vmem:[%s14202_s9 + $0x80] sm:$0xff] }
 0x819   :  { %v7948_v17 = vunpack.c.l.bf16 %v8034_v41  ;;  %v7949_v1 = vunpack.c.h.bf16 %v8034_v41  ;;  %v7952_v33 = vunpack.c.l.bf16 %v8035_v14  ;;  %v7953_v36 = vunpack.c.h.bf16 %v8035_v14  ;;  %v6996_v41 = vld [vmem:[%s14202_s9 + $0x90] sm:$0xff] }
 0x81a   :  { %8926 = vmatpush3.bf16.msra.mxu0 %v8923_v45  ;;  %v7956_v45 = vunpack.c.l.bf16 %v8036_v52  ;;  %v7957_v24 = vunpack.c.h.bf16 %v8036_v52  ;;  %v7960_v11 = vunpack.c.l.bf16 %v8037_v40  ;;  %v7961_v2 = vunpack.c.h.bf16 %v8037_v40  ;;  %v6998_v52 = vld [vmem:[%s14202_s9 + $0xa0] sm:$0xff] }
 0x81b   :  { %8928 = vmatprep.subr.bf16.mxu0 %v8927_v37  ;;  %v7964_v20 = vunpack.c.l.bf16 %v8038_v53  ;;  %v7965_v59 = vunpack.c.h.bf16 %v8038_v53  ;;  %v7968_v26 = vunpack.c.l.bf16 %v8039_v18  ;;  %v7969_v15 = vunpack.c.h.bf16 %v8039_v18  ;;  %v6982_v40 = vld [vmem:[%s14202_s9 + $0x20] sm:$0xff]  ;;  %v7000_v53 = vld [vmem:[%s14202_s9 + $0xb0] sm:$0xff] }
 0x81c   :  { %v7972_v12 = vunpack.c.l.bf16 %v8040_v21  ;;  %v7973_v22 = vunpack.c.h.bf16 %v8040_v21  ;;  %v7002_v21 = vld [vmem:[%s14202_s9 + $0xc0] sm:$0xff] }
 0x81e   :  { %8930 = vmatpush3.bf16.msra.mxu0 %v8927_v37  ;;  %v8041_v37 = vld [vmem:[%s14199_s2 + $0xa0] sm:$0xff]  }
 0x81f   :  { %8932 = vmatprep.subr.bf16.mxu0 %v8931_v54  ;;  %v7976_v46 = vunpack.c.l.bf16 %v8041_v37  ;;  %v7977_v13 = vunpack.c.h.bf16 %v8041_v37  ;;  %v6986_v37 = vld [vmem:[%s14202_s9 + $0x40] sm:$0xff] }
 0x822   :  { %8934 = vmatpush3.bf16.msra.mxu0 %v8931_v54  ;;  %v8042_v54 = vld [vmem:[%s14199_s2 + $0xa8] sm:$0xff]  }
 0x823   :  { %8674 = vmatprep.subr.mxu0 %v6111_v27  ;;  %v7980_v48 = vunpack.c.l.bf16 %v8042_v54  ;;  %v7981_v19 = vunpack.c.h.bf16 %v8042_v54  ;;  %v7004_v54 = vld [vmem:[%s14202_s9 + $0xd0] sm:$0xff] }
 0x826   :  { %8675 = vmatpush3.msra.mxu0 %v6111_v27  ;;  %v8043_v27 = vld [vmem:[%s14199_s2 + $0xb0] sm:$0xff]  }
 0x827   :  { %8677 = vmatmul.mubr.msk.f32.vlgmr.msra.gmra.mrb[150].mxu0 %vm6240_vm6, %v7897_v51  ;;  %v7984_v51 = vunpack.c.l.bf16 %v8043_v27  ;;  %v7985_v47 = vunpack.c.h.bf16 %v8043_v27 }
 0x828   :  { %8679 = vmatprep.mubr.msk.f32.mxu0 %vm6240_vm6, %v7900_v5  ;;  %v8044_v5 = vld [vmem:[%s14199_s2 + $0xb8] sm:$0xff]  }
 0x829   :  { %v7989_v60 = vunpack.c.h.bf16 %v8044_v5 }
 0x82b   :  { %8680 = vmatmul.mubr.msk.f32.gmra.mrb[152].mxu0 %vm6240_vm6, %v7901_v31  ;;  %v7988_v31 = vunpack.c.l.bf16 %v8044_v5 }
 0x82c   :  { %8682 = vmatprep.mubr.msk.f32.mxu0 %vm6240_vm6, %v7904_v39  ;;  %v8045_v39 = vld [vmem:[%s14199_s2 + $0xc0] sm:$0xff]  }
 0x82d   :  { %v7993_v63 = vunpack.c.h.bf16 %v8045_v39 }
 0x82f   :  { %8683 = vmatmul.mubr.msk.f32.gmra.mrb[154].mxu0 %vm6240_vm6, %v7905_v56  ;;  %v7992_v56 = vunpack.c.l.bf16 %v8045_v39  ;;  %v6990_v39 = vld [vmem:[%s14202_s9 + $0x60] sm:$0xff] }
 0x830   :  { %8685 = vmatprep.mubr.msk.f32.mxu0 %vm6240_vm6, %v7908_v57  ;;  %v8046_v57 = vld [vmem:[%s14199_s2 + $0xc8] sm:$0xff]  }
 0x831   :  { %v7997_v0 = vunpack.c.h.bf16 %v8046_v57 }
 0x833   :  { %8686 = vmatmul.mubr.msk.f32.gmra.mrb[156].mxu0 %vm6240_vm6, %v7909_v23  ;;  %v7996_v23 = vunpack.c.l.bf16 %v8046_v57  ;;  %v6991_v57 = vld [vmem:[%s14202_s9 + $0x68] sm:$0xff] }
 0x834   :  { %8688 = vmatprep.mubr.msk.f32.mxu0 %vm6240_vm6, %v7912_v61  ;;  %v8047_v61 = vld [vmem:[%s14199_s2 + $0xd0] sm:$0xff]  }
 0x835   :  { %v8001_v42 = vunpack.c.h.bf16 %v8047_v61 }
 0x837   :  { %8689 = vmatmul.mubr.msk.f32.gmra.mrb[158].mxu0 %vm6240_vm6, %v7913_v38  ;;  %v8000_v38 = vunpack.c.l.bf16 %v8047_v61 }
 0x838   :  { %8691 = vmatprep.mubr.msk.f32.mxu0 %vm6240_vm6, %v7916_v16  ;;  %v8048_v16 = vld [vmem:[%s14199_s2 + $0xd8] sm:$0xff]  }
 0x839   :  { %v8005_v50 = vunpack.c.h.bf16 %v8048_v16 }
 0x83b   :  { %8692 = vmatmul.mubr.msk.f32.gmra.mrb[160].mxu0 %vm6240_vm6, %v7917_v30  ;;  %v8004_v30 = vunpack.c.l.bf16 %v8048_v16 }
 0x83c   :  { %8694 = vmatprep.mubr.msk.f32.mxu0 %vm6240_vm6, %v7920_v49  ;;  %v8049_v49 = vld [vmem:[%s14199_s2 + $0xe0] sm:$0xff]  }
 0x83d   :  { %v8009_v44 = vunpack.c.h.bf16 %v8049_v49 }
 0x83f   :  { %8695 = vmatmul.mubr.msk.f32.gmra.mrb[162].mxu0 %vm6240_vm6, %v7921_v35  ;;  %v8008_v35 = vunpack.c.l.bf16 %v8049_v49 }
 0x840   :  { %8697 = vmatprep.mubr.msk.f32.mxu0 %vm6240_vm6, %v7924_v25  ;;  %v8050_v25 = vld [vmem:[%s14199_s2 + $0xe8] sm:$0xff]  }
 0x841   :  { %v8013_v6 = vunpack.c.h.bf16 %v8050_v25 }
 0x843   :  { %8698 = vmatmul.mubr.msk.f32.gmra.mrb[164].mxu0 %vm6240_vm6, %v7925_v9  ;;  %v8012_v9 = vunpack.c.l.bf16 %v8050_v25  ;;  %v6992_v25 = vld [vmem:[%s14202_s9 + $0x70] sm:$0xff] }
 0x844   :  { %8700 = vmatprep.mubr.msk.f32.mxu0 %vm6240_vm6, %v7928_v34  ;;  %v8051_v34 = vld [vmem:[%s14199_s2 + $0xf0] sm:$0xff]  }
 0x845   :  { %v8017_v8 = vunpack.c.h.bf16 %v8051_v34 }
 0x847   :  { %8701 = vmatmul.mubr.msk.f32.gmra.mrb[166].mxu0 %vm6240_vm6, %v7929_v43  ;;  %v8016_v43 = vunpack.c.l.bf16 %v8051_v34 }
 0x848   :  { %8703 = vmatprep.mubr.msk.f32.mxu0 %vm6240_vm6, %v7932_v32  ;;  %v8052_v32 = vld [vmem:[%s14199_s2 + $0xf8] sm:$0xff]  }
 0x84b   :  { %8704 = vmatmul.mubr.msk.f32.gmra.mrb[168].mxu0 %vm6240_vm6, %v7933_v58  ;;  %v8020_v58 = vunpack.c.l.bf16 %v8052_v32 }
 0x84c   :  { %8706 = vmatprep.mubr.msk.f32.mxu0 %vm6240_vm6, %v7936_v28  ;;  %v8021_v28 = vunpack.c.h.bf16 %v8052_v32 }
 0x84f   :  { %8707 = vmatmul.mubr.msk.f32.gmra.mrb[170].mxu0 %vm6240_vm6, %v7937_v62  ;;  %v6995_v62 = vld [vmem:[%s14202_s9 + $0x88] sm:$0xff] }
 0x850   :  { %8709 = vmatprep.mubr.msk.f32.mxu0 %vm6240_vm6, %v7940_v4  ;;  %v6978_v4 = vld [vmem:[%s14202_s9] sm:$0xff]  ;;  %v8935_v10 = vpack.c.bf16 %v6995_v62, %v6994_v3 }
 0x852   :  { %8936 = vmatprep.subr.bf16.mxu0 %v8935_v10 }
 0x853   :  { %8710 = vmatmul.mubr.msk.f32.gmra.mrb[172].mxu0 %vm6240_vm6, %v7941_v29  ;;  %v6979_v29 = vld [vmem:[%s14202_s9 + $0x8] sm:$0xff] }
 0x854   :  { %8712 = vmatprep.mubr.msk.f32.mxu0 %vm6240_vm6, %v7944_v55  ;;  %v8937_v55 = vpack.c.bf16 %v6979_v29, %v6978_v4 }
 0x856   :  { %8938 = vmatpush3.bf16.msra.mxu0 %v8937_v55 }
 0x857   :  { %8713 = vmatmul.mubr.msk.f32.gmra.mrb[174].mxu0 %vm6240_vm6, %v7945_v7  ;;  %v6997_v7 = vld [vmem:[%s14202_s9 + $0x98] sm:$0xff] }
 0x858   :  { %8715 = vmatprep.mubr.msk.f32.mxu0 %vm6240_vm6, %v7948_v17  ;;  %v6980_v17 = vld [vmem:[%s14202_s9 + $0x10] sm:$0xff]  ;;  %v8939_v14 = vpack.c.bf16 %v6997_v7, %v6996_v41 }
 0x85a   :  { %8940 = vmatprep.subr.bf16.mxu0 %v8939_v14 }
 0x85b   :  { %8716 = vmatmul.mubr.msk.f32.gmra.mrb[176].mxu0 %vm6240_vm6, %v7949_v1  ;;  %v6981_v1 = vld [vmem:[%s14202_s9 + $0x18] sm:$0xff] }
 0x85c   :  { %8718 = vmatprep.mubr.msk.f32.mxu0 %vm6240_vm6, %v7952_v33  ;;  %v8941_v33 = vpack.c.bf16 %v6981_v1, %v6980_v17 }
 0x85e   :  { %8942 = vmatpush3.bf16.msra.mxu0 %v8941_v33 }
 0x85f   :  { %8719 = vmatmul.mubr.msk.f32.gmra.mrb[178].mxu0 %vm6240_vm6, %v7953_v36  ;;  %v6999_v36 = vld [vmem:[%s14202_s9 + $0xa8] sm:$0xff] }
 0x860   :  { %8721 = vmatprep.mubr.msk.f32.mxu0 %vm6240_vm6, %v7956_v45  ;;  %v8943_v45 = vpack.c.bf16 %v6999_v36, %v6998_v52 }
 0x862   :  { %8944 = vmatprep.subr.bf16.mxu0 %v8943_v45 }
 0x863   :  { %8722 = vmatmul.mubr.msk.f32.gmra.mrb[180].mxu0 %vm6240_vm6, %v7957_v24  ;;  %v6983_v24 = vld [vmem:[%s14202_s9 + $0x28] sm:$0xff] }
 0x864   :  { %8724 = vmatprep.mubr.msk.f32.mxu0 %vm6240_vm6, %v7960_v11  ;;  %v8945_v11 = vpack.c.bf16 %v6983_v24, %v6982_v40 }
 0x866   :  { %8946 = vmatpush3.bf16.msra.mxu0 %v8945_v11 }
 0x867   :  { %8725 = vmatmul.mubr.msk.f32.gmra.mrb[182].mxu0 %vm6240_vm6, %v7961_v2  ;;  %v7001_v2 = vld [vmem:[%s14202_s9 + $0xb8] sm:$0xff] }
 0x868   :  { %8727 = vmatprep.mubr.msk.f32.mxu0 %vm6240_vm6, %v7964_v20  ;;  %v6984_v20 = vld [vmem:[%s14202_s9 + $0x30] sm:$0xff]  ;;  %v8947_v18 = vpack.c.bf16 %v7001_v2, %v7000_v53 }
 0x86a   :  { %8948 = vmatprep.subr.bf16.mxu0 %v8947_v18 }
 0x86b   :  { %8728 = vmatmul.mubr.msk.f32.gmra.mrb[184].mxu0 %vm6240_vm6, %v7965_v59  ;;  %v6985_v59 = vld [vmem:[%s14202_s9 + $0x38] sm:$0xff] }
 0x86c   :  { %8730 = vmatprep.mubr.msk.f32.mxu0 %vm6240_vm6, %v7968_v26  ;;  %v8949_v26 = vpack.c.bf16 %v6985_v59, %v6984_v20 }
 0x86e   :  { %8950 = vmatpush3.bf16.msra.mxu0 %v8949_v26 }
 0x86f   :  { %8731 = vmatmul.mubr.msk.f32.gmra.mrb[186].mxu0 %vm6240_vm6, %v7969_v15  ;;  %v7003_v15 = vld [vmem:[%s14202_s9 + $0xc8] sm:$0xff] }
 0x870   :  { %8733 = vmatprep.mubr.msk.f32.mxu0 %vm6240_vm6, %v7972_v12  ;;  %v8951_v12 = vpack.c.bf16 %v7003_v15, %v7002_v21 }
 0x872   :  { %8952 = vmatprep.subr.bf16.mxu0 %v8951_v12 }
 0x873   :  { %8734 = vmatmul.mubr.msk.f32.gmra.mrb[188].mxu0 %vm6240_vm6, %v7973_v22  ;;  %v6987_v22 = vld [vmem:[%s14202_s9 + $0x48] sm:$0xff] }
 0x874   :  { %8736 = vmatprep.mubr.msk.f32.mxu0 %vm6240_vm6, %v7976_v46  ;;  %v8953_v46 = vpack.c.bf16 %v6987_v22, %v6986_v37 }
 0x876   :  { %8954 = vmatpush3.bf16.msra.mxu0 %v8953_v46 }
 0x877   :  { %8737 = vmatmul.mubr.msk.f32.gmra.mrb[190].mxu0 %vm6240_vm6, %v7977_v13  ;;  %v7005_v13 = vld [vmem:[%s14202_s9 + $0xd8] sm:$0xff] }
 0x878   :  { %8739 = vmatprep.mubr.msk.f32.mxu0 %vm6240_vm6, %v7980_v48  ;;  %v6988_v48 = vld [vmem:[%s14202_s9 + $0x50] sm:$0xff]  ;;  %v8955_v27 = vpack.c.bf16 %v7005_v13, %v7004_v54 }
 0x87a   :  { %8956 = vmatprep.subr.bf16.mxu0 %v8955_v27 }
 0x87b   :  { %8740 = vmatmul.mubr.msk.f32.gmra.mrb[192].mxu0 %vm6240_vm6, %v7981_v19  ;;  %v6989_v19 = vld [vmem:[%s14202_s9 + $0x58] sm:$0xff] }
 0x87c   :  { %8742 = vmatprep.mubr.msk.f32.mxu0 %vm6240_vm6, %v7984_v51  ;;  %v8957_v5 = vpack.c.bf16 %v6989_v19, %v6988_v48 }
 0x87e   :  { %8958 = vmatpush3.bf16.msra.mxu0 %v8957_v5 }
 0x87f   :  { %8743 = vmatmul.mubr.msk.f32.gmra.mrb[194].mxu0 %vm6240_vm6, %v7985_v47  ;;  %v7006_v47 = vld [vmem:[%s14202_s9 + $0xe0] sm:$0xff] }
 0x880   :  { %8745 = vmatprep.mubr.msk.f32.mxu0 %vm6240_vm6, %v7988_v31  ;;  %v7007_v31 = vld [vmem:[%s14202_s9 + $0xe8] sm:$0xff] }
 0x883   :  { %8746 = vmatmul.mubr.msk.f32.gmra.mrb[196].mxu0 %vm6240_vm6, %v7989_v60 }
 0x884   :  { %8748 = vmatprep.mubr.msk.f32.mxu0 %vm6240_vm6, %v7992_v56  ;;  %v8959_v56 = vpack.c.bf16 %v7007_v31, %v7006_v47 }
 0x886   :  { %8960 = vmatprep.subr.bf16.mxu0 %v8959_v56 }
 0x887   :  { %8749 = vmatmul.mubr.msk.f32.gmra.mrb[198].mxu0 %vm6240_vm6, %v7993_v63  ;;  %v8961_v63 = vpack.c.bf16 %v6991_v57, %v6990_v39 }
 0x888   :  { %8751 = vmatprep.mubr.msk.f32.mxu0 %vm6240_vm6, %v7996_v23 }
 0x889   :  { %8962 = vmatpush3.bf16.msra.mxu0 %v8961_v63 }
 0x88b   :  { %8752 = vmatmul.mubr.msk.f32.gmra.mrb[200].mxu0 %vm6240_vm6, %v7997_v0 }
 0x88c   :  { %8754 = vmatprep.mubr.msk.f32.mxu0 %vm6240_vm6, %v8000_v38 }
 0x88f   :  { %8755 = vmatmul.mubr.msk.f32.gmra.mrb[202].mxu0 %vm6240_vm6, %v8001_v42 }
 0x890   :  { %8757 = vmatprep.mubr.msk.f32.mxu0 %vm6240_vm6, %v8004_v30 }
 0x893   :  { %8758 = vmatmul.mubr.msk.f32.gmra.mrb[204].mxu0 %vm6240_vm6, %v8005_v50  ;;  %v7008_v50 = vld [vmem:[%s14202_s9 + $0xf0] sm:$0xff] }
 0x894   :  { %8760 = vmatprep.mubr.msk.f32.mxu0 %vm6240_vm6, %v8008_v35  ;;  %v7009_v35 = vld [vmem:[%s14202_s9 + $0xf8] sm:$0xff] }
 0x897   :  { %8761 = vmatmul.mubr.msk.f32.gmra.mrb[206].mxu0 %vm6240_vm6, %v8009_v44  ;;  %v8963_v44 = vpack.c.bf16 %v7009_v35, %v7008_v50 }
 0x898   :  { %8763 = vmatprep.mubr.msk.f32.mxu0 %vm6240_vm6, %v8012_v9  ;;  %v6993_v9 = vld [vmem:[%s14202_s9 + $0x78] sm:$0xff] }
 0x899   :  { %v8965_v34 = vpack.c.bf16 %v6993_v9, %v6992_v25  ;;  %8964 = vmatprep.subr.bf16.mxu0 %v8963_v44 }
 0x89b   :  { %8764 = vmatmul.mubr.msk.f32.gmra.mrb[208].mxu0 %vm6240_vm6, %v8013_v6  ;;  %v7026_v6 = vld [vmem:[%s14202_s9 + $0x180] sm:$0xff] }
 0x89c   :  { %8766 = vmatprep.mubr.msk.f32.mxu0 %vm6240_vm6, %v8016_v43  ;;  %v7027_v43 = vld [vmem:[%s14202_s9 + $0x188] sm:$0xff]  ;;  %8966 = vmatpush3.bf16.msra.mxu0 %v8965_v34 }
 0x89f   :  { %8767 = vmatmul.mubr.msk.f32.gmra.mrb[210].mxu0 %vm6240_vm6, %v8017_v8  ;;  %v8967_v8 = vpack.c.bf16 %v7027_v43, %v7026_v6 }
 0x8a0   :  { %8769 = vmatprep.mubr.msk.f32.mxu0 %vm6240_vm6, %v8020_v58 }
 0x8a1   :  { %8968 = vmatprep.subr.bf16.mxu0 %v8967_v8 }
 0x8a3   :  { %8770 = vmatmul.mubr.msk.f32.gmra.mrb[212].mxu0 %vm6240_vm6, %v8021_v28 }
 0x8fa   :  { %v13710_v51 = vpop.f32.mrb[150].mxu0 }
 0x8fb   :  { %v13721_v60 = vpop.f32.mrb[151].mxu0 }
 0x8fe   :  { %v13726_v23 = vpop.f32.mrb[152].mxu0 }
 0x8ff   :  { %v13728_v61 = vpop.f32.mrb[153].mxu0 }
 0x902   :  { %v8684_v0 = vpop.f32.mrb[154].mxu0 }
 0x903   :  { %v6519_v38 = vpop.f32.mrb[155].mxu0 }
 0x906   :  { %v8687_v16 = vpop.f32.mrb[156].mxu0 }
 0x907   :  { %v6529_v42 = vpop.f32.mrb[157].mxu0 }
 0x90a   :  { %v13730_v30 = vpop.f32.mrb[158].mxu0 }
 0x90b   :  { %v13732_v49 = vpop.f32.mrb[159].mxu0 }
 0x90e   :  { %v13752_v32 = vpop.f32.mrb[160].mxu0 }
 0x90f   :  { %v13754_v58 = vpop.f32.mrb[161].mxu0 }
 0x912   :  { %v8696_v28 = vpop.f32.mrb[162].mxu0 }
 0x913   :  { %v9768_v3 = vpack.i.bf16 %v8684_v0, %v8696_v28  ;;  %v6559_v62 = vpop.f32.mrb[163].mxu0 }
 0x914   :  { %v9763_v4 = vpack.i.bf16 %v6519_v38, %v6559_v62 }
 0x915   :  { %9769 = vrot.lane.b32.xlu1 %v9768_v3, %s9855_s19 }
 0x916   :  { %9764 = vrot.lane.b32.xlu0 %v9763_v4, %s9855_s19  ;;  %v8699_v10 = vpop.f32.mrb[164].mxu0 }
 0x917   :  { %v9778_v29 = vpack.i.bf16 %v8687_v16, %v8699_v10  ;;  %v6569_v55 = vpop.f32.mrb[165].mxu0 }
 0x918   :  { %v9773_v41 = vpack.i.bf16 %v6529_v42, %v6569_v55 }
 0x919   :  { %9779 = vrot.lane.b32.xlu1 %v9778_v29, %s9855_s19 }
 0x91a   :  { %9774 = vrot.lane.b32.xlu0 %v9773_v41, %s9855_s19  ;;  %v13760_v7 = vpop.f32.mrb[166].mxu0 }
 0x91b   :  { %v13762_v17 = vpop.f32.mrb[167].mxu0 }
 0x91e   :  { %v13764_v14 = vpop.f32.mrb[168].mxu0 }
 0x91f   :  { %v13766_v1 = vpop.f32.mrb[169].mxu0 }
 0x922   :  { %v8708_v33 = vpop.f32.mrb[170].mxu0 }
 0x923   :  { %v6599_v52 = vpop.f32.mrb[171].mxu0 }
 0x926   :  { %v8711_v36 = vpop.f32.mrb[172].mxu0 }
 0x927   :  { %v6609_v45 = vpop.f32.mrb[173].mxu0 }
 0x92a   :  { %v13768_v40 = vpop.f32.mrb[174].mxu0 }
 0x92b   :  { %v13770_v24 = vpop.f32.mrb[175].mxu0 }
 0x92e   :  { %v13772_v11 = vpop.f32.mrb[176].mxu0 }
 0x92f   :  { %v13774_v53 = vpop.f32.mrb[177].mxu0 }
 0x932   :  { %v8720_v2 = vpop.f32.mrb[178].mxu0 }
 0x933   :  { %v9788_v20 = vpack.i.bf16 %v8708_v33, %v8720_v2  ;;  %v6639_v18 = vpop.f32.mrb[179].mxu0 }
 0x934   :  { %v9783_v59 = vpack.i.bf16 %v6599_v52, %v6639_v18  ;;  %v7011_v18 = vld [vmem:[%s14202_s9 + $0x108] sm:$0xff] }
 0x935   :  { %9789 = vrot.lane.b32.xlu1 %v9788_v20, %s9855_s19  ;;  %v7010_v20 = vld [vmem:[%s14202_s9 + $0x100] sm:$0xff] }
 0x936   :  { %9784 = vrot.lane.b32.xlu0 %v9783_v59, %s9855_s19  ;;  %v8723_v26 = vpop.f32.mrb[180].mxu0 }
 0x937   :  { %v9798_v21 = vpack.i.bf16 %v8711_v36, %v8723_v26  ;;  %v6649_v15 = vpop.f32.mrb[181].mxu0  ;;  %v7028_v26 = vld [vmem:[%s14202_s9 + $0x190] sm:$0xff] }
 0x938   :  { %v9793_v12 = vpack.i.bf16 %v6609_v45, %v6649_v15 }
 0x939   :  { %9799 = vrot.lane.b32.xlu1 %v9798_v21, %s9855_s19  ;;  %v7029_v21 = vld [vmem:[%s14202_s9 + $0x198] sm:$0xff] }
 0x93a   :  { %9794 = vrot.lane.b32.xlu0 %v9793_v12, %s9855_s19  ;;  %v13780_v37 = vpop.f32.mrb[182].mxu0 }
 0x93b   :  { %v13782_v22 = vpop.f32.mrb[183].mxu0 }
 0x93e   :  { %v13784_v46 = vpop.f32.mrb[184].mxu0 }
 0x93f   :  { %v13786_v54 = vpop.f32.mrb[185].mxu0 }
 0x942   :  { %v8732_v13 = vpop.f32.mrb[186].mxu0 }
 0x943   :  { %v6679_v48 = vpop.f32.mrb[187].mxu0 }
 0x946   :  { %v8735_v27 = vpop.f32.mrb[188].mxu0 }
 0x947   :  { %v6689_v19 = vpop.f32.mrb[189].mxu0 }
 0x94a   :  { %v13788_v5 = vpop.f32.mrb[190].mxu0 }
 0x94b   :  { %v13790_v47 = vpop.f32.mrb[191].mxu0 }
 0x94e   :  { %v13792_v31 = vpop.f32.mrb[192].mxu0 }
 0x94f   :  { %v13794_v39 = vpop.f32.mrb[193].mxu0 }
 0x952   :  { %v8744_v56 = vpop.f32.mrb[194].mxu0 }
 0x953   :  { %v9808_v57 = vpack.i.bf16 %v8732_v13, %v8744_v56  ;;  %v6719_v63 = vpop.f32.mrb[195].mxu0  ;;  %v8971_v56 = vpack.c.bf16 %v7029_v21, %v7028_v26 }
 0x954   :  { %v9803_v0 = vpack.i.bf16 %v6679_v48, %v6719_v63  ;;  %v8969_v48 = vpack.c.bf16 %v7011_v18, %v7010_v20  ;;  %v7013_v63 = vld [vmem:[%s14202_s9 + $0x118] sm:$0xff]  ;;  %v7035_v18 = vld [vmem:[%s14202_s9 + $0x1c8] sm:$0xff] }
 0x955   :  { %9809 = vrot.lane.b32.xlu1 %v9808_v57, %s9855_s19  ;;  %v7012_v57 = vld [vmem:[%s14202_s9 + $0x110] sm:$0xff] }
 0x956   :  { %9804 = vrot.lane.b32.xlu0 %v9803_v0, %s9855_s19  ;;  %v8747_v38 = vpop.f32.mrb[196].mxu0 }
 0x957   :  { %v9818_v16 = vpack.i.bf16 %v8735_v27, %v8747_v38  ;;  %v6729_v42 = vpop.f32.mrb[197].mxu0 }
 0x958   :  { %v9813_v50 = vpack.i.bf16 %v6689_v19, %v6729_v42 }
 0x959   :  { %9819 = vrot.lane.b32.xlu1 %v9818_v16, %s9855_s19  ;;  %v7030_v16 = vld [vmem:[%s14202_s9 + $0x1a0] sm:$0xff] }
 0x95a   :  { %9814 = vrot.lane.b32.xlu0 %v9813_v50, %s9855_s19  ;;  %v13800_v35 = vpop.f32.mrb[198].mxu0 }
 0x95b   :  { %v13802_v25 = vpop.f32.mrb[199].mxu0 }
 0x95e   :  { %v13804_v44 = vpop.f32.mrb[200].mxu0 }
 0x95f   :  { %v13806_v9 = vpop.f32.mrb[201].mxu0 }
 0x962   :  { %v8756_v34 = vpop.f32.mrb[202].mxu0 }
 0x963   :  { %v6759_v6 = vpop.f32.mrb[203].mxu0 }
 0x966   :  { %v8759_v43 = vpop.f32.mrb[204].mxu0 }
 0x967   :  { %v6769_v8 = vpop.f32.mrb[205].mxu0 }
 0x96a   :  { %v13808_v28 = vpop.f32.mrb[206].mxu0 }
 0x96b   :  { %v13810_v3 = vpop.f32.mrb[207].mxu0 }
 0x96e   :  { %v13812_v62 = vpop.f32.mrb[208].mxu0 }
 0x96f   :  { %v13814_v4 = vpop.f32.mrb[209].mxu0 }
 0x972   :  { %v8768_v10 = vpop.f32.mrb[210].mxu0 }
 0x973   :  { %v9828_v29 = vpack.i.bf16 %v8756_v34, %v8768_v10  ;;  %v6799_v55 = vpop.f32.mrb[211].mxu0  ;;  %v8973_v34 = vpack.c.bf16 %v7013_v63, %v7012_v57  ;;  %v7039_v57 = vld [vmem:[%s14202_s9 + $0x1e8] sm:$0xff] }
 0x974   :  { %v9823_v41 = vpack.i.bf16 %v6759_v6, %v6799_v55  ;;  %v7033_v55 = vld [vmem:[%s14202_s9 + $0x1b8] sm:$0xff] }
 0x975   :  { %9829 = vrot.lane.b32.xlu1 %v9828_v29, %s9855_s19 }
 0x976   :  { %9824 = vrot.lane.b32.xlu0 %v9823_v41, %s9855_s19  ;;  %v8771_v33 = vpop.f32.mrb[212].mxu0 }
 0x977   :  { %v9838_v52 = vpack.i.bf16 %v8759_v43, %v8771_v33  ;;  %v6809_v36 = vpop.f32.mrb[213].mxu0  ;;  %v7014_v43 = vld [vmem:[%s14202_s9 + $0x120] sm:$0xff] }
 0x978   :  { %v9833_v45 = vpack.i.bf16 %v6769_v8, %v6809_v36  ;;  %v7015_v8 = vld [vmem:[%s14202_s9 + $0x128] sm:$0xff] }
 0x979   :  { %9839 = vrot.lane.b32.xlu1 %v9838_v52, %s9855_s19  ;;  %v8977_v52 = vpack.c.bf16 %v7015_v8, %v7014_v43  ;;  %v7058_v43 = vld [vmem:[%s14202_s9 + $0x280] sm:$0xff]  ;;  %v7059_v8 = vld [vmem:[%s14202_s9 + $0x288] sm:$0xff] }
 0x97a   :  { %9834 = vrot.lane.b32.xlu0 %v9833_v45, %s9855_s19  ;;  %v7017_v45 = vld [vmem:[%s14202_s9 + $0x138] sm:$0xff] }
 0x987   :  { %v9770_v2 = vpop.permute.xlu1 %9769 }
 0x988   :  { %v9765_v59 = vpop.permute.xlu0 %9764  ;;  %v9771_v15 = vunpack.i.l.bf16 %v9770_v2  ;;  %v9772_v0 = vunpack.i.h.bf16 %v9770_v2 }
 0x989   :  { %v9767_v12 = vunpack.i.h.bf16 %v9765_v59  ;;  %v9766_v13 = vunpack.i.l.bf16 %v9765_v59 }
 0x98a   :  { %v6951_v42 = vsel %vm5386_vm4, %v13730_v30, %v9771_v15  ;;  %v6947_v29 = vsel %vm5386_vm4, %v13710_v51, %v9772_v0  ;;  %v7032_v30 = vld [vmem:[%s14202_s9 + $0x1b0] sm:$0xff]  ;;  %v7019_v15 = vld [vmem:[%s14202_s9 + $0x148] sm:$0xff] }
 0x98b   :  { %v6946_v27 = vsel %vm5386_vm4, %v13721_v60, %v9767_v12  ;;  %v6950_v19 = vsel %vm5386_vm4, %v13732_v49, %v9766_v13  ;;  %v7031_v60 = vld [vmem:[%s14202_s9 + $0x1a8] sm:$0xff]  ;;  %v9780_v50 = vpop.permute.xlu1 %9779  ;;  %v8979_v36 = vpack.c.bf16 %v7033_v55, %v7032_v30  ;;  %v7016_v51 = vld [vmem:[%s14202_s9 + $0x130] sm:$0xff]  ;;  %v7037_v13 = vld [vmem:[%s14202_s9 + $0x1d8] sm:$0xff]  ;;  %v8999_v30 = vpack.c.bf16 %v7059_v8, %v7058_v43 }
 0x98c   :  { %7177 = vmatprep.mubr.f32.mxu0 %v6950_v19  ;;  %v9775_v38 = vpop.permute.xlu0 %9774  ;;  %v8975_v6 = vpack.c.bf16 %v7031_v60, %v7030_v16  ;;  %v9781_v41 = vunpack.i.l.bf16 %v9780_v50  ;;  %v9782_v2 = vunpack.i.h.bf16 %v9780_v50  ;;  %v8981_v26 = vpack.c.bf16 %v7017_v45, %v7016_v51  ;;  %v7020_v19 = vld [vmem:[%s14202_s9 + $0x150] sm:$0xff]  ;;  %v7023_v16 = vld [vmem:[%s14202_s9 + $0x168] sm:$0xff]  ;;  %v7042_v55 = vld [vmem:[%s14202_s9 + $0x200] sm:$0xff] }
 0x98d   :  { %v9776_v49 = vunpack.i.l.bf16 %v9775_v38  ;;  %7178 = vmatmul.mubr.f32.vlgmr.msra.gmra.mrb[214].mxu0 %v6946_v27  ;;  %v9777_v10 = vunpack.i.h.bf16 %v9775_v38  ;;  %v7022_v38 = vld [vmem:[%s14202_s9 + $0x160] sm:$0xff]  ;;  %v7040_v60 = vld [vmem:[%s14202_s9 + $0x1f0] sm:$0xff] }
 0x98e   :  { %7182 = vmatprep.mubr.f32.mxu0 %v6951_v42  ;;  %8970 = vmatpush3.bf16.msra.mxu0 %v8969_v48  ;;  %v6953_v59 = vsel %vm5386_vm4, %v13752_v32, %v9781_v41  ;;  %v6949_v12 = vsel %vm5386_vm4, %v13726_v23, %v9782_v2  ;;  %v7036_v32 = vld [vmem:[%s14202_s9 + $0x1d0] sm:$0xff]  ;;  %v7021_v23 = vld [vmem:[%s14202_s9 + $0x158] sm:$0xff]  ;;  %v8993_v42 = vpack.c.bf16 %v7023_v16, %v7022_v38  ;;  %v7043_v41 = vld [vmem:[%s14202_s9 + $0x208] sm:$0xff] }
 0x98f   :  { %8972 = vmatprep.subr.bf16.mxu0 %v8971_v56  ;;  %v6952_v33 = vsel %vm5386_vm4, %v13754_v58, %v9776_v49  ;;  %v6948_v20 = vsel %vm5386_vm4, %v13728_v61, %v9777_v10  ;;  %v7034_v58 = vld [vmem:[%s14202_s9 + $0x1c0] sm:$0xff]  ;;  %v8987_v27 = vpack.c.bf16 %v7037_v13, %v7036_v32  ;;  %v8989_v63 = vpack.c.bf16 %v7021_v23, %v7020_v19  ;;  %v7041_v49 = vld [vmem:[%s14202_s9 + $0x1f8] sm:$0xff]  ;;  %v7047_v23 = vld [vmem:[%s14202_s9 + $0x228] sm:$0xff] }
 0x990   :  { %v8983_v21 = vpack.c.bf16 %v7035_v18, %v7034_v58  ;;  %v7018_v61 = vld [vmem:[%s14202_s9 + $0x140] sm:$0xff]  ;;  %v8995_v50 = vpack.c.bf16 %v7041_v49, %v7040_v60  ;;  %v7049_v49 = vld [vmem:[%s14202_s9 + $0x238] sm:$0xff] }
 0x991   :  { %7183 = vmatmul.mubr.f32.gmra.mrb[216].mxu0 %v6947_v29  ;;  %v8985_v48 = vpack.c.bf16 %v7019_v15, %v7018_v61  ;;  %v7038_v56 = vld [vmem:[%s14202_s9 + $0x1e0] sm:$0xff] }
 0x992   :  { %7187 = vmatprep.mubr.f32.mxu0 %v6952_v33  ;;  %8974 = vmatpush3.bf16.msra.mxu0 %v8973_v34  ;;  %v8991_v0 = vpack.c.bf16 %v7039_v57, %v7038_v56  ;;  %v7024_v34 = vld [vmem:[%s14202_s9 + $0x170] sm:$0xff]  ;;  %v7046_v19 = vld [vmem:[%s14202_s9 + $0x220] sm:$0xff] }
 0x993   :  { %8976 = vmatprep.subr.bf16.mxu0 %v8975_v6  ;;  %v7025_v6 = vld [vmem:[%s14202_s9 + $0x178] sm:$0xff]  ;;  %v9009_v16 = vpack.c.bf16 %v7047_v23, %v7046_v19  ;;  %v7092_v19 = vld [vmem:[%s14202_s9 + $0x390] sm:$0xff] }
 0x994   :  { %v8997_v10 = vpack.c.bf16 %v7025_v6, %v7024_v34  ;;  %v7067_v34 = vld [vmem:[%s14202_s9 + $0x2c8] sm:$0xff]  ;;  %v7093_v23 = vld [vmem:[%s14202_s9 + $0x398] sm:$0xff] }
 0x995   :  { %7188 = vmatmul.mubr.f32.gmra.mrb[218].mxu0 %v6948_v20  ;;  %v9001_v20 = vpack.c.bf16 %v7043_v41, %v7042_v55 }
 0x996   :  { %7192 = vmatprep.mubr.f32.mxu0 %v6953_v59  ;;  %8978 = vmatpush3.bf16.msra.mxu0 %v8977_v52  ;;  %v7060_v52 = vld [vmem:[%s14202_s9 + $0x290] sm:$0xff] }
 0x997   :  { %8980 = vmatprep.subr.bf16.mxu0 %v8979_v36  ;;  %v7061_v36 = vld [vmem:[%s14202_s9 + $0x298] sm:$0xff] }
 0x998   :  { %v9003_v59 = vpack.c.bf16 %v7061_v36, %v7060_v52  ;;  %v7070_v52 = vld [vmem:[%s14202_s9 + $0x2e0] sm:$0xff]  ;;  %v7071_v36 = vld [vmem:[%s14202_s9 + $0x2e8] sm:$0xff] }
 0x999   :  { %7193 = vmatmul.mubr.f32.gmra.mrb[220].mxu0 %v6949_v12 }
 0x99a   :  { %8982 = vmatpush3.bf16.msra.mxu0 %v8981_v26  ;;  %v7044_v26 = vld [vmem:[%s14202_s9 + $0x210] sm:$0xff] }
 0x99b   :  { %8984 = vmatprep.subr.bf16.mxu0 %v8983_v21  ;;  %v7045_v21 = vld [vmem:[%s14202_s9 + $0x218] sm:$0xff] }
 0x99e   :  { %8986 = vmatpush3.bf16.msra.mxu0 %v8985_v48  ;;  %v9005_v48 = vpack.c.bf16 %v7045_v21, %v7044_v26  ;;  %v7056_v21 = vld [vmem:[%s14202_s9 + $0x270] sm:$0xff] }
 0x99f   :  { %8988 = vmatprep.subr.bf16.mxu0 %v8987_v27 }
 0x9a2   :  { %8990 = vmatpush3.bf16.msra.mxu0 %v8989_v63  ;;  %v7065_v63 = vld [vmem:[%s14202_s9 + $0x2b8] sm:$0xff] }
 0x9a3   :  { %8992 = vmatprep.subr.bf16.mxu0 %v8991_v0 }
 0x9a6   :  { %8994 = vmatpush3.bf16.msra.mxu0 %v8993_v42 }
 0x9a7   :  { %v9790_v29 = vpop.permute.xlu1 %9789  ;;  %8996 = vmatprep.subr.bf16.mxu0 %v8995_v50 }
 0x9a8   :  { %v9785_v33 = vpop.permute.xlu0 %9784  ;;  %v9791_v51 = vunpack.i.l.bf16 %v9790_v29  ;;  %v9792_v61 = vunpack.i.h.bf16 %v9790_v29 }
 0x9a9   :  { %v9787_v45 = vunpack.i.h.bf16 %v9785_v33  ;;  %v9786_v2 = vunpack.i.l.bf16 %v9785_v33  ;;  %v7052_v33 = vld [vmem:[%s14202_s9 + $0x250] sm:$0xff] }
 0x9aa   :  { %8998 = vmatpush3.bf16.msra.mxu0 %v8997_v10  ;;  %v6959_v32 = vsel %vm5386_vm4, %v13768_v40, %v9791_v51  ;;  %v6955_v57 = vsel %vm5386_vm4, %v13760_v7, %v9792_v61  ;;  %v7064_v40 = vld [vmem:[%s14202_s9 + $0x2b0] sm:$0xff]  ;;  %v7051_v10 = vld [vmem:[%s14202_s9 + $0x248] sm:$0xff]  ;;  %v7057_v61 = vld [vmem:[%s14202_s9 + $0x278] sm:$0xff] }
 0x9ab   :  { %v6954_v58 = vsel %vm5386_vm4, %v13762_v17, %v9787_v45  ;;  %v6958_v18 = vsel %vm5386_vm4, %v13770_v24, %v9786_v2  ;;  %9000 = vmatprep.subr.bf16.mxu0 %v8999_v30  ;;  %v7062_v17 = vld [vmem:[%s14202_s9 + $0x2a0] sm:$0xff]  ;;  %v7063_v24 = vld [vmem:[%s14202_s9 + $0x2a8] sm:$0xff]  ;;  %v9800_v13 = vpop.permute.xlu1 %9799  ;;  %v9011_v60 = vpack.c.bf16 %v7065_v63, %v7064_v40  ;;  %v7048_v7 = vld [vmem:[%s14202_s9 + $0x230] sm:$0xff]  ;;  %v9023_v45 = vpack.c.bf16 %v7071_v36, %v7070_v52 }
 0x9ac   :  { %7262 = vmatprep.mubr.f32.mxu0 %v6958_v18  ;;  %v9795_v15 = vpop.permute.xlu0 %9794  ;;  %v9007_v27 = vpack.c.bf16 %v7063_v24, %v7062_v17  ;;  %v9801_v0 = vunpack.i.l.bf16 %v9800_v13  ;;  %v9802_v42 = vunpack.i.h.bf16 %v9800_v13  ;;  %v9013_v43 = vpack.c.bf16 %v7049_v49, %v7048_v7  ;;  %v7069_v30 = vld [vmem:[%s14202_s9 + $0x2d8] sm:$0xff]  ;;  %v7054_v2 = vld [vmem:[%s14202_s9 + $0x260] sm:$0xff]  ;;  %v7091_v17 = vld [vmem:[%s14202_s9 + $0x388] sm:$0xff] }
 0x9ad   :  { %v9796_v12 = vunpack.i.l.bf16 %v9795_v15  ;;  %7263 = vmatmul.mubr.f32.vlgmr.msra.gmra.mrb[222].mxu0 %v6954_v58  ;;  %v9797_v56 = vunpack.i.h.bf16 %v9795_v15  ;;  %v7072_v58 = vld [vmem:[%s14202_s9 + $0x2f0] sm:$0xff]  ;;  %v7073_v18 = vld [vmem:[%s14202_s9 + $0x2f8] sm:$0xff]  ;;  %v7090_v15 = vld [vmem:[%s14202_s9 + $0x380] sm:$0xff]  ;;  %v9029_v24 = vpack.c.bf16 %v7057_v61, %v7056_v21 }
 0x9ae   :  { %7267 = vmatprep.mubr.f32.mxu0 %v6959_v32  ;;  %9002 = vmatpush3.bf16.msra.mxu0 %v9001_v20  ;;  %v6961_v6 = vsel %vm5386_vm4, %v13772_v11, %v9801_v0  ;;  %v6957_v29 = vsel %vm5386_vm4, %v13764_v14, %v9802_v42  ;;  %v7068_v11 = vld [vmem:[%s14202_s9 + $0x2d0] sm:$0xff]  ;;  %v7053_v14 = vld [vmem:[%s14202_s9 + $0x258] sm:$0xff]  ;;  %v7055_v20 = vld [vmem:[%s14202_s9 + $0x268] sm:$0xff]  ;;  %v9027_v26 = vpack.c.bf16 %v7073_v18, %v7072_v58 }
 0x9af   :  { %9004 = vmatprep.subr.bf16.mxu0 %v9003_v59  ;;  %v6960_v38 = vsel %vm5386_vm4, %v13774_v53, %v9796_v12  ;;  %v6956_v50 = vsel %vm5386_vm4, %v13766_v1, %v9797_v56  ;;  %v7066_v53 = vld [vmem:[%s14202_s9 + $0x2c0] sm:$0xff]  ;;  %v9019_v41 = vpack.c.bf16 %v7069_v30, %v7068_v11  ;;  %v9021_v51 = vpack.c.bf16 %v7053_v14, %v7052_v33  ;;  %v7077_v7 = vld [vmem:[%s14202_s9 + $0x318] sm:$0xff]  ;;  %v7083_v58 = vld [vmem:[%s14202_s9 + $0x348] sm:$0xff] }
 0x9b0   :  { %v9015_v8 = vpack.c.bf16 %v7067_v34, %v7066_v53  ;;  %v7050_v1 = vld [vmem:[%s14202_s9 + $0x240] sm:$0xff]  ;;  %v9025_v59 = vpack.c.bf16 %v7055_v20, %v7054_v2  ;;  %v9031_v32 = vpack.c.bf16 %v7091_v17, %v7090_v15  ;;  %v7097_v11 = vld [vmem:[%s14202_s9 + $0x3b8] sm:$0xff]  ;;  %v7084_v61 = vld [vmem:[%s14202_s9 + $0x350] sm:$0xff] }
 0x9b1   :  { %7268 = vmatmul.mubr.f32.gmra.mrb[224].mxu0 %v6955_v57  ;;  %v9017_v55 = vpack.c.bf16 %v7051_v10, %v7050_v1  ;;  %v7074_v13 = vld [vmem:[%s14202_s9 + $0x300] sm:$0xff]  ;;  %v7079_v1 = vld [vmem:[%s14202_s9 + $0x328] sm:$0xff]  ;;  %v7081_v14 = vld [vmem:[%s14202_s9 + $0x338] sm:$0xff] }
 0x9b2   :  { %7272 = vmatprep.mubr.f32.mxu0 %v6960_v38  ;;  %9006 = vmatpush3.bf16.msra.mxu0 %v9005_v48  ;;  %v7075_v48 = vld [vmem:[%s14202_s9 + $0x308] sm:$0xff]  ;;  %v7102_v15 = vld [vmem:[%s14202_s9 + $0x3e0] sm:$0xff] }
 0x9b3   :  { %9008 = vmatprep.subr.bf16.mxu0 %v9007_v27  ;;  %v9033_v63 = vpack.c.bf16 %v7075_v48, %v7074_v13  ;;  %v7103_v17 = vld [vmem:[%s14202_s9 + $0x3e8] sm:$0xff]  ;;  %v7104_v48 = vld [vmem:[%s14202_s9 + $0x3f0] sm:$0xff] }
 0x9b4   :  { %v7087_v13 = vld [vmem:[%s14202_s9 + $0x368] sm:$0xff] }
 0x9b5   :  { %7273 = vmatmul.mubr.f32.gmra.mrb[226].mxu0 %v6956_v50 }
 0x9b6   :  { %7277 = vmatprep.mubr.f32.mxu0 %v6961_v6  ;;  %9010 = vmatpush3.bf16.msra.mxu0 %v9009_v16  ;;  %v9035_v16 = vpack.c.bf16 %v7093_v23, %v7092_v19 }
 0x9b7   :  { %9012 = vmatprep.subr.bf16.mxu0 %v9011_v60  ;;  %v7076_v60 = vld [vmem:[%s14202_s9 + $0x310] sm:$0xff] }
 0x9b8   :  { %v9037_v6 = vpack.c.bf16 %v7077_v7, %v7076_v60 }
 0x9b9   :  { %7278 = vmatmul.mubr.f32.gmra.mrb[228].mxu0 %v6957_v29 }
 0x9ba   :  { %9014 = vmatpush3.bf16.msra.mxu0 %v9013_v43 }
 0x9bb   :  { %9016 = vmatprep.subr.bf16.mxu0 %v9015_v8  ;;  %v7078_v8 = vld [vmem:[%s14202_s9 + $0x320] sm:$0xff] }
 0x9be   :  { %9018 = vmatpush3.bf16.msra.mxu0 %v9017_v55 }
 0x9bf   :  { %9020 = vmatprep.subr.bf16.mxu0 %v9019_v41  ;;  %v9041_v41 = vpack.c.bf16 %v7079_v1, %v7078_v8 }
 0x9c2   :  { %9022 = vmatpush3.bf16.msra.mxu0 %v9021_v51  ;;  %v7099_v51 = vld [vmem:[%s14202_s9 + $0x3c8] sm:$0xff] }
 0x9c3   :  { %9024 = vmatprep.subr.bf16.mxu0 %v9023_v45 }
 0x9c6   :  { %9026 = vmatpush3.bf16.msra.mxu0 %v9025_v59  ;;  %v7101_v59 = vld [vmem:[%s14202_s9 + $0x3d8] sm:$0xff] }
 0x9c7   :  { %v9810_v12 = vpop.permute.xlu1 %9809  ;;  %9028 = vmatprep.subr.bf16.mxu0 %v9027_v26 }
 0x9c8   :  { %v9805_v27 = vpop.permute.xlu0 %9804  ;;  %v9811_v56 = vunpack.i.l.bf16 %v9810_v12  ;;  %v9812_v49 = vunpack.i.h.bf16 %v9810_v12  ;;  %v9055_v12 = vpack.c.bf16 %v7103_v17, %v7102_v15 }
 0x9c9   :  { %v9807_v57 = vunpack.i.h.bf16 %v9805_v27  ;;  %v9806_v40 = vunpack.i.l.bf16 %v9805_v27  ;;  %v7105_v27 = vld [vmem:[%s14202_s9 + $0x3f8] sm:$0xff] }
 0x9ca   :  { %9030 = vmatpush3.bf16.msra.mxu0 %v9029_v24  ;;  %v6967_v53 = vsel %vm5386_vm4, %v13788_v5, %v9811_v56  ;;  %v6963_v29 = vsel %vm5386_vm4, %v13780_v37, %v9812_v49  ;;  %v7096_v5 = vld [vmem:[%s14202_s9 + $0x3b0] sm:$0xff]  ;;  %v9059_v23 = vpack.c.bf16 %v7105_v27, %v7104_v48 }
 0x9cb   :  { %v6962_v0 = vsel %vm5386_vm4, %v13782_v22, %v9807_v57  ;;  %v6966_v38 = vsel %vm5386_vm4, %v13790_v47, %v9806_v40  ;;  %9032 = vmatprep.subr.bf16.mxu0 %v9031_v32  ;;  %v7094_v22 = vld [vmem:[%s14202_s9 + $0x3a0] sm:$0xff]  ;;  %v7095_v47 = vld [vmem:[%s14202_s9 + $0x3a8] sm:$0xff]  ;;  %v9820_v34 = vpop.permute.xlu1 %9819  ;;  %v9043_v33 = vpack.c.bf16 %v7097_v11, %v7096_v5  ;;  %v7080_v37 = vld [vmem:[%s14202_s9 + $0x330] sm:$0xff] }
 0x9cc   :  { %7347 = vmatprep.mubr.f32.mxu0 %v6966_v38  ;;  %v9815_v42 = vpop.permute.xlu0 %9814  ;;  %v9039_v43 = vpack.c.bf16 %v7095_v47, %v7094_v22  ;;  %v9821_v30 = vunpack.i.l.bf16 %v9820_v34  ;;  %v9822_v52 = vunpack.i.h.bf16 %v9820_v34  ;;  %v9045_v2 = vpack.c.bf16 %v7081_v14, %v7080_v37  ;;  %v7086_v32 = vld [vmem:[%s14202_s9 + $0x360] sm:$0xff]  ;;  %v7088_v56 = vld [vmem:[%s14202_s9 + $0x370] sm:$0xff]  ;;  %v7089_v57 = vld [vmem:[%s14202_s9 + $0x378] sm:$0xff] }
 0x9cd   :  { %v9816_v50 = vunpack.i.l.bf16 %v9815_v42  ;;  %7348 = vmatmul.mubr.f32.vlgmr.msra.gmra.mrb[230].mxu0 %v6962_v0  ;;  %v9817_v10 = vunpack.i.h.bf16 %v9815_v42  ;;  %v9057_v19 = vpack.c.bf16 %v7087_v13, %v7086_v32  ;;  %v9061_v40 = vpack.c.bf16 %v7089_v57, %v7088_v56 }
 0x9ce   :  { %7352 = vmatprep.mubr.f32.mxu0 %v6967_v53  ;;  %9034 = vmatpush3.bf16.msra.mxu0 %v9033_v63  ;;  %v6969_v45 = vsel %vm5386_vm4, %v13792_v31, %v9821_v30  ;;  %v6965_v18 = vsel %vm5386_vm4, %v13784_v46, %v9822_v52  ;;  %v7100_v31 = vld [vmem:[%s14202_s9 + $0x3d0] sm:$0xff]  ;;  %v7085_v46 = vld [vmem:[%s14202_s9 + $0x358] sm:$0xff] }
 0x9cf   :  { %9036 = vmatprep.subr.bf16.mxu0 %v9035_v16  ;;  %v6968_v55 = vsel %vm5386_vm4, %v13794_v39, %v9816_v50  ;;  %v6964_v36 = vsel %vm5386_vm4, %v13786_v54, %v9817_v10  ;;  %v7098_v39 = vld [vmem:[%s14202_s9 + $0x3c0] sm:$0xff]  ;;  %v9051_v21 = vpack.c.bf16 %v7101_v59, %v7100_v31  ;;  %v9053_v24 = vpack.c.bf16 %v7085_v46, %v7084_v61 }
 0x9d0   :  { %v9047_v20 = vpack.c.bf16 %v7099_v51, %v7098_v39  ;;  %v7082_v54 = vld [vmem:[%s14202_s9 + $0x340] sm:$0xff] }
 0x9d1   :  { %7353 = vmatmul.mubr.f32.gmra.mrb[232].mxu0 %v6963_v29  ;;  %v9049_v26 = vpack.c.bf16 %v7083_v58, %v7082_v54 }
 0x9d2   :  { %7357 = vmatprep.mubr.f32.mxu0 %v6968_v55  ;;  %9038 = vmatpush3.bf16.msra.mxu0 %v9037_v6 }
 0x9d3   :  { %9040 = vmatprep.subr.bf16.mxu0 %v9039_v43 }
 0x9d5   :  { %7358 = vmatmul.mubr.f32.gmra.mrb[234].mxu0 %v6964_v36 }
 0x9d6   :  { %7362 = vmatprep.mubr.f32.mxu0 %v6969_v45  ;;  %9042 = vmatpush3.bf16.msra.mxu0 %v9041_v41 }
 0x9d7   :  { %9044 = vmatprep.subr.bf16.mxu0 %v9043_v33 }
 0x9d9   :  { %7363 = vmatmul.mubr.f32.gmra.mrb[236].mxu0 %v6965_v18 }
 0x9da   :  { %9046 = vmatpush3.bf16.msra.mxu0 %v9045_v2 }
 0x9db   :  { %9048 = vmatprep.subr.bf16.mxu0 %v9047_v20 }
 0x9de   :  { %9050 = vmatpush3.bf16.msra.mxu0 %v9049_v26 }
 0x9df   :  { %9052 = vmatprep.subr.bf16.mxu0 %v9051_v21 }
 0x9e2   :  { %9054 = vmatpush3.bf16.msra.mxu0 %v9053_v24 }
 0x9e3   :  { %9056 = vmatprep.subr.bf16.mxu0 %v9055_v12 }
 0x9e6   :  { %9058 = vmatpush3.bf16.msra.mxu0 %v9057_v19 }
 0x9e7   :  { %v9830_v63 = vpop.permute.xlu1 %9829  ;;  %9060 = vmatprep.subr.bf16.mxu0 %v9059_v23 }
 0x9e8   :  { %v9825_v0 = vpop.permute.xlu0 %9824  ;;  %v9831_v38 = vunpack.i.l.bf16 %v9830_v63  ;;  %v9832_v42 = vunpack.i.h.bf16 %v9830_v63 }
 0x9e9   :  { %v9827_v16 = vunpack.i.h.bf16 %v9825_v0  ;;  %v9826_v60 = vunpack.i.l.bf16 %v9825_v0 }
 0x9ea   :  { %9062 = vmatpush3.bf16.msra.mxu0 %v9061_v40  ;;  %v6975_v50 = vsel %vm5386_vm4, %v13808_v28, %v9831_v38  ;;  %v6971_v6 = vsel %vm5386_vm4, %v13800_v35, %v9832_v42 }
 0x9eb   :  { %v6970_v7 = vsel %vm5386_vm4, %v13802_v25, %v9827_v16  ;;  %v6974_v49 = vsel %vm5386_vm4, %v13810_v3, %v9826_v60  ;;  %v9840_v53 = vpop.permute.xlu1 %9839 }
 0x9ec   :  { %7432 = vmatprep.mubr.f32.mxu0 %v6974_v49  ;;  %v9835_v22 = vpop.permute.xlu0 %9834  ;;  %v9841_v43 = vunpack.i.l.bf16 %v9840_v53  ;;  %v9842_v3 = vunpack.i.h.bf16 %v9840_v53 }
 0x9ed   :  { %v9836_v47 = vunpack.i.l.bf16 %v9835_v22  ;;  %7433 = vmatmul.mubr.f32.vlgmr.msra.gmra.mrb[238].mxu0 %v6970_v7  ;;  %v9837_v34 = vunpack.i.h.bf16 %v9835_v22 }
 0x9ee   :  { %7437 = vmatprep.mubr.f32.mxu0 %v6975_v50  ;;  %v6977_v28 = vsel %vm5386_vm4, %v13812_v62, %v9841_v43  ;;  %v6973_v1 = vsel %vm5386_vm4, %v13804_v44, %v9842_v3  ;;  %v7890_v62 = vld [vmem:[%s14203_s10] ss:$0 sm:$0xff] }
 0x9ef   :  { %v6976_v25 = vsel %vm5386_vm4, %v13814_v4, %v9836_v47  ;;  %v6972_v8 = vsel %vm5386_vm4, %v13806_v9, %v9837_v34 }
 0x9f1   :  { %7438 = vmatmul.mubr.f32.gmra.mrb[240].mxu0 %v6971_v6 }
 0x9f2   :  { %7442 = vmatprep.mubr.f32.mxu0 %v6976_v25 }
 0x9f5   :  { %7443 = vmatmul.mubr.f32.gmra.mrb[242].mxu0 %v6972_v8 }
 0x9f6   :  { %7447 = vmatprep.mubr.f32.mxu0 %v6977_v28 }
 0x9f9   :  { %7448 = vmatmul.mubr.f32.gmra.mrb[244].mxu0 %v6973_v1 }
 0xa60   :  { %v8355_v35 = vpop.f32.mrb[214].mxu0 }
 0xa61   :  { %v8356_v10 = vpop.f32.mrb[215].mxu0 }
 0xa62   :  { %v8357_v29 = vadd.f32 %v8356_v10, %v8355_v35 }
 0xa64   :  { %v8358_v5 = vpop.f32.mrb[216].mxu0  ;;  %v7180_v44 = vadd.f32 %v8357_v29, %v7890_v62 }
 0xa65   :  { %v8359_v11 = vpop.f32.mrb[217].mxu0 }
 0xa66   :  { %v8360_v4 = vadd.f32 %v8359_v11, %v8358_v5 }
 0xa68   :  { %v8361_v30 = vpop.f32.mrb[218].mxu0  ;;  %v7185_v2 = vadd.f32 %v8360_v4, %v7890_v62 }
 0xa69   :  { %v8362_v55 = vpop.f32.mrb[219].mxu0 }
 0xa6a   :  { %v8363_v41 = vadd.f32 %v8362_v55, %v8361_v30 }
 0xa6c   :  { %v8364_v33 = vpop.f32.mrb[220].mxu0  ;;  %v7190_v31 = vadd.f32 %v8363_v41, %v7890_v62 }
 0xa6d   :  { %v8365_v9 = vpop.f32.mrb[221].mxu0 }
 0xa6e   :  { %v8366_v37 = vadd.f32 %v8365_v9, %v8364_v33 }
 0xa70   :  { %v7195_v46 = vadd.f32 %v8366_v37, %v7890_v62 }
 0xa80   :  { %v8399_v14 = vpop.f32.mrb[222].mxu0 }
 0xa81   :  { %v8400_v52 = vpop.f32.mrb[223].mxu0 }
 0xa82   :  { %v8401_v36 = vadd.f32 %v8400_v52, %v8399_v14 }
 0xa84   :  { %v7265_v39 = vadd.f32 %v8401_v36, %v7180_v44  ;;  %v8402_v51 = vpop.f32.mrb[224].mxu0 }
 0xa85   :  { %v8403_v45 = vpop.f32.mrb[225].mxu0 }
 0xa86   :  { %v8404_v20 = vadd.f32 %v8403_v45, %v8402_v51 }
 0xa88   :  { %v7270_v54 = vadd.f32 %v8404_v20, %v7185_v2  ;;  %v8405_v58 = vpop.f32.mrb[226].mxu0 }
 0xa89   :  { %v8406_v18 = vpop.f32.mrb[227].mxu0 }
 0xa8a   :  { %v8407_v59 = vadd.f32 %v8406_v18, %v8405_v58 }
 0xa8c   :  { %v7275_v26 = vadd.f32 %v8407_v59, %v7190_v31  ;;  %v8408_v21 = vpop.f32.mrb[228].mxu0 }
 0xa8d   :  { %v8409_v61 = vpop.f32.mrb[229].mxu0 }
 0xa8e   :  { %v8410_v15 = vadd.f32 %v8409_v61, %v8408_v21 }
 0xa90   :  { %v7280_v17 = vadd.f32 %v8410_v15, %v7195_v46  ;;  %v7891_v15 = vld [vmem:[%s14204_s11] ss:$0 sm:$0xff] }
 0xaa0   :  { %v8443_v24 = vpop.f32.mrb[230].mxu0 }
 0xaa1   :  { %v8444_v12 = vpop.f32.mrb[231].mxu0 }
 0xaa2   :  { %v8445_v32 = vadd.f32 %v8444_v12, %v8443_v24 }
 0xaa4   :  { %v7350_v13 = vadd.f32 %v8445_v32, %v7265_v39  ;;  %v8446_v48 = vpop.f32.mrb[232].mxu0 }
 0xaa5   :  { %v8447_v27 = vpop.f32.mrb[233].mxu0 }
 0xaa6   :  { %v8448_v19 = vadd.f32 %v8447_v27, %v8446_v48 }
 0xaa8   :  { %v7355_v23 = vadd.f32 %v8448_v19, %v7270_v54  ;;  %v8449_v56 = vpop.f32.mrb[234].mxu0 }
 0xaa9   :  { %v8450_v57 = vpop.f32.mrb[235].mxu0 }
 0xaaa   :  { %v8451_v40 = vadd.f32 %v8450_v57, %v8449_v56 }
 0xaac   :  { %v7360_v63 = vadd.f32 %v8451_v40, %v7275_v26  ;;  %v8452_v0 = vpop.f32.mrb[236].mxu0 }
 0xaad   :  { %v8453_v38 = vpop.f32.mrb[237].mxu0 }
 0xaae   :  { %v8454_v16 = vadd.f32 %v8453_v38, %v8452_v0 }
 0xab0   :  { %v7365_v60 = vadd.f32 %v8454_v16, %v7280_v17 }
 0xac0   :  { %v8487_v7 = vpop.f32.mrb[238].mxu0 }
 0xac1   :  { %v8488_v49 = vpop.f32.mrb[239].mxu0 }
 0xac2   :  { %v8489_v42 = vadd.f32 %v8488_v49, %v8487_v7  ;;  %v7520_v7 = vld [vmem:[%s14206_s13 + $0x18] sm:$0xff] }
 0xac4   :  { %v7435_v22 = vadd.f32 %v8489_v42, %v7350_v13  ;;  %v8490_v47 = vpop.f32.mrb[240].mxu0  ;;  %v7892_v13 = vld [vmem:[%s14205_s12] ss:$0 sm:$0xff] }
 0xac5   :  { %v8491_v50 = vpop.f32.mrb[241].mxu0  ;;  %v7517_v42 = vld [vmem:[%s14206_s13] sm:$0xff] }
 0xac6   :  { %v8492_v53 = vadd.f32 %v8491_v50, %v8490_v47 }
 0xac8   :  { %v7440_v34 = vadd.f32 %v8492_v53, %v7355_v23  ;;  %v8493_v6 = vpop.f32.mrb[242].mxu0  ;;  %v7518_v53 = vld [vmem:[%s14206_s13 + $0x8] sm:$0xff] }
 0xac9   :  { %v8494_v43 = vpop.f32.mrb[243].mxu0 }
 0xaca   :  { %v7455_v25 = vadd.f32 %v7440_v34, %v7435_v22  ;;  %v8495_v3 = vadd.f32 %v8494_v43, %v8493_v6 }
 0xacc   :  { %v7445_v8 = vadd.f32 %v8495_v3, %v7360_v63  ;;  %v8496_v28 = vpop.f32.mrb[244].mxu0 }
 0xacd   :  { %v8497_v1 = vpop.f32.mrb[245].mxu0 }
 0xace   :  { %v7456_v35 = vadd.f32 %v7455_v25, %v7445_v8  ;;  %v8498_v10 = vadd.f32 %v8497_v1, %v8496_v28 }
 0xad0   :  { %v7450_v29 = vadd.f32 %v8498_v10, %v7365_v60  ;;  %v7519_v60 = vld [vmem:[%s14206_s13 + $0x10] sm:$0xff] }
 0xad2   :  { %v7457_v5 = vadd.f32 %v7456_v35, %v7450_v29 }
 0xad4   :  { %v7458_v11 = vrot.slane %v7457_v5, 4 }
 0xad6   :  { %v7459_v4 = vadd.f32 %v7458_v11, %v7457_v5 }
 0xad8   :  { %v7460_v30 = vrot.slane %v7459_v4, 2 }
 0xada   :  { %v7461_v55 = vadd.f32 %v7460_v30, %v7459_v4 }
 0xadc   :  { %v7462_v41 = vrot.slane %v7461_v55, 1 }
 0xade   :  { %v7463_v33 = vadd.f32 %v7462_v41, %v7461_v55 }
 0xae0   :  { %v7464_v9 = vmul.f32 0.03125, %v7463_v33 }
 0xae2   :  { %v7465_v37 = vsub.f32 %v7435_v22, %v7464_v9  ;;  %v7466_v62 = vsub.f32 %v7440_v34, %v7464_v9  ;;  %v7467_v14 = vsub.f32 %v7445_v8, %v7464_v9  ;;  %v7468_v52 = vsub.f32 %v7450_v29, %v7464_v9 }
 0xae4   :  { %v7469_v44 = vmul.f32 %v7465_v37, %v7465_v37  ;;  %v7470_v36 = vmul.f32 %v7466_v62, %v7466_v62  ;;  %v7471_v39 = vmul.f32 %v7467_v14, %v7467_v14  ;;  %v7472_v45 = vmul.f32 %v7468_v52, %v7468_v52 }
 0xae6   :  { %v7473_v51 = vadd.f32 %v7470_v36, %v7469_v44 }
 0xae8   :  { %v7474_v2 = vadd.f32 %v7473_v51, %v7471_v39 }
 0xaea   :  { %v7475_v20 = vadd.f32 %v7474_v2, %v7472_v45 }
 0xaec   :  { %v7476_v54 = vrot.slane %v7475_v20, 4 }
 0xaee   :  { %v7477_v58 = vadd.f32 %v7476_v54, %v7475_v20 }
 0xaf0   :  { %v7478_v18 = vrot.slane %v7477_v58, 2 }
 0xaf2   :  { %v7479_v31 = vadd.f32 %v7478_v18, %v7477_v58 }
 0xaf4   :  { %v7480_v59 = vrot.slane %v7479_v31, 1 }
 0xaf6   :  { %v7481_v26 = vadd.f32 %v7480_v59, %v7479_v31 }
 0xaf8   :  { %v7482_v21 = vmul.f32 0.03125, %v7481_v26 }
 0xafa   :  { %v7483_v61 = vadd.f32 1e-05, %v7482_v21 }
 0xafc   :  { %9845 = vrsqrt.f32 %v7483_v61 }
 0xb06   :  { %v9846_v46 = vpop.eup %9845 }
 0xb07   :  { %v7488_v17 = vmul.f32 %v9846_v46, %v7468_v52  ;;  %v7487_v24 = vmul.f32 %v9846_v46, %v7467_v14  ;;  %v7485_v12 = vmul.f32 %v9846_v46, %v7465_v37  ;;  %v7486_v32 = vmul.f32 %v9846_v46, %v7466_v62 }
 0xb08   :  { %v7550_v52 = vstv %s14207_s14 }
 0xb09   :  { %v7498_v48 = vmul.f32 %v7891_v15, %v7488_v17  ;;  %v7497_v27 = vmul.f32 %v7891_v15, %v7487_v24  ;;  %v7495_v19 = vmul.f32 %v7891_v15, %v7485_v12  ;;  %v7496_v23 = vmul.f32 %v7891_v15, %v7486_v32 }
 0xb0b   :  { %v7507_v56 = vadd.f32 %v7892_v13, %v7497_v27  ;;  %v7508_v57 = vadd.f32 %v7892_v13, %v7498_v48  ;;  %v7505_v40 = vadd.f32 %v7892_v13, %v7495_v19  ;;  %v7506_v63 = vadd.f32 %v7892_v13, %v7496_v23 }
 0xb0d   :  { %v7511_v0 = vmul.f32 0.2, %v7507_v56  ;;  %v7512_v38 = vmul.f32 0.2, %v7508_v57  ;;  %v7509_v16 = vmul.f32 0.2, %v7505_v40 }
 0xb0e   :  { %v7510_v49 = vmul.f32 0.2, %v7506_v63 }
 0xb0f   :  { %v7515_v22 = vmax.f32 %v7507_v56, %v7511_v0  ;;  %v7516_v47 = vmax.f32 %v7508_v57, %v7512_v38  ;;  %v7513_v50 = vmax.f32 %v7505_v40, %v7509_v16 }
 0xb10   :  { %v7514_v34 = vmax.f32 %v7506_v63, %v7510_v49 }
 0xb11   :  { %v7523_v6 = vmul.f32 %v7519_v60, %v7515_v22  ;;  %v7524_v43 = vmul.f32 %v7520_v7, %v7516_v47  ;;  %v7521_v25 = vmul.f32 %v7517_v42, %v7513_v50 }
 0xb12   :  { %v7522_v3 = vmul.f32 %v7518_v53, %v7514_v34 }
 0xb13   :  { %v7536_v8 = vadd.f32 %v7524_v43, %v7523_v6 }
 0xb14   :  { %v7525_v28 = vadd.f32 %v7522_v3, %v7521_v25 }
 0xb15   :  { %7537 = vadd.xlane.f32.xlu1 %v7536_v8 }
 0xb16   :  { %7526 = vadd.xlane.f32.xlu0 %v7525_v28 }
 0xba2   :  { %v7538_v1 = vpop.xlane.xlu1 %7537 }
 0xba3   :  { %v7539_v35 = vrot.slane %v7538_v1, 4  ;;  %v7527_v10 = vpop.xlane.xlu0 %7526 }
 0xba4   :  { %v7528_v29 = vrot.slane %v7527_v10, 4 }
 0xba5   :  { %v7540_v5 = vadd.f32 %v7539_v35, %v7538_v1 }
 0xba6   :  { %v7529_v11 = vadd.f32 %v7528_v29, %v7527_v10 }
 0xba7   :  { %v7541_v4 = vrot.slane %v7540_v5, 2 }
 0xba8   :  { %v7530_v30 = vrot.slane %v7529_v11, 2 }
 0xba9   :  { %v7542_v55 = vadd.f32 %v7541_v4, %v7540_v5 }
 0xbaa   :  { %v7531_v41 = vadd.f32 %v7530_v30, %v7529_v11 }
 0xbab   :  { %v7543_v33 = vrot.slane %v7542_v55, 1 }
 0xbac   :  { %v7532_v9 = vrot.slane %v7531_v41, 1 }
 0xbad   :  { %v7544_v37 = vadd.f32 %v7543_v33, %v7542_v55 }
 0xbae   :  { %v7533_v62 = vadd.f32 %v7532_v9, %v7531_v41 }
 0xbb0   :  { %9363 = vpush %v7533_v62 }
 0xbb1   :  { %9365 = vpush %v7544_v37 }
 0xbe1   :  { %s9364_s13 = spop %9363 }
 0xbe2   :  { %v7535_v14 = vstv %s9364_s13  ;;  %s9366_s8 = spop %9365 }
 0xbe3   :  { %v7546_v44 = vstv %s9366_s8 }
 0xbe4   :  { %v7548_v36 = vsel %vm7547_vm8, %v7535_v14, %v7546_v44 }
 0xbe5   :  { %v7551_v39 = vadd.f32 %v7550_v52, %v7548_v36 }
 0xbe7   :  { %v7893_v51 = vmul.f32 -1.442695, %v7551_v39 }
 0xbe9   :  { %9847 = vpow2.f32 %v7893_v51 }
 0xbf3   :  { %v9848_v45 = vpop.eup %9847 }
 0xbf4   :  { %v7555_v2 = vadd.f32 1.0, %v9848_v45 }
 0xbf6   :  { %9849 = vrcp.f32 %v7555_v2 }
 0xc00   :  { %v9850_v20 = vpop.eup %9849 }
 0xc01   :  { %7559 = vst.msk [vmem:[%s14208_s15] sm:$0x3] %vm7558_vm9, %v9850_v20 }

</bundles_post_ra>
